<compile_context>
chip_gen: v6e
topology: v6e:2x2x1
jax: 0.10.0
libtpu: 0.0.40
codegen_flags: <defaults>
</compile_context>

<pallas_src>
import math
from functools import partial

import numpy as np
import jax
import jax.numpy as jnp
from jax import lax
from jax.experimental import pallas as pl
from jax.experimental.pallas import tpu as pltpu

EPS = 1e-5
ACT = jnp.bfloat16                          # MXU dtype for weights / activations
BN_SCALE = 1.0 / math.sqrt(1.0 + EPS)       # gamma / sqrt(running_var + eps) at init
PAD = 1                                     # per-sample layout padding rows (each side)


# ------------------------------ geometry helpers ------------------------------

def _conv_len(l, k, s, p):
    return (l + 2 * p - k) // s + 1


def _stride2_select(tb, l_in, lp_in, p_in, l_out, lp_out, p_out, parity):
    """Block-diagonal 0/1 gather: S[b*lp_out+p_out+o, b*lp_in+p_in+2o+parity] = 1."""
    s = np.zeros((tb * lp_out, tb * lp_in), np.float32)
    for b in range(tb):
        for o in range(l_out):
            src = 2 * o + parity
            if 0 <= src < l_in:
                s[b * lp_out + p_out + o, b * lp_in + p_in + src] = 1.0
    return jnp.asarray(s, dtype=ACT)


def _valid_row_mask(tb, l, lp, p):
    """(tb*lp, 1) f32 mask: 1 on real data rows, 0 on per-sample layout-pad rows."""
    m = np.zeros((tb * lp, 1), np.float32)
    for b in range(tb):
        m[b * lp + p: b * lp + p + l, 0] = 1.0
    return jnp.asarray(m)


def _avgpool_matrix(tb, l, lp, p):
    """(tb, tb*lp) f32: per-sample mean over the l valid rows (global average pool)."""
    m = np.zeros((tb, tb * lp), np.float32)
    for b in range(tb):
        m[b, b * lp + p: b * lp + p + l] = 1.0 / l
    return jnp.asarray(m)


# -------------------------------- parameter init ------------------------------

def _conv_weight(key, c_out, c_in, k):
    # torch nn.init.kaiming_normal_(mode='fan_out', nonlinearity='relu'); bias=False.
    # BN (inference, fresh stats) folded in as a single scale; rounded to bf16 once so
    # the kernel and the pure-JAX reference share identical weight values.
    std = math.sqrt(2.0 / (c_out * k))
    w = jax.random.normal(key, (c_out, c_in, k), jnp.float32) * std
    return (w * BN_SCALE).astype(ACT)       # torch layout (C_out, C_in, K)


def _to_im2col(w):
    # (C_out, C_in, K) -> (K*C_in, C_out); row t*C_in + ci corresponds to tap t.
    c_out, c_in, k = w.shape
    return jnp.transpose(w, (2, 1, 0)).reshape(k * c_in, c_out)


def init_resnet(key, *, tb, length, c_in=12, num_classes=8, layers=(1, 1, 1, 1)):
    """Returns (kernel constant inputs, per-block static config, reference params)."""
    kit = iter(jax.random.split(key, 32))
    consts, ref = [], {}

    # --- stem: Conv1d(12, 64, k=5, s=2, p=2) + BN + ReLU ---
    l0, lp0, p0 = length, length, 0                       # raw input: no layout pad
    l1 = _conv_len(l0, 5, 2, 2)
    lp1 = l1 + 2 * PAD
    w_stem = _conv_weight(next(kit), 64, c_in, 5)
    ref["stem"] = w_stem
    consts += [
        _stride2_select(tb, l0, lp0, p0, l1, lp1, PAD, 0),    # even rows x[2o]
        _stride2_select(tb, l0, lp0, p0, l1, lp1, PAD, 1),    # odd  rows x[2o+1]
        _to_im2col(w_stem),                                   # (5*c_in, 64)
        _valid_row_mask(tb, l1, lp1, PAD),
    ]

    # --- MaxPool1d(k=3, s=2, p=1): stride-1 running max + one centre-row gather ---
    l2 = _conv_len(l1, 3, 2, 1)
    lp2 = l2 + 2 * PAD
    consts.append(_stride2_select(tb, l1, lp1, PAD, l2, lp2, PAD, 0))

    # --- BasicBlocks (planes=128 for every layer group, per the spec) ---
    blocks_cfg, ref_blocks = [], []
    inplanes, cur_l, cur_lp = 64, l2, lp2
    for li, nblocks in enumerate(layers):
        planes = 128
        for bi in range(nblocks):
            stride = 2 if (li > 0 and bi == 0) else 1
            has_ds = stride != 1 or inplanes != planes        # BasicBlock.expansion == 1
            l_out = _conv_len(cur_l, 3, stride, 1)
            lp_out = l_out + 2 * PAD
            w1 = _conv_weight(next(kit), planes, inplanes, 3)
            w2 = _conv_weight(next(kit), planes, planes, 3)
            wd = _conv_weight(next(kit), planes, inplanes, 1) if has_ds else None
            if stride == 2:
                consts += [
                    _stride2_select(tb, cur_l, cur_lp, PAD, l_out, lp_out, PAD, 0),
                    _stride2_select(tb, cur_l, cur_lp, PAD, l_out, lp_out, PAD, 1),
                ]
            w1_mm = _to_im2col(w1)                            # (3*inplanes, planes)
            if has_ds:
                # Fuse the 1x1 downsample (+BN) into conv1 along N: its input is the
                # centre-tap slab, i.e. rows [inplanes, 2*inplanes) of the im2col weight.
                wd_mm = _to_im2col(wd)                        # (inplanes, planes)
                w1f = jnp.zeros((3 * inplanes, 2 * planes), ACT)
                w1f = w1f.at[:, :planes].set(w1_mm)
                w1f = w1f.at[inplanes:2 * inplanes, planes:].set(wd_mm)
                w1_mm = w1f
            consts += [w1_mm, _valid_row_mask(tb, l_out, lp_out, PAD), _to_im2col(w2)]
            blocks_cfg.append(dict(planes=planes, stride=stride, has_ds=has_ds))
            ref_blocks.append(dict(w1=w1, w2=w2, wd=wd, stride=stride))
            inplanes, cur_l, cur_lp = planes, l_out, lp_out
    ref["blocks"] = ref_blocks

    # --- head: global average pool + Linear(128, num_classes), torch default init ---
    consts.append(_avgpool_matrix(tb, cur_l, cur_lp, PAD))
    bound = 1.0 / math.sqrt(128.0)
    kw, kb = jax.random.split(next(kit))
    w_fc = jax.random.uniform(kw, (128, num_classes), jnp.float32, -bound, bound)
    b_fc = jax.random.uniform(kb, (1, num_classes), jnp.float32, -bound, bound)
    consts += [w_fc, b_fc]
    ref["fc_w"], ref["fc_b"] = w_fc, b_fc

    return consts, blocks_cfg, ref


# --------------------------------- the kernel ---------------------------------

def _shift_rows(x, d):
    """result[r, :] = x[r + d, :]; rows shifted in from outside the slab are zero.

    Pure sublane shift/copy work (never the MXU).  The per-sample layout-padding rows
    guarantee that no *valid* output row ever reads another sample's data.
    """
    if d == 0:
        return x
    z = jnp.zeros((abs(d), x.shape[1]), x.dtype)
    if d > 0:
        return jnp.concatenate([x[d:, :], z], axis=0)
    return jnp.concatenate([z, x[:d, :]], axis=0)


def _resnet_kernel(blocks_cfg, *refs):
    x_ref, out_ref = refs[0], refs[-1]
    params = refs[1:-1]
    cur = [0]

    def nxt():
        r = params[cur[0]]
        cur[0] += 1
        return r

    f32 = jnp.float32

    # ---- stem: Conv1d(12,64,k=5,s=2,p=2) + folded BN + ReLU ----
    x = x_ref[...]                                                   # (TB*L, 12) bf16
    se, so = nxt()[...], nxt()[...]
    ev = jnp.dot(se, x, preferred_element_type=f32).astype(ACT)      # x[2o]
    od = jnp.dot(so, x, preferred_element_type=f32).astype(ACT)      # x[2o+1]
    taps = jnp.concatenate(
        [_shift_rows(ev, -1), _shift_rows(od, -1), ev, od, _shift_rows(ev, 1)], axis=1)
    y = jnp.dot(taps, nxt()[...], preferred_element_type=f32)        # (TB*Lp1, 64)
    h = (jnp.maximum(y, 0.0) * nxt()[...]).astype(ACT)               # ReLU + zero pads

    # ---- MaxPool1d(k=3,s=2,p=1).  h >= 0 post-ReLU so zero-fill == -inf padding. ----
    pf = jnp.maximum(jnp.maximum(_shift_rows(h, -1), h), _shift_rows(h, 1))
    h = jnp.dot(nxt()[...], pf, preferred_element_type=f32).astype(ACT)  # (TB*Lp2, 64)

    # ---- BasicBlocks ----
    for blk in blocks_cfg:
        planes, stride, has_ds = blk["planes"], blk["stride"], blk["has_ds"]
        if stride == 2:
            se, so = nxt()[...], nxt()[...]
            ev = jnp.dot(se, h, preferred_element_type=f32).astype(ACT)   # h[2o]
            od = jnp.dot(so, h, preferred_element_type=f32).astype(ACT)   # h[2o+1]
            taps = jnp.concatenate([_shift_rows(od, -1), ev, od], axis=1)
        else:
            taps = jnp.concatenate([_shift_rows(h, -1), h, _shift_rows(h, 1)], axis=1)
        y = jnp.dot(taps, nxt()[...], preferred_element_type=f32)
        if has_ds:
            # conv1(+bn1) and the 1x1 downsample(+bn) were fused along N at init:
            # columns [:planes] are conv1, [planes:] are the downsample identity.
            main, identity = y[:, :planes], y[:, planes:]
        else:
            main, identity = y, h.astype(f32)
        main = (jnp.maximum(main, 0.0) * nxt()[...]).astype(ACT)     # ReLU + zero pads
        taps = jnp.concatenate(
            [_shift_rows(main, -1), main, _shift_rows(main, 1)], axis=1)
        y2 = jnp.dot(taps, nxt()[...], preferred_element_type=f32)
        h = jnp.maximum(y2 + identity, 0.0).astype(ACT)

    # ---- head: global average pool over length + Linear ----
    pooled = jnp.dot(nxt()[...], h.astype(f32), preferred_element_type=f32)  # (TB, 128)
    logits = jnp.dot(pooled, nxt()[...], preferred_element_type=f32) + nxt()[...]
    out_ref[...] = logits.astype(out_ref.dtype)                      # (TB, num_classes)


# ------------------------------- pallas wrapper --------------------------------

def make_resnet_forward(consts, blocks_cfg, *, batch, tb, length, c_in, num_classes):
    assert batch % tb == 0, "batch must be a multiple of the sample tile TB"
    grid = (batch // tb,)        # >= 2 steps keeps both v7x TensorCores busy

    in_specs = [pl.BlockSpec((tb * length, c_in), lambda b: (b, 0))]
    for a in consts:
        in_specs.append(pl.BlockSpec(a.shape, lambda b, _n=a.ndim: (0,) * _n))

    fused = pl.pallas_call(
        partial(_resnet_kernel, blocks_cfg),
        out_shape=jax.ShapeDtypeStruct((batch, num_classes), jnp.float32),
        grid=grid,
        in_specs=in_specs,
        out_specs=pl.BlockSpec((tb, num_classes), lambda b: (b, 0)),
        compiler_params=pltpu.CompilerParams(
            dimension_semantics=("parallel",),
        ),
    )

    @jax.jit
    def forward(x_ncl):
        # torch NCL -> channels-last, samples stacked along the sublane/M axis.
        x = jnp.transpose(x_ncl, (0, 2, 1)).reshape(batch * length, c_in).astype(ACT)
        return fused(x, *consts)

    return forward


# -------------------------- pure-JAX f32 reference -----------------------------

def resnet_reference(ref, x_ncl):
    """Straightforward f32 reference using the same (BN-folded, bf16-rounded) weights."""
    f32 = jnp.float32

    def conv1d(x, w, stride, padding):
        return lax.conv_general_dilated(
            x, w.astype(f32), (stride,), [(padding, padding)],
            dimension_numbers=("NCH", "OIH", "NCH"))

    x = x_ncl.astype(ACT).astype(f32)           # match the kernel's bf16 input rounding
    h = jax.nn.relu(conv1d(x, ref["stem"], 2, 2))
    h = lax.reduce_window(h, -jnp.inf, lax.max, (1, 1, 3), (1, 1, 2),
                          [(0, 0), (0, 0), (1, 1)])
    for blk in ref["blocks"]:
        identity = h if blk["wd"] is None else conv1d(h, blk["wd"], blk["stride"], 0)
        y = jax.nn.relu(conv1d(h, blk["w1"], blk["stride"], 1))
        y = conv1d(y, blk["w2"], 1, 1)
        h = jax.nn.relu(y + identity)
    pooled = jnp.mean(h, axis=2)                # (B, 128)
    return pooled @ ref["fc_w"] + ref["fc_b"]


# ------------------------------------ main --------------------------------------

if __name__ == "__main__":
    key = jax.random.PRNGKey(0)
    kp, kx = jax.random.split(key)

    B, TB, C_IN, L, NUM_CLASSES = 16, 8, 12, 64, 8

    consts, blocks_cfg, ref = init_resnet(
        kp, tb=TB, length=L, c_in=C_IN, num_classes=NUM_CLASSES, layers=(1, 1, 1, 1))

    x_ncl = jax.random.normal(kx, (B, C_IN, L), dtype=jnp.float32)   # torch NCL input

    forward = make_resnet_forward(consts, blocks_cfg, batch=B, tb=TB, length=L,
                                  c_in=C_IN, num_classes=NUM_CLASSES)
    out = jax.block_until_ready(forward(x_ncl))

    assert out.shape == (B, NUM_CLASSES) and out.dtype == jnp.float32
    assert bool(jnp.all(jnp.isfinite(out)))

    # Tolerance-check against the pure-JAX f32 reference (kernel uses bf16 activations,
    # so allow a few percent; a layout/semantics bug would be O(full scale)).
    ref_out = jax.block_until_ready(jax.jit(partial(resnet_reference, ref))(x_ncl))
    err = float(jnp.max(jnp.abs(out - ref_out)))
    scale = float(jnp.max(jnp.abs(ref_out))) + 1e-6
    assert err <= 0.1 * scale + 0.05, f"kernel vs reference mismatch: {err} (scale {scale})"

    print("KERNEL_OK")
</pallas_src>

<mosaic_0001>
module attributes {stable_mosaic.version = 11 : i64} {
  func.func @_resnet_kernel(%arg0: i32, %arg1: memref<512x12xbf16, #tpu.memory_space<vmem>>, %arg2: memref<272x512xbf16, #tpu.memory_space<vmem>>, %arg3: memref<272x512xbf16, #tpu.memory_space<vmem>>, %arg4: memref<60x64xbf16, #tpu.memory_space<vmem>>, %arg5: memref<272x1xf32, #tpu.memory_space<vmem>>, %arg6: memref<144x272xbf16, #tpu.memory_space<vmem>>, %arg7: memref<192x256xbf16, #tpu.memory_space<vmem>>, %arg8: memref<144x1xf32, #tpu.memory_space<vmem>>, %arg9: memref<384x128xbf16, #tpu.memory_space<vmem>>, %arg10: memref<80x144xbf16, #tpu.memory_space<vmem>>, %arg11: memref<80x144xbf16, #tpu.memory_space<vmem>>, %arg12: memref<384x256xbf16, #tpu.memory_space<vmem>>, %arg13: memref<80x1xf32, #tpu.memory_space<vmem>>, %arg14: memref<384x128xbf16, #tpu.memory_space<vmem>>, %arg15: memref<48x80xbf16, #tpu.memory_space<vmem>>, %arg16: memref<48x80xbf16, #tpu.memory_space<vmem>>, %arg17: memref<384x256xbf16, #tpu.memory_space<vmem>>, %arg18: memref<48x1xf32, #tpu.memory_space<vmem>>, %arg19: memref<384x128xbf16, #tpu.memory_space<vmem>>, %arg20: memref<32x48xbf16, #tpu.memory_space<vmem>>, %arg21: memref<32x48xbf16, #tpu.memory_space<vmem>>, %arg22: memref<384x256xbf16, #tpu.memory_space<vmem>>, %arg23: memref<32x1xf32, #tpu.memory_space<vmem>>, %arg24: memref<384x128xbf16, #tpu.memory_space<vmem>>, %arg25: memref<8x32xf32, #tpu.memory_space<vmem>>, %arg26: memref<128x8xf32, #tpu.memory_space<vmem>>, %arg27: memref<1x8xf32, #tpu.memory_space<vmem>>, %arg28: memref<8x8xf32, #tpu.memory_space<vmem>>) attributes {dimension_semantics = [#tpu.dimension_semantics<parallel>], iteration_bounds = array<i64: 2>, scalar_prefetch = 0 : i64, scratch_operands = 0 : i64, tpu.core_type = #tpu.core_type<tc>, window_params = [{transform_indices = @transform_0, window_bounds = array<i64: 512, 12>}, {pipeline_mode = #tpu.pipeline_mode<synchronous>, transform_indices = @transform_1, window_bounds = array<i64: 272, 512>}, {pipeline_mode = #tpu.pipeline_mode<synchronous>, transform_indices = @transform_2, window_bounds = array<i64: 272, 512>}, {pipeline_mode = #tpu.pipeline_mode<synchronous>, transform_indices = @transform_3, window_bounds = array<i64: 60, 64>}, {pipeline_mode = #tpu.pipeline_mode<synchronous>, transform_indices = @transform_4, window_bounds = array<i64: 272, 1>}, {pipeline_mode = #tpu.pipeline_mode<synchronous>, transform_indices = @transform_5, window_bounds = array<i64: 144, 272>}, {pipeline_mode = #tpu.pipeline_mode<synchronous>, transform_indices = @transform_6, window_bounds = array<i64: 192, 256>}, {pipeline_mode = #tpu.pipeline_mode<synchronous>, transform_indices = @transform_7, window_bounds = array<i64: 144, 1>}, {pipeline_mode = #tpu.pipeline_mode<synchronous>, transform_indices = @transform_8, window_bounds = array<i64: 384, 128>}, {pipeline_mode = #tpu.pipeline_mode<synchronous>, transform_indices = @transform_9, window_bounds = array<i64: 80, 144>}, {pipeline_mode = #tpu.pipeline_mode<synchronous>, transform_indices = @transform_10, window_bounds = array<i64: 80, 144>}, {pipeline_mode = #tpu.pipeline_mode<synchronous>, transform_indices = @transform_11, window_bounds = array<i64: 384, 256>}, {pipeline_mode = #tpu.pipeline_mode<synchronous>, transform_indices = @transform_12, window_bounds = array<i64: 80, 1>}, {pipeline_mode = #tpu.pipeline_mode<synchronous>, transform_indices = @transform_13, window_bounds = array<i64: 384, 128>}, {pipeline_mode = #tpu.pipeline_mode<synchronous>, transform_indices = @transform_14, window_bounds = array<i64: 48, 80>}, {pipeline_mode = #tpu.pipeline_mode<synchronous>, transform_indices = @transform_15, window_bounds = array<i64: 48, 80>}, {pipeline_mode = #tpu.pipeline_mode<synchronous>, transform_indices = @transform_16, window_bounds = array<i64: 384, 256>}, {pipeline_mode = #tpu.pipeline_mode<synchronous>, transform_indices = @transform_17, window_bounds = array<i64: 48, 1>}, {pipeline_mode = #tpu.pipeline_mode<synchronous>, transform_indices = @transform_18, window_bounds = array<i64: 384, 128>}, {pipeline_mode = #tpu.pipeline_mode<synchronous>, transform_indices = @transform_19, window_bounds = array<i64: 32, 48>}, {pipeline_mode = #tpu.pipeline_mode<synchronous>, transform_indices = @transform_20, window_bounds = array<i64: 32, 48>}, {pipeline_mode = #tpu.pipeline_mode<synchronous>, transform_indices = @transform_21, window_bounds = array<i64: 384, 256>}, {pipeline_mode = #tpu.pipeline_mode<synchronous>, transform_indices = @transform_22, window_bounds = array<i64: 32, 1>}, {pipeline_mode = #tpu.pipeline_mode<synchronous>, transform_indices = @transform_23, window_bounds = array<i64: 384, 128>}, {pipeline_mode = #tpu.pipeline_mode<synchronous>, transform_indices = @transform_24, window_bounds = array<i64: 8, 32>}, {pipeline_mode = #tpu.pipeline_mode<synchronous>, transform_indices = @transform_25, window_bounds = array<i64: 128, 8>}, {pipeline_mode = #tpu.pipeline_mode<synchronous>, transform_indices = @transform_26, window_bounds = array<i64: 1, 8>}, {transform_indices = @transform_27, window_bounds = array<i64: 8, 8>}]} {
    %c0 = arith.constant 0 : index
    %c0_0 = arith.constant 0 : index
    %0 = vector.load %arg1[%c0, %c0_0] : memref<512x12xbf16, #tpu.memory_space<vmem>>, vector<512x12xbf16>
    %c0_1 = arith.constant 0 : index
    %c0_2 = arith.constant 0 : index
    %1 = vector.load %arg2[%c0_1, %c0_2] : memref<272x512xbf16, #tpu.memory_space<vmem>>, vector<272x512xbf16>
    %c0_3 = arith.constant 0 : index
    %c0_4 = arith.constant 0 : index
    %2 = vector.load %arg3[%c0_3, %c0_4] : memref<272x512xbf16, #tpu.memory_space<vmem>>, vector<272x512xbf16>
    %cst = arith.constant dense<0.000000e+00> : vector<272x12xf32>
    %3 = tpu.matmul %1, %0, %cst {dimension_numbers = #tpu.dot_dimension_numbers<[1], [0], [0], [1], [0, 0, 1, 1], [], []>} : vector<272x512xbf16>, vector<512x12xbf16>, vector<272x12xf32> -> vector<272x12xf32>
    %4 = arith.truncf %3 : vector<272x12xf32> to vector<272x12xbf16>
    %cst_5 = arith.constant dense<0.000000e+00> : vector<272x12xf32>
    %5 = tpu.matmul %2, %0, %cst_5 {dimension_numbers = #tpu.dot_dimension_numbers<[1], [0], [0], [1], [0, 0, 1, 1], [], []>} : vector<272x512xbf16>, vector<512x12xbf16>, vector<272x12xf32> -> vector<272x12xf32>
    %6 = arith.truncf %5 : vector<272x12xf32> to vector<272x12xbf16>
    %cst_6 = arith.constant 0.000000e+00 : bf16
    %7 = vector.broadcast %cst_6 : bf16 to vector<1x12xbf16>
    %8 = vector.extract_strided_slice %4 {offsets = [0, 0], sizes = [271, 12], strides = [1, 1]} : vector<272x12xbf16> to vector<271x12xbf16>
    %9 = tpu.concatenate %7, %8 in 0 : vector<1x12xbf16>, vector<271x12xbf16> -> vector<272x12xbf16>
    %cst_7 = arith.constant 0.000000e+00 : bf16
    %10 = vector.broadcast %cst_7 : bf16 to vector<1x12xbf16>
    %11 = vector.extract_strided_slice %6 {offsets = [0, 0], sizes = [271, 12], strides = [1, 1]} : vector<272x12xbf16> to vector<271x12xbf16>
    %12 = tpu.concatenate %10, %11 in 0 : vector<1x12xbf16>, vector<271x12xbf16> -> vector<272x12xbf16>
    %cst_8 = arith.constant 0.000000e+00 : bf16
    %13 = vector.broadcast %cst_8 : bf16 to vector<1x12xbf16>
    %14 = vector.extract_strided_slice %4 {offsets = [1, 0], sizes = [271, 12], strides = [1, 1]} : vector<272x12xbf16> to vector<271x12xbf16>
    %15 = tpu.concatenate %14, %13 in 0 : vector<271x12xbf16>, vector<1x12xbf16> -> vector<272x12xbf16>
    %16 = tpu.concatenate %9, %12, %4, %6, %15 in 1 : vector<272x12xbf16>, vector<272x12xbf16>, vector<272x12xbf16>, vector<272x12xbf16>, vector<272x12xbf16> -> vector<272x60xbf16>
    %c0_9 = arith.constant 0 : index
    %c0_10 = arith.constant 0 : index
    %17 = vector.load %arg4[%c0_9, %c0_10] : memref<60x64xbf16, #tpu.memory_space<vmem>>, vector<60x64xbf16>
    %cst_11 = arith.constant dense<0.000000e+00> : vector<272x64xf32>
    %18 = tpu.matmul %16, %17, %cst_11 {dimension_numbers = #tpu.dot_dimension_numbers<[1], [0], [0], [1], [0, 0, 1, 1], [], []>} : vector<272x60xbf16>, vector<60x64xbf16>, vector<272x64xf32> -> vector<272x64xf32>
    %cst_12 = arith.constant 0.000000e+00 : f32
    %19 = vector.broadcast %cst_12 : f32 to vector<272x64xf32>
    %20 = arith.maximumf %18, %19 : vector<272x64xf32>
    %c0_13 = arith.constant 0 : index
    %c0_14 = arith.constant 0 : index
    %21 = vector.load %arg5[%c0_13, %c0_14] : memref<272x1xf32, #tpu.memory_space<vmem>>, vector<272x1xf32>
    %22 = vector.broadcast %21 : vector<272x1xf32> to vector<272x64xf32>
    %23 = arith.mulf %20, %22 : vector<272x64xf32>
    %24 = arith.truncf %23 : vector<272x64xf32> to vector<272x64xbf16>
    %cst_15 = arith.constant 0.000000e+00 : bf16
    %25 = vector.broadcast %cst_15 : bf16 to vector<1x64xbf16>
    %26 = vector.extract_strided_slice %24 {offsets = [0, 0], sizes = [271, 64], strides = [1, 1]} : vector<272x64xbf16> to vector<271x64xbf16>
    %27 = tpu.concatenate %25, %26 in 0 : vector<1x64xbf16>, vector<271x64xbf16> -> vector<272x64xbf16>
    %28 = arith.maximumf %27, %24 : vector<272x64xbf16>
    %cst_16 = arith.constant 0.000000e+00 : bf16
    %29 = vector.broadcast %cst_16 : bf16 to vector<1x64xbf16>
    %30 = vector.extract_strided_slice %24 {offsets = [1, 0], sizes = [271, 64], strides = [1, 1]} : vector<272x64xbf16> to vector<271x64xbf16>
    %31 = tpu.concatenate %30, %29 in 0 : vector<271x64xbf16>, vector<1x64xbf16> -> vector<272x64xbf16>
    %32 = arith.maximumf %28, %31 : vector<272x64xbf16>
    %c0_17 = arith.constant 0 : index
    %c0_18 = arith.constant 0 : index
    %33 = vector.load %arg6[%c0_17, %c0_18] : memref<144x272xbf16, #tpu.memory_space<vmem>>, vector<144x272xbf16>
    %cst_19 = arith.constant dense<0.000000e+00> : vector<144x64xf32>
    %34 = tpu.matmul %33, %32, %cst_19 {dimension_numbers = #tpu.dot_dimension_numbers<[1], [0], [0], [1], [0, 0, 1, 1], [], []>} : vector<144x272xbf16>, vector<272x64xbf16>, vector<144x64xf32> -> vector<144x64xf32>
    %35 = arith.truncf %34 : vector<144x64xf32> to vector<144x64xbf16>
    %cst_20 = arith.constant 0.000000e+00 : bf16
    %36 = vector.broadcast %cst_20 : bf16 to vector<1x64xbf16>
    %37 = vector.extract_strided_slice %35 {offsets = [0, 0], sizes = [143, 64], strides = [1, 1]} : vector<144x64xbf16> to vector<143x64xbf16>
    %38 = tpu.concatenate %36, %37 in 0 : vector<1x64xbf16>, vector<143x64xbf16> -> vector<144x64xbf16>
    %cst_21 = arith.constant 0.000000e+00 : bf16
    %39 = vector.broadcast %cst_21 : bf16 to vector<1x64xbf16>
    %40 = vector.extract_strided_slice %35 {offsets = [1, 0], sizes = [143, 64], strides = [1, 1]} : vector<144x64xbf16> to vector<143x64xbf16>
    %41 = tpu.concatenate %40, %39 in 0 : vector<143x64xbf16>, vector<1x64xbf16> -> vector<144x64xbf16>
    %42 = tpu.concatenate %38, %35, %41 in 1 : vector<144x64xbf16>, vector<144x64xbf16>, vector<144x64xbf16> -> vector<144x192xbf16>
    %c0_22 = arith.constant 0 : index
    %c0_23 = arith.constant 0 : index
    %43 = vector.load %arg7[%c0_22, %c0_23] : memref<192x256xbf16, #tpu.memory_space<vmem>>, vector<192x256xbf16>
    %cst_24 = arith.constant dense<0.000000e+00> : vector<144x256xf32>
    %44 = tpu.matmul %42, %43, %cst_24 {dimension_numbers = #tpu.dot_dimension_numbers<[1], [0], [0], [1], [0, 0, 1, 1], [], []>} : vector<144x192xbf16>, vector<192x256xbf16>, vector<144x256xf32> -> vector<144x256xf32>
    %45 = vector.extract_strided_slice %44 {offsets = [0, 0], sizes = [144, 128], strides = [1, 1]} : vector<144x256xf32> to vector<144x128xf32>
    %46 = vector.extract_strided_slice %44 {offsets = [0, 128], sizes = [144, 128], strides = [1, 1]} : vector<144x256xf32> to vector<144x128xf32>
    %cst_25 = arith.constant 0.000000e+00 : f32
    %47 = vector.broadcast %cst_25 : f32 to vector<144x128xf32>
    %48 = arith.maximumf %45, %47 : vector<144x128xf32>
    %c0_26 = arith.constant 0 : index
    %c0_27 = arith.constant 0 : index
    %49 = vector.load %arg8[%c0_26, %c0_27] : memref<144x1xf32, #tpu.memory_space<vmem>>, vector<144x1xf32>
    %50 = vector.broadcast %49 : vector<144x1xf32> to vector<144x128xf32>
    %51 = arith.mulf %48, %50 : vector<144x128xf32>
    %52 = arith.truncf %51 : vector<144x128xf32> to vector<144x128xbf16>
    %cst_28 = arith.constant 0.000000e+00 : bf16
    %53 = vector.broadcast %cst_28 : bf16 to vector<1x128xbf16>
    %54 = vector.extract_strided_slice %52 {offsets = [0, 0], sizes = [143, 128], strides = [1, 1]} : vector<144x128xbf16> to vector<143x128xbf16>
    %55 = tpu.concatenate %53, %54 in 0 : vector<1x128xbf16>, vector<143x128xbf16> -> vector<144x128xbf16>
    %cst_29 = arith.constant 0.000000e+00 : bf16
    %56 = vector.broadcast %cst_29 : bf16 to vector<1x128xbf16>
    %57 = vector.extract_strided_slice %52 {offsets = [1, 0], sizes = [143, 128], strides = [1, 1]} : vector<144x128xbf16> to vector<143x128xbf16>
    %58 = tpu.concatenate %57, %56 in 0 : vector<143x128xbf16>, vector<1x128xbf16> -> vector<144x128xbf16>
    %59 = tpu.concatenate %55, %52, %58 in 1 : vector<144x128xbf16>, vector<144x128xbf16>, vector<144x128xbf16> -> vector<144x384xbf16>
    %c0_30 = arith.constant 0 : index
    %c0_31 = arith.constant 0 : index
    %60 = vector.load %arg9[%c0_30, %c0_31] : memref<384x128xbf16, #tpu.memory_space<vmem>>, vector<384x128xbf16>
    %cst_32 = arith.constant dense<0.000000e+00> : vector<144x128xf32>
    %61 = tpu.matmul %59, %60, %cst_32 {dimension_numbers = #tpu.dot_dimension_numbers<[1], [0], [0], [1], [0, 0, 1, 1], [], []>} : vector<144x384xbf16>, vector<384x128xbf16>, vector<144x128xf32> -> vector<144x128xf32>
    %62 = arith.addf %61, %46 : vector<144x128xf32>
    %cst_33 = arith.constant 0.000000e+00 : f32
    %63 = vector.broadcast %cst_33 : f32 to vector<144x128xf32>
    %64 = arith.maximumf %62, %63 : vector<144x128xf32>
    %65 = arith.truncf %64 : vector<144x128xf32> to vector<144x128xbf16>
    %c0_34 = arith.constant 0 : index
    %c0_35 = arith.constant 0 : index
    %66 = vector.load %arg10[%c0_34, %c0_35] : memref<80x144xbf16, #tpu.memory_space<vmem>>, vector<80x144xbf16>
    %c0_36 = arith.constant 0 : index
    %c0_37 = arith.constant 0 : index
    %67 = vector.load %arg11[%c0_36, %c0_37] : memref<80x144xbf16, #tpu.memory_space<vmem>>, vector<80x144xbf16>
    %cst_38 = arith.constant dense<0.000000e+00> : vector<80x128xf32>
    %68 = tpu.matmul %66, %65, %cst_38 {dimension_numbers = #tpu.dot_dimension_numbers<[1], [0], [0], [1], [0, 0, 1, 1], [], []>} : vector<80x144xbf16>, vector<144x128xbf16>, vector<80x128xf32> -> vector<80x128xf32>
    %69 = arith.truncf %68 : vector<80x128xf32> to vector<80x128xbf16>
    %cst_39 = arith.constant dense<0.000000e+00> : vector<80x128xf32>
    %70 = tpu.matmul %67, %65, %cst_39 {dimension_numbers = #tpu.dot_dimension_numbers<[1], [0], [0], [1], [0, 0, 1, 1], [], []>} : vector<80x144xbf16>, vector<144x128xbf16>, vector<80x128xf32> -> vector<80x128xf32>
    %71 = arith.truncf %70 : vector<80x128xf32> to vector<80x128xbf16>
    %cst_40 = arith.constant 0.000000e+00 : bf16
    %72 = vector.broadcast %cst_40 : bf16 to vector<1x128xbf16>
    %73 = vector.extract_strided_slice %71 {offsets = [0, 0], sizes = [79, 128], strides = [1, 1]} : vector<80x128xbf16> to vector<79x128xbf16>
    %74 = tpu.concatenate %72, %73 in 0 : vector<1x128xbf16>, vector<79x128xbf16> -> vector<80x128xbf16>
    %75 = tpu.concatenate %74, %69, %71 in 1 : vector<80x128xbf16>, vector<80x128xbf16>, vector<80x128xbf16> -> vector<80x384xbf16>
    %c0_41 = arith.constant 0 : index
    %c0_42 = arith.constant 0 : index
    %76 = vector.load %arg12[%c0_41, %c0_42] : memref<384x256xbf16, #tpu.memory_space<vmem>>, vector<384x256xbf16>
    %cst_43 = arith.constant dense<0.000000e+00> : vector<80x256xf32>
    %77 = tpu.matmul %75, %76, %cst_43 {dimension_numbers = #tpu.dot_dimension_numbers<[1], [0], [0], [1], [0, 0, 1, 1], [], []>} : vector<80x384xbf16>, vector<384x256xbf16>, vector<80x256xf32> -> vector<80x256xf32>
    %78 = vector.extract_strided_slice %77 {offsets = [0, 0], sizes = [80, 128], strides = [1, 1]} : vector<80x256xf32> to vector<80x128xf32>
    %79 = vector.extract_strided_slice %77 {offsets = [0, 128], sizes = [80, 128], strides = [1, 1]} : vector<80x256xf32> to vector<80x128xf32>
    %cst_44 = arith.constant 0.000000e+00 : f32
    %80 = vector.broadcast %cst_44 : f32 to vector<80x128xf32>
    %81 = arith.maximumf %78, %80 : vector<80x128xf32>
    %c0_45 = arith.constant 0 : index
    %c0_46 = arith.constant 0 : index
    %82 = vector.load %arg13[%c0_45, %c0_46] : memref<80x1xf32, #tpu.memory_space<vmem>>, vector<80x1xf32>
    %83 = vector.broadcast %82 : vector<80x1xf32> to vector<80x128xf32>
    %84 = arith.mulf %81, %83 : vector<80x128xf32>
    %85 = arith.truncf %84 : vector<80x128xf32> to vector<80x128xbf16>
    %cst_47 = arith.constant 0.000000e+00 : bf16
    %86 = vector.broadcast %cst_47 : bf16 to vector<1x128xbf16>
    %87 = vector.extract_strided_slice %85 {offsets = [0, 0], sizes = [79, 128], strides = [1, 1]} : vector<80x128xbf16> to vector<79x128xbf16>
    %88 = tpu.concatenate %86, %87 in 0 : vector<1x128xbf16>, vector<79x128xbf16> -> vector<80x128xbf16>
    %cst_48 = arith.constant 0.000000e+00 : bf16
    %89 = vector.broadcast %cst_48 : bf16 to vector<1x128xbf16>
    %90 = vector.extract_strided_slice %85 {offsets = [1, 0], sizes = [79, 128], strides = [1, 1]} : vector<80x128xbf16> to vector<79x128xbf16>
    %91 = tpu.concatenate %90, %89 in 0 : vector<79x128xbf16>, vector<1x128xbf16> -> vector<80x128xbf16>
    %92 = tpu.concatenate %88, %85, %91 in 1 : vector<80x128xbf16>, vector<80x128xbf16>, vector<80x128xbf16> -> vector<80x384xbf16>
    %c0_49 = arith.constant 0 : index
    %c0_50 = arith.constant 0 : index
    %93 = vector.load %arg14[%c0_49, %c0_50] : memref<384x128xbf16, #tpu.memory_space<vmem>>, vector<384x128xbf16>
    %cst_51 = arith.constant dense<0.000000e+00> : vector<80x128xf32>
    %94 = tpu.matmul %92, %93, %cst_51 {dimension_numbers = #tpu.dot_dimension_numbers<[1], [0], [0], [1], [0, 0, 1, 1], [], []>} : vector<80x384xbf16>, vector<384x128xbf16>, vector<80x128xf32> -> vector<80x128xf32>
    %95 = arith.addf %94, %79 : vector<80x128xf32>
    %cst_52 = arith.constant 0.000000e+00 : f32
    %96 = vector.broadcast %cst_52 : f32 to vector<80x128xf32>
    %97 = arith.maximumf %95, %96 : vector<80x128xf32>
    %98 = arith.truncf %97 : vector<80x128xf32> to vector<80x128xbf16>
    %c0_53 = arith.constant 0 : index
    %c0_54 = arith.constant 0 : index
    %99 = vector.load %arg15[%c0_53, %c0_54] : memref<48x80xbf16, #tpu.memory_space<vmem>>, vector<48x80xbf16>
    %c0_55 = arith.constant 0 : index
    %c0_56 = arith.constant 0 : index
    %100 = vector.load %arg16[%c0_55, %c0_56] : memref<48x80xbf16, #tpu.memory_space<vmem>>, vector<48x80xbf16>
    %cst_57 = arith.constant dense<0.000000e+00> : vector<48x128xf32>
    %101 = tpu.matmul %99, %98, %cst_57 {dimension_numbers = #tpu.dot_dimension_numbers<[1], [0], [0], [1], [0, 0, 1, 1], [], []>} : vector<48x80xbf16>, vector<80x128xbf16>, vector<48x128xf32> -> vector<48x128xf32>
    %102 = arith.truncf %101 : vector<48x128xf32> to vector<48x128xbf16>
    %cst_58 = arith.constant dense<0.000000e+00> : vector<48x128xf32>
    %103 = tpu.matmul %100, %98, %cst_58 {dimension_numbers = #tpu.dot_dimension_numbers<[1], [0], [0], [1], [0, 0, 1, 1], [], []>} : vector<48x80xbf16>, vector<80x128xbf16>, vector<48x128xf32> -> vector<48x128xf32>
    %104 = arith.truncf %103 : vector<48x128xf32> to vector<48x128xbf16>
    %cst_59 = arith.constant 0.000000e+00 : bf16
    %105 = vector.broadcast %cst_59 : bf16 to vector<1x128xbf16>
    %106 = vector.extract_strided_slice %104 {offsets = [0, 0], sizes = [47, 128], strides = [1, 1]} : vector<48x128xbf16> to vector<47x128xbf16>
    %107 = tpu.concatenate %105, %106 in 0 : vector<1x128xbf16>, vector<47x128xbf16> -> vector<48x128xbf16>
    %108 = tpu.concatenate %107, %102, %104 in 1 : vector<48x128xbf16>, vector<48x128xbf16>, vector<48x128xbf16> -> vector<48x384xbf16>
    %c0_60 = arith.constant 0 : index
    %c0_61 = arith.constant 0 : index
    %109 = vector.load %arg17[%c0_60, %c0_61] : memref<384x256xbf16, #tpu.memory_space<vmem>>, vector<384x256xbf16>
    %cst_62 = arith.constant dense<0.000000e+00> : vector<48x256xf32>
    %110 = tpu.matmul %108, %109, %cst_62 {dimension_numbers = #tpu.dot_dimension_numbers<[1], [0], [0], [1], [0, 0, 1, 1], [], []>} : vector<48x384xbf16>, vector<384x256xbf16>, vector<48x256xf32> -> vector<48x256xf32>
    %111 = vector.extract_strided_slice %110 {offsets = [0, 0], sizes = [48, 128], strides = [1, 1]} : vector<48x256xf32> to vector<48x128xf32>
    %112 = vector.extract_strided_slice %110 {offsets = [0, 128], sizes = [48, 128], strides = [1, 1]} : vector<48x256xf32> to vector<48x128xf32>
    %cst_63 = arith.constant 0.000000e+00 : f32
    %113 = vector.broadcast %cst_63 : f32 to vector<48x128xf32>
    %114 = arith.maximumf %111, %113 : vector<48x128xf32>
    %c0_64 = arith.constant 0 : index
    %c0_65 = arith.constant 0 : index
    %115 = vector.load %arg18[%c0_64, %c0_65] : memref<48x1xf32, #tpu.memory_space<vmem>>, vector<48x1xf32>
    %116 = vector.broadcast %115 : vector<48x1xf32> to vector<48x128xf32>
    %117 = arith.mulf %114, %116 : vector<48x128xf32>
    %118 = arith.truncf %117 : vector<48x128xf32> to vector<48x128xbf16>
    %cst_66 = arith.constant 0.000000e+00 : bf16
    %119 = vector.broadcast %cst_66 : bf16 to vector<1x128xbf16>
    %120 = vector.extract_strided_slice %118 {offsets = [0, 0], sizes = [47, 128], strides = [1, 1]} : vector<48x128xbf16> to vector<47x128xbf16>
    %121 = tpu.concatenate %119, %120 in 0 : vector<1x128xbf16>, vector<47x128xbf16> -> vector<48x128xbf16>
    %cst_67 = arith.constant 0.000000e+00 : bf16
    %122 = vector.broadcast %cst_67 : bf16 to vector<1x128xbf16>
    %123 = vector.extract_strided_slice %118 {offsets = [1, 0], sizes = [47, 128], strides = [1, 1]} : vector<48x128xbf16> to vector<47x128xbf16>
    %124 = tpu.concatenate %123, %122 in 0 : vector<47x128xbf16>, vector<1x128xbf16> -> vector<48x128xbf16>
    %125 = tpu.concatenate %121, %118, %124 in 1 : vector<48x128xbf16>, vector<48x128xbf16>, vector<48x128xbf16> -> vector<48x384xbf16>
    %c0_68 = arith.constant 0 : index
    %c0_69 = arith.constant 0 : index
    %126 = vector.load %arg19[%c0_68, %c0_69] : memref<384x128xbf16, #tpu.memory_space<vmem>>, vector<384x128xbf16>
    %cst_70 = arith.constant dense<0.000000e+00> : vector<48x128xf32>
    %127 = tpu.matmul %125, %126, %cst_70 {dimension_numbers = #tpu.dot_dimension_numbers<[1], [0], [0], [1], [0, 0, 1, 1], [], []>} : vector<48x384xbf16>, vector<384x128xbf16>, vector<48x128xf32> -> vector<48x128xf32>
    %128 = arith.addf %127, %112 : vector<48x128xf32>
    %cst_71 = arith.constant 0.000000e+00 : f32
    %129 = vector.broadcast %cst_71 : f32 to vector<48x128xf32>
    %130 = arith.maximumf %128, %129 : vector<48x128xf32>
    %131 = arith.truncf %130 : vector<48x128xf32> to vector<48x128xbf16>
    %c0_72 = arith.constant 0 : index
    %c0_73 = arith.constant 0 : index
    %132 = vector.load %arg20[%c0_72, %c0_73] : memref<32x48xbf16, #tpu.memory_space<vmem>>, vector<32x48xbf16>
    %c0_74 = arith.constant 0 : index
    %c0_75 = arith.constant 0 : index
    %133 = vector.load %arg21[%c0_74, %c0_75] : memref<32x48xbf16, #tpu.memory_space<vmem>>, vector<32x48xbf16>
    %cst_76 = arith.constant dense<0.000000e+00> : vector<32x128xf32>
    %134 = tpu.matmul %132, %131, %cst_76 {dimension_numbers = #tpu.dot_dimension_numbers<[1], [0], [0], [1], [0, 0, 1, 1], [], []>} : vector<32x48xbf16>, vector<48x128xbf16>, vector<32x128xf32> -> vector<32x128xf32>
    %135 = arith.truncf %134 : vector<32x128xf32> to vector<32x128xbf16>
    %cst_77 = arith.constant dense<0.000000e+00> : vector<32x128xf32>
    %136 = tpu.matmul %133, %131, %cst_77 {dimension_numbers = #tpu.dot_dimension_numbers<[1], [0], [0], [1], [0, 0, 1, 1], [], []>} : vector<32x48xbf16>, vector<48x128xbf16>, vector<32x128xf32> -> vector<32x128xf32>
    %137 = arith.truncf %136 : vector<32x128xf32> to vector<32x128xbf16>
    %cst_78 = arith.constant 0.000000e+00 : bf16
    %138 = vector.broadcast %cst_78 : bf16 to vector<1x128xbf16>
    %139 = vector.extract_strided_slice %137 {offsets = [0, 0], sizes = [31, 128], strides = [1, 1]} : vector<32x128xbf16> to vector<31x128xbf16>
    %140 = tpu.concatenate %138, %139 in 0 : vector<1x128xbf16>, vector<31x128xbf16> -> vector<32x128xbf16>
    %141 = tpu.concatenate %140, %135, %137 in 1 : vector<32x128xbf16>, vector<32x128xbf16>, vector<32x128xbf16> -> vector<32x384xbf16>
    %c0_79 = arith.constant 0 : index
    %c0_80 = arith.constant 0 : index
    %142 = vector.load %arg22[%c0_79, %c0_80] : memref<384x256xbf16, #tpu.memory_space<vmem>>, vector<384x256xbf16>
    %cst_81 = arith.constant dense<0.000000e+00> : vector<32x256xf32>
    %143 = tpu.matmul %141, %142, %cst_81 {dimension_numbers = #tpu.dot_dimension_numbers<[1], [0], [0], [1], [0, 0, 1, 1], [], []>} : vector<32x384xbf16>, vector<384x256xbf16>, vector<32x256xf32> -> vector<32x256xf32>
    %144 = vector.extract_strided_slice %143 {offsets = [0, 0], sizes = [32, 128], strides = [1, 1]} : vector<32x256xf32> to vector<32x128xf32>
    %145 = vector.extract_strided_slice %143 {offsets = [0, 128], sizes = [32, 128], strides = [1, 1]} : vector<32x256xf32> to vector<32x128xf32>
    %cst_82 = arith.constant 0.000000e+00 : f32
    %146 = vector.broadcast %cst_82 : f32 to vector<32x128xf32>
    %147 = arith.maximumf %144, %146 : vector<32x128xf32>
    %c0_83 = arith.constant 0 : index
    %c0_84 = arith.constant 0 : index
    %148 = vector.load %arg23[%c0_83, %c0_84] : memref<32x1xf32, #tpu.memory_space<vmem>>, vector<32x1xf32>
    %149 = vector.broadcast %148 : vector<32x1xf32> to vector<32x128xf32>
    %150 = arith.mulf %147, %149 : vector<32x128xf32>
    %151 = arith.truncf %150 : vector<32x128xf32> to vector<32x128xbf16>
    %cst_85 = arith.constant 0.000000e+00 : bf16
    %152 = vector.broadcast %cst_85 : bf16 to vector<1x128xbf16>
    %153 = vector.extract_strided_slice %151 {offsets = [0, 0], sizes = [31, 128], strides = [1, 1]} : vector<32x128xbf16> to vector<31x128xbf16>
    %154 = tpu.concatenate %152, %153 in 0 : vector<1x128xbf16>, vector<31x128xbf16> -> vector<32x128xbf16>
    %cst_86 = arith.constant 0.000000e+00 : bf16
    %155 = vector.broadcast %cst_86 : bf16 to vector<1x128xbf16>
    %156 = vector.extract_strided_slice %151 {offsets = [1, 0], sizes = [31, 128], strides = [1, 1]} : vector<32x128xbf16> to vector<31x128xbf16>
    %157 = tpu.concatenate %156, %155 in 0 : vector<31x128xbf16>, vector<1x128xbf16> -> vector<32x128xbf16>
    %158 = tpu.concatenate %154, %151, %157 in 1 : vector<32x128xbf16>, vector<32x128xbf16>, vector<32x128xbf16> -> vector<32x384xbf16>
    %c0_87 = arith.constant 0 : index
    %c0_88 = arith.constant 0 : index
    %159 = vector.load %arg24[%c0_87, %c0_88] : memref<384x128xbf16, #tpu.memory_space<vmem>>, vector<384x128xbf16>
    %cst_89 = arith.constant dense<0.000000e+00> : vector<32x128xf32>
    %160 = tpu.matmul %158, %159, %cst_89 {dimension_numbers = #tpu.dot_dimension_numbers<[1], [0], [0], [1], [0, 0, 1, 1], [], []>} : vector<32x384xbf16>, vector<384x128xbf16>, vector<32x128xf32> -> vector<32x128xf32>
    %161 = arith.addf %160, %145 : vector<32x128xf32>
    %cst_90 = arith.constant 0.000000e+00 : f32
    %162 = vector.broadcast %cst_90 : f32 to vector<32x128xf32>
    %163 = arith.maximumf %161, %162 : vector<32x128xf32>
    %164 = arith.truncf %163 : vector<32x128xf32> to vector<32x128xbf16>
    %c0_91 = arith.constant 0 : index
    %c0_92 = arith.constant 0 : index
    %165 = vector.load %arg25[%c0_91, %c0_92] : memref<8x32xf32, #tpu.memory_space<vmem>>, vector<8x32xf32>
    %166 = arith.extf %164 : vector<32x128xbf16> to vector<32x128xf32>
    %cst_93 = arith.constant dense<0.000000e+00> : vector<8x128xf32>
    %167 = tpu.matmul %165, %166, %cst_93 {dimension_numbers = #tpu.dot_dimension_numbers<[1], [0], [0], [1], [0, 0, 1, 1], [], []>} : vector<8x32xf32>, vector<32x128xf32>, vector<8x128xf32> -> vector<8x128xf32>
    %c0_94 = arith.constant 0 : index
    %c0_95 = arith.constant 0 : index
    %168 = vector.load %arg26[%c0_94, %c0_95] : memref<128x8xf32, #tpu.memory_space<vmem>>, vector<128x8xf32>
    %cst_96 = arith.constant dense<0.000000e+00> : vector<8x8xf32>
    %169 = tpu.matmul %167, %168, %cst_96 {dimension_numbers = #tpu.dot_dimension_numbers<[1], [0], [0], [1], [0, 0, 1, 1], [], []>} : vector<8x128xf32>, vector<128x8xf32>, vector<8x8xf32> -> vector<8x8xf32>
    %c0_97 = arith.constant 0 : index
    %c0_98 = arith.constant 0 : index
    %170 = vector.load %arg27[%c0_97, %c0_98] : memref<1x8xf32, #tpu.memory_space<vmem>>, vector<1x8xf32>
    %171 = vector.broadcast %170 : vector<1x8xf32> to vector<8x8xf32>
    %172 = arith.addf %169, %171 : vector<8x8xf32>
    %c0_99 = arith.constant 0 : index
    %c0_100 = arith.constant 0 : index
    %173 = vector.load %arg28[%c0_99, %c0_100] : memref<8x8xf32, #tpu.memory_space<vmem>>, vector<8x8xf32>
    tpu.vector_store %arg28[%c0_99, %c0_100], %172 {strides = array<i32>} : memref<8x8xf32, #tpu.memory_space<vmem>>, vector<8x8xf32>,
    return
  }
  func.func @transform_0(%arg0: i32) -> (i32, i32) {
    %c0_i32 = arith.constant 0 : i32
    %c0_i32_0 = arith.constant 0 : i32
    return %arg0, %c0_i32 : i32, i32
  }
  func.func @transform_1(%arg0: i32) -> (i32, i32) {
    %c0_i32 = arith.constant 0 : i32
    %c0_i32_0 = arith.constant 0 : i32
    %c0_i32_1 = arith.constant 0 : i32
    return %c0_i32, %c0_i32_0 : i32, i32
  }
  func.func @transform_2(%arg0: i32) -> (i32, i32) {
    %c0_i32 = arith.constant 0 : i32
    %c0_i32_0 = arith.constant 0 : i32
    %c0_i32_1 = arith.constant 0 : i32
    return %c0_i32, %c0_i32_0 : i32, i32
  }
  func.func @transform_3(%arg0: i32) -> (i32, i32) {
    %c0_i32 = arith.constant 0 : i32
    %c0_i32_0 = arith.constant 0 : i32
    %c0_i32_1 = arith.constant 0 : i32
    return %c0_i32, %c0_i32_0 : i32, i32
  }
  func.func @transform_4(%arg0: i32) -> (i32, i32) {
    %c0_i32 = arith.constant 0 : i32
    %c0_i32_0 = arith.constant 0 : i32
    %c0_i32_1 = arith.constant 0 : i32
    return %c0_i32, %c0_i32_0 : i32, i32
  }
  func.func @transform_5(%arg0: i32) -> (i32, i32) {
    %c0_i32 = arith.constant 0 : i32
    %c0_i32_0 = arith.constant 0 : i32
    %c0_i32_1 = arith.constant 0 : i32
    return %c0_i32, %c0_i32_0 : i32, i32
  }
  func.func @transform_6(%arg0: i32) -> (i32, i32) {
    %c0_i32 = arith.constant 0 : i32
    %c0_i32_0 = arith.constant 0 : i32
    %c0_i32_1 = arith.constant 0 : i32
    return %c0_i32, %c0_i32_0 : i32, i32
  }
  func.func @transform_7(%arg0: i32) -> (i32, i32) {
    %c0_i32 = arith.constant 0 : i32
    %c0_i32_0 = arith.constant 0 : i32
    %c0_i32_1 = arith.constant 0 : i32
    return %c0_i32, %c0_i32_0 : i32, i32
  }
  func.func @transform_8(%arg0: i32) -> (i32, i32) {
    %c0_i32 = arith.constant 0 : i32
    %c0_i32_0 = arith.constant 0 : i32
    %c0_i32_1 = arith.constant 0 : i32
    return %c0_i32, %c0_i32_0 : i32, i32
  }
  func.func @transform_9(%arg0: i32) -> (i32, i32) {
    %c0_i32 = arith.constant 0 : i32
    %c0_i32_0 = arith.constant 0 : i32
    %c0_i32_1 = arith.constant 0 : i32
    return %c0_i32, %c0_i32_0 : i32, i32
  }
  func.func @transform_10(%arg0: i32) -> (i32, i32) {
    %c0_i32 = arith.constant 0 : i32
    %c0_i32_0 = arith.constant 0 : i32
    %c0_i32_1 = arith.constant 0 : i32
    return %c0_i32, %c0_i32_0 : i32, i32
  }
  func.func @transform_11(%arg0: i32) -> (i32, i32) {
    %c0_i32 = arith.constant 0 : i32
    %c0_i32_0 = arith.constant 0 : i32
    %c0_i32_1 = arith.constant 0 : i32
    return %c0_i32, %c0_i32_0 : i32, i32
  }
  func.func @transform_12(%arg0: i32) -> (i32, i32) {
    %c0_i32 = arith.constant 0 : i32
    %c0_i32_0 = arith.constant 0 : i32
    %c0_i32_1 = arith.constant 0 : i32
    return %c0_i32, %c0_i32_0 : i32, i32
  }
  func.func @transform_13(%arg0: i32) -> (i32, i32) {
    %c0_i32 = arith.constant 0 : i32
    %c0_i32_0 = arith.constant 0 : i32
    %c0_i32_1 = arith.constant 0 : i32
    return %c0_i32, %c0_i32_0 : i32, i32
  }
  func.func @transform_14(%arg0: i32) -> (i32, i32) {
    %c0_i32 = arith.constant 0 : i32
    %c0_i32_0 = arith.constant 0 : i32
    %c0_i32_1 = arith.constant 0 : i32
    return %c0_i32, %c0_i32_0 : i32, i32
  }
  func.func @transform_15(%arg0: i32) -> (i32, i32) {
    %c0_i32 = arith.constant 0 : i32
    %c0_i32_0 = arith.constant 0 : i32
    %c0_i32_1 = arith.constant 0 : i32
    return %c0_i32, %c0_i32_0 : i32, i32
  }
  func.func @transform_16(%arg0: i32) -> (i32, i32) {
    %c0_i32 = arith.constant 0 : i32
    %c0_i32_0 = arith.constant 0 : i32
    %c0_i32_1 = arith.constant 0 : i32
    return %c0_i32, %c0_i32_0 : i32, i32
  }
  func.func @transform_17(%arg0: i32) -> (i32, i32) {
    %c0_i32 = arith.constant 0 : i32
    %c0_i32_0 = arith.constant 0 : i32
    %c0_i32_1 = arith.constant 0 : i32
    return %c0_i32, %c0_i32_0 : i32, i32
  }
  func.func @transform_18(%arg0: i32) -> (i32, i32) {
    %c0_i32 = arith.constant 0 : i32
    %c0_i32_0 = arith.constant 0 : i32
    %c0_i32_1 = arith.constant 0 : i32
    return %c0_i32, %c0_i32_0 : i32, i32
  }
  func.func @transform_19(%arg0: i32) -> (i32, i32) {
    %c0_i32 = arith.constant 0 : i32
    %c0_i32_0 = arith.constant 0 : i32
    %c0_i32_1 = arith.constant 0 : i32
    return %c0_i32, %c0_i32_0 : i32, i32
  }
  func.func @transform_20(%arg0: i32) -> (i32, i32) {
    %c0_i32 = arith.constant 0 : i32
    %c0_i32_0 = arith.constant 0 : i32
    %c0_i32_1 = arith.constant 0 : i32
    return %c0_i32, %c0_i32_0 : i32, i32
  }
  func.func @transform_21(%arg0: i32) -> (i32, i32) {
    %c0_i32 = arith.constant 0 : i32
    %c0_i32_0 = arith.constant 0 : i32
    %c0_i32_1 = arith.constant 0 : i32
    return %c0_i32, %c0_i32_0 : i32, i32
  }
  func.func @transform_22(%arg0: i32) -> (i32, i32) {
    %c0_i32 = arith.constant 0 : i32
    %c0_i32_0 = arith.constant 0 : i32
    %c0_i32_1 = arith.constant 0 : i32
    return %c0_i32, %c0_i32_0 : i32, i32
  }
  func.func @transform_23(%arg0: i32) -> (i32, i32) {
    %c0_i32 = arith.constant 0 : i32
    %c0_i32_0 = arith.constant 0 : i32
    %c0_i32_1 = arith.constant 0 : i32
    return %c0_i32, %c0_i32_0 : i32, i32
  }
  func.func @transform_24(%arg0: i32) -> (i32, i32) {
    %c0_i32 = arith.constant 0 : i32
    %c0_i32_0 = arith.constant 0 : i32
    %c0_i32_1 = arith.constant 0 : i32
    return %c0_i32, %c0_i32_0 : i32, i32
  }
  func.func @transform_25(%arg0: i32) -> (i32, i32) {
    %c0_i32 = arith.constant 0 : i32
    %c0_i32_0 = arith.constant 0 : i32
    %c0_i32_1 = arith.constant 0 : i32
    return %c0_i32, %c0_i32_0 : i32, i32
  }
  func.func @transform_26(%arg0: i32) -> (i32, i32) {
    %c0_i32 = arith.constant 0 : i32
    %c0_i32_0 = arith.constant 0 : i32
    %c0_i32_1 = arith.constant 0 : i32
    return %c0_i32, %c0_i32_0 : i32, i32
  }
  func.func @transform_27(%arg0: i32) -> (i32, i32) {
    %c0_i32 = arith.constant 0 : i32
    %c0_i32_0 = arith.constant 0 : i32
    return %arg0, %c0_i32 : i32, i32
  }
}

</mosaic_0001>

<bundles_post_ra>
// kernel: forward.1
= control target key start
LH: loop header
LB: loop body
LE: loop exit
PB: predicated region body
PF: predicated region fallthrough
CT: control target
= control target key end

     0   :  { %s15024_s0 = inlined_call_operand.vmem [shape: bf16[1024,12], index: 0, kind: input, shape index: {}]   ;;  %s15025_s1 = inlined_call_operand.hbm [shape: bf16[272,512], index: 1, kind: input, shape index: {}]   ;;  %s15026_s2 = inlined_call_operand.vmem [shape: bf16[272,512], index: 2, kind: input, shape index: {}]   ;;  %s15027_s3 = inlined_call_operand.hbm [shape: bf16[60,64], index: 3, kind: input, shape index: {}]   ;;  %s15028_s4 = inlined_call_operand.hbm [shape: f32[272,1], index: 4, kind: input, shape index: {}]   ;;  %s15029_s5 = inlined_call_operand.hbm [shape: bf16[144,272], index: 5, kind: input, shape index: {}]   ;;  %s15030_s6 = inlined_call_operand.hbm [shape: bf16[192,256], index: 6, kind: input, shape index: {}]   ;;  %s15031_s7 = inlined_call_operand.hbm [shape: f32[144,1], index: 7, kind: input, shape index: {}]   ;;  %s15032_s8 = inlined_call_operand.hbm [shape: bf16[384,128], index: 8, kind: input, shape index: {}]   ;;  %s15033_s9 = inlined_call_operand.hbm [shape: bf16[80,144], index: 9, kind: input, shape index: {}]   ;;  %s15034_s10 = inlined_call_operand.hbm [shape: bf16[80,144], index: 10, kind: input, shape index: {}]   ;;  %s15035_s11 = inlined_call_operand.hbm [shape: bf16[384,256], index: 11, kind: input, shape index: {}]   ;;  %s15036_s12 = inlined_call_operand.hbm [shape: f32[80,1], index: 12, kind: input, shape index: {}]   ;;  %s15037_s13 = inlined_call_operand.hbm [shape: bf16[384,128], index: 13, kind: input, shape index: {}]   ;;  %s15038_s14 = inlined_call_operand.hbm [shape: bf16[48,80], index: 14, kind: input, shape index: {}]   ;;  %s15039_s15 = inlined_call_operand.hbm [shape: bf16[48,80], index: 15, kind: input, shape index: {}]   ;;  %s15040_s16 = inlined_call_operand.hbm [shape: bf16[384,256], index: 16, kind: input, shape index: {}]   ;;  %s15041_s17 = inlined_call_operand.hbm [shape: f32[48,1], index: 17, kind: input, shape index: {}]   ;;  %s15042_s18 = inlined_call_operand.hbm [shape: bf16[384,128], index: 18, kind: input, shape index: {}]   ;;  %s15043_s19 = inlined_call_operand.hbm [shape: bf16[32,48], index: 19, kind: input, shape index: {}]   ;;  %s15044_s20 = inlined_call_operand.hbm [shape: bf16[32,48], index: 20, kind: input, shape index: {}]   ;;  %s15045_s21 = inlined_call_operand.vmem [shape: bf16[384,256], index: 21, kind: input, shape index: {}]   ;;  %s15046_s22 = inlined_call_operand.hbm [shape: f32[32,1], index: 22, kind: input, shape index: {}]   ;;  %s15047_s23 = inlined_call_operand.hbm [shape: bf16[384,128], index: 23, kind: input, shape index: {}]   ;;  %s15048_s24 = inlined_call_operand.vmem [shape: f32[8,32], index: 24, kind: input, shape index: {}]   ;;  %s15049_s25 = inlined_call_operand.hbm [shape: f32[128,8], index: 25, kind: input, shape index: {}]   ;;  %s15050_s26 = inlined_call_operand.vmem [shape: f32[1,8], index: 26, kind: input, shape index: {}]   ;;  %s15051_s27 = inlined_call_operand.vmem [shape: f32[16,8], index: 27, kind: output, shape index: {}]  }
   0x1   :  { %15080 = sst [smem:[#allocation87_spill]] %s15024_s0 }
   0x2   :  { %15081 = sst [smem:[#allocation88_spill]] %s15025_s1 }
   0x3   :  { %15082 = sst [smem:[#allocation89_spill]] %s15026_s2 }
   0x4   :  { %15083 = sst [smem:[#allocation90_spill]] %s15027_s3 }
   0x5   :  { %15084 = sst [smem:[#allocation91_spill]] %s15028_s4 }
   0x6   :  { %15085 = sst [smem:[#allocation92_spill]] %s15029_s5 }
   0x7   :  { %15086 = sst [smem:[#allocation93_spill]] %s15030_s6 }
   0x8   :  { %15087 = sst [smem:[#allocation94_spill]] %s15031_s7 }
   0x9   :  { %15088 = sst [smem:[#allocation95_spill]] %s15032_s8 }
   0xa   :  { %15089 = sst [smem:[#allocation96_spill]] %s15033_s9 }
   0xb   :  { %15090 = sst [smem:[#allocation97_spill]] %s15034_s10 }
   0xc   :  { %15091 = sst [smem:[#allocation98_spill]] %s15035_s11 }
   0xd   :  { %15092 = sst [smem:[#allocation99_spill]] %s15037_s13 }
   0xe   :  { %15093 = sst [smem:[#allocation100_spill]] %s15039_s15 }
   0xf   :  { %15094 = sst [smem:[#allocation101_spill]] %s15041_s17 }
  0x10   :  { %15095 = sst [smem:[#allocation102_spill]] %s15051_s27 }
  0x11   :  { %32 = vsyncpa [#allocation3], 0 }
  0x12   :  { %33 = vsyncpa [#allocation5], 0 }
  0x13   :  { %34 = vsyncpa [#allocation8], 0 }
  0x14   :  { %35 = vsyncpa [#allocation11], 0 }
  0x15   :  { %36 = vsyncpa [#allocation14], 0 }
  0x16   :  { %37 = vsyncpa [#allocation17], 0 }
  0x17   :  { %38 = vsyncpa [#allocation20], 0 }
  0x18   :  { %39 = vsyncpa [#allocation23], 0 }
  0x19   :  { %40 = vsyncpa [#allocation26], 0 }
  0x1a   :  { %41 = vsyncpa [#allocation29], 0 }
  0x1b   :  { %42 = vsyncpa [#allocation32], 0 }
  0x1c   :  { %43 = vsyncpa [#allocation35], 0  ;;  %s12723_s7 = smov 0  }
  0x1d LB: > { %15096 = sst [smem:[#allocation48_spill]] %s12543_s7  ;;  %s12545_s4 = smov [#allocation4]   ;;  %s12543_s7 = sphi %s12723_s7, %s49_s7  }
  0x1e   : > { %s680_s8 = sshll.u32 %s12545_s4, 4  ;;  %s12729_s30 = sadd.s32 4294967295, %s12543_s7   ;;  %s681_s8 = int_to_ptr.vmem [resolvable:$true] %s680_s8 }
  0x1f   : > { %p9618_p0 = scmp.ge.s32.totalorder %s12543_s7, 1  ;;  %p652_p1 = scmp.lt.s32.totalorder %s12543_s7, 3 }
  0x20   : > { %p11145_p2 = scmp.eq.s32.totalorder %s12729_s30, 0  ;;  %s12546_s5 = smov [#allocation7]  }
  0x21   : > { %p12734_p3 = pnand %p9618_p0, %p652_p1  ;;  %s706_s28 = sshll.u32 %s12546_s5, 4  ;;  %s12740_s28 = int_to_ptr.vmem [resolvable:$true] %s706_s28 }
  0x22   : > { %s11928_s29 = scalar_lea.vmem %s681_s8, 512  ;;  %p11936_p10 = scmp.lt.s32.totalorder %s681_s8, %s681_s8 }
  0x23   : > { %p11078_p4 = pneg %p12734_p3  ;;  %p11929_p7 = scmp.ne.s32.totalorder %s681_s8, %s11928_s29 }
  0x24   : > { %p11937_p11 = scmp.lt.s32.totalorder %s11928_s29, %s11928_s29 }
  0x25   : > { %p12744_p5 = pnand %p11145_p2, %p11078_p4 }
  0x26   : > { %p11938_p12 = por %p11937_p11, %p11936_p10 }
  0x27   : > { %p12750_p6 = pneg %p12744_p5 }
  0x29   : > { %p11931_p8 = pnand %p11929_p7, %p12750_p6 }
  0x2b   : > { %p11932_p9 = pneg %p11931_p8 }
  0x2d   : > { %p11939_p13 = pnand %p11938_p12, %p11932_p9 }
  0x2f   : > { %11942 = shalt.err (!%p11939_p13)
}
  0x30   : > { %s15054_s1 = smov 64   ;;  %s15056_s6 = smov 4  }
  0x31   : > { %s15100_s3 = sld [smem:[#allocation90_spill]]  ;;  %s11954_s4 = scalar_lea.vmem %s12740_s28, 3456 }
  0x32   : > { %p11955_p0 = scmp.ne.s32.totalorder %s12740_s28, %s11954_s4  ;;  %p11962_p7 = scmp.lt.s32.totalorder %s12740_s28, %s12740_s28 }
  0x33   : > { %p11963_p8 = scmp.lt.s32.totalorder %s11954_s4, %s11954_s4 }
  0x34   : > { %p11957_p1 = pnand %p11955_p0, %p12750_p6 }
  0x35   : > { %p11964_p9 = por %p11963_p8, %p11962_p7 }
  0x36   : > { %p11958_p4 = pneg %p11957_p1 }
  0x37   : > { %11084 = dma.hbm_to_vmem [thread:$0]  (!%p12744_p5), %s15100_s3, 512, %s681_s8, [#allocation5], %s15054_s1, %s15054_s1, %s15056_s6  }
  0x38   : > { %p11965_p10 = pnand %p11964_p9, %p11958_p4 }
  0x3a   : > { %11968 = shalt.err (!%p11965_p10)
}
  0x3b   : > { %s12549_s5 = smov 192   ;;  %s12550_s29 = smov 12  }
  0x3c   : > { %s15101_s8 = sld [smem:[#allocation92_spill]]  ;;  %s12551_s2 = smov [#allocation10]  }
  0x3d   : > { %s732_s3 = sshll.u32 %s12551_s2, 4  ;;  %s12552_s1 = smov [#allocation13]   ;;  %s733_s3 = int_to_ptr.vmem [resolvable:$true] %s732_s3 }
  0x3e   : > { %s758_s6 = sshll.u32 %s12552_s1, 4  ;;  %s11980_s27 = scalar_lea.vmem %s733_s3, 2304  ;;  %s759_s6 = int_to_ptr.vmem [resolvable:$true] %s758_s6 }
  0x3f   : > { %p11981_p11 = scmp.ne.s32.totalorder %s733_s3, %s11980_s27  ;;  %p11988_p0 = scmp.lt.s32.totalorder %s733_s3, %s733_s3 }
  0x40   : > { %p11989_p1 = scmp.lt.s32.totalorder %s11980_s27, %s11980_s27 }
  0x41   : > { %p11983_p12 = pnand %p11981_p11, %p12750_p6 }
  0x42   : > { %11090 = dma.hbm_to_vmem [thread:$0]  (!%p12744_p5), %s15101_s8, 3456, %s12740_s28, [#allocation8], %s12549_s5, %s12549_s5, %s12550_s29  }
  0x43   : > { %p11984_p13 = pneg %p11983_p12  ;;  %p11990_p4 = por %p11989_p1, %p11988_p0 }
  0x45   : > { %p11991_p7 = pnand %p11990_p4, %p11984_p13 }
  0x47   : > { %11994 = shalt.err (!%p11991_p7)
}
  0x48   : > { %s15058_s4 = smov 128   ;;  %s15060_s7 = smov 8  }
  0x49   : > { %s15102_s5 = sld [smem:[#allocation94_spill]]  ;;  %s12006_s29 = scalar_lea.vmem %s759_s6, 1280 }
  0x4a   : > { %p12007_p8 = scmp.ne.s32.totalorder %s759_s6, %s12006_s29  ;;  %p12014_p11 = scmp.lt.s32.totalorder %s759_s6, %s759_s6 }
  0x4b   : > { %p12015_p12 = scmp.lt.s32.totalorder %s12006_s29, %s12006_s29 }
  0x4c   : > { %p12009_p9 = pnand %p12007_p8, %p12750_p6 }
  0x4d   : > { %p12016_p13 = por %p12015_p12, %p12014_p11 }
  0x4e   : > { %p12010_p10 = pneg %p12009_p9 }
  0x4f   : > { %11096 = dma.hbm_to_vmem [thread:$0]  (!%p12744_p5), %s15102_s5, 2304, %s733_s3, [#allocation11], %s15058_s4, %s15058_s4, %s15060_s7  }
  0x50   : > { %p12017_p0 = pnand %p12016_p13, %p12010_p10 }
  0x52   : > { %12020 = shalt.err (!%p12017_p0)
}
  0x53   : > { %s15103_s8 = sld [smem:[#allocation96_spill]]  ;;  %s12555_s2 = smov [#allocation16]  }
  0x54   : > { %s784_s3 = sshll.u32 %s12555_s2, 4  ;;  %s12556_s28 = smov [#allocation19]   ;;  %s785_s3 = int_to_ptr.vmem [resolvable:$true] %s784_s3 }
  0x55   : > { %s810_s1 = sshll.u32 %s12556_s28, 4  ;;  %s12032_s5 = scalar_lea.vmem %s785_s3, 6144  ;;  %s811_s1 = int_to_ptr.vmem [resolvable:$true] %s810_s1 }
  0x56   : > { %p12033_p1 = scmp.ne.s32.totalorder %s785_s3, %s12032_s5  ;;  %p12040_p8 = scmp.lt.s32.totalorder %s785_s3, %s785_s3 }
  0x57   : > { %p12041_p9 = scmp.lt.s32.totalorder %s12032_s5, %s12032_s5 }
  0x58   : > { %p12035_p4 = pnand %p12033_p1, %p12750_p6 }
  0x59   : > { %11102 = dma.hbm_to_vmem [thread:$0]  (!%p12744_p5), %s15103_s8, 1280, %s759_s6, [#allocation14], %s15058_s4, %s15058_s4, %s15060_s7  }
  0x5a   : > { %p12036_p7 = pneg %p12035_p4  ;;  %p12042_p10 = por %p12041_p9, %p12040_p8 }
  0x5c   : > { %p12043_p11 = pnand %p12042_p10, %p12036_p7 }
  0x5e   : > { %12046 = shalt.err (!%p12043_p11)
}
  0x5f   : > { %s15104_s27 = sld [smem:[#allocation98_spill]]  ;;  %s12058_s11 = scalar_lea.vmem %s811_s1, 3072 }
  0x60   : > { %p12059_p12 = scmp.ne.s32.totalorder %s811_s1, %s12058_s11  ;;  %p12066_p1 = scmp.lt.s32.totalorder %s811_s1, %s811_s1 }
  0x61   : > { %p12067_p4 = scmp.lt.s32.totalorder %s12058_s11, %s12058_s11 }
  0x62   : > { %p12061_p13 = pnand %p12059_p12, %p12750_p6 }
  0x63   : > { %p12068_p7 = por %p12067_p4, %p12066_p1 }
  0x64   : > { %p12062_p0 = pneg %p12061_p13 }
  0x65   : > { %11108 = dma.hbm_to_vmem [thread:$0]  (!%p12744_p5), %s15104_s27, 6144, %s785_s3, [#allocation17], %s15058_s4, %s15058_s4, %s15060_s7  }
  0x66   : > { %p12069_p8 = pnand %p12068_p7, %p12062_p0 }
  0x68   : > { %12072 = shalt.err (!%p12069_p8)
}
  0x69   : > { %s15105_s8 = smov 4   ;;  %s15106_s2 = smov 64  }
  0x6a   : > { %s15107_s13 = sld [smem:[#allocation99_spill]]  ;;  %s12557_s3 = smov [#allocation22]  }
  0x6b   : > { %s836_s6 = sshll.u32 %s12557_s3, 4  ;;  %s12558_s29 = smov [#allocation25]   ;;  %s837_s6 = int_to_ptr.vmem [resolvable:$true] %s836_s6 }
  0x6c   : > { %s862_s27 = sshll.u32 %s12558_s29, 4  ;;  %s12084_s4 = scalar_lea.vmem %s837_s6, 384  ;;  %s863_s27 = int_to_ptr.vmem [resolvable:$true] %s862_s27 }
  0x6d   : > { %p12085_p9 = scmp.ne.s32.totalorder %s837_s6, %s12084_s4  ;;  %p12092_p12 = scmp.lt.s32.totalorder %s837_s6, %s837_s6 }
  0x6e   : > { %p12093_p13 = scmp.lt.s32.totalorder %s12084_s4, %s12084_s4 }
  0x6f   : > { %p12087_p10 = pnand %p12085_p9, %p12750_p6 }
  0x70   : > { %11114 = dma.hbm_to_vmem [thread:$0]  (!%p12744_p5), %s15107_s13, 3072, %s811_s1, [#allocation20], %s15106_s2, %s15106_s2, %s15105_s8  }
  0x71   : > { %p12088_p11 = pneg %p12087_p10  ;;  %p12094_p0 = por %p12093_p13, %p12092_p12 }
  0x73   : > { %p12095_p1 = pnand %p12094_p0, %p12088_p11 }
  0x75   : > { %12098 = shalt.err (!%p12095_p1)
}
  0x76   : > { %s15108_s15 = sld [smem:[#allocation100_spill]]  ;;  %s12110_s28 = scalar_lea.vmem %s863_s27, 768 }
  0x77   : > { %p12111_p4 = scmp.ne.s32.totalorder %s863_s27, %s12110_s28  ;;  %p12118_p9 = scmp.lt.s32.totalorder %s863_s27, %s863_s27 }
  0x78   : > { %p12119_p10 = scmp.lt.s32.totalorder %s12110_s28, %s12110_s28 }
  0x79   : > { %p12113_p7 = pnand %p12111_p4, %p12750_p6 }
  0x7a   : > { %p12120_p11 = por %p12119_p10, %p12118_p9 }
  0x7b   : > { %p12114_p8 = pneg %p12113_p7 }
  0x7c   : > { %11120 = dma.hbm_to_vmem [thread:$0]  (!%p12744_p5), %s15108_s15, 384, %s837_s6, [#allocation23], %s15106_s2, %s15106_s2, %s15105_s8  }
  0x7d   : > { %p12121_p12 = pnand %p12120_p11, %p12114_p8 }
  0x7f   : > { %12124 = shalt.err (!%p12121_p12)
}
  0x80   : > { %s15109_s4 = smov 128   ;;  %s15110_s17 = sld [smem:[#allocation101_spill]] }
  0x81   : > { %s12559_s6 = smov [#allocation28]   ;;  %s12560_s1 = smov [#allocation31]  }
  0x82   : > { %s888_s29 = sshll.u32 %s12559_s6, 4  ;;  %s917_s11 = sshll.u32 %s12560_s1, 4  ;;  %s889_s29 = int_to_ptr.vmem [resolvable:$true] %s888_s29  ;;  %s918_s11 = int_to_ptr.vmem [resolvable:$true] %s917_s11 }
  0x83   : > { %s12136_s13 = scalar_lea.vmem %s889_s29, 256  ;;  %p12144_p4 = scmp.lt.s32.totalorder %s889_s29, %s889_s29 }
  0x84   : > { %p12137_p13 = scmp.ne.s32.totalorder %s889_s29, %s12136_s13  ;;  %p12145_p7 = scmp.lt.s32.totalorder %s12136_s13, %s12136_s13 }
  0x86   : > { %11126 = dma.hbm_to_vmem [thread:$0]  (!%p12744_p5), %s15110_s17, 768, %s863_s27, [#allocation26], %s15109_s4, %s15109_s4, %s15060_s7  }
  0x87   : > { %p12139_p0 = pnand %p12137_p13, %p12750_p6  ;;  %p12146_p8 = por %p12145_p7, %p12144_p4 }
  0x89   : > { %p12140_p1 = pneg %p12139_p0 }
  0x8b   : > { %p12147_p9 = pnand %p12146_p8, %p12140_p1 }
  0x8d   : > { %12150 = shalt.err (!%p12147_p9)
}
  0x8e   : > { %11132 = dma.hbm_to_vmem [thread:$0]  (!%p12744_p5), %s15043_s19, 256, %s889_s29, [#allocation29], %s15106_s2, %s15106_s2, %s15105_s8  }
  0x8f   : > { %s12162_s5 = scalar_lea.vmem %s918_s11, 512  ;;  %p12170_p13 = scmp.lt.s32.totalorder %s918_s11, %s918_s11 }
  0x90   : > { %p12163_p10 = scmp.ne.s32.totalorder %s918_s11, %s12162_s5  ;;  %p12171_p0 = scmp.lt.s32.totalorder %s12162_s5, %s12162_s5 }
  0x92   : > { %p12165_p11 = pnand %p12163_p10, %p12750_p6  ;;  %p12172_p1 = por %p12171_p0, %p12170_p13 }
  0x94   : > { %p12166_p12 = pneg %p12165_p11 }
  0x96   : > { %p12173_p4 = pnand %p12172_p1, %p12166_p12 }
  0x98   : > { %12176 = shalt.err (!%p12173_p4)
}
  0x99   : > { %11138 = dma.hbm_to_vmem [thread:$0]  (!%p12744_p5), %s15046_s22, 512, %s918_s11, [#allocation32], %s15109_s4, %s15109_s4, %s15060_s7  }
  0x9a   : > { %s12561_s6 = smov [#allocation2]  }
  0x9b   : > { %s664_s29 = sshll.u32 %s12561_s6, 4  ;;  %s665_s29 = int_to_ptr.vmem [resolvable:$true] %s664_s29 }
  0x9c   : > { %s12188_s1 = scalar_lea.vmem %s665_s29, 8704  ;;  %p12196_p10 = scmp.lt.s32.totalorder %s665_s29, %s665_s29 }
  0x9d   : > { %p12189_p7 = scmp.ne.s32.totalorder %s665_s29, %s12188_s1  ;;  %p12197_p11 = scmp.lt.s32.totalorder %s12188_s1, %s12188_s1 }
  0x9f   : > { %p12191_p8 = pnand %p12189_p7, %p12750_p6  ;;  %p12198_p12 = por %p12197_p11, %p12196_p10 }
  0xa1   : > { %p12192_p9 = pneg %p12191_p8 }
  0xa3   : > { %p12199_p13 = pnand %p12198_p12, %p12192_p9 }
  0xa5   : > { %12202 = shalt.err (!%p12199_p13)
}
  0xa6   : > { %s12562_s27 = smov 256   ;;  %s12563_s28 = smov 16  }
  0xa7   : > { %s15111_s13 = sld [smem:[#allocation88_spill]]  ;;  %s12564_s3 = smov [#allocation6]  }
  0xa8   : > { %s693_s6 = sshll.u32 %s12564_s3, 4  ;;  %s12565_s7 = smov [#allocation9]   ;;  %s694_s6 = int_to_ptr.vmem [resolvable:$true] %s693_s6 }
  0xa9   : > { %s719_s15 = sshll.u32 %s12565_s7, 4  ;;  %s12214_s17 = scalar_lea.vmem %s694_s6, 4352  ;;  %s720_s15 = int_to_ptr.vmem [resolvable:$true] %s719_s15 }
  0xaa   : > { %p12215_p0 = scmp.ne.s32.totalorder %s694_s6, %s12214_s17  ;;  %p12222_p7 = scmp.lt.s32.totalorder %s694_s6, %s694_s6 }
  0xab   : > { %p12223_p8 = scmp.lt.s32.totalorder %s12214_s17, %s12214_s17 }
  0xac   : > { %p12217_p1 = pnand %p12215_p0, %p12750_p6 }
  0xad   : > { %11081 = dma.hbm_to_vmem [thread:$0]  (!%p12744_p5), %s15111_s13, 8704, %s665_s29, [#allocation3], %s12562_s27, %s12562_s27, %s12563_s28  }
  0xae   : > { %p12218_p4 = pneg %p12217_p1  ;;  %p12224_p9 = por %p12223_p8, %p12222_p7 }
  0xb0   : > { %p12225_p10 = pnand %p12224_p9, %p12218_p4 }
  0xb2   : > { %12228 = shalt.err (!%p12225_p10)
}
  0xb3   : > { %s15112_s1 = smov 8   ;;  %s15113_s7 = sld [smem:[#allocation91_spill]] }
  0xb4   : > { %s12240_s28 = scalar_lea.vmem %s720_s15, 3072  ;;  %p12248_p0 = scmp.lt.s32.totalorder %s720_s15, %s720_s15 }
  0xb5   : > { %p12241_p11 = scmp.ne.s32.totalorder %s720_s15, %s12240_s28  ;;  %p12249_p1 = scmp.lt.s32.totalorder %s12240_s28, %s12240_s28 }
  0xb7   : > { %p12243_p12 = pnand %p12241_p11, %p12750_p6  ;;  %p12250_p7 = por %p12249_p1, %p12248_p0 }
  0xb9   : > { %11087 = dma.hbm_to_vmem [thread:$0]  (!%p12744_p5), %s15113_s7, 4352, %s694_s6, [#allocation5], %s15109_s4, %s15109_s4, %s15112_s1  }
  0xba   : > { %p12244_p13 = pneg %p12243_p12 }
  0xbc   : > { %p12251_p4 = pnand %p12250_p7, %p12244_p13 }
  0xbe   : > { %12254 = shalt.err (!%p12251_p4)
}
  0xbf   : > { %s15114_s11 = sld [smem:[#allocation93_spill]]  ;;  %s12566_s13 = smov [#allocation12]  }
  0xc0   : > { %s745_s3 = sshll.u32 %s12566_s13, 4  ;;  %s12567_s6 = smov [#allocation15]   ;;  %s746_s3 = int_to_ptr.vmem [resolvable:$true] %s745_s3 }
  0xc1   : > { %s771_s29 = sshll.u32 %s12567_s6, 4  ;;  %s12266_s27 = scalar_lea.vmem %s746_s3, 3072  ;;  %s772_s29 = int_to_ptr.vmem [resolvable:$true] %s771_s29 }
  0xc2   : > { %p12267_p8 = scmp.ne.s32.totalorder %s746_s3, %s12266_s27  ;;  %p12274_p11 = scmp.lt.s32.totalorder %s746_s3, %s746_s3 }
  0xc3   : > { %p12275_p12 = scmp.lt.s32.totalorder %s12266_s27, %s12266_s27 }
  0xc4   : > { %p12269_p9 = pnand %p12267_p8, %p12750_p6 }
  0xc5   : > { %11093 = dma.hbm_to_vmem [thread:$0]  (!%p12744_p5), %s15114_s11, 3072, %s720_s15, [#allocation8], %s15109_s4, %s15109_s4, %s15112_s1  }
  0xc6   : > { %p12270_p10 = pneg %p12269_p9  ;;  %p12276_p13 = por %p12275_p12, %p12274_p11 }
  0xc8   : > { %p12277_p0 = pnand %p12276_p13, %p12270_p10 }
  0xca   : > { %12280 = shalt.err (!%p12277_p0)
}
  0xcb   : > { %s15115_s28 = sld [smem:[#allocation95_spill]]  ;;  %s12292_s17 = scalar_lea.vmem %s772_s29, 1280 }
  0xcc   : > { %p12293_p1 = scmp.ne.s32.totalorder %s772_s29, %s12292_s17  ;;  %p12300_p8 = scmp.lt.s32.totalorder %s772_s29, %s772_s29 }
  0xcd   : > { %p12301_p9 = scmp.lt.s32.totalorder %s12292_s17, %s12292_s17 }
  0xce   : > { %p12295_p7 = pnand %p12293_p1, %p12750_p6 }
  0xcf   : > { %p12302_p11 = por %p12301_p9, %p12300_p8 }
  0xd0   : > { %p12296_p4 = pneg %p12295_p7 }
  0xd1   : > { %11099 = dma.hbm_to_vmem [thread:$0]  (!%p12744_p5), %s15115_s28, 3072, %s746_s3, [#allocation11], %s15106_s2, %s15106_s2, %s15105_s8  }
  0xd2   : > { %p12303_p10 = pnand %p12302_p11, %p12296_p4 }
  0xd4   : > { %12306 = shalt.err (!%p12303_p10)
}
  0xd5   : > { %s15116_s13 = sld [smem:[#allocation97_spill]]  ;;  %s12568_s3 = smov [#allocation18]  }
  0xd6   : > { %s797_s6 = sshll.u32 %s12568_s3, 4  ;;  %s12569_s27 = smov [#allocation21]   ;;  %s798_s6 = int_to_ptr.vmem [resolvable:$true] %s797_s6 }
  0xd7   : > { %s823_s15 = sshll.u32 %s12569_s27, 4  ;;  %s12318_s7 = scalar_lea.vmem %s798_s6, 1280  ;;  %s824_s15 = int_to_ptr.vmem [resolvable:$true] %s823_s15 }
  0xd8   : > { %p12319_p12 = scmp.ne.s32.totalorder %s798_s6, %s12318_s7  ;;  %p12326_p1 = scmp.lt.s32.totalorder %s798_s6, %s798_s6 }
  0xd9   : > { %p12327_p7 = scmp.lt.s32.totalorder %s12318_s7, %s12318_s7 }
  0xda   : > { %p12321_p13 = pnand %p12319_p12, %p12750_p6 }
  0xdb   : > { %11105 = dma.hbm_to_vmem [thread:$0]  (!%p12744_p5), %s15116_s13, 1280, %s772_s29, [#allocation14], %s15109_s4, %s15109_s4, %s15112_s1  }
  0xdc   : > { %p12322_p0 = pneg %p12321_p13  ;;  %p12328_p4 = por %p12327_p7, %p12326_p1 }
  0xde   : > { %p12329_p8 = pnand %p12328_p4, %p12322_p0 }
  0xe0   : > { %12332 = shalt.err (!%p12329_p8)
}
  0xe1   : > { %11111 = dma.hbm_to_vmem [thread:$0]  (!%p12744_p5), %s15036_s12, 1280, %s798_s6, [#allocation17], %s15109_s4, %s15109_s4, %s15112_s1  }
  0xe2   : > { %s12344_s17 = scalar_lea.vmem %s824_s15, 384  ;;  %p12352_p12 = scmp.lt.s32.totalorder %s824_s15, %s824_s15 }
  0xe3   : > { %p12345_p9 = scmp.ne.s32.totalorder %s824_s15, %s12344_s17  ;;  %p12353_p13 = scmp.lt.s32.totalorder %s12344_s17, %s12344_s17 }
  0xe5   : > { %p12347_p11 = pnand %p12345_p9, %p12750_p6  ;;  %p12354_p1 = por %p12353_p13, %p12352_p12 }
  0xe7   : > { %p12348_p10 = pneg %p12347_p11 }
  0xe9   : > { %p12355_p0 = pnand %p12354_p1, %p12348_p10 }
  0xeb   : > { %12358 = shalt.err (!%p12355_p0)
}
  0xec   : > { %11117 = dma.hbm_to_vmem [thread:$0]  (!%p12744_p5), %s15038_s14, 384, %s824_s15, [#allocation20], %s15106_s2, %s15106_s2, %s15105_s8  }
  0xed   : > { %s12570_s13 = smov [#allocation24]   ;;  %s12571_s6 = smov [#allocation27]  }
  0xee   : > { %s849_s3 = sshll.u32 %s12570_s13, 4  ;;  %s875_s27 = sshll.u32 %s12571_s6, 4  ;;  %s850_s3 = int_to_ptr.vmem [resolvable:$true] %s849_s3  ;;  %s876_s27 = int_to_ptr.vmem [resolvable:$true] %s875_s27 }
  0xef   : > { %s12370_s7 = scalar_lea.vmem %s850_s3, 6144  ;;  %p12378_p9 = scmp.lt.s32.totalorder %s850_s3, %s850_s3 }
  0xf0   : > { %p12371_p7 = scmp.ne.s32.totalorder %s850_s3, %s12370_s7  ;;  %p12379_p11 = scmp.lt.s32.totalorder %s12370_s7, %s12370_s7 }
  0xf2   : > { %p12373_p4 = pnand %p12371_p7, %p12750_p6  ;;  %p12380_p10 = por %p12379_p11, %p12378_p9 }
  0xf4   : > { %p12374_p8 = pneg %p12373_p4 }
  0xf6   : > { %p12381_p12 = pnand %p12380_p10, %p12374_p8 }
  0xf8   : > { %12384 = shalt.err (!%p12381_p12)
}
  0xf9   : > { %11123 = dma.hbm_to_vmem [thread:$0]  (!%p12744_p5), %s15040_s16, 6144, %s850_s3, [#allocation23], %s15109_s4, %s15109_s4, %s15112_s1  }
  0xfa   : > { %s12396_s28 = scalar_lea.vmem %s876_s27, 3072  ;;  %p12404_p7 = scmp.lt.s32.totalorder %s876_s27, %s876_s27 }
  0xfb   : > { %p12397_p13 = scmp.ne.s32.totalorder %s876_s27, %s12396_s28  ;;  %p12405_p4 = scmp.lt.s32.totalorder %s12396_s28, %s12396_s28 }
  0xfd   : > { %p12399_p1 = pnand %p12397_p13, %p12750_p6  ;;  %p12406_p9 = por %p12405_p4, %p12404_p7 }
  0xff   : > { %p12400_p0 = pneg %p12399_p1 }
 0x101   : > { %p12407_p8 = pnand %p12406_p9, %p12400_p0 }
 0x103   : > { %12410 = shalt.err (!%p12407_p8)
}
 0x104   : > { %11129 = dma.hbm_to_vmem [thread:$0]  (!%p12744_p5), %s15042_s18, 3072, %s876_s27, [#allocation26], %s15106_s2, %s15106_s2, %s15105_s8  }
 0x105   : > { %s12572_s11 = smov [#allocation30]   ;;  %s12573_s3 = smov [#allocation33]  }
 0x106   : > { %s901_s13 = sshll.u32 %s12572_s11, 4  ;;  %s930_s6 = sshll.u32 %s12573_s3, 4  ;;  %s902_s13 = int_to_ptr.vmem [resolvable:$true] %s901_s13  ;;  %s931_s6 = int_to_ptr.vmem [resolvable:$true] %s930_s6 }
 0x107   : > { %s12422_s7 = scalar_lea.vmem %s902_s13, 256  ;;  %p12430_p13 = scmp.lt.s32.totalorder %s902_s13, %s902_s13 }
 0x108   : > { %p12423_p11 = scmp.ne.s32.totalorder %s902_s13, %s12422_s7  ;;  %p12431_p1 = scmp.lt.s32.totalorder %s12422_s7, %s12422_s7 }
 0x10a   : > { %p12425_p10 = pnand %p12423_p11, %p12750_p6  ;;  %p12432_p0 = por %p12431_p1, %p12430_p13 }
 0x10c   : > { %p12426_p12 = pneg %p12425_p10 }
 0x10e   : > { %p12433_p7 = pnand %p12432_p0, %p12426_p12 }
 0x110   : > { %12436 = shalt.err (!%p12433_p7)
}
 0x111   : > { %11135 = dma.hbm_to_vmem [thread:$0]  (!%p12744_p5), %s15044_s20, 256, %s902_s13, [#allocation29], %s15106_s2, %s15106_s2, %s15105_s8  }
 0x112   : > { %s12448_s29 = scalar_lea.vmem %s931_s6, 3072  ;;  %p12456_p11 = scmp.lt.s32.totalorder %s931_s6, %s931_s6 }
 0x113   : > { %p12449_p4 = scmp.ne.s32.totalorder %s931_s6, %s12448_s29  ;;  %p12457_p10 = scmp.lt.s32.totalorder %s12448_s29, %s12448_s29 }
 0x115   : > { %p12451_p9 = pnand %p12449_p4, %p12750_p6  ;;  %p12458_p13 = por %p12457_p10, %p12456_p11 }
 0x117   : > { %p12452_p8 = pneg %p12451_p9 }
 0x119   : > { %p12459_p12 = pnand %p12458_p13, %p12452_p8 }
 0x11b   : > { %12462 = shalt.err (!%p12459_p12)
}
 0x11c   : > { %11141 = dma.hbm_to_vmem [thread:$0]  (!%p12744_p5), %s15047_s23, 3072, %s931_s6, [#allocation32], %s15106_s2, %s15106_s2, %s15105_s8  }
 0x11d   : > { %s12574_s5 = smov [#allocation34]  }
 0x11e   : > { %s946_s11 = sshll.u32 %s12574_s5, 4  ;;  %s947_s11 = int_to_ptr.vmem [resolvable:$true] %s946_s11 }
 0x11f   : > { %s12474_s13 = scalar_lea.vmem %s947_s11, 2048  ;;  %p12482_p4 = scmp.lt.s32.totalorder %s947_s11, %s947_s11 }
 0x120   : > { %p12475_p1 = scmp.ne.s32.totalorder %s947_s11, %s12474_s13  ;;  %p12483_p9 = scmp.lt.s32.totalorder %s12474_s13, %s12474_s13 }
 0x122   : > { %p12477_p0 = pnand %p12475_p1, %p12750_p6  ;;  %p12484_p8 = por %p12483_p9, %p12482_p4 }
 0x124   : > { %p12478_p7 = pneg %p12477_p0 }
 0x126   : > { %p12485_p11 = pnand %p12484_p8, %p12478_p7 }
 0x128   : > { %12488 = shalt.err (!%p12485_p11)
}
 0x129   : > { %11144 = dma.hbm_to_vmem [thread:$0]  (!%p12744_p5), %s15049_s25, 2048, %s947_s11, [#allocation35], %s15109_s4, %s15109_s4, %s15112_s1  }
 0x12a   : > { %974 = sbr.rel (%p12734_p3) target bundleno = 4713 (0x1269), region = 128 }
 0x12f   : > { %12494 = dma.done.wait (%p11145_p2), [#allocation3], 8704  }
 0x130   : > { %12496 = vsyncadd (%p11145_p2), [#allocation3], 4294958592 }
 0x131   : > { %12498 = dma.done.wait (%p11145_p2), [#allocation5], 4864  }
 0x132   : > { %12500 = vsyncadd (%p11145_p2), [#allocation5], 4294962432 }
 0x133   : > { %12502 = dma.done.wait (%p11145_p2), [#allocation8], 6528  }
 0x134   : > { %12504 = vsyncadd (%p11145_p2), [#allocation8], 4294960768 }
 0x135   : > { %12506 = dma.done.wait (%p11145_p2), [#allocation11], 5376  }
 0x136   : > { %12508 = vsyncadd (%p11145_p2), [#allocation11], 4294961920 }
 0x137   : > { %12510 = dma.done.wait (%p11145_p2), [#allocation14], 2560  }
 0x138   : > { %12512 = vsyncadd (%p11145_p2), [#allocation14], 4294964736 }
 0x139   : > { %12514 = dma.done.wait (%p11145_p2), [#allocation17], 7424  }
 0x13a   : > { %12516 = vsyncadd (%p11145_p2), [#allocation17], 4294959872 }
 0x13b   : > { %12518 = dma.done.wait (%p11145_p2), [#allocation20], 3456  }
 0x13c   : > { %12520 = vsyncadd (%p11145_p2), [#allocation20], 4294963840 }
 0x13d   : > { %12522 = dma.done.wait (%p11145_p2), [#allocation23], 6528  }
 0x13e   : > { %12524 = vsyncadd (%p11145_p2), [#allocation23], 4294960768 }
 0x13f   : > { %12526 = dma.done.wait (%p11145_p2), [#allocation26], 3840  }
 0x140   : > { %12528 = vsyncadd (%p11145_p2), [#allocation26], 4294963456 }
 0x141   : > { %12530 = dma.done.wait (%p11145_p2), [#allocation29], 512  }
 0x142   : > { %12532 = vsyncadd (%p11145_p2), [#allocation29], 4294966784 }
 0x143   : > { %12534 = dma.done.wait (%p11145_p2), [#allocation32], 3584  }
 0x144   : > { %12536 = vsyncadd (%p11145_p2), [#allocation32], 4294963712 }
 0x145   : > { %12538 = dma.done.wait (%p11145_p2), [#allocation35], 2048  }
 0x146   : > { %12540 = vsyncadd (%p11145_p2), [#allocation35], 4294965248  ;;  %s9665_s9 = sshll.u32 %s12729_s30, 6  ;;  %v15062_v0 = vmov 0   ;;  %s15117_s4 = sld [smem:[#allocation87_spill]]  ;;  %vm3649_vm2 = vcmask 1045504  }
 0x147   : > { %1872 = vmatprep.subr.bf16.mxu0 %v15062_v0  ;;  %2041 = vmatprep.subr.bf16.mxu1 %v15062_v0  ;;  %p1130_p3 = scmp.lt.s32.totalorder %s9665_s9, 127  ;;  %v11271_v19 = vld [vmem:[#allocation2 + $0x4] ss:$16 sps:$4 sm:$0xff]   ;;  %v11274_v21 = vld [vmem:[#allocation2 + $0xc] ss:$16 sps:$4 sm:$0xff]   ;;  %s15118_s27 = sld [smem:[#allocation89_spill]] }
 0x148   : > { %11236 = vset.pattern.permute.xlu1 %v15062_v0  ;;  %11235 = vset.pattern.permute.xlu0 %v15062_v0  ;;  %v11269_v35 = vld [vmem:[#allocation2] ss:$16 sps:$4 sm:$0xff]   ;;  %v11272_v36 = vld [vmem:[#allocation2 + $0x8] ss:$16 sps:$4 sm:$0xff]   ;;  %v11275_v37 = vld [vmem:[#allocation2 + $0x24] ss:$16 sps:$4 sm:$0xff]  }
 0x149   : > { %s15205_s9 = smov (!%p1130_p3, %s9665_s9), 127  ;;  %1904 = vmatprep.mubr.bf16.mxu0 %v11271_v19  ;;  %2073 = vmatprep.mubr.bf16.mxu1 %v11274_v21  ;;  %v11277_v38 = vld [vmem:[#allocation2 + $0x2c] ss:$16 sps:$4 sm:$0xff]   ;;  %v11279_v39 = vld [vmem:[#allocation2 + $0x20] ss:$16 sps:$4 sm:$0xff]   ;;  %s12577_s28 = smov 36  }
 0x14a   : > { %s9666_s0 = sshll.u32 %s15205_s9, 2  ;;  %v11280_v40 = vld [vmem:[#allocation2 + $0x28] ss:$16 sps:$4 sm:$0xff]   ;;  %v11281_v41 = vld [vmem:[#allocation2 + $0x44] ss:$16 sps:$4 sm:$0xff]   ;;  %vm12578_vm3 = vmmov 0  }
 0x14b   : > { %v11283_v42 = vld [vmem:[#allocation2 + $0x4c] ss:$16 sps:$4 sm:$0xff]   ;;  %v11285_v43 = vld [vmem:[#allocation2 + $0x40] ss:$16 sps:$4 sm:$0xff]   ;;  %v11286_v44 = vld [vmem:[#allocation2 + $0x48] ss:$16 sps:$4 sm:$0xff]  }
 0x14c   : > { %s13031_s1 = scalar_lea.vmem %s15117_s4, %s9666_s0  ;;  %v11287_v45 = vld [vmem:[#allocation2 + $0x64] ss:$16 sps:$4 sm:$0xff]   ;;  %v11289_v46 = vld [vmem:[#allocation2 + $0x6c] ss:$16 sps:$4 sm:$0xff]   ;;  %v11291_v47 = vld [vmem:[#allocation2 + $0x60] ss:$16 sps:$4 sm:$0xff]  }
 0x14d   : > { %v13034_v1 = vld [vmem:[%s13031_s1 + $0x38] sm:$0xff]   ;;  %v13041_v3 = vld [vmem:[%s13031_s1 + $0x30] sm:$0xff]   ;;  %v13051_v5 = vld [vmem:[%s13031_s1 + $0x28] sm:$0xff]   ;;  %vm3199_vm0 = vsmask.f32 7424  ;;  %vm3059_vm4 = vcmask 1040384  }
 0x14e   : > { %v13037_v2 = vld [vmem:[%s13031_s1 + $0xb8] sm:$0xff]   ;;  %1873 = vmatpush1.bf16.msra.mxu0 %v13034_v1  ;;  %v13046_v4 = vld [vmem:[%s13031_s1 + $0xb0] sm:$0xff]   ;;  %v13056_v6 = vld [vmem:[%s13031_s1 + $0xa8] sm:$0xff]   ;;  %vm2922_vm1 = vsmask.f32 256  ;;  %s12579_s17 = smov 48  }
 0x14f   : > { %2042 = vmatpush1.bf16.msra.mxu1 %v13037_v2  ;;  %1874 = vmatprep.subr.bf16.mxu0 %v15062_v0  ;;  %v13061_v7 = vld [vmem:[%s13031_s1 + $0x20] sm:$0xff]   ;;  %v13071_v9 = vld [vmem:[%s13031_s1 + $0x18] sm:$0xff]   ;;  %v13081_v11 = vld [vmem:[%s13031_s1 + $0x10] sm:$0xff]   ;;  %s12580_s5 = smov 12   ;;  %s12581_s11 = smov 24   ;;  %vm3426_vm6 = vcmask 97280  }
 0x150   : > { %2043 = vmatprep.subr.bf16.mxu1 %v15062_v0  ;;  %v13066_v8 = vld [vmem:[%s13031_s1 + $0xa0] sm:$0xff]   ;;  %v13076_v10 = vld [vmem:[%s13031_s1 + $0x98] sm:$0xff]   ;;  %v13086_v12 = vld [vmem:[%s13031_s1 + $0x90] sm:$0xff]   ;;  %vm3478_vm7 = vcmask 195584   ;;  %vm3513_vm8 = vcmask 293888   ;;  %vm3548_vm9 = vcmask 392192  }
 0x151   : > { %v13091_v13 = vld [vmem:[%s13031_s1 + $0x8] sm:$0xff]   ;;  %v13101_v15 = vld [vmem:[%s13031_s1] sm:$0xff]   ;;  %v13111_v17 = vld [vmem:[%s13031_s1 + $0x78] sm:$0xff]   ;;  %vm3251_vm10 = vcmask 1047552   ;;  %vm3614_vm11 = vcmask 490496   ;;  %vm4537_vm13 = vcmask 130048  }
 0x152   : > { %1875 = vmatpush1.bf16.msra.mxu0 %v13041_v3  ;;  %v13096_v14 = vld [vmem:[%s13031_s1 + $0x88] sm:$0xff]   ;;  %v13106_v16 = vld [vmem:[%s13031_s1 + $0x80] sm:$0xff]   ;;  %v13116_v18 = vld [vmem:[%s13031_s1 + $0xf8] sm:$0xff]   ;;  %s12582_s13 = smov 64   ;;  %vm4912_vm14 = vcmask 523264   ;;  %vm7267_vm15 = vcmask 654336  }
 0x153   : > { %2044 = vmatpush1.bf16.msra.mxu1 %v13046_v4  ;;  %1876 = vmatprep.subr.bf16.mxu0 %v15062_v0  ;;  %v13121_v20 = vld [vmem:[%s13031_s1 + $0x70] sm:$0xff]   ;;  %v13131_v23 = vld [vmem:[%s13031_s1 + $0x68] sm:$0xff]   ;;  %v13141_v25 = vld [vmem:[%s13031_s1 + $0x60] sm:$0xff]   ;;  %p1135_p2 = scmp.lt.s32.totalorder %s12729_s30, 1  ;;  %s15202_s8 = sld [smem:[#allocation102_spill]] }
 0x154   : > { %2045 = vmatprep.subr.bf16.mxu1 %v15062_v0  ;;  %v13126_v22 = vld [vmem:[%s13031_s1 + $0xf0] sm:$0xff]   ;;  %v13136_v24 = vld [vmem:[%s13031_s1 + $0xe8] sm:$0xff]   ;;  %v13146_v26 = vld [vmem:[%s13031_s1 + $0xe0] sm:$0xff]  }
 0x155   : > { %v13151_v27 = vld [vmem:[%s13031_s1 + $0x58] sm:$0xff]   ;;  %v13161_v29 = vld [vmem:[%s13031_s1 + $0x50] sm:$0xff]   ;;  %v13171_v31 = vld [vmem:[%s13031_s1 + $0x48] sm:$0xff]   ;;  %s15207_s30 = smov (!%p1135_p2, %s12729_s30), 1 }
 0x156   : > { %1877 = vmatpush1.bf16.msra.mxu0 %v13051_v5  ;;  %v13156_v28 = vld [vmem:[%s13031_s1 + $0xd8] sm:$0xff]   ;;  %v13166_v30 = vld [vmem:[%s13031_s1 + $0xd0] sm:$0xff]   ;;  %v13176_v32 = vld [vmem:[%s13031_s1 + $0xc8] sm:$0xff]  }
 0x157   : > { %2046 = vmatpush1.bf16.msra.mxu1 %v13056_v6  ;;  %1878 = vmatprep.subr.bf16.mxu0 %v15062_v0  ;;  %v13181_v33 = vld [vmem:[%s13031_s1 + $0x40] sm:$0xff]   ;;  %v11292_v48 = vld [vmem:[#allocation2 + $0x68] ss:$16 sps:$4 sm:$0xff]   ;;  %v11295_v50 = vld [vmem:[#allocation2 + $0x8c] ss:$16 sps:$4 sm:$0xff]  }
 0x158   : > { %2047 = vmatprep.subr.bf16.mxu1 %v15062_v0  ;;  %v13186_v34 = vld [vmem:[%s13031_s1 + $0xc0] sm:$0xff]   ;;  %v11298_v52 = vld [vmem:[#allocation2 + $0x88] ss:$16 sps:$4 sm:$0xff]   ;;  %v11301_v54 = vld [vmem:[#allocation2 + $0xac] ss:$16 sps:$4 sm:$0xff]  }
 0x159   : > { %v11293_v49 = vld [vmem:[#allocation2 + $0x84] ss:$16 sps:$4 sm:$0xff]   ;;  %v11297_v51 = vld [vmem:[#allocation2 + $0x80] ss:$16 sps:$4 sm:$0xff]   ;;  %v11304_v56 = vld [vmem:[#allocation2 + $0xa8] ss:$16 sps:$4 sm:$0xff]  }
 0x15a   : > { %1879 = vmatpush1.bf16.msra.mxu0 %v13061_v7  ;;  %v11299_v53 = vld [vmem:[#allocation2 + $0xa4] ss:$16 sps:$4 sm:$0xff]   ;;  %v11303_v55 = vld [vmem:[#allocation2 + $0xa0] ss:$16 sps:$4 sm:$0xff]   ;;  %v11307_v58 = vld [vmem:[#allocation2 + $0xcc] ss:$16 sps:$4 sm:$0xff]  }
 0x15b   : > { %2048 = vmatpush1.bf16.msra.mxu1 %v13066_v8  ;;  %1880 = vmatprep.subr.bf16.mxu0 %v15062_v0  ;;  %v11305_v57 = vld [vmem:[#allocation2 + $0xc4] ss:$16 sps:$4 sm:$0xff]   ;;  %v11309_v59 = vld [vmem:[#allocation2 + $0xc0] ss:$16 sps:$4 sm:$0xff]   ;;  %v11310_v60 = vld [vmem:[#allocation2 + $0xc8] ss:$16 sps:$4 sm:$0xff]  }
 0x15c   : > { %2049 = vmatprep.subr.bf16.mxu1 %v15062_v0  ;;  %v11311_v61 = vld [vmem:[#allocation2 + $0xe4] ss:$16 sps:$4 sm:$0xff]   ;;  %v11313_v62 = vld [vmem:[#allocation2 + $0xec] ss:$16 sps:$4 sm:$0xff]   ;;  %v11315_v63 = vld [vmem:[#allocation2 + $0xe0] ss:$16 sps:$4 sm:$0xff]  }
 0x15d   : > { %v11343_v19 = vld [vmem:[#allocation2 + $0x18c] ss:$16 sps:$4 sm:$0xff]   ;;  %v11346_v21 = vld [vmem:[#allocation2 + $0x188] ss:$16 sps:$4 sm:$0xff]   ;;  %vm13788_vm5 = vmand %vm3059_vm4, %vm2922_vm1 }
 0x15e   : > { %1881 = vmatpush1.bf16.msra.mxu0 %v13071_v9  ;;  %vm13929_vm12 = vmand %vm3251_vm10, %vm3199_vm0 }
 0x15f   : > { %2050 = vmatpush1.bf16.msra.mxu1 %v13076_v10  ;;  %1882 = vmatprep.subr.bf16.mxu0 %v15062_v0 }
 0x160   : > { %2051 = vmatprep.subr.bf16.mxu1 %v15062_v0 }
 0x162   : > { %1883 = vmatpush1.bf16.msra.mxu0 %v13081_v11 }
 0x163   : > { %2052 = vmatpush1.bf16.msra.mxu1 %v13086_v12  ;;  %1884 = vmatprep.subr.bf16.mxu0 %v15062_v0 }
 0x164   : > { %2053 = vmatprep.subr.bf16.mxu1 %v15062_v0 }
 0x166   : > { %1885 = vmatpush1.bf16.msra.mxu0 %v13091_v13 }
 0x167   : > { %2054 = vmatpush1.bf16.msra.mxu1 %v13096_v14  ;;  %1886 = vmatprep.subr.bf16.mxu0 %v15062_v0 }
 0x168   : > { %2055 = vmatprep.subr.bf16.mxu1 %v15062_v0 }
 0x16a   : > { %1887 = vmatpush1.bf16.msra.mxu0 %v13101_v15 }
 0x16b   : > { %2056 = vmatpush1.bf16.msra.mxu1 %v13106_v16  ;;  %1888 = vmatprep.subr.bf16.mxu0 %v15062_v0 }
 0x16c   : > { %2057 = vmatprep.subr.bf16.mxu1 %v15062_v0 }
 0x16e   : > { %1889 = vmatpush2.bf16.msra.mxu0 %v13111_v17 }
 0x16f   : > { %2058 = vmatpush2.bf16.msra.mxu1 %v13116_v18  ;;  %1890 = vmatprep.subr.bf16.mxu0 %v15062_v0 }
 0x170   : > { %2059 = vmatprep.subr.bf16.mxu1 %v15062_v0 }
 0x172   : > { %1891 = vmatpush2.bf16.msra.mxu0 %v13121_v20 }
 0x173   : > { %2060 = vmatpush2.bf16.msra.mxu1 %v13126_v22  ;;  %1892 = vmatprep.subr.bf16.mxu0 %v15062_v0 }
 0x174   : > { %2061 = vmatprep.subr.bf16.mxu1 %v15062_v0 }
 0x176   : > { %1893 = vmatpush2.bf16.msra.mxu0 %v13131_v23 }
 0x177   : > { %2062 = vmatpush2.bf16.msra.mxu1 %v13136_v24  ;;  %1894 = vmatprep.subr.bf16.mxu0 %v15062_v0 }
 0x178   : > { %2063 = vmatprep.subr.bf16.mxu1 %v15062_v0 }
 0x17a   : > { %1895 = vmatpush2.bf16.msra.mxu0 %v13141_v25 }
 0x17b   : > { %2064 = vmatpush2.bf16.msra.mxu1 %v13146_v26  ;;  %1896 = vmatprep.subr.bf16.mxu0 %v15062_v0 }
 0x17c   : > { %2065 = vmatprep.subr.bf16.mxu1 %v15062_v0 }
 0x17e   : > { %1897 = vmatpush2.bf16.msra.mxu0 %v13151_v27 }
 0x17f   : > { %2066 = vmatpush2.bf16.msra.mxu1 %v13156_v28  ;;  %1898 = vmatprep.subr.bf16.mxu0 %v15062_v0 }
 0x180   : > { %2067 = vmatprep.subr.bf16.mxu1 %v15062_v0 }
 0x182   : > { %1899 = vmatpush2.bf16.msra.mxu0 %v13161_v29 }
 0x183   : > { %2068 = vmatpush2.bf16.msra.mxu1 %v13166_v30  ;;  %1900 = vmatprep.subr.bf16.mxu0 %v15062_v0 }
 0x184   : > { %2069 = vmatprep.subr.bf16.mxu1 %v15062_v0 }
 0x186   : > { %1901 = vmatpush2.bf16.msra.mxu0 %v13171_v31 }
 0x187   : > { %2070 = vmatpush2.bf16.msra.mxu1 %v13176_v32  ;;  %1902 = vmatprep.subr.bf16.mxu0 %v15062_v0 }
 0x188   : > { %2071 = vmatprep.subr.bf16.mxu1 %v15062_v0 }
 0x18a   : > { %1903 = vmatpush2.bf16.msra.mxu0 %v13181_v33 }
 0x18b   : > { %2072 = vmatpush2.bf16.msra.mxu1 %v13186_v34  ;;  %2567 = vmatprep.subr.bf16.mxu0 %v15062_v0 }
 0x18c   : > { %10958 = vmatprep.subr.bf16.mxu1 %v15062_v0 }
 0x18d   : > { %1905 = vmatmul.mubr.bf16.vlgmr.msra.gmra.mxu0 %v11269_v35  ;;  %v11367_v35 = vld [vmem:[#allocation2 + $0x20c] ss:$16 sps:$4 sm:$0xff]  }
 0x18e   : > { %2074 = vmatmul.mubr.bf16.vlgmr.msra.gmra.mxu1 %v11272_v36  ;;  %1912 = vmatprep.mubr.bf16.mxu0 %v11275_v37  ;;  %v11369_v36 = vld [vmem:[#allocation2 + $0x200] ss:$16 sps:$4 sm:$0xff]   ;;  %v11370_v37 = vld [vmem:[#allocation2 + $0x208] ss:$16 sps:$4 sm:$0xff]  }
 0x18f   : > { %2081 = vmatprep.mubr.bf16.mxu1 %v11277_v38  ;;  %2568 = vmatpush1.bf16.msra.mxu0 %v13034_v1  ;;  %v11316_v1 = vld [vmem:[#allocation2 + $0xe8] ss:$16 sps:$4 sm:$0xff]   ;;  %v11373_v38 = vld [vmem:[%s15118_s27 + $0x4] ss:$16 sps:$4 sm:$0xff]  }
 0x190   : > { %2569 = vmatprep.subr.bf16.mxu0 %v15062_v0  ;;  %10974 = vmatpush1.bf16.msra.mxu1 %v13037_v2  ;;  %v11317_v2 = vld [vmem:[#allocation2 + $0x104] ss:$16 sps:$4 sm:$0xff]  }
 0x191   : > { %10959 = vmatprep.subr.bf16.mxu1 %v15062_v0 }
 0x193   : > { %2570 = vmatpush1.bf16.msra.mxu0 %v13041_v3  ;;  %v11319_v3 = vld [vmem:[#allocation2 + $0x10c] ss:$16 sps:$4 sm:$0xff]  }
 0x194   : > { %2571 = vmatprep.subr.bf16.mxu0 %v15062_v0  ;;  %10975 = vmatpush1.bf16.msra.mxu1 %v13046_v4  ;;  %v11321_v4 = vld [vmem:[#allocation2 + $0x100] ss:$16 sps:$4 sm:$0xff]  }
 0x195   : > { %1913 = vmatmul.mubr.bf16.gmra.mxu0 %v11279_v39  ;;  %10960 = vmatprep.subr.bf16.mxu1 %v15062_v0  ;;  %v11381_v39 = vld [vmem:[%s15118_s27 + $0x4c] ss:$16 sps:$4 sm:$0xff]  }
 0x196   : > { %2082 = vmatmul.mubr.bf16.gmra.mxu1 %v11280_v40  ;;  %1920 = vmatprep.mubr.bf16.mxu0 %v11281_v41  ;;  %v11371_v40 = vld [vmem:[%s15118_s27] ss:$16 sps:$4 sm:$0xff]   ;;  %v11374_v41 = vld [vmem:[%s15118_s27 + $0x24] ss:$16 sps:$4 sm:$0xff]  }
 0x197   : > { %2089 = vmatprep.mubr.bf16.mxu1 %v11283_v42  ;;  %2572 = vmatpush1.bf16.msra.mxu0 %v13051_v5  ;;  %v11322_v5 = vld [vmem:[#allocation2 + $0x108] ss:$16 sps:$4 sm:$0xff]  }
 0x198   : > { %2573 = vmatprep.subr.bf16.mxu0 %v15062_v0  ;;  %10976 = vmatpush1.bf16.msra.mxu1 %v13056_v6  ;;  %v11323_v6 = vld [vmem:[#allocation2 + $0x124] ss:$16 sps:$4 sm:$0xff]   ;;  %v11379_v42 = vld [vmem:[%s15118_s27 + $0x48] ss:$16 sps:$4 sm:$0xff]  }
 0x199   : > { %10961 = vmatprep.subr.bf16.mxu1 %v15062_v0 }
 0x19b   : > { %2574 = vmatpush1.bf16.msra.mxu0 %v13061_v7  ;;  %v11325_v7 = vld [vmem:[#allocation2 + $0x12c] ss:$16 sps:$4 sm:$0xff]  }
 0x19c   : > { %2575 = vmatprep.subr.bf16.mxu0 %v15062_v0  ;;  %10977 = vmatpush1.bf16.msra.mxu1 %v13066_v8  ;;  %v11327_v8 = vld [vmem:[#allocation2 + $0x120] ss:$16 sps:$4 sm:$0xff]  }
 0x19d   : > { %1921 = vmatmul.mubr.bf16.gmra.mxu0 %v11285_v43  ;;  %10962 = vmatprep.subr.bf16.mxu1 %v15062_v0  ;;  %v11385_v43 = vld [vmem:[%s15118_s27 + $0x6c] ss:$16 sps:$4 sm:$0xff]  }
 0x19e   : > { %2090 = vmatmul.mubr.bf16.gmra.mxu1 %v11286_v44  ;;  %1928 = vmatprep.mubr.bf16.mxu0 %v11287_v45  ;;  %v11376_v44 = vld [vmem:[%s15118_s27 + $0x20] ss:$16 sps:$4 sm:$0xff]   ;;  %v11901_v45 = vld [vmem:[%s13031_s1 + $0xb8] sm:$0xff]  }
 0x19f   : > { %2097 = vmatprep.mubr.bf16.mxu1 %v11289_v46  ;;  %2576 = vmatpush1.bf16.msra.mxu0 %v13071_v9  ;;  %v11328_v9 = vld [vmem:[#allocation2 + $0x128] ss:$16 sps:$4 sm:$0xff]   ;;  %v11377_v46 = vld [vmem:[%s15118_s27 + $0x44] ss:$16 sps:$4 sm:$0xff]  }
 0x1a0   : > { %2577 = vmatprep.subr.bf16.mxu0 %v15062_v0  ;;  %10978 = vmatpush1.bf16.msra.mxu1 %v13076_v10  ;;  %v11329_v10 = vld [vmem:[#allocation2 + $0x144] ss:$16 sps:$4 sm:$0xff]  }
 0x1a1   : > { %10963 = vmatprep.subr.bf16.mxu1 %v15062_v0 }
 0x1a3   : > { %2578 = vmatpush1.bf16.msra.mxu0 %v13081_v11  ;;  %v11331_v11 = vld [vmem:[#allocation2 + $0x14c] ss:$16 sps:$4 sm:$0xff]  }
 0x1a4   : > { %2579 = vmatprep.subr.bf16.mxu0 %v15062_v0  ;;  %10979 = vmatpush1.bf16.msra.mxu1 %v13086_v12  ;;  %v11333_v12 = vld [vmem:[#allocation2 + $0x140] ss:$16 sps:$4 sm:$0xff]  }
 0x1a5   : > { %1929 = vmatmul.mubr.bf16.gmra.mxu0 %v11291_v47  ;;  %10964 = vmatprep.subr.bf16.mxu1 %v15062_v0  ;;  %v11388_v47 = vld [vmem:[%s15118_s27 + $0x68] ss:$16 sps:$4 sm:$0xff]  }
 0x1a6   : > { %2098 = vmatmul.mubr.bf16.gmra.mxu1 %v11292_v48  ;;  %1936 = vmatprep.mubr.bf16.mxu0 %v11293_v49  ;;  %v11391_v48 = vld [vmem:[%s15118_s27 + $0x8c] ss:$16 sps:$4 sm:$0xff]   ;;  %v11902_v49 = vld [vmem:[%s13031_s1 + $0xb0] sm:$0xff]  }
 0x1a7   : > { %2105 = vmatprep.mubr.bf16.mxu1 %v11295_v50  ;;  %2580 = vmatpush1.bf16.msra.mxu0 %v13091_v13  ;;  %v11334_v13 = vld [vmem:[#allocation2 + $0x148] ss:$16 sps:$4 sm:$0xff]   ;;  %v11382_v50 = vld [vmem:[%s15118_s27 + $0x40] ss:$16 sps:$4 sm:$0xff]  }
 0x1a8   : > { %2581 = vmatprep.subr.bf16.mxu0 %v15062_v0  ;;  %10980 = vmatpush1.bf16.msra.mxu1 %v13096_v14  ;;  %v11335_v14 = vld [vmem:[#allocation2 + $0x164] ss:$16 sps:$4 sm:$0xff]  }
 0x1a9   : > { %10965 = vmatprep.subr.bf16.mxu1 %v15062_v0 }
 0x1ab   : > { %2582 = vmatpush1.bf16.msra.mxu0 %v13101_v15  ;;  %v11337_v15 = vld [vmem:[#allocation2 + $0x16c] ss:$16 sps:$4 sm:$0xff]  }
 0x1ac   : > { %2583 = vmatprep.subr.bf16.mxu0 %v15062_v0  ;;  %10981 = vmatpush1.bf16.msra.mxu1 %v13106_v16  ;;  %v11339_v16 = vld [vmem:[#allocation2 + $0x160] ss:$16 sps:$4 sm:$0xff]  }
 0x1ad   : > { %1937 = vmatmul.mubr.bf16.gmra.mxu0 %v11297_v51  ;;  %10966 = vmatprep.subr.bf16.mxu1 %v15062_v0  ;;  %v11903_v51 = vld [vmem:[%s13031_s1 + $0xa8] sm:$0xff]  }
 0x1ae   : > { %2106 = vmatmul.mubr.bf16.gmra.mxu1 %v11298_v52  ;;  %1944 = vmatprep.mubr.bf16.mxu0 %v11299_v53  ;;  %v11383_v52 = vld [vmem:[%s15118_s27 + $0x64] ss:$16 sps:$4 sm:$0xff]   ;;  %v11394_v53 = vld [vmem:[%s15118_s27 + $0x88] ss:$16 sps:$4 sm:$0xff]  }
 0x1af   : > { %2113 = vmatprep.mubr.bf16.mxu1 %v11301_v54  ;;  %2584 = vmatpush2.bf16.msra.mxu0 %v13111_v17  ;;  %v11340_v17 = vld [vmem:[#allocation2 + $0x168] ss:$16 sps:$4 sm:$0xff]   ;;  %v11397_v54 = vld [vmem:[%s15118_s27 + $0xac] ss:$16 sps:$4 sm:$0xff]  }
 0x1b0   : > { %2585 = vmatprep.subr.bf16.mxu0 %v15062_v0  ;;  %10982 = vmatpush2.bf16.msra.mxu1 %v13116_v18  ;;  %v11341_v18 = vld [vmem:[#allocation2 + $0x184] ss:$16 sps:$4 sm:$0xff]  }
 0x1b1   : > { %10967 = vmatprep.subr.bf16.mxu1 %v15062_v0 }
 0x1b3   : > { %2586 = vmatpush2.bf16.msra.mxu0 %v13121_v20  ;;  %v11345_v20 = vld [vmem:[#allocation2 + $0x180] ss:$16 sps:$4 sm:$0xff]  }
 0x1b4   : > { %2587 = vmatprep.subr.bf16.mxu0 %v15062_v0  ;;  %10983 = vmatpush2.bf16.msra.mxu1 %v13126_v22  ;;  %v11347_v22 = vld [vmem:[#allocation2 + $0x1a4] ss:$16 sps:$4 sm:$0xff]  }
 0x1b5   : > { %1945 = vmatmul.mubr.bf16.gmra.mxu0 %v11303_v55  ;;  %10968 = vmatprep.subr.bf16.mxu1 %v15062_v0  ;;  %v11904_v55 = vld [vmem:[%s13031_s1 + $0xa0] sm:$0xff]  }
 0x1b6   : > { %2114 = vmatmul.mubr.bf16.gmra.mxu1 %v11304_v56  ;;  %1952 = vmatprep.mubr.bf16.mxu0 %v11305_v57  ;;  %v11387_v56 = vld [vmem:[%s15118_s27 + $0x60] ss:$16 sps:$4 sm:$0xff]   ;;  %v11905_v57 = vld [vmem:[%s13031_s1 + $0x98] sm:$0xff]  }
 0x1b7   : > { %2121 = vmatprep.mubr.bf16.mxu1 %v11307_v58  ;;  %2588 = vmatpush2.bf16.msra.mxu0 %v13131_v23  ;;  %v11349_v23 = vld [vmem:[#allocation2 + $0x1ac] ss:$16 sps:$4 sm:$0xff]   ;;  %v11389_v58 = vld [vmem:[%s15118_s27 + $0x84] ss:$16 sps:$4 sm:$0xff]  }
 0x1b8   : > { %2589 = vmatprep.subr.bf16.mxu0 %v15062_v0  ;;  %10984 = vmatpush2.bf16.msra.mxu1 %v13136_v24  ;;  %v11351_v24 = vld [vmem:[#allocation2 + $0x1a0] ss:$16 sps:$4 sm:$0xff]  }
 0x1b9   : > { %10969 = vmatprep.subr.bf16.mxu1 %v15062_v0 }
 0x1bb   : > { %2590 = vmatpush2.bf16.msra.mxu0 %v13141_v25  ;;  %v11352_v25 = vld [vmem:[#allocation2 + $0x1a8] ss:$16 sps:$4 sm:$0xff]  }
 0x1bc   : > { %2591 = vmatprep.subr.bf16.mxu0 %v15062_v0  ;;  %10985 = vmatpush2.bf16.msra.mxu1 %v13146_v26  ;;  %v11353_v26 = vld [vmem:[#allocation2 + $0x1c4] ss:$16 sps:$4 sm:$0xff]  }
 0x1bd   : > { %1953 = vmatmul.mubr.bf16.gmra.mxu0 %v11309_v59  ;;  %10970 = vmatprep.subr.bf16.mxu1 %v15062_v0  ;;  %v11400_v59 = vld [vmem:[%s15118_s27 + $0xa8] ss:$16 sps:$4 sm:$0xff]  }
 0x1be   : > { %2122 = vmatmul.mubr.bf16.gmra.mxu1 %v11310_v60  ;;  %1960 = vmatprep.mubr.bf16.mxu0 %v11311_v61  ;;  %v11403_v60 = vld [vmem:[%s15118_s27 + $0xcc] ss:$16 sps:$4 sm:$0xff]   ;;  %v11906_v61 = vld [vmem:[%s13031_s1 + $0x90] sm:$0xff]  }
 0x1bf   : > { %2129 = vmatprep.mubr.bf16.mxu1 %v11313_v62  ;;  %2592 = vmatpush2.bf16.msra.mxu0 %v13151_v27  ;;  %v11355_v27 = vld [vmem:[#allocation2 + $0x1cc] ss:$16 sps:$4 sm:$0xff]   ;;  %v11393_v62 = vld [vmem:[%s15118_s27 + $0x80] ss:$16 sps:$4 sm:$0xff]  }
 0x1c0   : > { %2593 = vmatprep.subr.bf16.mxu0 %v15062_v0  ;;  %10986 = vmatpush2.bf16.msra.mxu1 %v13156_v28  ;;  %v11357_v28 = vld [vmem:[#allocation2 + $0x1c0] ss:$16 sps:$4 sm:$0xff]  }
 0x1c1   : > { %10971 = vmatprep.subr.bf16.mxu1 %v15062_v0 }
 0x1c3   : > { %2594 = vmatpush2.bf16.msra.mxu0 %v13161_v29  ;;  %v11358_v29 = vld [vmem:[#allocation2 + $0x1c8] ss:$16 sps:$4 sm:$0xff]  }
 0x1c4   : > { %2595 = vmatprep.subr.bf16.mxu0 %v15062_v0  ;;  %10987 = vmatpush2.bf16.msra.mxu1 %v13166_v30  ;;  %v11359_v30 = vld [vmem:[#allocation2 + $0x1e4] ss:$16 sps:$4 sm:$0xff]  }
 0x1c5   : > { %1961 = vmatmul.mubr.bf16.gmra.mxu0 %v11315_v63  ;;  %10972 = vmatprep.subr.bf16.mxu1 %v15062_v0  ;;  %v11907_v63 = vld [vmem:[%s13031_s1 + $0x88] sm:$0xff]  }
 0x1c6   : > { %2130 = vmatmul.mubr.bf16.gmra.mxu1 %v11316_v1  ;;  %1968 = vmatprep.mubr.bf16.mxu0 %v11317_v2  ;;  %v11395_v1 = vld [vmem:[%s15118_s27 + $0xa4] ss:$16 sps:$4 sm:$0xff]   ;;  %v11406_v2 = vld [vmem:[%s15118_s27 + $0xc8] ss:$16 sps:$4 sm:$0xff]  }
 0x1c7   : > { %2137 = vmatprep.mubr.bf16.mxu1 %v11319_v3  ;;  %2596 = vmatpush2.bf16.msra.mxu0 %v13171_v31  ;;  %v11361_v31 = vld [vmem:[#allocation2 + $0x1ec] ss:$16 sps:$4 sm:$0xff]  }
 0x1c8   : > { %2597 = vmatprep.subr.bf16.mxu0 %v15062_v0  ;;  %10988 = vmatpush2.bf16.msra.mxu1 %v13176_v32  ;;  %v11363_v32 = vld [vmem:[#allocation2 + $0x1e0] ss:$16 sps:$4 sm:$0xff]   ;;  %v11409_v3 = vld [vmem:[%s15118_s27 + $0xec] ss:$16 sps:$4 sm:$0xff]  }
 0x1c9   : > { %10973 = vmatprep.subr.bf16.mxu1 %v15062_v0 }
 0x1cb   : > { %2598 = vmatpush2.bf16.msra.mxu0 %v13181_v33  ;;  %v11364_v33 = vld [vmem:[#allocation2 + $0x1e8] ss:$16 sps:$4 sm:$0xff]  }
 0x1cc   : > { %10989 = vmatpush2.bf16.msra.mxu1 %v13186_v34  ;;  %2736 = vmatprep.subr.bf16.mxu0 %v15062_v0  ;;  %v11365_v34 = vld [vmem:[#allocation2 + $0x204] ss:$16 sps:$4 sm:$0xff]  }
 0x1cd   : > { %1969 = vmatmul.mubr.bf16.gmra.mxu0 %v11321_v4  ;;  %v11908_v4 = vld [vmem:[%s13031_s1 + $0x80] sm:$0xff]  }
 0x1ce   : > { %2138 = vmatmul.mubr.bf16.gmra.mxu1 %v11322_v5  ;;  %1976 = vmatprep.mubr.bf16.mxu0 %v11323_v6  ;;  %v11399_v5 = vld [vmem:[%s15118_s27 + $0xa0] ss:$16 sps:$4 sm:$0xff]   ;;  %v11909_v6 = vld [vmem:[%s13031_s1 + $0xf8] sm:$0xff]  }
 0x1cf   : > { %2145 = vmatprep.mubr.bf16.mxu1 %v11325_v7  ;;  %v11401_v7 = vld [vmem:[%s15118_s27 + $0xc4] ss:$16 sps:$4 sm:$0xff]  }
 0x1d5   : > { %1977 = vmatmul.mubr.bf16.gmra.mxu0 %v11327_v8  ;;  %v11412_v8 = vld [vmem:[%s15118_s27 + $0xe8] ss:$16 sps:$4 sm:$0xff]  }
 0x1d6   : > { %2146 = vmatmul.mubr.bf16.gmra.mxu1 %v11328_v9  ;;  %1984 = vmatprep.mubr.bf16.mxu0 %v11329_v10  ;;  %v11415_v9 = vld [vmem:[%s15118_s27 + $0x10c] ss:$16 sps:$4 sm:$0xff]   ;;  %v11910_v10 = vld [vmem:[%s13031_s1 + $0xf0] sm:$0xff]  }
 0x1d7   : > { %2153 = vmatprep.mubr.bf16.mxu1 %v11331_v11  ;;  %v11405_v11 = vld [vmem:[%s15118_s27 + $0xc0] ss:$16 sps:$4 sm:$0xff]  }
 0x1dd   : > { %1985 = vmatmul.mubr.bf16.gmra.mxu0 %v11333_v12  ;;  %v11911_v12 = vld [vmem:[%s13031_s1 + $0xe8] sm:$0xff]  }
 0x1de   : > { %2154 = vmatmul.mubr.bf16.gmra.mxu1 %v11334_v13  ;;  %1992 = vmatprep.mubr.bf16.mxu0 %v11335_v14  ;;  %v11407_v13 = vld [vmem:[%s15118_s27 + $0xe4] ss:$16 sps:$4 sm:$0xff]   ;;  %v11418_v14 = vld [vmem:[%s15118_s27 + $0x108] ss:$16 sps:$4 sm:$0xff]  }
 0x1df   : > { %2161 = vmatprep.mubr.bf16.mxu1 %v11337_v15  ;;  %v11421_v15 = vld [vmem:[%s15118_s27 + $0x12c] ss:$16 sps:$4 sm:$0xff]  }
 0x1e5   : > { %1993 = vmatmul.mubr.bf16.gmra.mxu0 %v11339_v16  ;;  %v11912_v16 = vld [vmem:[%s13031_s1 + $0xe0] sm:$0xff]  }
 0x1e6   : > { %2162 = vmatmul.mubr.bf16.gmra.mxu1 %v11340_v17  ;;  %2000 = vmatprep.mubr.bf16.mxu0 %v11341_v18  ;;  %v11411_v17 = vld [vmem:[%s15118_s27 + $0xe0] ss:$16 sps:$4 sm:$0xff]   ;;  %v11913_v18 = vld [vmem:[%s13031_s1 + $0xd8] sm:$0xff]  }
 0x1e7   : > { %2169 = vmatprep.mubr.bf16.mxu1 %v11343_v19  ;;  %v11413_v19 = vld [vmem:[%s15118_s27 + $0x104] ss:$16 sps:$4 sm:$0xff]  }
 0x1ed   : > { %2001 = vmatmul.mubr.bf16.gmra.mxu0 %v11345_v20  ;;  %v11424_v20 = vld [vmem:[%s15118_s27 + $0x128] ss:$16 sps:$4 sm:$0xff]  }
 0x1ee   : > { %2170 = vmatmul.mubr.bf16.gmra.mxu1 %v11346_v21  ;;  %2008 = vmatprep.mubr.bf16.mxu0 %v11347_v22  ;;  %v11427_v21 = vld [vmem:[%s15118_s27 + $0x14c] ss:$16 sps:$4 sm:$0xff]   ;;  %v11914_v22 = vld [vmem:[%s13031_s1 + $0xd0] sm:$0xff]  }
 0x1ef   : > { %2177 = vmatprep.mubr.bf16.mxu1 %v11349_v23 }
 0x1f5   : > { %2009 = vmatmul.mubr.bf16.gmra.mxu0 %v11351_v24 }
 0x1f6   : > { %2178 = vmatmul.mubr.bf16.gmra.mxu1 %v11352_v25  ;;  %2016 = vmatprep.mubr.bf16.mxu0 %v11353_v26 }
 0x1f7   : > { %2185 = vmatprep.mubr.bf16.mxu1 %v11355_v27  ;;  %v11417_v27 = vld [vmem:[%s15118_s27 + $0x100] ss:$16 sps:$4 sm:$0xff]  }
 0x1fd   : > { %2017 = vmatmul.mubr.bf16.gmra.mxu0 %v11357_v28  ;;  %v11915_v28 = vld [vmem:[%s13031_s1 + $0xc8] sm:$0xff]  }
 0x1fe   : > { %2186 = vmatmul.mubr.bf16.gmra.mxu1 %v11358_v29  ;;  %2024 = vmatprep.mubr.bf16.mxu0 %v11359_v30  ;;  %v11419_v30 = vld [vmem:[%s15118_s27 + $0x124] ss:$16 sps:$4 sm:$0xff]  }
 0x1ff   : > { %2193 = vmatprep.mubr.bf16.mxu1 %v11361_v31  ;;  %v11430_v31 = vld [vmem:[%s15118_s27 + $0x148] ss:$16 sps:$4 sm:$0xff]  }
 0x205   : > { %2025 = vmatmul.mubr.bf16.gmra.mxu0 %v11363_v32 }
 0x206   : > { %2194 = vmatmul.mubr.bf16.gmra.mxu1 %v11364_v33  ;;  %2032 = vmatprep.mubr.bf16.mxu0 %v11365_v34  ;;  %v11434_v33 = vld [vmem:[%s15118_s27 + $0x16c] ss:$16 sps:$4 sm:$0xff]  }
 0x207   : > { %2201 = vmatprep.mubr.bf16.mxu1 %v11367_v35 }
 0x20d   : > { %2033 = vmatmul.mubr.bf16.gmra.mxu0 %v11369_v36 }
 0x20e   : > { %2202 = vmatmul.mubr.bf16.gmra.mxu1 %v11370_v37  ;;  %2599 = vmatprep.mubr.bf16.mxu0 %v11373_v38  ;;  %v11916_v37 = vld [vmem:[%s13031_s1 + $0xc0] sm:$0xff]  }
 0x20f   : > { %2784 = vmatprep.mubr.bf16.mxu1 %v11381_v39 }
 0x215   : > { %2600 = vmatmul.mubr.bf16.vlgmr.msra.gmra.mxu0 %v11371_v40 }
 0x216   : > { %2607 = vmatprep.mubr.bf16.mxu0 %v11374_v41  ;;  %2785 = vmatmul.mubr.bf16.vlgmr.msra.gmra.mxu1 %v11379_v42 }
 0x217   : > { %2792 = vmatprep.mubr.bf16.mxu1 %v11385_v43  ;;  %2737 = vmatpush1.bf16.msra.mxu0 %v11901_v45  ;;  %v11423_v45 = vld [vmem:[%s15118_s27 + $0x120] ss:$16 sps:$4 sm:$0xff]  }
 0x218   : > { %2738 = vmatprep.subr.bf16.mxu0 %v15062_v0 }
 0x21b   : > { %2739 = vmatpush1.bf16.msra.mxu0 %v11902_v49 }
 0x21c   : > { %2740 = vmatprep.subr.bf16.mxu0 %v15062_v0 }
 0x21d   : > { %2608 = vmatmul.mubr.bf16.gmra.mxu0 %v11376_v44 }
 0x21e   : > { %2615 = vmatprep.mubr.bf16.mxu0 %v11377_v46  ;;  %2793 = vmatmul.mubr.bf16.gmra.mxu1 %v11388_v47  ;;  %v11425_v47 = vld [vmem:[%s15118_s27 + $0x144] ss:$16 sps:$4 sm:$0xff]  }
 0x21f   : > { %2800 = vmatprep.mubr.bf16.mxu1 %v11391_v48  ;;  %2741 = vmatpush1.bf16.msra.mxu0 %v11903_v51  ;;  %v11436_v48 = vld [vmem:[%s15118_s27 + $0x168] ss:$16 sps:$4 sm:$0xff]  }
 0x220   : > { %2742 = vmatprep.subr.bf16.mxu0 %v15062_v0 }
 0x223   : > { %2743 = vmatpush1.bf16.msra.mxu0 %v11904_v55  ;;  %v11440_v55 = vld [vmem:[%s15118_s27 + $0x18c] ss:$16 sps:$4 sm:$0xff]  }
 0x224   : > { %2744 = vmatprep.subr.bf16.mxu0 %v15062_v0 }
 0x225   : > { %2616 = vmatmul.mubr.bf16.gmra.mxu0 %v11382_v50 }
 0x226   : > { %2623 = vmatprep.mubr.bf16.mxu0 %v11383_v52  ;;  %2801 = vmatmul.mubr.bf16.gmra.mxu1 %v11394_v53 }
 0x227   : > { %2808 = vmatprep.mubr.bf16.mxu1 %v11397_v54  ;;  %2745 = vmatpush1.bf16.msra.mxu0 %v11905_v57 }
 0x228   : > { %2746 = vmatprep.subr.bf16.mxu0 %v15062_v0 }
 0x22b   : > { %2747 = vmatpush1.bf16.msra.mxu0 %v11906_v61 }
 0x22c   : > { %2748 = vmatprep.subr.bf16.mxu0 %v15062_v0 }
 0x22d   : > { %2624 = vmatmul.mubr.bf16.gmra.mxu0 %v11387_v56 }
 0x22e   : > { %2631 = vmatprep.mubr.bf16.mxu0 %v11389_v58  ;;  %2809 = vmatmul.mubr.bf16.gmra.mxu1 %v11400_v59 }
 0x22f   : > { %2816 = vmatprep.mubr.bf16.mxu1 %v11403_v60  ;;  %2749 = vmatpush1.bf16.msra.mxu0 %v11907_v63 }
 0x230   : > { %2750 = vmatprep.subr.bf16.mxu0 %v15062_v0 }
 0x233   : > { %2751 = vmatpush1.bf16.msra.mxu0 %v11908_v4 }
 0x234   : > { %2752 = vmatprep.subr.bf16.mxu0 %v15062_v0 }
 0x235   : > { %2632 = vmatmul.mubr.bf16.gmra.mxu0 %v11393_v62 }
 0x236   : > { %2639 = vmatprep.mubr.bf16.mxu0 %v11395_v1  ;;  %2817 = vmatmul.mubr.bf16.gmra.mxu1 %v11406_v2 }
 0x237   : > { %2824 = vmatprep.mubr.bf16.mxu1 %v11409_v3  ;;  %2753 = vmatpush2.bf16.msra.mxu0 %v11909_v6  ;;  %v11429_v6 = vld [vmem:[%s15118_s27 + $0x140] ss:$16 sps:$4 sm:$0xff]  }
 0x238   : > { %2754 = vmatprep.subr.bf16.mxu0 %v15062_v0 }
 0x23b   : > { %2755 = vmatpush2.bf16.msra.mxu0 %v11910_v10  ;;  %v11433_v10 = vld [vmem:[%s15118_s27 + $0x164] ss:$16 sps:$4 sm:$0xff]  }
 0x23c   : > { %2756 = vmatprep.subr.bf16.mxu0 %v15062_v0 }
 0x23d   : > { %2640 = vmatmul.mubr.bf16.gmra.mxu0 %v11399_v5 }
 0x23e   : > { %2647 = vmatprep.mubr.bf16.mxu0 %v11401_v7  ;;  %2825 = vmatmul.mubr.bf16.gmra.mxu1 %v11412_v8 }
 0x23f   : > { %2832 = vmatprep.mubr.bf16.mxu1 %v11415_v9  ;;  %2757 = vmatpush2.bf16.msra.mxu0 %v11911_v12 }
 0x240   : > { %2758 = vmatprep.subr.bf16.mxu0 %v15062_v0 }
 0x243   : > { %2759 = vmatpush2.bf16.msra.mxu0 %v11912_v16 }
 0x244   : > { %2760 = vmatprep.subr.bf16.mxu0 %v15062_v0 }
 0x245   : > { %2648 = vmatmul.mubr.bf16.gmra.mxu0 %v11405_v11  ;;  %v11442_v11 = vld [vmem:[%s15118_s27 + $0x188] ss:$16 sps:$4 sm:$0xff]  }
 0x246   : > { %2655 = vmatprep.mubr.bf16.mxu0 %v11407_v13  ;;  %2833 = vmatmul.mubr.bf16.gmra.mxu1 %v11418_v14  ;;  %v11448_v14 = vld [vmem:[%s15118_s27 + $0x1ac] ss:$16 sps:$4 sm:$0xff]  }
 0x247   : > { %2840 = vmatprep.mubr.bf16.mxu1 %v11421_v15  ;;  %2761 = vmatpush2.bf16.msra.mxu0 %v11913_v18 }
 0x248   : > { %2762 = vmatprep.subr.bf16.mxu0 %v15062_v0 }
 0x24b   : > { %2763 = vmatpush2.bf16.msra.mxu0 %v11914_v22 }
 0x24c   : > { %2764 = vmatprep.subr.bf16.mxu0 %v15062_v0 }
 0x24d   : > { %v1906_v23 = vpop.f32.mrf.mxu0  ;;  %2656 = vmatmul.mubr.bf16.gmra.mxu0 %v11411_v17 }
 0x24e   : > { %v2075_v24 = vpop.f32.mrf.mxu1  ;;  %2663 = vmatprep.mubr.bf16.mxu0 %v11413_v19  ;;  %2841 = vmatmul.mubr.bf16.gmra.mxu1 %v11424_v20 }
 0x24f   : > { %v2076_v25 = vadd.f32 %v2075_v24, %v1906_v23  ;;  %v1908_v26 = vpop.f32.mrf.mxu0  ;;  %2848 = vmatprep.mubr.bf16.mxu1 %v11427_v21  ;;  %2765 = vmatpush2.bf16.msra.mxu0 %v11915_v28 }
 0x250   : > { %v2077_v29 = vpop.f32.mrf.mxu1  ;;  %2766 = vmatprep.subr.bf16.mxu0 %v15062_v0 }
 0x251   : > { %v1909_v32 = vpop.f32.mrf.mxu0  ;;  %v11431_v29 = vld [vmem:[%s15118_s27 + $0x160] ss:$16 sps:$4 sm:$0xff]  }
 0x252   : > { %v2078_v34 = vpop.f32.mrf.mxu1 }
 0x253   : > { %v2079_v35 = vadd.f32 %v2078_v34, %v1909_v32  ;;  %v1911_v36 = vpop.f32.mrf.mxu0  ;;  %2767 = vmatpush2.bf16.msra.mxu0 %v11916_v37  ;;  %v11446_v34 = vld [vmem:[%s15118_s27 + $0x1a8] ss:$16 sps:$4 sm:$0xff]   ;;  %v11454_v37 = vld [vmem:[%s15118_s27 + $0x1cc] ss:$16 sps:$4 sm:$0xff]  }
 0x254   : > { %v2080_v38 = vpop.f32.mrf.mxu1 }
 0x255   : > { %v13401_v39 = vpack.c.bf16 %v2079_v35, %v2076_v25  ;;  %v1914_v40 = vpop.f32.mrf.mxu0  ;;  %2664 = vmatmul.mubr.bf16.gmra.mxu0 %v11417_v27 }
 0x256   : > { %v2083_v41 = vpop.f32.mrf.mxu1  ;;  %2671 = vmatprep.mubr.bf16.mxu0 %v11419_v30  ;;  %2849 = vmatmul.mubr.bf16.gmra.mxu1 %v11430_v31 }
 0x257   : > { %v2924_v42 = vshrl.u32 %v13401_v39, 16  ;;  %v2084_v43 = vadd.f32 %v2083_v41, %v1914_v40  ;;  %v1916_v44 = vpop.f32.mrf.mxu0  ;;  %2856 = vmatprep.mubr.bf16.mxu1 %v11434_v33  ;;  %v2927_v49 = vshll.u32 %v13401_v39, 16  ;;  %v11439_v33 = vld [vmem:[%s15118_s27 + $0x184] ss:$16 sps:$4 sm:$0xff]  }
 0x258   : > { %v2085_v46 = vpop.f32.mrf.mxu1 }
 0x259   : > { %v1917_v50 = vpop.f32.mrf.mxu0  ;;  %v2926_v51 = vrot.slane %v2924_v42, 7  ;;  %v3200_v60 = vrot.slane %v2927_v49, 1 }
 0x25a   : > { %v2086_v52 = vpop.f32.mrf.mxu1 }
 0x25b   : > { %v2087_v53 = vadd.f32 %v2086_v52, %v1917_v50  ;;  %v1919_v54 = vpop.f32.mrf.mxu0  ;;  %v13417_v56 = vor.u32 %v2927_v49, %v2926_v51  ;;  %v3201_v7 = vor.u32 %v3200_v60, %v2924_v42  ;;  %v11452_v60 = vld [vmem:[%s15118_s27 + $0x1c8] ss:$16 sps:$4 sm:$0xff]  }
 0x25c   : > { %v2088_v57 = vpop.f32.mrf.mxu1 }
 0x25d   : > { %15119 = vst [vmem:[#allocation49_spill] sm:$0xff] %v13417_v56  ;;  %v13419_v58 = vpack.c.bf16 %v2087_v53, %v2084_v43  ;;  %v1922_v59 = vpop.f32.mrf.mxu0  ;;  %2672 = vmatmul.mubr.bf16.gmra.mxu0 %v11423_v45  ;;  %v11437_v53 = vld [vmem:[%s15118_s27 + $0x180] ss:$16 sps:$4 sm:$0xff]  }
 0x25e   : > { %v2091_v61 = vpop.f32.mrf.mxu1  ;;  %2679 = vmatprep.mubr.bf16.mxu0 %v11425_v47  ;;  %2857 = vmatmul.mubr.bf16.gmra.mxu1 %v11436_v48 }
 0x25f   : > { %v2931_v62 = vshrl.u32 %v13419_v58, 16  ;;  %v2934_v63 = vshll.u32 %v13419_v58, 16  ;;  %v2092_v1 = vadd.f32 %v2091_v61, %v1922_v59  ;;  %v1924_v2 = vpop.f32.mrf.mxu0  ;;  %2864 = vmatprep.mubr.bf16.mxu1 %v11440_v55  ;;  %v11445_v59 = vld [vmem:[%s15118_s27 + $0x1a4] ss:$16 sps:$4 sm:$0xff]  }
 0x260   : > { %v2093_v3 = vpop.f32.mrf.mxu1 }
 0x261   : > { %v2933_v4 = vrot.slane %v2931_v62, 7  ;;  %v1925_v5 = vpop.f32.mrf.mxu0  ;;  %v3202_v8 = vrot.slane %v2934_v63, 1 }
 0x262   : > { %v2094_v9 = vpop.f32.mrf.mxu1 }
 0x263   : > { %v2095_v12 = vadd.f32 %v2094_v9, %v1925_v5  ;;  %v1927_v13 = vpop.f32.mrf.mxu0  ;;  %v13436_v15 = vsel %vm3199_vm0, %v3201_v7, %v3202_v8  ;;  %v2936_v16 = vor.u32 %v2934_v63, %v2933_v4  ;;  %v3204_v30 = vor.u32 %v3202_v8, %v2931_v62  ;;  %v11460_v63 = vld [vmem:[%s15118_s27 + $0x1ec] ss:$16 sps:$4 sm:$0xff]  }
 0x264   : > { %v2096_v17 = vpop.f32.mrf.mxu1 }
 0x265   : > { %v13438_v18 = vpack.c.bf16 %v2095_v12, %v2092_v1  ;;  %v1930_v19 = vpop.f32.mrf.mxu0  ;;  %2680 = vmatmul.mubr.bf16.gmra.mxu0 %v11429_v6  ;;  %v13441_v20 = vsel %vm2922_vm1, %v2926_v51, %v2936_v16  ;;  %v11443_v16 = vld [vmem:[%s15118_s27 + $0x1a0] ss:$16 sps:$4 sm:$0xff]  }
 0x266   : > { %15120 = vst [vmem:[#allocation50_spill] sm:$0xff] %v13441_v20  ;;  %v2099_v21 = vpop.f32.mrf.mxu1  ;;  %2687 = vmatprep.mubr.bf16.mxu0 %v11433_v10  ;;  %2865 = vmatmul.mubr.bf16.gmra.mxu1 %v11442_v11 }
 0x267   : > { %v2939_v22 = vshrl.u32 %v13438_v18, 16  ;;  %v2942_v23 = vshll.u32 %v13438_v18, 16  ;;  %v2100_v24 = vadd.f32 %v2099_v21, %v1930_v19  ;;  %v1932_v25 = vpop.f32.mrf.mxu0  ;;  %2872 = vmatprep.mubr.bf16.mxu1 %v11448_v14 }
 0x268   : > { %v2101_v26 = vpop.f32.mrf.mxu1 }
 0x269   : > { %v2941_v27 = vrot.slane %v2939_v22, 7  ;;  %v1933_v28 = vpop.f32.mrf.mxu0  ;;  %v3205_v31 = vrot.slane %v2942_v23, 1  ;;  %v11466_v26 = vld [vmem:[%s15118_s27 + $0x20c] ss:$16 sps:$4 sm:$0xff]  }
 0x26a   : > { %v2102_v32 = vpop.f32.mrf.mxu1 }
 0x26b   : > { %v2103_v35 = vadd.f32 %v2102_v32, %v1933_v28  ;;  %v1935_v36 = vpop.f32.mrf.mxu0  ;;  %v13458_v38 = vsel %vm3199_vm0, %v3204_v30, %v3205_v31  ;;  %v2944_v40 = vor.u32 %v2942_v23, %v2941_v27  ;;  %v3207_v54 = vor.u32 %v3205_v31, %v2939_v22  ;;  %v11451_v22 = vld [vmem:[%s15118_s27 + $0x1c4] ss:$16 sps:$4 sm:$0xff]   ;;  %v11458_v23 = vld [vmem:[%s15118_s27 + $0x1e8] ss:$16 sps:$4 sm:$0xff]  }
 0x26c   : > { %v2104_v41 = vpop.f32.mrf.mxu1 }
 0x26d   : > { %v13460_v42 = vpack.c.bf16 %v2103_v35, %v2100_v24  ;;  %v1938_v43 = vpop.f32.mrf.mxu0  ;;  %2688 = vmatmul.mubr.bf16.gmra.mxu0 %v11431_v29  ;;  %v13463_v44 = vsel %vm2922_vm1, %v2933_v4, %v2944_v40 }
 0x26e   : > { %15121 = vst [vmem:[#allocation51_spill] sm:$0xff] %v13463_v44  ;;  %v2107_v45 = vpop.f32.mrf.mxu1  ;;  %2695 = vmatprep.mubr.bf16.mxu0 %v11439_v33  ;;  %2873 = vmatmul.mubr.bf16.gmra.mxu1 %v11446_v34 }
 0x26f   : > { %v2947_v46 = vshrl.u32 %v13460_v42, 16  ;;  %v2950_v47 = vshll.u32 %v13460_v42, 16  ;;  %v2108_v48 = vadd.f32 %v2107_v45, %v1938_v43  ;;  %v1940_v49 = vpop.f32.mrf.mxu0  ;;  %2880 = vmatprep.mubr.bf16.mxu1 %v11454_v37  ;;  %v11449_v45 = vld [vmem:[%s15118_s27 + $0x1c0] ss:$16 sps:$4 sm:$0xff]  }
 0x270   : > { %v2109_v50 = vpop.f32.mrf.mxu1  ;;  %v11457_v49 = vld [vmem:[%s15118_s27 + $0x1e4] ss:$16 sps:$4 sm:$0xff]  }
 0x271   : > { %v2949_v51 = vrot.slane %v2947_v46, 7  ;;  %v1941_v52 = vpop.f32.mrf.mxu0  ;;  %v3208_v55 = vrot.slane %v2950_v47, 1  ;;  %v11464_v50 = vld [vmem:[%s15118_s27 + $0x208] ss:$16 sps:$4 sm:$0xff]  }
 0x272   : > { %v2110_v57 = vpop.f32.mrf.mxu1 }
 0x273   : > { %v2111_v61 = vadd.f32 %v2110_v57, %v1941_v52  ;;  %v1943_v62 = vpop.f32.mrf.mxu0  ;;  %v13480_v1 = vsel %vm3199_vm0, %v3207_v54, %v3208_v55  ;;  %v2952_v2 = vor.u32 %v2950_v47, %v2949_v51  ;;  %v3210_v17 = vor.u32 %v3208_v55, %v2947_v46 }
 0x274   : > { %v2112_v3 = vpop.f32.mrf.mxu1 }
 0x275   : > { %v13482_v4 = vpack.c.bf16 %v2111_v61, %v2108_v48  ;;  %v1946_v5 = vpop.f32.mrf.mxu0  ;;  %2696 = vmatmul.mubr.bf16.gmra.mxu0 %v11437_v53  ;;  %v13485_v6 = vsel %vm2922_vm1, %v2941_v27, %v2952_v2 }
 0x276   : > { %15122 = vst [vmem:[#allocation52_spill] sm:$0xff] %v13485_v6  ;;  %v2115_v7 = vpop.f32.mrf.mxu1  ;;  %2703 = vmatprep.mubr.bf16.mxu0 %v11445_v59  ;;  %2881 = vmatmul.mubr.bf16.gmra.mxu1 %v11452_v60 }
 0x277   : > { %v2955_v8 = vshrl.u32 %v13482_v4, 16  ;;  %v2958_v9 = vshll.u32 %v13482_v4, 16  ;;  %v2116_v10 = vadd.f32 %v2115_v7, %v1946_v5  ;;  %v1948_v11 = vpop.f32.mrf.mxu0  ;;  %2888 = vmatprep.mubr.bf16.mxu1 %v11460_v63 }
 0x278   : > { %v2117_v12 = vpop.f32.mrf.mxu1 }
 0x279   : > { %v2957_v13 = vrot.slane %v2955_v8, 7  ;;  %v1949_v14 = vpop.f32.mrf.mxu0  ;;  %v3211_v19 = vrot.slane %v2958_v9, 1 }
 0x27a   : > { %v2118_v21 = vpop.f32.mrf.mxu1 }
 0x27b   : > { %v2119_v24 = vadd.f32 %v2118_v21, %v1949_v14  ;;  %v1951_v25 = vpop.f32.mrf.mxu0  ;;  %v13502_v27 = vsel %vm3199_vm0, %v3210_v17, %v3211_v19  ;;  %v2960_v28 = vor.u32 %v2958_v9, %v2957_v13  ;;  %v3213_v46 = vor.u32 %v3211_v19, %v2955_v8  ;;  %v11455_v9 = vld [vmem:[%s15118_s27 + $0x1e0] ss:$16 sps:$4 sm:$0xff]  }
 0x27c   : > { %v2120_v29 = vpop.f32.mrf.mxu1 }
 0x27d   : > { %v13504_v30 = vpack.c.bf16 %v2119_v24, %v2116_v10  ;;  %v1954_v31 = vpop.f32.mrf.mxu0  ;;  %2704 = vmatmul.mubr.bf16.gmra.mxu0 %v11443_v16  ;;  %v13507_v32 = vsel %vm2922_vm1, %v2949_v51, %v2960_v28 }
 0x27e   : > { %15123 = vst [vmem:[#allocation53_spill] sm:$0xff] %v13507_v32  ;;  %v2123_v33 = vpop.f32.mrf.mxu1  ;;  %2711 = vmatprep.mubr.bf16.mxu0 %v11451_v22  ;;  %2889 = vmatmul.mubr.bf16.gmra.mxu1 %v11458_v23 }
 0x27f   : > { %v2963_v34 = vshrl.u32 %v13504_v30, 16  ;;  %v2966_v35 = vshll.u32 %v13504_v30, 16  ;;  %v2124_v36 = vadd.f32 %v2123_v33, %v1954_v31  ;;  %v1956_v37 = vpop.f32.mrf.mxu0  ;;  %2896 = vmatprep.mubr.bf16.mxu1 %v11466_v26 }
 0x280   : > { %v2125_v40 = vpop.f32.mrf.mxu1 }
 0x281   : > { %v2965_v41 = vrot.slane %v2963_v34, 7  ;;  %v1957_v43 = vpop.f32.mrf.mxu0  ;;  %v3214_v47 = vrot.slane %v2966_v35, 1 }
 0x282   : > { %v2126_v48 = vpop.f32.mrf.mxu1 }
 0x283   : > { %v2127_v51 = vadd.f32 %v2126_v48, %v1957_v43  ;;  %v1959_v52 = vpop.f32.mrf.mxu0  ;;  %v13521_v53 = vsel %vm3199_vm0, %v3213_v46, %v3214_v47  ;;  %v2968_v54 = vor.u32 %v2966_v35, %v2965_v41  ;;  %v3216_v10 = vor.u32 %v3214_v47, %v2963_v34 }
 0x284   : > { %v2128_v55 = vpop.f32.mrf.mxu1 }
 0x285   : > { %v13523_v57 = vpack.c.bf16 %v2127_v51, %v2124_v36  ;;  %v1962_v59 = vpop.f32.mrf.mxu0  ;;  %2712 = vmatmul.mubr.bf16.gmra.mxu0 %v11449_v45  ;;  %v13526_v60 = vsel %vm2922_vm1, %v2957_v13, %v2968_v54  ;;  %v11463_v13 = vld [vmem:[%s15118_s27 + $0x204] ss:$16 sps:$4 sm:$0xff]   ;;  %v11461_v36 = vld [vmem:[%s15118_s27 + $0x200] ss:$16 sps:$4 sm:$0xff]  }
 0x286   : > { %15124 = vst [vmem:[#allocation54_spill] sm:$0xff] %v13526_v60  ;;  %v2131_v61 = vpop.f32.mrf.mxu1  ;;  %2719 = vmatprep.mubr.bf16.mxu0 %v11457_v49  ;;  %2897 = vmatmul.mubr.bf16.gmra.mxu1 %v11464_v50 }
 0x287   : > { %v2971_v62 = vshrl.u32 %v13523_v57, 16  ;;  %v2974_v63 = vshll.u32 %v13523_v57, 16  ;;  %v2132_v2 = vadd.f32 %v2131_v61, %v1962_v59  ;;  %v1964_v3 = vpop.f32.mrf.mxu0 }
 0x288   : > { %v2133_v5 = vpop.f32.mrf.mxu1 }
 0x289   : > { %v2973_v7 = vrot.slane %v2971_v62, 7  ;;  %v1965_v8 = vpop.f32.mrf.mxu0  ;;  %v3217_v11 = vrot.slane %v2974_v63, 1  ;;  %v11467_v5 = vld [vmem:[%s15118_s27 + $0x8] ss:$16 sps:$4 sm:$0xff]  }
 0x28a   : > { %v2134_v12 = vpop.f32.mrf.mxu1 }
 0x28b   : > { %v2135_v14 = vadd.f32 %v2134_v12, %v1965_v8  ;;  %v1967_v16 = vpop.f32.mrf.mxu0  ;;  %v13537_v17 = vsel %vm3199_vm0, %v3216_v10, %v3217_v11  ;;  %v2976_v19 = vor.u32 %v2974_v63, %v2973_v7  ;;  %v3219_v37 = vor.u32 %v3217_v11, %v2971_v62 }
 0x28c   : > { %v2136_v21 = vpop.f32.mrf.mxu1 }
 0x28d   : > { %v13539_v22 = vpack.c.bf16 %v2135_v14, %v2132_v2  ;;  %v1970_v23 = vpop.f32.mrf.mxu0  ;;  %2720 = vmatmul.mubr.bf16.gmra.mxu0 %v11455_v9  ;;  %v13542_v24 = vsel %vm2922_vm1, %v2965_v41, %v2976_v19  ;;  %v11469_v41 = vld [vmem:[%s15118_s27 + $0xc] ss:$16 sps:$4 sm:$0xff]  }
 0x28e   : > { %15125 = vst [vmem:[#allocation55_spill] sm:$0xff] %v13542_v24  ;;  %v2139_v25 = vpop.f32.mrf.mxu1  ;;  %2727 = vmatprep.mubr.bf16.mxu0 %v11463_v13 }
 0x28f   : > { %v2979_v26 = vshrl.u32 %v13539_v22, 16  ;;  %v2982_v28 = vshll.u32 %v13539_v22, 16  ;;  %v2140_v29 = vadd.f32 %v2139_v25, %v1970_v23  ;;  %v1972_v31 = vpop.f32.mrf.mxu0 }
 0x290   : > { %v2141_v33 = vpop.f32.mrf.mxu1 }
 0x291   : > { %v2981_v34 = vrot.slane %v2979_v26, 7  ;;  %v1973_v35 = vpop.f32.mrf.mxu0  ;;  %v3220_v40 = vrot.slane %v2982_v28, 1 }
 0x292   : > { %v2142_v43 = vpop.f32.mrf.mxu1 }
 0x293   : > { %v2143_v45 = vadd.f32 %v2142_v43, %v1973_v35  ;;  %v1975_v46 = vpop.f32.mrf.mxu0  ;;  %v13553_v47 = vsel %vm3199_vm0, %v3219_v37, %v3220_v40  ;;  %v2984_v48 = vor.u32 %v2982_v28, %v2981_v34  ;;  %v3222_v8 = vor.u32 %v3220_v40, %v2979_v26  ;;  %v11470_v37 = vld [vmem:[%s15118_s27 + $0x28] ss:$16 sps:$4 sm:$0xff]  }
 0x294   : > { %v2144_v49 = vpop.f32.mrf.mxu1 }
 0x295   : > { %v13555_v50 = vpack.c.bf16 %v2143_v45, %v2140_v29  ;;  %v1978_v51 = vpop.f32.mrf.mxu0  ;;  %2728 = vmatmul.mubr.bf16.gmra.mxu0 %v11461_v36  ;;  %v13558_v52 = vsel %vm2922_vm1, %v2973_v7, %v2984_v48  ;;  %v11472_v7 = vld [vmem:[%s15118_s27 + $0x2c] ss:$16 sps:$4 sm:$0xff]  }
 0x296   : > { %15126 = vst [vmem:[#allocation56_spill] sm:$0xff] %v13558_v52  ;;  %v2147_v54 = vpop.f32.mrf.mxu1  ;;  %2768 = vmatprep.mubr.bf16.mxu0 %v11469_v41 }
 0x297   : > { %v2987_v55 = vshrl.u32 %v13555_v50, 16  ;;  %v2990_v59 = vshll.u32 %v13555_v50, 16  ;;  %v2148_v61 = vadd.f32 %v2147_v54, %v1978_v51  ;;  %v1980_v62 = vpop.f32.mrf.mxu0 }
 0x298   : > { %v2149_v63 = vpop.f32.mrf.mxu1 }
 0x299   : > { %v2989_v2 = vrot.slane %v2987_v55, 7  ;;  %v1981_v3 = vpop.f32.mrf.mxu0  ;;  %v3223_v9 = vrot.slane %v2990_v59, 1 }
 0x29a   : > { %v2150_v10 = vpop.f32.mrf.mxu1 }
 0x29b   : > { %v2151_v11 = vadd.f32 %v2150_v10, %v1981_v3  ;;  %v1983_v12 = vpop.f32.mrf.mxu0  ;;  %v13569_v13 = vsel %vm3199_vm0, %v3222_v8, %v3223_v9  ;;  %v2992_v14 = vor.u32 %v2990_v59, %v2989_v2  ;;  %v3225_v40 = vor.u32 %v3223_v9, %v2987_v55 }
 0x29c   : > { %v2152_v16 = vpop.f32.mrf.mxu1 }
 0x29d   : > { %v13571_v19 = vpack.c.bf16 %v2151_v11, %v2148_v61  ;;  %v1986_v21 = vpop.f32.mrf.mxu0  ;;  %2769 = vmatmul.mubr.bf16.vlgmr.msra.gmra.mxu0 %v11467_v5  ;;  %v13574_v23 = vsel %vm2922_vm1, %v2981_v34, %v2992_v14 }
 0x29e   : > { %15127 = vst [vmem:[#allocation57_spill] sm:$0xff] %v13574_v23  ;;  %v2155_v25 = vpop.f32.mrf.mxu1  ;;  %2776 = vmatprep.mubr.bf16.mxu0 %v11472_v7 }
 0x29f   : > { %v2995_v26 = vshrl.u32 %v13571_v19, 16  ;;  %v2998_v28 = vshll.u32 %v13571_v19, 16  ;;  %v2156_v29 = vadd.f32 %v2155_v25, %v1986_v21  ;;  %v1988_v31 = vpop.f32.mrf.mxu0 }
 0x2a0   : > { %v2157_v33 = vpop.f32.mrf.mxu1 }
 0x2a1   : > { %v2997_v35 = vrot.slane %v2995_v26, 7  ;;  %v1989_v36 = vpop.f32.mrf.mxu0  ;;  %v3226_v43 = vrot.slane %v2998_v28, 1 }
 0x2a2   : > { %v2158_v41 = vpop.f32.mrf.mxu1 }
 0x2a3   : > { %v2159_v34 = vadd.f32 %v2158_v41, %v1989_v36  ;;  %v1991_v45 = vpop.f32.mrf.mxu0  ;;  %v13582_v46 = vsel %vm3199_vm0, %v3225_v40, %v3226_v43  ;;  %v3000_v48 = vor.u32 %v2998_v28, %v2997_v35  ;;  %v3228_v10 = vor.u32 %v3226_v43, %v2995_v26 }
 0x2a4   : > { %v2160_v49 = vpop.f32.mrf.mxu1 }
 0x2a5   : > { %v13584_v51 = vpack.c.bf16 %v2159_v34, %v2156_v29  ;;  %v1994_v54 = vpop.f32.mrf.mxu0  ;;  %2777 = vmatmul.mubr.bf16.gmra.mxu0 %v11470_v37  ;;  %v13587_v59 = vsel %vm2922_vm1, %v2989_v2, %v3000_v48 }
 0x2a6   : > { %15128 = vst [vmem:[#allocation58_spill] sm:$0xff] %v13587_v59  ;;  %v2163_v61 = vpop.f32.mrf.mxu1 }
 0x2a7   : > { %v3003_v62 = vshrl.u32 %v13584_v51, 16  ;;  %v3006_v55 = vshll.u32 %v13584_v51, 16  ;;  %v2164_v63 = vadd.f32 %v2163_v61, %v1994_v54  ;;  %v1996_v3 = vpop.f32.mrf.mxu0 }
 0x2a8   : > { %v2165_v5 = vpop.f32.mrf.mxu1 }
 0x2a9   : > { %v3005_v8 = vrot.slane %v3003_v62, 7  ;;  %v1997_v9 = vpop.f32.mrf.mxu0  ;;  %v3229_v7 = vrot.slane %v3006_v55, 1 }
 0x2aa   : > { %v2166_v11 = vpop.f32.mrf.mxu1 }
 0x2ab   : > { %v2167_v12 = vadd.f32 %v2166_v11, %v1997_v9  ;;  %v1999_v14 = vpop.f32.mrf.mxu0  ;;  %v13592_v16 = vsel %vm3199_vm0, %v3228_v10, %v3229_v7  ;;  %v3008_v2 = vor.u32 %v3006_v55, %v3005_v8  ;;  %v3231_v34 = vor.u32 %v3229_v7, %v3003_v62 }
 0x2ac   : > { %v2168_v21 = vpop.f32.mrf.mxu1 }
 0x2ad   : > { %v13594_v25 = vpack.c.bf16 %v2167_v12, %v2164_v63  ;;  %v2002_v28 = vpop.f32.mrf.mxu0  ;;  %v13597_v29 = vsel %vm2922_vm1, %v2997_v35, %v3008_v2 }
 0x2ae   : > { %15130 = vst [vmem:[#allocation60_spill] sm:$0xff] %v13597_v29  ;;  %v2171_v31 = vpop.f32.mrf.mxu1 }
 0x2af   : > { %15129 = vst [vmem:[#allocation59_spill] sm:$0xff] %v13594_v25  ;;  %v3011_v33 = vshrl.u32 %v13594_v25, 16  ;;  %v3014_v26 = vshll.u32 %v13594_v25, 16  ;;  %v2172_v36 = vadd.f32 %v2171_v31, %v2002_v28  ;;  %v2004_v37 = vpop.f32.mrf.mxu0 }
 0x2b0   : > { %v2173_v40 = vpop.f32.mrf.mxu1 }
 0x2b1   : > { %v3013_v43 = vrot.slane %v3011_v33, 7  ;;  %v2005_v41 = vpop.f32.mrf.mxu0  ;;  %v3232_v45 = vrot.slane %v3014_v26, 1 }
 0x2b2   : > { %v2174_v48 = vpop.f32.mrf.mxu1 }
 0x2b3   : > { %v2175_v49 = vadd.f32 %v2174_v48, %v2005_v41  ;;  %v2007_v54 = vpop.f32.mrf.mxu0  ;;  %v13602_v61 = vsel %vm3199_vm0, %v3231_v34, %v3232_v45  ;;  %v3016_v35 = vor.u32 %v3014_v26, %v3013_v43  ;;  %v3234_v21 = vor.u32 %v3232_v45, %v3011_v33 }
 0x2b4   : > { %15131 = vst [vmem:[#allocation61_spill] sm:$0xff] %v13602_v61  ;;  %v2176_v55 = vpop.f32.mrf.mxu1 }
 0x2b5   : > { %v13604_v63 = vpack.c.bf16 %v2175_v49, %v2172_v36  ;;  %v2010_v3 = vpop.f32.mrf.mxu0  ;;  %v13607_v5 = vsel %vm2922_vm1, %v3005_v8, %v3016_v35 }
 0x2b6   : > { %15133 = vst [vmem:[#allocation63_spill] sm:$0xff] %v13607_v5  ;;  %v2179_v9 = vpop.f32.mrf.mxu1 }
 0x2b7   : > { %15132 = vst [vmem:[#allocation62_spill] sm:$0xff] %v13604_v63  ;;  %v3019_v10 = vshrl.u32 %v13604_v63, 16  ;;  %v3022_v62 = vshll.u32 %v13604_v63, 16  ;;  %v2180_v7 = vadd.f32 %v2179_v9, %v2010_v3  ;;  %v2012_v11 = vpop.f32.mrf.mxu0 }
 0x2b8   : > { %v2181_v12 = vpop.f32.mrf.mxu1 }
 0x2b9   : > { %v3021_v14 = vrot.slane %v3019_v10, 7  ;;  %v2013_v2 = vpop.f32.mrf.mxu0  ;;  %v3235_v28 = vrot.slane %v3022_v62, 1 }
 0x2ba   : > { %v2182_v31 = vpop.f32.mrf.mxu1 }
 0x2bb   : > { %v2183_v26 = vadd.f32 %v2182_v31, %v2013_v2  ;;  %v2015_v36 = vpop.f32.mrf.mxu0  ;;  %v13612_v37 = vsel %vm3199_vm0, %v3234_v21, %v3235_v28  ;;  %v3024_v8 = vor.u32 %v3022_v62, %v3021_v14  ;;  %v3237_v11 = vor.u32 %v3235_v28, %v3019_v10 }
 0x2bc   : > { %15134 = vst [vmem:[#allocation64_spill] sm:$0xff] %v13612_v37  ;;  %v2184_v40 = vpop.f32.mrf.mxu1 }
 0x2bd   : > { %v13614_v41 = vpack.c.bf16 %v2183_v26, %v2180_v7  ;;  %v2018_v34 = vpop.f32.mrf.mxu0  ;;  %v13617_v48 = vsel %vm2922_vm1, %v3013_v43, %v3024_v8 }
 0x2be   : > { %15136 = vst [vmem:[#allocation66_spill] sm:$0xff] %v13617_v48  ;;  %v2187_v49 = vpop.f32.mrf.mxu1 }
 0x2bf   : > { %15135 = vst [vmem:[#allocation65_spill] sm:$0xff] %v13614_v41  ;;  %v3027_v54 = vshrl.u32 %v13614_v41, 16  ;;  %v3030_v33 = vshll.u32 %v13614_v41, 16  ;;  %v2188_v45 = vadd.f32 %v2187_v49, %v2018_v34  ;;  %v2020_v35 = vpop.f32.mrf.mxu0 }
 0x2c0   : > { %v2189_v55 = vpop.f32.mrf.mxu1 }
 0x2c1   : > { %v3029_v3 = vrot.slane %v3027_v54, 7  ;;  %v2021_v9 = vpop.f32.mrf.mxu0  ;;  %v3238_v12 = vrot.slane %v3030_v33, 1 }
 0x2c2   : > { %v2190_v62 = vpop.f32.mrf.mxu1 }
 0x2c3   : > { %v2191_v2 = vadd.f32 %v2190_v62, %v2021_v9  ;;  %v2023_v7 = vpop.f32.mrf.mxu0  ;;  %v13622_v21 = vsel %vm3199_vm0, %v3237_v11, %v3238_v12  ;;  %v3032_v43 = vor.u32 %v3030_v33, %v3029_v3  ;;  %v3240_v11 = vor.u32 %v3238_v12, %v3027_v54 }
 0x2c4   : > { %15137 = vst [vmem:[#allocation67_spill] sm:$0xff] %v13622_v21  ;;  %v2192_v31 = vpop.f32.mrf.mxu1 }
 0x2c5   : > { %v13624_v26 = vpack.c.bf16 %v2191_v2, %v2188_v45  ;;  %v2026_v36 = vpop.f32.mrf.mxu0  ;;  %v13627_v8 = vsel %vm2922_vm1, %v3021_v14, %v3032_v43 }
 0x2c6   : > { %15139 = vst [vmem:[#allocation69_spill] sm:$0xff] %v13627_v8  ;;  %v2195_v40 = vpop.f32.mrf.mxu1 }
 0x2c7   : > { %15138 = vst [vmem:[#allocation68_spill] sm:$0xff] %v13624_v26  ;;  %v3035_v34 = vshrl.u32 %v13624_v26, 16  ;;  %v3038_v10 = vshll.u32 %v13624_v26, 16  ;;  %v2196_v28 = vadd.f32 %v2195_v40, %v2026_v36  ;;  %v2028_v49 = vpop.f32.mrf.mxu0 }
 0x2c8   : > { %v2197_v35 = vpop.f32.mrf.mxu1 }
 0x2c9   : > { %v3037_v55 = vrot.slane %v3035_v34, 7  ;;  %v2029_v9 = vpop.f32.mrf.mxu0  ;;  %v3241_v62 = vrot.slane %v3038_v10, 1 }
 0x2ca   : > { %v2198_v33 = vpop.f32.mrf.mxu1 }
 0x2cb   : > { %v2199_v7 = vadd.f32 %v2198_v33, %v2029_v9  ;;  %v2031_v45 = vpop.f32.mrf.mxu0  ;;  %v13632_v2 = vsel %vm3199_vm0, %v3240_v11, %v3241_v62  ;;  %v3040_v14 = vor.u32 %v3038_v10, %v3037_v55  ;;  %v3243_v11 = vor.u32 %v3241_v62, %v3035_v34 }
 0x2cc   : > { %15140 = vst [vmem:[#allocation70_spill] sm:$0xff] %v13632_v2  ;;  %v2200_v43 = vpop.f32.mrf.mxu1 }
 0x2cd   : > { %v13634_v31 = vpack.c.bf16 %v2199_v7, %v2196_v28  ;;  %v2034_v0 = vpop.f32.mrf.mxu0  ;;  %v13637_v8 = vsel %vm2922_vm1, %v3029_v3, %v3040_v14 }
 0x2ce   : > { %15142 = vst [vmem:[#allocation72_spill] sm:$0xff] %v13637_v8  ;;  %v2203_v36 = vpop.f32.mrf.mxu1 }
 0x2cf   : > { %15141 = vst [vmem:[#allocation71_spill] sm:$0xff] %v13634_v31  ;;  %v3043_v40 = vshrl.u32 %v13634_v31, 16  ;;  %v3046_v54 = vshll.u32 %v13634_v31, 16  ;;  %v2204_v12 = vadd.f32 %v2203_v36, %v2034_v0  ;;  %v2036_v49 = vpop.f32.mrf.mxu0 }
 0x2d0   : > { %v2205_v35 = vpop.f32.mrf.mxu1 }
 0x2d1   : > { %v3045_v9 = vrot.slane %v3043_v40, 7  ;;  %v2037_v33 = vpop.f32.mrf.mxu0  ;;  %v3244_v45 = vrot.slane %v3046_v54, 1 }
 0x2d2   : > { %v2206_v10 = vpop.f32.mrf.mxu1 }
 0x2d3   : > { %v2207_v43 = vadd.f32 %v2206_v10, %v2037_v33  ;;  %v2039_v28 = vpop.f32.mrf.mxu0  ;;  %v13642_v7 = vsel %vm3199_vm0, %v3243_v11, %v3244_v45  ;;  %v3048_v3 = vor.u32 %v3046_v54, %v3045_v9  ;;  %v3246_v11 = vor.u32 %v3244_v45, %v3043_v40 }
 0x2d4   : > { %15143 = vst [vmem:[#allocation73_spill] sm:$0xff] %v13642_v7  ;;  %v2208_v14 = vpop.f32.mrf.mxu1 }
 0x2d5   : > { %v13644_v8 = vpack.c.bf16 %v2207_v43, %v2204_v12  ;;  %v13646_v48 = vpop.f32.mrf.mxu0  ;;  %v13649_v0 = vsel %vm2922_vm1, %v3037_v55, %v3048_v3 }
 0x2d6   : > { %15145 = vst [vmem:[#allocation75_spill] sm:$0xff] %v13649_v0  ;;  %v2786_v36 = vpop.f32.mrf.mxu1 }
 0x2d7   : > { %15144 = vst [vmem:[#allocation74_spill] sm:$0xff] %v13644_v8  ;;  %v3054_v49 = vshll.u32 %v13644_v8, 16  ;;  %v2603_v34 = vpop.f32.mrf.mxu0  ;;  %v15064_v62 = vshrl.u32 %v13644_v8, 16 }
 0x2d8   : > { %v2788_v35 = vpop.f32.mrf.mxu1 }
 0x2d9   : > { %v13653_v33 = vpop.f32.mrf.mxu0  ;;  %v13655_v10 = vrot.slane %v3054_v49, 1  ;;  %v3053_v54 = vrot.slane %v15064_v62, 7 }
 0x2da   : > { %v2789_v12 = vpop.f32.mrf.mxu1 }
 0x2db   : > { %15146 = vst [vmem:[#allocation76_spill] sm:$0xff] %v13655_v10  ;;  %v2606_v43 = vpop.f32.mrf.mxu0  ;;  %v13661_v55 = vsel %vm3199_vm0, %v3246_v11, %v13655_v10  ;;  %v3056_v28 = vor.u32 %v3054_v49, %v3053_v54 }
 0x2dc   : > { %15147 = vst [vmem:[#allocation77_spill] sm:$0xff] %v13661_v55  ;;  %v2791_v3 = vpop.f32.mrf.mxu1 }
 0x2dd   : > { %v13663_v14 = vpop.f32.mrf.mxu0  ;;  %v13666_v34 = vsel %vm2922_vm1, %v3045_v9, %v3056_v28 }
 0x2de   : > { %15148 = vst [vmem:[#allocation78_spill] sm:$0xff] %v13666_v34  ;;  %v2794_v35 = vpop.f32.mrf.mxu1 }
 0x2df   : > { %v2611_v40 = vpop.f32.mrf.mxu0 }
 0x2e0   : > { %v2796_v45 = vpop.f32.mrf.mxu1 }
 0x2e1   : > { %v13668_v0 = vpop.f32.mrf.mxu0 }
 0x2e2   : > { %v2797_v5 = vpop.f32.mrf.mxu1 }
 0x2e3   : > { %v2614_v62 = vpop.f32.mrf.mxu0 }
 0x2e4   : > { %v2799_v29 = vpop.f32.mrf.mxu1 }
 0x2e5   : > { %v2617_v43 = vpop.f32.mrf.mxu0 }
 0x2e6   : > { %v2787_v59 = vadd.f32 %v2786_v36, %v2617_v43  ;;  %v2802_v23 = vpop.f32.mrf.mxu1 }
 0x2e7   : > { %v2619_v11 = vpop.f32.mrf.mxu0 }
 0x2e8   : > { %v2804_v52 = vpop.f32.mrf.mxu1 }
 0x2e9   : > { %v2620_v49 = vpop.f32.mrf.mxu0 }
 0x2ea   : > { %v2790_v54 = vadd.f32 %v2789_v12, %v2620_v49  ;;  %v2805_v3 = vpop.f32.mrf.mxu1 }
 0x2eb   : > { %v2622_v24 = vpop.f32.mrf.mxu0 }
 0x2ec   : > { %v13670_v60 = vpack.c.bf16 %v2790_v54, %v2787_v59  ;;  %v2807_v9 = vpop.f32.mrf.mxu1 }
 0x2ed   : > { %v2625_v28 = vpop.f32.mrf.mxu0 }
 0x2ee   : > { %v2795_v40 = vadd.f32 %v2794_v35, %v2625_v28  ;;  %v2810_v45 = vpop.f32.mrf.mxu1  ;;  %v3078_v12 = vshrl.u32 %v13670_v60, 16 }
 0x2ef   : > { %v2627_v34 = vpop.f32.mrf.mxu0 }
 0x2f0   : > { %v2812_v32 = vpop.f32.mrf.mxu1  ;;  %v13677_v9 = vrot.slane %v3078_v12, 7 }
 0x2f1   : > { %v2628_v6 = vpop.f32.mrf.mxu0 }
 0x2f2   : > { %v2798_v62 = vadd.f32 %v2797_v5, %v2628_v6  ;;  %v2813_v29 = vpop.f32.mrf.mxu1 }
 0x2f3   : > { %v2630_v44 = vpop.f32.mrf.mxu0 }
 0x2f4   : > { %v13672_v36 = vpack.c.bf16 %v2798_v62, %v2795_v40  ;;  %v2815_v43 = vpop.f32.mrf.mxu1 }
 0x2f5   : > { %v2633_v52 = vpop.f32.mrf.mxu0 }
 0x2f6   : > { %v3086_v24 = vshrl.u32 %v13672_v36, 16  ;;  %v2803_v59 = vadd.f32 %v2802_v23, %v2633_v52  ;;  %v2818_v11 = vpop.f32.mrf.mxu1  ;;  %v3089_v35 = vshll.u32 %v13672_v36, 16 }
 0x2f7   : > { %v2635_v49 = vpop.f32.mrf.mxu0 }
 0x2f8   : > { %v3088_v54 = vrot.slane %v3086_v24, 7  ;;  %v2820_v34 = vpop.f32.mrf.mxu1 }
 0x2f9   : > { %v2636_v32 = vpop.f32.mrf.mxu0 }
 0x2fa   : > { %v2806_v6 = vadd.f32 %v2805_v3, %v2636_v32  ;;  %v2821_v44 = vpop.f32.mrf.mxu1  ;;  %v3091_v5 = vor.u32 %v3089_v35, %v3088_v54 }
 0x2fb   : > { %v2638_v28 = vpop.f32.mrf.mxu0 }
 0x2fc   : > { %v13679_v40 = vpack.c.bf16 %v2806_v6, %v2803_v59  ;;  %v2823_v62 = vpop.f32.mrf.mxu1  ;;  %v13683_v43 = vsel %vm2922_vm1, %v13677_v9, %v3091_v5 }
 0x2fd   : > { %v2641_v23 = vpop.f32.mrf.mxu0 }
 0x2fe   : > { %v3094_v52 = vshrl.u32 %v13679_v40, 16  ;;  %v2811_v24 = vadd.f32 %v2810_v45, %v2641_v23  ;;  %v2826_v49 = vpop.f32.mrf.mxu1  ;;  %v3097_v12 = vshll.u32 %v13679_v40, 16 }
 0x2ff   : > { %v2643_v34 = vpop.f32.mrf.mxu0 }
 0x300   : > { %v3096_v20 = vrot.slane %v3094_v52, 7  ;;  %v2828_v3 = vpop.f32.mrf.mxu1 }
 0x301   : > { %v2644_v32 = vpop.f32.mrf.mxu0 }
 0x302   : > { %v2814_v35 = vadd.f32 %v2813_v29, %v2644_v32  ;;  %v2829_v28 = vpop.f32.mrf.mxu1  ;;  %v3099_v59 = vor.u32 %v3097_v12, %v3096_v20 }
 0x303   : > { %v2646_v6 = vpop.f32.mrf.mxu0 }
 0x304   : > { %v13687_v62 = vpack.c.bf16 %v2814_v35, %v2811_v24  ;;  %v2831_v10 = vpop.f32.mrf.mxu1  ;;  %v13690_v5 = vsel %vm2922_vm1, %v3088_v54, %v3099_v59 }
 0x305   : > { %v2649_v8 = vpop.f32.mrf.mxu0 }
 0x306   : > { %v3102_v45 = vshrl.u32 %v13687_v62, 16  ;;  %v2819_v23 = vadd.f32 %v2818_v11, %v2649_v8  ;;  %v2834_v34 = vpop.f32.mrf.mxu1  ;;  %v3105_v3 = vshll.u32 %v13687_v62, 16 }
 0x307   : > { %v2651_v52 = vpop.f32.mrf.mxu0 }
 0x308   : > { %v3104_v55 = vrot.slane %v3102_v45, 7  ;;  %v2836_v56 = vpop.f32.mrf.mxu1 }
 0x309   : > { %v2652_v29 = vpop.f32.mrf.mxu0 }
 0x30a   : > { %v2822_v32 = vadd.f32 %v2821_v44, %v2652_v29  ;;  %v2837_v12 = vpop.f32.mrf.mxu1  ;;  %v3107_v6 = vor.u32 %v3105_v3, %v3104_v55 }
 0x30b   : > { %v2654_v24 = vpop.f32.mrf.mxu0 }
 0x30c   : > { %v13694_v35 = vpack.c.bf16 %v2822_v32, %v2819_v23  ;;  %v2839_v10 = vpop.f32.mrf.mxu1  ;;  %v13697_v54 = vsel %vm2922_vm1, %v3096_v20, %v3107_v6 }
 0x30d   : > { %v2657_v59 = vpop.f32.mrf.mxu0 }
 0x30e   : > { %v3110_v8 = vshrl.u32 %v13694_v35, 16  ;;  %v2827_v11 = vadd.f32 %v2826_v49, %v2657_v59  ;;  %v2842_v52 = vpop.f32.mrf.mxu1  ;;  %v3113_v56 = vshll.u32 %v13694_v35, 16 }
 0x30f   : > { %v2659_v45 = vpop.f32.mrf.mxu0 }
 0x310   : > { %v3112_v31 = vrot.slane %v3110_v8, 7  ;;  %v2844_v7 = vpop.f32.mrf.mxu1 }
 0x311   : > { %v2660_v44 = vpop.f32.mrf.mxu0 }
 0x312   : > { %v2830_v29 = vadd.f32 %v2829_v28, %v2660_v44  ;;  %v2845_v3 = vpop.f32.mrf.mxu1  ;;  %v3115_v24 = vor.u32 %v3113_v56, %v3112_v31 }
 0x313   : > { %v2662_v23 = vpop.f32.mrf.mxu0 }
 0x314   : > { %v13701_v32 = vpack.c.bf16 %v2830_v29, %v2827_v11  ;;  %v2847_v10 = vpop.f32.mrf.mxu1  ;;  %v13704_v20 = vsel %vm2922_vm1, %v3104_v55, %v3115_v24 }
 0x315   : > { %v2665_v6 = vpop.f32.mrf.mxu0 }
 0x316   : > { %v3118_v49 = vshrl.u32 %v13701_v32, 16  ;;  %v2835_v59 = vadd.f32 %v2834_v34, %v2665_v6  ;;  %v2850_v45 = vpop.f32.mrf.mxu1  ;;  %v3121_v7 = vshll.u32 %v13701_v32, 16 }
 0x317   : > { %v2667_v8 = vpop.f32.mrf.mxu0 }
 0x318   : > { %v3120_v26 = vrot.slane %v3118_v49, 7  ;;  %v2852_v2 = vpop.f32.mrf.mxu1 }
 0x319   : > { %v2668_v28 = vpop.f32.mrf.mxu0 }
 0x31a   : > { %v2838_v44 = vadd.f32 %v2837_v12, %v2668_v28  ;;  %v2853_v56 = vpop.f32.mrf.mxu1  ;;  %v3123_v23 = vor.u32 %v3121_v7, %v3120_v26 }
 0x31b   : > { %v2670_v11 = vpop.f32.mrf.mxu0 }
 0x31c   : > { %v13708_v29 = vpack.c.bf16 %v2838_v44, %v2835_v59  ;;  %v2855_v10 = vpop.f32.mrf.mxu1  ;;  %v13711_v55 = vsel %vm2922_vm1, %v3112_v31, %v3123_v23 }
 0x31d   : > { %v2673_v24 = vpop.f32.mrf.mxu0 }
 0x31e   : > { %v3126_v34 = vshrl.u32 %v13708_v29, 16  ;;  %v2843_v6 = vadd.f32 %v2842_v52, %v2673_v24  ;;  %v2858_v8 = vpop.f32.mrf.mxu1  ;;  %v3129_v2 = vshll.u32 %v13708_v29, 16 }
 0x31f   : > { %v2675_v49 = vpop.f32.mrf.mxu0 }
 0x320   : > { %v3128_v41 = vrot.slane %v3126_v34, 7  ;;  %v2860_v21 = vpop.f32.mrf.mxu1 }
 0x321   : > { %v2676_v12 = vpop.f32.mrf.mxu0 }
 0x322   : > { %v2846_v28 = vadd.f32 %v2845_v3, %v2676_v12  ;;  %v2861_v7 = vpop.f32.mrf.mxu1  ;;  %v3131_v11 = vor.u32 %v3129_v2, %v3128_v41 }
 0x323   : > { %v2678_v59 = vpop.f32.mrf.mxu0 }
 0x324   : > { %v13715_v44 = vpack.c.bf16 %v2846_v28, %v2843_v6  ;;  %v2863_v10 = vpop.f32.mrf.mxu1  ;;  %v13718_v31 = vsel %vm2922_vm1, %v3120_v26, %v3131_v11 }
 0x325   : > { %v2681_v23 = vpop.f32.mrf.mxu0 }
 0x326   : > { %15149 = vst [vmem:[#allocation79_spill] sm:$0xff] %v13715_v44  ;;  %v3134_v52 = vshrl.u32 %v13715_v44, 16  ;;  %v2851_v24 = vadd.f32 %v2850_v45, %v2681_v23  ;;  %v2866_v49 = vpop.f32.mrf.mxu1  ;;  %v3137_v21 = vshll.u32 %v13715_v44, 16 }
 0x327   : > { %v2683_v34 = vpop.f32.mrf.mxu0 }
 0x328   : > { %v3136_v63 = vrot.slane %v3134_v52, 7  ;;  %v2868_v37 = vpop.f32.mrf.mxu1 }
 0x329   : > { %v2684_v3 = vpop.f32.mrf.mxu0 }
 0x32a   : > { %v2854_v12 = vadd.f32 %v2853_v56, %v2684_v3  ;;  %v2869_v2 = vpop.f32.mrf.mxu1  ;;  %v3139_v59 = vor.u32 %v3137_v21, %v3136_v63 }
 0x32b   : > { %v2686_v6 = vpop.f32.mrf.mxu0 }
 0x32c   : > { %v13722_v28 = vpack.c.bf16 %v2854_v12, %v2851_v24  ;;  %v2871_v10 = vpop.f32.mrf.mxu1  ;;  %v13725_v26 = vsel %vm2922_vm1, %v3128_v41, %v3139_v59 }
 0x32d   : > { %v2689_v11 = vpop.f32.mrf.mxu0 }
 0x32e   : > { %15150 = vst [vmem:[#allocation80_spill] sm:$0xff] %v13722_v28  ;;  %v3142_v45 = vshrl.u32 %v13722_v28, 16  ;;  %v2859_v23 = vadd.f32 %v2858_v8, %v2689_v11  ;;  %v2874_v34 = vpop.f32.mrf.mxu1  ;;  %v3145_v37 = vshll.u32 %v13722_v28, 16 }
 0x32f   : > { %v2691_v52 = vpop.f32.mrf.mxu0 }
 0x330   : > { %v3144_v25 = vrot.slane %v3142_v45, 7  ;;  %v2876_v61 = vpop.f32.mrf.mxu1 }
 0x331   : > { %v2692_v56 = vpop.f32.mrf.mxu0 }
 0x332   : > { %v2862_v3 = vadd.f32 %v2861_v7, %v2692_v56  ;;  %v2877_v21 = vpop.f32.mrf.mxu1  ;;  %v3147_v6 = vor.u32 %v3145_v37, %v3144_v25 }
 0x333   : > { %v2694_v24 = vpop.f32.mrf.mxu0 }
 0x334   : > { %v13729_v12 = vpack.c.bf16 %v2862_v3, %v2859_v23  ;;  %v2879_v10 = vpop.f32.mrf.mxu1  ;;  %v13732_v41 = vsel %vm2922_vm1, %v3136_v63, %v3147_v6 }
 0x335   : > { %15152 = vst [vmem:[#allocation82_spill] sm:$0xff] %v13732_v41  ;;  %v2697_v59 = vpop.f32.mrf.mxu0 }
 0x336   : > { %15151 = vst [vmem:[#allocation81_spill] sm:$0xff] %v13729_v12  ;;  %v3150_v8 = vshrl.u32 %v13729_v12, 16  ;;  %v2867_v11 = vadd.f32 %v2866_v49, %v2697_v59  ;;  %v2882_v52 = vpop.f32.mrf.mxu1  ;;  %v3153_v61 = vshll.u32 %v13729_v12, 16 }
 0x337   : > { %v2699_v45 = vpop.f32.mrf.mxu0 }
 0x338   : > { %v3152_v44 = vrot.slane %v3150_v8, 7  ;;  %v2884_v28 = vpop.f32.mrf.mxu1 }
 0x339   : > { %v2700_v7 = vpop.f32.mrf.mxu0 }
 0x33a   : > { %v2870_v56 = vadd.f32 %v2869_v2, %v2700_v7  ;;  %v2885_v37 = vpop.f32.mrf.mxu1  ;;  %v3155_v24 = vor.u32 %v3153_v61, %v3152_v44 }
 0x33b   : > { %v2702_v23 = vpop.f32.mrf.mxu0 }
 0x33c   : > { %v13736_v3 = vpack.c.bf16 %v2870_v56, %v2867_v11  ;;  %v2887_v10 = vpop.f32.mrf.mxu1  ;;  %v13739_v63 = vsel %vm2922_vm1, %v3144_v25, %v3155_v24 }
 0x33d   : > { %15154 = vst [vmem:[#allocation84_spill] sm:$0xff] %v13739_v63  ;;  %v2705_v6 = vpop.f32.mrf.mxu0 }
 0x33e   : > { %15153 = vst [vmem:[#allocation83_spill] sm:$0xff] %v13736_v3  ;;  %v3158_v49 = vshrl.u32 %v13736_v3, 16  ;;  %v2875_v59 = vadd.f32 %v2874_v34, %v2705_v6  ;;  %v2890_v45 = vpop.f32.mrf.mxu1  ;;  %v3161_v28 = vshll.u32 %v13736_v3, 16 }
 0x33f   : > { %v2707_v8 = vpop.f32.mrf.mxu0 }
 0x340   : > { %v3160_v41 = vrot.slane %v3158_v49, 7  ;;  %v2892_v12 = vpop.f32.mrf.mxu1 }
 0x341   : > { %v2708_v2 = vpop.f32.mrf.mxu0 }
 0x342   : > { %v2878_v7 = vadd.f32 %v2877_v21, %v2708_v2  ;;  %v2893_v61 = vpop.f32.mrf.mxu1  ;;  %v3163_v23 = vor.u32 %v3161_v28, %v3160_v41 }
 0x343   : > { %v2710_v11 = vpop.f32.mrf.mxu0 }
 0x344   : > { %v13743_v56 = vpack.c.bf16 %v2878_v7, %v2875_v59  ;;  %v2895_v10 = vpop.f32.mrf.mxu1  ;;  %v13746_v25 = vsel %vm2922_vm1, %v3152_v44, %v3163_v23 }
 0x345   : > { %15156 = vst [vmem:[#allocation86_spill] sm:$0xff] %v13746_v25  ;;  %v2713_v24 = vpop.f32.mrf.mxu0 }
 0x346   : > { %15155 = vst [vmem:[#allocation85_spill] sm:$0xff] %v13743_v56  ;;  %v3166_v34 = vshrl.u32 %v13743_v56, 16  ;;  %v2883_v6 = vadd.f32 %v2882_v52, %v2713_v24  ;;  %v2898_v8 = vpop.f32.mrf.mxu1  ;;  %v3169_v12 = vshll.u32 %v13743_v56, 16 }
 0x347   : > { %v2715_v49 = vpop.f32.mrf.mxu0 }
 0x348   : > { %v3168_v63 = vrot.slane %v3166_v34, 7  ;;  %v2900_v3 = vpop.f32.mrf.mxu1 }
 0x349   : > { %v2716_v21 = vpop.f32.mrf.mxu0 }
 0x34a   : > { %v2886_v2 = vadd.f32 %v2885_v37, %v2716_v21  ;;  %v2901_v28 = vpop.f32.mrf.mxu1  ;;  %v3171_v11 = vor.u32 %v3169_v12, %v3168_v63 }
 0x34b   : > { %v2718_v59 = vpop.f32.mrf.mxu0 }
 0x34c   : > { %v13750_v7 = vpack.c.bf16 %v2886_v2, %v2883_v6  ;;  %v13753_v44 = vsel %vm2922_vm1, %v3160_v41, %v3171_v11  ;;  %v2903_v23 = vpop.f32.mrf.mxu1  ;;  %v11473_v59 = vld [vmem:[#allocation4 + $0x18] sm:$0x3f]  }
 0x34d   : > { %v2721_v10 = vpop.f32.mrf.mxu0 }
 0x34e   : > { %v3174_v52 = vshrl.u32 %v13750_v7, 16  ;;  %v2891_v24 = vadd.f32 %v2890_v45, %v2721_v10  ;;  %v3177_v56 = vshll.u32 %v13750_v7, 16  ;;  %v15078_v45 = vmov 0.0  }
 0x34f   : > { %v2723_v49 = vpop.f32.mrf.mxu0  ;;  %10598 = vmatprep.subr.bf16.mxu0 %v15078_v45  ;;  %10606 = vmatprep.mubr.msk.bf16.mxu0 %vm12578_vm3, %v15078_v45 }
 0x350   : > { %v3176_v34 = vrot.slane %v3174_v52, 7 }
 0x351   : > { %v2724_v3 = vpop.f32.mrf.mxu0 }
 0x352   : > { %v2894_v25 = vadd.f32 %v2893_v61, %v2724_v3  ;;  %v3179_v37 = vor.u32 %v3177_v56, %v3176_v34  ;;  %v3651_v56 = vsel %vm3649_vm2, %v11473_v59, 0 }
 0x353   : > { %v2726_v21 = vpop.f32.mrf.mxu0  ;;  %10599 = vmatpush3.bf16.msra.mxu0 %v3651_v56  ;;  %v11476_v56 = vld [vmem:[#allocation4] sm:$0xff]  }
 0x354   : > { %v13757_v12 = vpack.c.bf16 %v2894_v25, %v2891_v24  ;;  %v13760_v6 = vsel %vm2922_vm1, %v3168_v63, %v3179_v37  ;;  %10600 = vmatprep.subr.bf16.mxu0 %v15078_v45  ;;  %v11474_v63 = vld [vmem:[#allocation4 + $0x10] sm:$0xff]  }
 0x355   : > { %v2729_v41 = vpop.f32.mrf.mxu0 }
 0x356   : > { %v3182_v2 = vshrl.u32 %v13757_v12, 16  ;;  %v2899_v11 = vadd.f32 %v2898_v8, %v2729_v41  ;;  %v3185_v61 = vshll.u32 %v13757_v12, 16 }
 0x357   : > { %v2731_v23 = vpop.f32.mrf.mxu0  ;;  %10601 = vmatpush3.bf16.msra.mxu0 %v11474_v63 }
 0x358   : > { %v3184_v10 = vrot.slane %v3182_v2, 7  ;;  %10602 = vmatprep.subr.bf16.mxu0 %v15078_v45  ;;  %v11475_v2 = vld [vmem:[#allocation4 + $0x8] sm:$0xff]  }
 0x359   : > { %v2732_v52 = vpop.f32.mrf.mxu0 }
 0x35a   : > { %v2902_v25 = vadd.f32 %v2901_v28, %v2732_v52  ;;  %v3187_v24 = vor.u32 %v3185_v61, %v3184_v10 }
 0x35b   : > { %v2734_v49 = vpop.f32.mrf.mxu0  ;;  %10603 = vmatpush3.bf16.msra.mxu0 %v11475_v2 }
 0x35c   : > { %v13766_v3 = vpack.c.bf16 %v2902_v25, %v2899_v11  ;;  %v13769_v8 = vsel %vm2922_vm1, %v3176_v34, %v3187_v24  ;;  %10604 = vmatprep.subr.bf16.mxu0 %v15078_v45 }
 0x35d   : > { %v2770_v37 = vpop.f32.mrf.mxu0 }
 0x35e   : > { %v3190_v21 = vshrl.u32 %v13766_v3, 16  ;;  %v3193_v28 = vshll.u32 %v13766_v3, 16  ;;  %v2771_v61 = vadd.f32 %v2770_v37, %v13646_v48 }
 0x35f   : > { %v2772_v41 = vpop.f32.mrf.mxu0  ;;  %10605 = vmatpush3.bf16.msra.mxu0 %v11476_v56  ;;  %v3081_v56 = vshll.u32 %v13670_v60, 16 }
 0x360   : > { %v3192_v59 = vrot.slane %v3190_v21, 7 }
 0x361   : > { %v2773_v23 = vpop.f32.mrf.mxu0 }
 0x362   : > { %v2774_v11 = vadd.f32 %v2773_v23, %v13653_v33  ;;  %v3195_v52 = vor.u32 %v3193_v28, %v3192_v59 }
 0x363   : > { %v2775_v34 = vpop.f32.mrf.mxu0 }
 0x364   : > { %v2905_v25 = vpack.c.bf16 %v2774_v11, %v2771_v61  ;;  %v13778_v24 = vsel %vm2922_vm1, %v3184_v10, %v3195_v52 }
 0x365   : > { %v2778_v63 = vpop.f32.mrf.mxu0 }
 0x366   : > { %3357 = vrot.lane.b32.xlu1 %v2905_v25, %s12577_s28  ;;  %v3063_v49 = vshrl.u32 %v2905_v25, 16  ;;  %v3066_v33 = vshll.u32 %v2905_v25, 16  ;;  %v2779_v41 = vadd.f32 %v2778_v63, %v13663_v14  ;;  %v15184_v25 = vld [vmem:[#allocation50_spill] sm:$0xff] }
 0x367   : > { %v2780_v21 = vpop.f32.mrf.mxu0 }
 0x368   : > { %v3065_v48 = vrot.slane %v3063_v49, 7 }
 0x369   : > { %v2781_v37 = vpop.f32.mrf.mxu0 }
 0x36a   : > { %v2782_v2 = vadd.f32 %v2781_v37, %v13668_v0  ;;  %3392 = vrot.lane.b32.xlu1 %v13436_v15, %s12579_s17  ;;  %v3068_v10 = vor.u32 %v3066_v33, %v3065_v48  ;;  %v3887_v33 = vld [vmem:[#allocation6 + $0xf8] sm:$0xff] }
 0x36b   : > { %v2783_v59 = vpop.f32.mrf.mxu0 }
 0x36c   : > { %v2906_v23 = vpack.c.bf16 %v2782_v2, %v2779_v41  ;;  %v3198_v61 = vsel %vm13788_vm5, 0, %v3068_v10  ;;  %v3870_v10 = vld [vmem:[#allocation6 + $0x70] sm:$0xff]  ;;  %v15185_v59 = vld [vmem:[#allocation51_spill] sm:$0xff] }
 0x36d   : > { %3255 = vrot.lane.b32.xlu0 %v3198_v61, %s12580_s5 }
 0x36e   : > { %v3070_v14 = vshrl.u32 %v2906_v23, 16  ;;  %3308 = vrot.lane.b32.xlu1 %v13419_v58, %s12581_s11  ;;  %v3073_v0 = vshll.u32 %v2906_v23, 16 }
 0x370   : > { %v3072_v15 = vrot.slane %v3070_v14, 7  ;;  %v3886_v14 = vld [vmem:[#allocation6 + $0xf0] sm:$0xff] }
 0x371   : > { %3306 = vrot.lane.b32.xlu0 %v13401_v39, %s12581_s11  ;;  %v3083_v39 = vor.u32 %v3081_v56, %v13677_v9 }
 0x372   : > { %3394 = vrot.lane.b32.xlu1 %v13458_v38, %s12579_s17  ;;  %v3075_v11 = vor.u32 %v3073_v0, %v3072_v15  ;;  %v15160_v38 = vld [vmem:[#allocation61_spill] sm:$0xff]  ;;  %v3884_v0 = vld [vmem:[#allocation6 + $0xe0] sm:$0xff] }
 0x373   : > { %v3084_v58 = vsel %vm2922_vm1, %v3072_v15, %v3083_v39  ;;  %v3871_v39 = vld [vmem:[#allocation6 + $0x78] sm:$0xff] }
 0x374   : > { %v3076_v34 = vsel %vm2922_vm1, %v3065_v48, %v3075_v11 }
 0x375   : > { %3257 = vrot.lane.b32.xlu0 %v3076_v34, %s12580_s5 }
 0x376   : > { %3310 = vrot.lane.b32.xlu1 %v13438_v18, %s12581_s11  ;;  %v15159_v18 = vld [vmem:[#allocation79_spill] sm:$0xff] }
 0x379   : > { %3359 = vrot.lane.b32.xlu0 %v2906_v23, %s12577_s28 }
 0x37a   : > { %3396 = vrot.lane.b32.xlu1 %v13480_v1, %s12579_s17  ;;  %v15162_v1 = vld [vmem:[#allocation59_spill] sm:$0xff] }
 0x37d   : > { %3259 = vrot.lane.b32.xlu0 %v3084_v58, %s12580_s5 }
 0x37e   : > { %3312 = vrot.lane.b32.xlu1 %v13460_v42, %s12581_s11  ;;  %v15161_v42 = vld [vmem:[#allocation82_spill] sm:$0xff] }
 0x381   : > { %3361 = vrot.lane.b32.xlu0 %v13670_v60, %s12577_s28  ;;  %v15168_v60 = vld [vmem:[#allocation67_spill] sm:$0xff] }
 0x382   : > { %3398 = vrot.lane.b32.xlu1 %v13502_v27, %s12579_s17  ;;  %v15164_v27 = vld [vmem:[#allocation64_spill] sm:$0xff] }
 0x385   : > { %3261 = vrot.lane.b32.xlu0 %v13683_v43, %s12580_s5  ;;  %v15177_v43 = vld [vmem:[#allocation49_spill] sm:$0xff] }
 0x386   : > { %3314 = vrot.lane.b32.xlu1 %v13482_v4, %s12581_s11  ;;  %v15163_v4 = vld [vmem:[#allocation80_spill] sm:$0xff] }
 0x389   : > { %3363 = vrot.lane.b32.xlu0 %v13672_v36, %s12577_s28  ;;  %v15176_v36 = vld [vmem:[#allocation71_spill] sm:$0xff] }
 0x38a   : > { %3400 = vrot.lane.b32.xlu1 %v13521_v53, %s12579_s17  ;;  %v15166_v53 = vld [vmem:[#allocation62_spill] sm:$0xff] }
 0x38d   : > { %3263 = vrot.lane.b32.xlu0 %v13690_v5, %s12580_s5  ;;  %v15178_v5 = vld [vmem:[#allocation77_spill] sm:$0xff] }
 0x38e   : > { %3316 = vrot.lane.b32.xlu1 %v13504_v30, %s12581_s11  ;;  %v15165_v30 = vld [vmem:[#allocation84_spill] sm:$0xff] }
 0x391   : > { %3365 = vrot.lane.b32.xlu0 %v13679_v40, %s12577_s28 }
 0x392   : > { %3402 = vrot.lane.b32.xlu1 %v13537_v17, %s12579_s17  ;;  %v15169_v17 = vld [vmem:[#allocation86_spill] sm:$0xff] }
 0x395   : > { %3265 = vrot.lane.b32.xlu0 %v13697_v54, %s12580_s5 }
 0x396   : > { %3318 = vrot.lane.b32.xlu1 %v13523_v57, %s12581_s11  ;;  %v15167_v57 = vld [vmem:[#allocation81_spill] sm:$0xff] }
 0x399   : > { %3367 = vrot.lane.b32.xlu0 %v13687_v62, %s12577_s28  ;;  %v3061_v62 = vsel %vm13788_vm5, 0, %v15177_v43 }
 0x39a   : > { %3404 = vrot.lane.b32.xlu1 %v13553_v47, %s12579_s17  ;;  %v15171_v47 = vld [vmem:[#allocation83_spill] sm:$0xff] }
 0x39d   : > { %3267 = vrot.lane.b32.xlu0 %v13704_v20, %s12580_s5 }
 0x39e   : > { %3320 = vrot.lane.b32.xlu1 %v13539_v22, %s12581_s11  ;;  %v15170_v22 = vld [vmem:[#allocation65_spill] sm:$0xff] }
 0x3a1   : > { %3369 = vrot.lane.b32.xlu0 %v13694_v35, %s12577_s28 }
 0x3a2   : > { %3406 = vrot.lane.b32.xlu1 %v13569_v13, %s12579_s17  ;;  %v15173_v13 = vld [vmem:[#allocation68_spill] sm:$0xff] }
 0x3a5   : > { %3269 = vrot.lane.b32.xlu0 %v13711_v55, %s12580_s5  ;;  %v15179_v55 = vld [vmem:[#allocation74_spill] sm:$0xff] }
 0x3a6   : > { %3322 = vrot.lane.b32.xlu1 %v13555_v50, %s12581_s11  ;;  %v15172_v50 = vld [vmem:[#allocation70_spill] sm:$0xff] }
 0x3a9   : > { %3371 = vrot.lane.b32.xlu0 %v13701_v32, %s12577_s28 }
 0x3aa   : > { %3408 = vrot.lane.b32.xlu1 %v13582_v46, %s12579_s17  ;;  %v15174_v46 = vld [vmem:[#allocation85_spill] sm:$0xff] }
 0x3ad   : > { %3271 = vrot.lane.b32.xlu0 %v13718_v31, %s12580_s5  ;;  %v15180_v31 = vshrl.u32 %v15179_v55, 16 }
 0x3ae   : > { %3324 = vrot.lane.b32.xlu1 %v13571_v19, %s12581_s11 }
 0x3b1   : > { %3373 = vrot.lane.b32.xlu0 %v13708_v29, %s12577_s28 }
 0x3b2   : > { %3410 = vrot.lane.b32.xlu1 %v13592_v16, %s12579_s17 }
 0x3b5   : > { %3273 = vrot.lane.b32.xlu0 %v13725_v26, %s12580_s5  ;;  %v15181_v26 = vld [vmem:[#allocation76_spill] sm:$0xff] }
 0x3b6   : > { %3326 = vrot.lane.b32.xlu1 %v13584_v51, %s12581_s11  ;;  %v15175_v51 = vld [vmem:[#allocation73_spill] sm:$0xff] }
 0x3b9   : > { %3375 = vrot.lane.b32.xlu0 %v15159_v18, %s12577_s28  ;;  %v3868_v18 = vld [vmem:[#allocation6 + $0x60] sm:$0xff] }
 0x3ba   : > { %3412 = vrot.lane.b32.xlu1 %v15160_v38, %s12579_s17  ;;  %v15186_v38 = vld [vmem:[#allocation52_spill] sm:$0xff] }
 0x3bd   : > { %3275 = vrot.lane.b32.xlu0 %v15161_v42, %s12580_s5 }
 0x3be   : > { %3328 = vrot.lane.b32.xlu1 %v15162_v1, %s12581_s11  ;;  %v3885_v1 = vld [vmem:[#allocation6 + $0xe8] sm:$0xff] }
 0x3c1   : > { %3377 = vrot.lane.b32.xlu0 %v15163_v4, %s12577_s28 }
 0x3c2   : > { %3414 = vrot.lane.b32.xlu1 %v15164_v27, %s12579_s17 }
 0x3c5   : > { %3277 = vrot.lane.b32.xlu0 %v15165_v30, %s12580_s5  ;;  %v3888_v30 = vld [vmem:[#allocation6 + $0x100] sm:$0xff] }
 0x3c6   : > { %3330 = vrot.lane.b32.xlu1 %v15166_v53, %s12581_s11 }
 0x3c9   : > { %3379 = vrot.lane.b32.xlu0 %v15167_v57, %s12577_s28 }
 0x3ca   : > { %3416 = vrot.lane.b32.xlu1 %v15168_v60, %s12579_s17 }
 0x3cd   : > { %3279 = vrot.lane.b32.xlu0 %v15169_v17, %s12580_s5  ;;  %v3869_v17 = vld [vmem:[#allocation6 + $0x68] sm:$0xff] }
 0x3ce   : > { %3332 = vrot.lane.b32.xlu1 %v15170_v22, %s12581_s11 }
 0x3d1   : > { %3381 = vrot.lane.b32.xlu0 %v15171_v47, %s12577_s28  ;;  %v3872_v47 = vld [vmem:[#allocation6 + $0x80] sm:$0xff] }
 0x3d2   : > { %3418 = vrot.lane.b32.xlu1 %v15172_v50, %s12579_s17  ;;  %v15187_v50 = vld [vmem:[#allocation53_spill] sm:$0xff] }
 0x3d5   : > { %3281 = vrot.lane.b32.xlu0 %v13753_v44, %s12580_s5 }
 0x3d6   : > { %3334 = vrot.lane.b32.xlu1 %v15173_v13, %s12581_s11 }
 0x3d8   : > { %v3358_v19 = vpop.permute.xlu1 %3357 }
 0x3d9   : > { %3383 = vrot.lane.b32.xlu0 %v15174_v46, %s12577_s28  ;;  %v3889_v46 = vld [vmem:[#allocation6 + $0x108] sm:$0xff] }
 0x3da   : > { %3420 = vrot.lane.b32.xlu1 %v15175_v51, %s12579_s17 }
 0x3dc   : > { %v3393_v16 = vpop.permute.xlu1 %3392 }
 0x3dd   : > { %3283 = vrot.lane.b32.xlu0 %v13760_v6, %s12580_s5  ;;  %v9267_v6 = vld [vmem:[#allocation34 + $0x58] sm:$0xff] }
 0x3de   : > { %3336 = vrot.lane.b32.xlu1 %v15176_v36, %s12581_s11  ;;  %v3882_v36 = vld [vmem:[#allocation6 + $0xd0] sm:$0xff] }
 0x3df   : > { %v3256_v9 = vpop.permute.xlu0 %3255 }
 0x3e0   : > { %v3309_v40 = vpop.permute.xlu1 %3308  ;;  %v3429_v35 = vsel %vm3426_vm6, %v3061_v62, %v3256_v9  ;;  %v3873_v62 = vld [vmem:[#allocation6 + $0x88] sm:$0xff] }
 0x3e1   : > { %3385 = vrot.lane.b32.xlu0 %v13750_v7, %s12577_s28  ;;  %v3249_v7 = vor.u32 %v15181_v26, %v15180_v31  ;;  %v3880_v26 = vld [vmem:[#allocation6 + $0xc0] sm:$0xff] }
 0x3e2   : > { %3422 = vrot.lane.b32.xlu1 %v15178_v5, %s12579_s17 }
 0x3e3   : > { %v3307_v54 = vpop.permute.xlu0 %3306  ;;  %v3253_v49 = vsel %vm13929_vm12, %v3249_v7, 0 }
 0x3e4   : > { %v3480_v32 = vsel %vm3478_vm7, %v3429_v35, %v3307_v54  ;;  %v3395_v20 = vpop.permute.xlu1 %3394  ;;  %v3866_v35 = vld [vmem:[#allocation6 + $0x50] sm:$0xff] }
 0x3e5   : > { %v3515_v29 = vsel %vm3513_vm8, %v3480_v32, %v3358_v19  ;;  %3285 = vrot.lane.b32.xlu0 %v13769_v8, %s12580_s5  ;;  %v15188_v54 = vld [vmem:[#allocation54_spill] sm:$0xff] }
 0x3e6   : > { %v3550_v44 = vsel %vm3548_vm9, %v3515_v29, %v3393_v16  ;;  %3338 = vrot.lane.b32.xlu1 %v15179_v55, %s12581_s11  ;;  %v3883_v29 = vld [vmem:[#allocation6 + $0xd8] sm:$0xff] }
 0x3e7   : > { %10607 = vmatmul.mubr.msk.bf16.vlgmr.msra.gmra.mxu0 %vm3614_vm11, %v3550_v44  ;;  %v3258_v52 = vpop.permute.xlu0 %3257 }
 0x3e8   : > { %v3432_v8 = vsel %vm3426_vm6, %v15184_v25, %v3258_v52  ;;  %v3311_v63 = vpop.permute.xlu1 %3310  ;;  %10610 = vmatprep.mubr.msk.bf16.mxu0 %vm12578_vm3, %v15078_v45  ;;  %v3867_v25 = vld [vmem:[#allocation6 + $0x58] sm:$0xff] }
 0x3e9   : > { %3387 = vrot.lane.b32.xlu0 %v13757_v12, %s12577_s28  ;;  %v3482_v21 = vsel %vm3478_vm7, %v3432_v8, %v3309_v40 }
 0x3ea   : > { %3424 = vrot.lane.b32.xlu1 %v3253_v49, %s12579_s17  ;;  %v15189_v49 = vld [vmem:[#allocation55_spill] sm:$0xff]  ;;  %s9667_s17 = sshll.u32 %s15207_s30, 3 }
 0x3eb   : > { %v3360_v48 = vpop.permute.xlu0 %3359  ;;  %s1138_s9 = scalar_lea.vmem %s15202_s8, %s9667_s17 }
 0x3ec   : > { %v3517_v37 = vsel %vm3513_vm8, %v3482_v21, %v3360_v48  ;;  %v3397_v41 = vpop.permute.xlu1 %3396 }
 0x3ed   : > { %v3552_v2 = vsel %vm3548_vm9, %v3517_v37, %v3395_v20  ;;  %3287 = vrot.lane.b32.xlu0 %v13778_v24, %s12580_s5 }
 0x3ee   : > { %4047 = vperm.xlu1 %11236, %v3887_v33   ;;  %v3881_v33 = vld [vmem:[#allocation6 + $0xc8] sm:$0xff] }
 0x3ef   : > { %10611 = vmatmul.mubr.msk.bf16.gmra.mxu0 %vm3614_vm11, %v3552_v2  ;;  %v3260_v12 = vpop.permute.xlu0 %3259  ;;  %v3878_v2 = vld [vmem:[#allocation6 + $0xb0] sm:$0xff] }
 0x3f0   : > { %v3435_v23 = vsel %vm3426_vm6, %v15185_v59, %v3260_v12  ;;  %v3313_v61 = vpop.permute.xlu1 %3312  ;;  %10614 = vmatprep.mubr.msk.bf16.mxu0 %vm12578_vm3, %v15078_v45 }
 0x3f1   : > { %3389 = vrot.lane.b32.xlu0 %v13766_v3, %s12577_s28  ;;  %v3484_v15 = vsel %vm3478_vm7, %v3435_v23, %v3311_v63  ;;  %v3864_v63 = vld [vmem:[#allocation6 + $0x40] sm:$0xff]  ;;  %v3865_v23 = vld [vmem:[#allocation6 + $0x48] sm:$0xff] }
 0x3f2   : > { %3962 = vperm.xlu1 %11236, %v3870_v10  }
 0x3f3   : > { %v3362_v24 = vpop.permute.xlu0 %3361 }
 0x3f4   : > { %v3519_v11 = vsel %vm3513_vm8, %v3484_v15, %v3362_v24  ;;  %v3399_v34 = vpop.permute.xlu1 %3398  ;;  %v15190_v15 = vld [vmem:[#allocation56_spill] sm:$0xff] }
 0x3f5   : > { %v3554_v56 = vsel %vm3548_vm9, %v3519_v11, %v3397_v41  ;;  %4042 = vperm.xlu0 %11235, %v3886_v14   ;;  %v3862_v14 = vld [vmem:[#allocation6 + $0x30] sm:$0xff]  ;;  %v3879_v11 = vld [vmem:[#allocation6 + $0xb8] sm:$0xff] }
 0x3f6   : > { %4032 = vperm.xlu1 %11236, %v3884_v0  }
 0x3f7   : > { %10615 = vmatmul.mubr.msk.bf16.gmra.mxu0 %vm3614_vm11, %v3554_v56  ;;  %v3262_v58 = vpop.permute.xlu0 %3261 }
 0x3f8   : > { %v3438_v3 = vsel %vm3426_vm6, %v15186_v38, %v3262_v58  ;;  %v3315_v42 = vpop.permute.xlu1 %3314  ;;  %10618 = vmatprep.mubr.msk.bf16.mxu0 %vm12578_vm3, %v15078_v45 }
 0x3f9   : > { %3967 = vperm.xlu0 %11235, %v3871_v39   ;;  %v3486_v4 = vsel %vm3478_vm7, %v3438_v3, %v3313_v61  ;;  %v3876_v39 = vld [vmem:[#allocation6 + $0xa0] sm:$0xff]  ;;  %v3863_v3 = vld [vmem:[#allocation6 + $0x38] sm:$0xff] }
 0x3fa   : > { %3952 = vperm.xlu1 %11236, %v3868_v18  }
 0x3fb   : > { %v3364_v27 = vpop.permute.xlu0 %3363 }
 0x3fc   : > { %v3521_v53 = vsel %vm3513_vm8, %v3486_v4, %v3364_v27  ;;  %v3401_v57 = vpop.permute.xlu1 %3400  ;;  %v15191_v4 = vld [vmem:[#allocation57_spill] sm:$0xff] }
 0x3fd   : > { %v3556_v60 = vsel %vm3548_vm9, %v3521_v53, %v3399_v34  ;;  %4037 = vperm.xlu0 %11235, %v3885_v1   ;;  %v3860_v1 = vld [vmem:[#allocation6 + $0x20] sm:$0xff]  ;;  %v3877_v53 = vld [vmem:[#allocation6 + $0xa8] sm:$0xff] }
 0x3fe   : > { %4052 = vperm.xlu1 %11236, %v3888_v30  }
 0x3ff   : > { %10619 = vmatmul.mubr.msk.bf16.gmra.mxu0 %vm3614_vm11, %v3556_v60  ;;  %v3264_v22 = vpop.permute.xlu0 %3263 }
 0x400   : > { %v3441_v13 = vsel %vm3426_vm6, %v15187_v50, %v3264_v22  ;;  %v3317_v19 = vpop.permute.xlu1 %3316  ;;  %10622 = vmatprep.mubr.msk.bf16.mxu0 %vm12578_vm3, %v15078_v45 }
 0x401   : > { %3957 = vperm.xlu0 %11235, %v3869_v17   ;;  %v3488_v51 = vsel %vm3478_vm7, %v3441_v13, %v3315_v42  ;;  %v3874_v17 = vld [vmem:[#allocation6 + $0x90] sm:$0xff]  ;;  %v3861_v13 = vld [vmem:[#allocation6 + $0x28] sm:$0xff] }
 0x402   : > { %3972 = vperm.xlu1 %11236, %v3872_v47  }
 0x403   : > { %v3366_v16 = vpop.permute.xlu0 %3365 }
 0x404   : > { %v3523_v9 = vsel %vm3513_vm8, %v3488_v51, %v3366_v16  ;;  %v3403_v40 = vpop.permute.xlu1 %3402  ;;  %v15192_v51 = vld [vmem:[#allocation58_spill] sm:$0xff] }
 0x405   : > { %v3558_v43 = vsel %vm3548_vm9, %v3523_v9, %v3401_v57  ;;  %4057 = vperm.xlu0 %11235, %v3889_v46   ;;  %v3858_v46 = vld [vmem:[#allocation6 + $0x10] sm:$0xff]  ;;  %v3875_v9 = vld [vmem:[#allocation6 + $0x98] sm:$0xff] }
 0x406   : > { %4022 = vperm.xlu1 %11236, %v3882_v36  }
 0x407   : > { %10623 = vmatmul.mubr.msk.bf16.gmra.mxu0 %vm3614_vm11, %v3558_v43  ;;  %v3266_v5 = vpop.permute.xlu0 %3265 }
 0x408   : > { %v3444_v32 = vsel %vm3426_vm6, %v15188_v54, %v3266_v5  ;;  %v3319_v20 = vpop.permute.xlu1 %3318  ;;  %10626 = vmatprep.mubr.msk.bf16.mxu0 %vm12578_vm3, %v15078_v45 }
 0x409   : > { %3977 = vperm.xlu0 %11235, %v3873_v62   ;;  %v3490_v55 = vsel %vm3478_vm7, %v3444_v32, %v3317_v19  ;;  %v3856_v62 = vld [vmem:[#allocation6] sm:$0xff]  ;;  %v3859_v32 = vld [vmem:[#allocation6 + $0x18] sm:$0xff] }
 0x40a   : > { %3942 = vperm.xlu1 %11236, %v3866_v35  }
 0x40b   : > { %v3368_v31 = vpop.permute.xlu0 %3367 }
 0x40c   : > { %v3525_v7 = vsel %vm3513_vm8, %v3490_v55, %v3368_v31  ;;  %v3405_v44 = vpop.permute.xlu1 %3404 }
 0x40d   : > { %v3560_v52 = vsel %vm3548_vm9, %v3525_v7, %v3403_v40  ;;  %4027 = vperm.xlu0 %11235, %v3883_v29   ;;  %v15193_v29 = vld [vmem:[#allocation60_spill] sm:$0xff] }
 0x40e   : > { %4012 = vperm.xlu1 %11236, %v3880_v26   ;;  %v3857_v26 = vld [vmem:[#allocation6 + $0x8] sm:$0xff] }
 0x40f   : > { %10627 = vmatmul.mubr.msk.bf16.gmra.mxu0 %vm3614_vm11, %v3560_v52  ;;  %v3268_v8 = vpop.permute.xlu0 %3267 }
 0x410   : > { %v3447_v21 = vsel %vm3426_vm6, %v15189_v49, %v3268_v8  ;;  %v3321_v48 = vpop.permute.xlu1 %3320  ;;  %10630 = vmatprep.mubr.msk.bf16.mxu0 %vm12578_vm3, %v15078_v45  ;;  %v15194_v49 = vld [vmem:[#allocation63_spill] sm:$0xff] }
 0x411   : > { %3947 = vperm.xlu0 %11235, %v3867_v25   ;;  %v3492_v37 = vsel %vm3478_vm7, %v3447_v21, %v3319_v20 }
 0x412   : > { %3932 = vperm.xlu1 %11236, %v3864_v63  }
 0x413   : > { %v3370_v41 = vpop.permute.xlu0 %3369 }
 0x414   : > { %v3527_v12 = vsel %vm3513_vm8, %v3492_v37, %v3370_v41  ;;  %v3407_v10 = vpop.permute.xlu1 %3406 }
 0x415   : > { %v3562_v59 = vsel %vm3548_vm9, %v3527_v12, %v3405_v44  ;;  %4017 = vperm.xlu0 %11235, %v3881_v33  }
 0x416   : > { %4002 = vperm.xlu1 %11236, %v3878_v2  }
 0x417   : > { %10631 = vmatmul.mubr.msk.bf16.gmra.mxu0 %vm3614_vm11, %v3562_v59  ;;  %v3270_v61 = vpop.permute.xlu0 %3269  ;;  %v15195_v59 = vld [vmem:[#allocation66_spill] sm:$0xff] }
 0x418   : > { %v3450_v24 = vsel %vm3426_vm6, %v15190_v15, %v3270_v61  ;;  %v3323_v0 = vpop.permute.xlu1 %3322  ;;  %10634 = vmatprep.mubr.msk.bf16.mxu0 %vm12578_vm3, %v15078_v45 }
 0x419   : > { %3937 = vperm.xlu0 %11235, %v3865_v23   ;;  %v3494_v34 = vsel %vm3478_vm7, %v3450_v24, %v3321_v48 }
 0x41a   : > { %3922 = vperm.xlu1 %11236, %v3862_v14  }
 0x41b   : > { %v3372_v56 = vpop.permute.xlu0 %3371 }
 0x41c   : > { %v3529_v58 = vsel %vm3513_vm8, %v3494_v34, %v3372_v56  ;;  %v3409_v18 = vpop.permute.xlu1 %3408  ;;  %v15196_v56 = vld [vmem:[#allocation69_spill] sm:$0xff] }
 0x41d   : > { %v3564_v38 = vsel %vm3548_vm9, %v3529_v58, %v3407_v10  ;;  %4007 = vperm.xlu0 %11235, %v3879_v11  }
 0x41e   : > { %3992 = vperm.xlu1 %11236, %v3876_v39  }
 0x41f   : > { %10635 = vmatmul.mubr.msk.bf16.gmra.mxu0 %vm3614_vm11, %v3564_v38  ;;  %v3272_v42 = vpop.permute.xlu0 %3271 }
 0x420   : > { %v3453_v27 = vsel %vm3426_vm6, %v15191_v4, %v3272_v42  ;;  %v3325_v30 = vpop.permute.xlu1 %3324  ;;  %10638 = vmatprep.mubr.msk.bf16.mxu0 %vm12578_vm3, %v15078_v45 }
 0x421   : > { %3927 = vperm.xlu0 %11235, %v3863_v3   ;;  %v3496_v57 = vsel %vm3478_vm7, %v3453_v27, %v3323_v0  ;;  %v15197_v27 = vld [vmem:[#allocation72_spill] sm:$0xff] }
 0x422   : > { %3912 = vperm.xlu1 %11236, %v3860_v1  }
 0x423   : > { %v3374_v60 = vpop.permute.xlu0 %3373 }
 0x424   : > { %v3531_v22 = vsel %vm3513_vm8, %v3496_v57, %v3374_v60  ;;  %v3411_v47 = vpop.permute.xlu1 %3410 }
 0x425   : > { %v3566_v50 = vsel %vm3548_vm9, %v3531_v22, %v3409_v18  ;;  %3997 = vperm.xlu0 %11235, %v3877_v53  }
 0x426   : > { %3982 = vperm.xlu1 %11236, %v3874_v17  }
 0x427   : > { %10639 = vmatmul.mubr.msk.bf16.gmra.mxu0 %vm3614_vm11, %v3566_v50  ;;  %v3274_v19 = vpop.permute.xlu0 %3273 }
 0x428   : > { %v3456_v16 = vsel %vm3426_vm6, %v15192_v51, %v3274_v19  ;;  %v3327_v36 = vpop.permute.xlu1 %3326  ;;  %10642 = vmatprep.mubr.msk.bf16.mxu0 %vm12578_vm3, %v15078_v45 }
 0x429   : > { %3917 = vperm.xlu0 %11235, %v3861_v13   ;;  %v3498_v40 = vsel %vm3478_vm7, %v3456_v16, %v3325_v30  ;;  %v15198_v13 = vld [vmem:[#allocation75_spill] sm:$0xff] }
 0x42a   : > { %3902 = vperm.xlu1 %11236, %v3858_v46  }
 0x42b   : > { %v3376_v43 = vpop.permute.xlu0 %3375 }
 0x42c   : > { %v3533_v5 = vsel %vm3513_vm8, %v3498_v40, %v3376_v43  ;;  %v3413_v35 = vpop.permute.xlu1 %3412  ;;  %v15199_v43 = vld [vmem:[#allocation78_spill] sm:$0xff] }
 0x42d   : > { %v3568_v54 = vsel %vm3548_vm9, %v3533_v5, %v3411_v47  ;;  %3987 = vperm.xlu0 %11235, %v3875_v9  }
 0x42e   : > { %3892 = vperm.xlu1 %11236, %v3856_v62  }
 0x42f   : > { %10643 = vmatmul.mubr.msk.bf16.gmra.mxu0 %vm3614_vm11, %v3568_v54  ;;  %v3276_v20 = vpop.permute.xlu0 %3275 }
 0x430   : > { %v3459_v55 = vsel %vm3426_vm6, %v15193_v29, %v3276_v20  ;;  %v3329_v31 = vpop.permute.xlu1 %3328  ;;  %10646 = vmatprep.mubr.msk.bf16.mxu0 %vm12578_vm3, %v15078_v45 }
 0x431   : > { %3907 = vperm.xlu0 %11235, %v3859_v32   ;;  %v3500_v7 = vsel %vm3478_vm7, %v3459_v55, %v3327_v36 }
 0x433   : > { %v3378_v44 = vpop.permute.xlu0 %3377 }
 0x434   : > { %v3535_v52 = vsel %vm3513_vm8, %v3500_v7, %v3378_v44  ;;  %v3415_v25 = vpop.permute.xlu1 %3414 }
 0x435   : > { %v3570_v8 = vsel %vm3548_vm9, %v3535_v52, %v3413_v35  ;;  %3897 = vperm.xlu0 %11235, %v3857_v26  }
 0x437   : > { %10647 = vmatmul.mubr.msk.bf16.gmra.mxu0 %vm3614_vm11, %v3570_v8  ;;  %v3278_v63 = vpop.permute.xlu0 %3277 }
 0x438   : > { %v3462_v21 = vsel %vm3426_vm6, %v15194_v49, %v3278_v63  ;;  %v3331_v48 = vpop.permute.xlu1 %3330  ;;  %10650 = vmatprep.mubr.msk.bf16.mxu0 %vm12578_vm3, %v15078_v45 }
 0x439   : > { %v3502_v33 = vsel %vm3478_vm7, %v3462_v21, %v3329_v31 }
 0x43b   : > { %v3380_v37 = vpop.permute.xlu0 %3379 }
 0x43c   : > { %v3537_v41 = vsel %vm3513_vm8, %v3502_v33, %v3380_v37  ;;  %v3417_v2 = vpop.permute.xlu1 %3416 }
 0x43d   : > { %v3572_v12 = vsel %vm3548_vm9, %v3537_v41, %v3415_v25 }
 0x43f   : > { %10651 = vmatmul.mubr.msk.bf16.gmra.mxu0 %vm3614_vm11, %v3572_v12  ;;  %v3280_v10 = vpop.permute.xlu0 %3279 }
 0x440   : > { %v3465_v23 = vsel %vm3426_vm6, %v15195_v59, %v3280_v10  ;;  %v3333_v61 = vpop.permute.xlu1 %3332  ;;  %10654 = vmatprep.mubr.msk.bf16.mxu0 %vm12578_vm3, %v15078_v45 }
 0x441   : > { %v3504_v14 = vsel %vm3478_vm7, %v3465_v23, %v3331_v48 }
 0x443   : > { %v3382_v15 = vpop.permute.xlu0 %3381 }
 0x444   : > { %v3539_v24 = vsel %vm3513_vm8, %v3504_v14, %v3382_v15  ;;  %v3419_v0 = vpop.permute.xlu1 %3418 }
 0x445   : > { %v3574_v11 = vsel %vm3548_vm9, %v3539_v24, %v3417_v2 }
 0x447   : > { %10655 = vmatmul.mubr.msk.bf16.gmra.mxu0 %vm3614_vm11, %v3574_v11  ;;  %v3282_v34 = vpop.permute.xlu0 %3281 }
 0x448   : > { %v3468_v39 = vsel %vm3426_vm6, %v15196_v56, %v3282_v34  ;;  %v3335_v58 = vpop.permute.xlu1 %3334  ;;  %10658 = vmatprep.mubr.msk.bf16.mxu0 %vm12578_vm3, %v15078_v45 }
 0x449   : > { %v3506_v18 = vsel %vm3478_vm7, %v3468_v39, %v3333_v61 }
 0x44b   : > { %v3384_v38 = vpop.permute.xlu0 %3383 }
 0x44c   : > { %v3541_v3 = vsel %vm3513_vm8, %v3506_v18, %v3384_v38  ;;  %v3421_v42 = vpop.permute.xlu1 %3420 }
 0x44d   : > { %v3576_v1 = vsel %vm3548_vm9, %v3541_v3, %v3419_v0 }
 0x44f   : > { %10659 = vmatmul.mubr.msk.bf16.gmra.mxu0 %vm3614_vm11, %v3576_v1  ;;  %v3284_v4 = vpop.permute.xlu0 %3283 }
 0x450   : > { %v3471_v30 = vsel %vm3426_vm6, %v15197_v27, %v3284_v4  ;;  %10662 = vmatprep.mubr.msk.bf16.mxu0 %vm12578_vm3, %v15078_v45  ;;  %v3337_v53 = vpop.permute.xlu1 %3336 }
 0x451   : > { %v3508_v57 = vsel %vm3478_vm7, %v3471_v30, %v3335_v58 }
 0x453   : > { %v3386_v60 = vpop.permute.xlu0 %3385 }
 0x454   : > { %v3543_v17 = vsel %vm3513_vm8, %v3508_v57, %v3386_v60  ;;  %v3423_v50 = vpop.permute.xlu1 %3422 }
 0x455   : > { %v3578_v22 = vsel %vm3548_vm9, %v3543_v17, %v3421_v42 }
 0x457   : > { %10663 = vmatmul.mubr.msk.bf16.gmra.mxu0 %vm3614_vm11, %v3578_v22  ;;  %v3286_v47 = vpop.permute.xlu0 %3285 }
 0x458   : > { %v3474_v19 = vsel %vm3426_vm6, %v15198_v13, %v3286_v47  ;;  %10666 = vmatprep.mubr.msk.bf16.mxu0 %vm12578_vm3, %v15078_v45  ;;  %v3339_v9 = vpop.permute.xlu1 %3338 }
 0x459   : > { %v3510_v46 = vsel %vm3478_vm7, %v3474_v19, %v3337_v53 }
 0x45b   : > { %v3388_v51 = vpop.permute.xlu0 %3387 }
 0x45c   : > { %v3545_v16 = vsel %vm3513_vm8, %v3510_v46, %v3388_v51  ;;  %v3425_v54 = vpop.permute.xlu1 %3424 }
 0x45d   : > { %v3580_v36 = vsel %vm3548_vm9, %v3545_v16, %v3423_v50 }
 0x45f   : > { %10667 = vmatmul.mubr.msk.bf16.gmra.mxu0 %vm3614_vm11, %v3580_v36  ;;  %v3288_v40 = vpop.permute.xlu0 %3287 }
 0x460   : > { %v3477_v62 = vsel %vm3426_vm6, %v15199_v43, %v3288_v40  ;;  %10670 = vmatprep.mubr.msk.bf16.mxu0 %vm12578_vm3, %v15078_v45 }
 0x461   : > { %v3512_v5 = vsel %vm3478_vm7, %v3477_v62, %v3339_v9 }
 0x463   : > { %v3390_v35 = vpop.permute.xlu0 %3389 }
 0x464   : > { %v3547_v32 = vsel %vm3513_vm8, %v3512_v5, %v3390_v35 }
 0x465   : > { %v3582_v20 = vsel %vm3548_vm9, %v3547_v32, %v3425_v54 }
 0x467   : > { %10671 = vmatmul.mubr.msk.bf16.gmra.mxu0 %vm3614_vm11, %v3582_v20 }
 0x469   : > { %v14071_v29 = vpop.permute.xlu1 %4047 }
 0x46d   : > { %v14073_v55 = vpop.permute.xlu1 %3962 }
 0x470   : > { %v14075_v31 = vpop.permute.xlu0 %4042 }
 0x471   : > { %v14077_v26 = vpop.permute.xlu1 %4032 }
 0x474   : > { %v14079_v7 = vpop.permute.xlu0 %3967 }
 0x475   : > { %v14081_v44 = vpop.permute.xlu1 %3952 }
 0x478   : > { %v14083_v52 = vpop.permute.xlu0 %4037 }
 0x479   : > { %v14085_v25 = vpop.permute.xlu1 %4052 }
 0x47c   : > { %v14087_v8 = vpop.permute.xlu0 %3957 }
 0x47d   : > { %v14089_v63 = vpop.permute.xlu1 %3972 }
 0x480   : > { %v14091_v49 = vpop.permute.xlu0 %4057 }
 0x481   : > { %v14093_v21 = vpop.permute.xlu1 %4022 }
 0x484   : > { %v14095_v48 = vpop.permute.xlu0 %3977 }
 0x485   : > { %v14097_v33 = vpop.permute.xlu1 %3942 }
 0x488   : > { %v14099_v37 = vpop.permute.xlu0 %4027 }
 0x489   : > { %v14101_v41 = vpop.permute.xlu1 %4012 }
 0x48c   : > { %v14103_v2 = vpop.permute.xlu0 %3947 }
 0x48d   : > { %v14105_v12 = vpop.permute.xlu1 %3932 }
 0x490   : > { %v14107_v10 = vpop.permute.xlu0 %4017 }
 0x491   : > { %v14109_v59 = vpop.permute.xlu1 %4002 }
 0x494   : > { %v14111_v23 = vpop.permute.xlu0 %3937 }
 0x495   : > { %v14113_v61 = vpop.permute.xlu1 %3922 }
 0x498   : > { %v14115_v14 = vpop.permute.xlu0 %4007 }
 0x499   : > { %v14117_v15 = vpop.permute.xlu1 %3992 }
 0x49c   : > { %v14119_v24 = vpop.permute.xlu0 %3927 }
 0x49d   : > { %v3913_v0 = vpop.permute.xlu1 %3912 }
 0x4a0   : > { %v14121_v11 = vpop.permute.xlu0 %3997 }
 0x4a1   : > { %v14123_v34 = vpop.permute.xlu1 %3982 }
 0x4a4   : > { %v3918_v56 = vpop.permute.xlu0 %3917 }
 0x4a5   : > { %v3903_v58 = vpop.permute.xlu1 %3902 }
 0x4a7   : > { %v3687_v39 = vpop.f32.mrf.mxu0 }
 0x4a8   : > { %v14125_v18 = vpop.permute.xlu0 %3987  ;;  %v3822_v1 = vmax.f32 %v3687_v39, 0.0 }
 0x4a9   : > { %v10608_v38 = vpop.f32.mrf.mxu0  ;;  %v3893_v27 = vpop.permute.xlu1 %3892 }
 0x4aa   : > { %v4060_v60 = vmul.f32 %v3893_v27, %v3822_v1 }
 0x4ab   : > { %v3690_v3 = vpop.f32.mrf.mxu0 }
 0x4ac   : > { %v3908_v42 = vpop.permute.xlu0 %3907  ;;  %v3823_v30 = vmax.f32 %v3690_v3, 0.0 }
 0x4ad   : > { %v10609_v4 = vpop.f32.mrf.mxu0 }
 0x4af   : > { %v3695_v53 = vpop.f32.mrf.mxu0 }
 0x4b0   : > { %v3898_v57 = vpop.permute.xlu0 %3897  ;;  %v3824_v47 = vmax.f32 %v3695_v53, 0.0 }
 0x4b1   : > { %v4061_v17 = vmul.f32 %v3898_v57, %v3823_v30  ;;  %v10612_v22 = vpop.f32.mrf.mxu0 }
 0x4b2   : > { %v4062_v36 = vmul.f32 %v3903_v58, %v3824_v47 }
 0x4b3   : > { %v4094_v50 = vpack.c.bf16 %v4061_v17, %v4060_v60  ;;  %v3698_v13 = vpop.f32.mrf.mxu0 }
 0x4b4   : > { %v3825_v19 = vmax.f32 %v3698_v13, 0.0 }
 0x4b5   : > { %v4112_v46 = vshrl.u32 %v4094_v50, 16  ;;  %v4115_v51 = vshll.u32 %v4094_v50, 16  ;;  %v10613_v16 = vpop.f32.mrf.mxu0 }
 0x4b6   : > { %v4063_v9 = vmul.f32 %v3908_v42, %v3825_v19 }
 0x4b7   : > { %v4114_v40 = vrot.slane %v4112_v46, 7  ;;  %v4281_v43 = vrot.slane %v4115_v51, 1  ;;  %v3703_v62 = vpop.f32.mrf.mxu0 }
 0x4b8   : > { %v4095_v5 = vpack.c.bf16 %v4063_v9, %v4062_v36  ;;  %v3826_v39 = vmax.f32 %v3703_v62, 0.0 }
 0x4b9   : > { %v4117_v35 = vor.u32 %v4115_v51, %v4114_v40  ;;  %v10616_v54 = vpop.f32.mrf.mxu0  ;;  %v4282_v3 = vor.u32 %v4281_v43, %v4112_v46 }
 0x4ba   : > { %v4119_v32 = vshrl.u32 %v4095_v5, 16  ;;  %v4122_v20 = vshll.u32 %v4095_v5, 16  ;;  %v4064_v57 = vmul.f32 %v3913_v0, %v3826_v39 }
 0x4bb   : > { %v4263_v38 = vsel %vm13788_vm5, 0, %v4117_v35  ;;  %v3706_v1 = vpop.f32.mrf.mxu0 }
 0x4bc   : > { %v14129_v4 = vmax.bf16 %v4263_v38, %v4094_v50  ;;  %v4121_v27 = vrot.slane %v4119_v32, 7  ;;  %v4283_v30 = vrot.slane %v4122_v20, 1  ;;  %v3827_v58 = vmax.f32 %v3706_v1, 0.0 }
 0x4bd   : > { %v10617_v42 = vpop.f32.mrf.mxu0 }
 0x4be   : > { %v4124_v53 = vor.u32 %v4122_v20, %v4121_v27  ;;  %v4065_v60 = vmul.f32 %v3918_v56, %v3827_v58  ;;  %v14132_v17 = vsel %vm3199_vm0, %v4282_v3, %v4283_v30  ;;  %v4285_v43 = vor.u32 %v4283_v30, %v4119_v32 }
 0x4bf   : > { %v3711_v22 = vpop.f32.mrf.mxu0  ;;  %v4349_v47 = vmax.bf16 %v14132_v17, %v14129_v4  ;;  %v11486_v4 = vld [vmem:[#allocation7 + $0x48] ss:$12 sps:$4 sm:$0xff]   ;;  %v11491_v17 = vld [vmem:[#allocation7 + $0x64] ss:$12 sps:$4 sm:$0xff]  }
 0x4c0   : > { %v4125_v13 = vsel %vm2922_vm1, %v4114_v40, %v4124_v53  ;;  %v4096_v19 = vpack.c.bf16 %v4065_v60, %v4064_v57  ;;  %v3828_v36 = vmax.f32 %v3711_v22, 0.0 }
 0x4c1   : > { %v4265_v46 = vmax.bf16 %v4125_v13, %v4095_v5  ;;  %v10620_v50 = vpop.f32.mrf.mxu0 }
 0x4c2   : > { %v4127_v51 = vshrl.u32 %v4096_v19, 16  ;;  %v4130_v16 = vshll.u32 %v4096_v19, 16  ;;  %v4066_v20 = vmul.f32 %v14113_v61, %v3828_v36 }
 0x4c3   : > { %v3714_v9 = vpop.f32.mrf.mxu0 }
 0x4c4   : > { %v4129_v62 = vrot.slane %v4127_v51, 7  ;;  %v4286_v0 = vrot.slane %v4130_v16, 1  ;;  %v3829_v56 = vmax.f32 %v3714_v9, 0.0 }
 0x4c5   : > { %v10621_v35 = vpop.f32.mrf.mxu0 }
 0x4c6   : > { %v4132_v54 = vor.u32 %v4130_v16, %v4129_v62  ;;  %v4067_v39 = vmul.f32 %v14119_v24, %v3829_v56  ;;  %v4287_v38 = vsel %vm3199_vm0, %v4285_v43, %v4286_v0  ;;  %v4288_v60 = vor.u32 %v4286_v0, %v4127_v51 }
 0x4c7   : > { %v3719_v40 = vpop.f32.mrf.mxu0  ;;  %v14140_v3 = vmax.bf16 %v4287_v38, %v4265_v46 }
 0x4c8   : > { %v4133_v5 = vsel %vm2922_vm1, %v4121_v27, %v4132_v54  ;;  %v4097_v1 = vpack.c.bf16 %v4067_v39, %v4066_v20  ;;  %v3830_v53 = vmax.f32 %v3719_v40, 0.0 }
 0x4c9   : > { %v4266_v58 = vmax.bf16 %v4133_v5, %v4096_v19  ;;  %v10624_v42 = vpop.f32.mrf.mxu0 }
 0x4ca   : > { %v4135_v32 = vshrl.u32 %v4097_v1, 16  ;;  %v4138_v30 = vshll.u32 %v4097_v1, 16  ;;  %v4068_v16 = vmul.f32 %v14105_v12, %v3830_v53 }
 0x4cb   : > { %v3722_v57 = vpop.f32.mrf.mxu0 }
 0x4cc   : > { %v4137_v22 = vrot.slane %v4135_v32, 7  ;;  %v4289_v13 = vrot.slane %v4138_v30, 1  ;;  %v3831_v61 = vmax.f32 %v3722_v57, 0.0 }
 0x4cd   : > { %v10625_v50 = vpop.f32.mrf.mxu0 }
 0x4ce   : > { %v4140_v24 = vor.u32 %v4138_v30, %v4137_v22  ;;  %v4069_v46 = vmul.f32 %v14111_v23, %v3831_v61  ;;  %v4290_v36 = vsel %vm3199_vm0, %v4288_v60, %v4289_v13  ;;  %v4291_v39 = vor.u32 %v4289_v13, %v4135_v32 }
 0x4cf   : > { %v3727_v27 = vpop.f32.mrf.mxu0  ;;  %v14146_v9 = vmax.bf16 %v4290_v36, %v4266_v58 }
 0x4d0   : > { %v4141_v19 = vsel %vm2922_vm1, %v4129_v62, %v4140_v24  ;;  %v4098_v43 = vpack.c.bf16 %v4069_v46, %v4068_v16  ;;  %v3832_v54 = vmax.f32 %v3727_v27, 0.0  ;;  %v11479_v62 = vld [vmem:[#allocation7 + $0x4] ss:$12 sps:$4 sm:$0xff]  }
 0x4d1   : > { %v4267_v56 = vmax.bf16 %v4141_v19, %v4097_v1  ;;  %v10628_v35 = vpop.f32.mrf.mxu0  ;;  %4597 = vmatprep.mubr.bf16.mxu1 %v11479_v62 }
 0x4d2   : > { %v4143_v51 = vshrl.u32 %v4098_v43, 16  ;;  %v4146_v0 = vshll.u32 %v4098_v43, 16  ;;  %v4070_v42 = vmul.f32 %v14097_v33, %v3832_v54 }
 0x4d3   : > { %v3730_v20 = vpop.f32.mrf.mxu0 }
 0x4d4   : > { %v4145_v38 = vrot.slane %v4143_v51, 7  ;;  %v4292_v40 = vrot.slane %v4146_v0, 1  ;;  %v3833_v12 = vmax.f32 %v3730_v20, 0.0 }
 0x4d5   : > { %v10629_v5 = vpop.f32.mrf.mxu0 }
 0x4d6   : > { %v4148_v23 = vor.u32 %v4146_v0, %v4145_v38  ;;  %v4071_v58 = vmul.f32 %v14103_v2, %v3833_v12  ;;  %v4293_v30 = vsel %vm3199_vm0, %v4291_v39, %v4292_v40  ;;  %v4294_v46 = vor.u32 %v4292_v40, %v4143_v51 }
 0x4d7   : > { %v3735_v53 = vpop.f32.mrf.mxu0  ;;  %v14152_v1 = vmax.bf16 %v4293_v30, %v4267_v56 }
 0x4d8   : > { %v4149_v57 = vsel %vm2922_vm1, %v4137_v22, %v4148_v23  ;;  %v4099_v60 = vpack.c.bf16 %v4071_v58, %v4070_v42  ;;  %v3834_v24 = vmax.f32 %v3735_v53, 0.0 }
 0x4d9   : > { %v4268_v32 = vmax.bf16 %v4149_v57, %v4098_v43  ;;  %v10632_v13 = vpop.f32.mrf.mxu0 }
 0x4da   : > { %v4151_v61 = vshrl.u32 %v4099_v60, 16  ;;  %v4154_v50 = vshll.u32 %v4099_v60, 16  ;;  %v4072_v35 = vmul.f32 %v14081_v44, %v3834_v24 }
 0x4db   : > { %v3738_v16 = vpop.f32.mrf.mxu0 }
 0x4dc   : > { %v4153_v33 = vrot.slane %v4151_v61, 7  ;;  %v4295_v36 = vrot.slane %v4154_v50, 1  ;;  %v3835_v2 = vmax.f32 %v3738_v16, 0.0 }
 0x4dd   : > { %v10633_v27 = vpop.f32.mrf.mxu0 }
 0x4de   : > { %v4156_v19 = vor.u32 %v4154_v50, %v4153_v33  ;;  %v4073_v56 = vmul.f32 %v14087_v8, %v3835_v2  ;;  %v4296_v22 = vsel %vm3199_vm0, %v4294_v46, %v4295_v36  ;;  %v4297_v42 = vor.u32 %v4295_v36, %v4151_v61 }
 0x4df   : > { %v3743_v0 = vpop.f32.mrf.mxu0  ;;  %v14158_v54 = vmax.bf16 %v4296_v22, %v4268_v32 }
 0x4e0   : > { %v4157_v43 = vsel %vm2922_vm1, %v4145_v38, %v4156_v19  ;;  %v4100_v20 = vpack.c.bf16 %v4073_v56, %v4072_v35  ;;  %v3836_v5 = vmax.f32 %v3743_v0, 0.0 }
 0x4e1   : > { %v4269_v39 = vmax.bf16 %v4157_v43, %v4099_v60  ;;  %v10636_v12 = vpop.f32.mrf.mxu0 }
 0x4e2   : > { %v4159_v51 = vshrl.u32 %v4100_v20, 16  ;;  %v4162_v40 = vshll.u32 %v4100_v20, 16  ;;  %v4074_v53 = vmul.f32 %v14073_v55, %v3836_v5 }
 0x4e3   : > { %v3746_v23 = vpop.f32.mrf.mxu0 }
 0x4e4   : > { %v4161_v58 = vrot.slane %v4159_v51, 7  ;;  %v4298_v30 = vrot.slane %v4162_v40, 1  ;;  %v3837_v44 = vmax.f32 %v3746_v23, 0.0 }
 0x4e5   : > { %v10637_v62 = vpop.f32.mrf.mxu0 }
 0x4e6   : > { %v4164_v8 = vor.u32 %v4162_v40, %v4161_v58  ;;  %v4075_v57 = vmul.f32 %v14079_v7, %v3837_v44  ;;  %v4299_v32 = vsel %vm3199_vm0, %v4297_v42, %v4298_v30  ;;  %v4300_v27 = vor.u32 %v4298_v30, %v4159_v51 }
 0x4e7   : > { %v3751_v38 = vpop.f32.mrf.mxu0  ;;  %v14164_v13 = vmax.bf16 %v4299_v32, %v4269_v39 }
 0x4e8   : > { %v4165_v60 = vsel %vm2922_vm1, %v4153_v33, %v4164_v8  ;;  %v4101_v50 = vpack.c.bf16 %v4075_v57, %v4074_v53  ;;  %v3838_v36 = vmax.f32 %v3751_v38, 0.0 }
 0x4e9   : > { %v4270_v24 = vmax.bf16 %v4165_v60, %v4100_v20  ;;  %v10640_v16 = vpop.f32.mrf.mxu0 }
 0x4ea   : > { %v4167_v61 = vshrl.u32 %v4101_v50, 16  ;;  %v4170_v46 = vshll.u32 %v4101_v50, 16  ;;  %v4076_v22 = vmul.f32 %v14089_v63, %v3838_v36 }
 0x4eb   : > { %v3754_v2 = vpop.f32.mrf.mxu0 }
 0x4ec   : > { %v4169_v19 = vrot.slane %v4167_v61, 7  ;;  %v4301_v35 = vrot.slane %v4170_v46, 1  ;;  %v3839_v55 = vmax.f32 %v3754_v2, 0.0 }
 0x4ed   : > { %v10641_v56 = vpop.f32.mrf.mxu0 }
 0x4ee   : > { %v4172_v7 = vor.u32 %v4170_v46, %v4169_v19  ;;  %v4077_v0 = vmul.f32 %v14095_v48, %v3839_v55  ;;  %v4302_v43 = vsel %vm3199_vm0, %v4300_v27, %v4301_v35  ;;  %v4303_v44 = vor.u32 %v4301_v35, %v4167_v61 }
 0x4ef   : > { %v3759_v33 = vpop.f32.mrf.mxu0  ;;  %v14170_v39 = vmax.bf16 %v4302_v43, %v4270_v24 }
 0x4f0   : > { %v4173_v20 = vsel %vm2922_vm1, %v4161_v58, %v4172_v7  ;;  %v4102_v12 = vpack.c.bf16 %v4077_v0, %v4076_v22  ;;  %v3840_v42 = vmax.f32 %v3759_v33, 0.0 }
 0x4f1   : > { %v4271_v40 = vmax.bf16 %v4173_v20, %v4101_v50  ;;  %v10644_v5 = vpop.f32.mrf.mxu0 }
 0x4f2   : > { %v4175_v51 = vshrl.u32 %v4102_v12, 16  ;;  %v4178_v23 = vshll.u32 %v4102_v12, 16  ;;  %v4078_v57 = vmul.f32 %v14123_v34, %v3840_v42 }
 0x4f3   : > { %v3762_v30 = vpop.f32.mrf.mxu0 }
 0x4f4   : > { %v4177_v62 = vrot.slane %v4175_v51, 7  ;;  %v4304_v8 = vrot.slane %v4178_v23, 1  ;;  %v3841_v63 = vmax.f32 %v3762_v30, 0.0 }
 0x4f5   : > { %v10645_v53 = vpop.f32.mrf.mxu0 }
 0x4f6   : > { %v4180_v48 = vor.u32 %v4178_v23, %v4177_v62  ;;  %v4079_v32 = vmul.f32 %v14125_v18, %v3841_v63  ;;  %v4305_v38 = vsel %vm3199_vm0, %v4303_v44, %v4304_v8  ;;  %v4306_v34 = vor.u32 %v4304_v8, %v4175_v51 }
 0x4f7   : > { %v3767_v58 = vpop.f32.mrf.mxu0  ;;  %v14176_v60 = vmax.bf16 %v4305_v38, %v4271_v40 }
 0x4f8   : > { %v4103_v50 = vpack.c.bf16 %v4079_v32, %v4078_v57  ;;  %v4181_v24 = vsel %vm2922_vm1, %v4169_v19, %v4180_v48  ;;  %v3842_v2 = vmax.f32 %v3767_v58, 0.0 }
 0x4f9   : > { %v10648_v16 = vpop.f32.mrf.mxu0  ;;  %v4272_v46 = vmax.bf16 %v4181_v24, %v4102_v12 }
 0x4fa   : > { %v4183_v61 = vshrl.u32 %v4103_v50, 16  ;;  %v4186_v36 = vshll.u32 %v4103_v50, 16  ;;  %v4080_v22 = vmul.f32 %v14117_v15, %v3842_v2 }
 0x4fb   : > { %v3770_v27 = vpop.f32.mrf.mxu0 }
 0x4fc   : > { %v4185_v35 = vrot.slane %v4183_v61, 7  ;;  %v4307_v55 = vrot.slane %v4186_v36, 1  ;;  %v3843_v56 = vmax.f32 %v3770_v27, 0.0 }
 0x4fd   : > { %v10649_v7 = vpop.f32.mrf.mxu0 }
 0x4fe   : > { %v4188_v18 = vor.u32 %v4186_v36, %v4185_v35  ;;  %v4081_v0 = vmul.f32 %v14121_v11, %v3843_v56  ;;  %v4308_v43 = vsel %vm3199_vm0, %v4306_v34, %v4307_v55  ;;  %v4309_v63 = vor.u32 %v4307_v55, %v4183_v61 }
 0x4ff   : > { %v3775_v33 = vpop.f32.mrf.mxu0  ;;  %v14182_v19 = vmax.bf16 %v4308_v43, %v4272_v46 }
 0x500   : > { %v4104_v20 = vpack.c.bf16 %v4081_v0, %v4080_v22  ;;  %v4189_v12 = vsel %vm2922_vm1, %v4177_v62, %v4188_v18  ;;  %v3844_v30 = vmax.f32 %v3775_v33, 0.0 }
 0x501   : > { %v10652_v40 = vpop.f32.mrf.mxu0  ;;  %v4273_v5 = vmax.bf16 %v4189_v12, %v4103_v50 }
 0x502   : > { %v4191_v23 = vshrl.u32 %v4104_v20, 16  ;;  %v4194_v42 = vshll.u32 %v4104_v20, 16  ;;  %v4082_v48 = vmul.f32 %v14109_v59, %v3844_v30 }
 0x503   : > { %v3778_v51 = vpop.f32.mrf.mxu0 }
 0x504   : > { %v14185_v44 = vrot.slane %v4191_v23, 7  ;;  %v4310_v8 = vrot.slane %v4194_v42, 1  ;;  %v3845_v15 = vmax.f32 %v3778_v51, 0.0 }
 0x505   : > { %v10653_v11 = vpop.f32.mrf.mxu0 }
 0x506   : > { %v4196_v53 = vor.u32 %v4194_v42, %v14185_v44  ;;  %v4083_v57 = vmul.f32 %v14115_v14, %v3845_v15  ;;  %v4311_v62 = vsel %vm3199_vm0, %v4309_v63, %v4310_v8  ;;  %v4312_v59 = vor.u32 %v4310_v8, %v4191_v23 }
 0x507   : > { %v3783_v32 = vpop.f32.mrf.mxu0  ;;  %v14191_v38 = vmax.bf16 %v4311_v62, %v4273_v5 }
 0x508   : > { %v14193_v58 = vpack.c.bf16 %v4083_v57, %v4082_v48  ;;  %v4197_v50 = vsel %vm2922_vm1, %v4185_v35, %v4196_v53  ;;  %v3846_v53 = vmax.f32 %v3783_v32, 0.0 }
 0x509   : > { %v10656_v24 = vpop.f32.mrf.mxu0  ;;  %v4274_v16 = vmax.bf16 %v4197_v50, %v4104_v20 }
 0x50a   : > { %v4202_v46 = vshll.u32 %v14193_v58, 16 }
 0x50b   : > { %v3786_v61 = vpop.f32.mrf.mxu0 }
 0x50c   : > { %v14199_v36 = vrot.slane %v4202_v46, 1  ;;  %v3847_v51 = vmax.f32 %v3786_v61, 0.0  ;;  %v4084_v61 = vmul.f32 %v14101_v41, %v3846_v53 }
 0x50d   : > { %v10657_v14 = vpop.f32.mrf.mxu0 }
 0x50e   : > { %v4314_v2 = vsel %vm3199_vm0, %v4312_v59, %v14199_v36 }
 0x50f   : > { %v3791_v27 = vpop.f32.mrf.mxu0  ;;  %v14203_v55 = vmax.bf16 %v4314_v2, %v4274_v16 }
 0x510   : > { %v3848_v5 = vmax.f32 %v3791_v27, 0.0 }
 0x511   : > { %v10660_v56 = vpop.f32.mrf.mxu0 }
 0x512   : > { %v4086_v48 = vmul.f32 %v14093_v21, %v3848_v5  ;;  %v4199_v5 = vshrl.u32 %v14193_v58, 16 }
 0x513   : > { %v3794_v34 = vpop.f32.mrf.mxu0 }
 0x514   : > { %v3849_v20 = vmax.f32 %v3794_v34, 0.0 }
 0x515   : > { %v10661_v35 = vpop.f32.mrf.mxu0 }
 0x516   : > { %v4087_v8 = vmul.f32 %v14099_v37, %v3849_v20 }
 0x517   : > { %v3799_v7 = vpop.f32.mrf.mxu0 }
 0x518   : > { %v3850_v33 = vmax.f32 %v3799_v7, 0.0  ;;  %v4107_v24 = vpack.c.bf16 %v4087_v8, %v4086_v48 }
 0x519   : > { %v10664_v18 = vpop.f32.mrf.mxu0 }
 0x51a   : > { %v4088_v42 = vmul.f32 %v14077_v26, %v3850_v33  ;;  %v4215_v32 = vshrl.u32 %v4107_v24, 16 }
 0x51b   : > { %v3802_v22 = vpop.f32.mrf.mxu0 }
 0x51c   : > { %v3851_v0 = vmax.f32 %v3802_v22, 0.0 }
 0x51d   : > { %v10665_v43 = vpop.f32.mrf.mxu0 }
 0x51e   : > { %v4089_v40 = vmul.f32 %v14083_v52, %v3851_v0  ;;  %v4085_v52 = vmul.f32 %v14107_v10, %v3847_v51  ;;  %v4217_v0 = vrot.slane %v4215_v32, 7  ;;  %v4218_v43 = vshll.u32 %v4107_v24, 16 }
 0x51f   : > { %v3807_v12 = vpop.f32.mrf.mxu0 }
 0x520   : > { %v3852_v30 = vmax.f32 %v3807_v12, 0.0  ;;  %v4108_v63 = vpack.c.bf16 %v4089_v40, %v4088_v42  ;;  %v4106_v27 = vpack.c.bf16 %v4085_v52, %v4084_v61  ;;  %v4220_v8 = vor.u32 %v4218_v43, %v4217_v0 }
 0x521   : > { %v10668_v23 = vpop.f32.mrf.mxu0 }
 0x522   : > { %v4090_v62 = vmul.f32 %v14075_v31, %v3852_v30  ;;  %v4223_v26 = vshrl.u32 %v4108_v63, 16  ;;  %v4226_v56 = vshll.u32 %v4108_v63, 16  ;;  %v4207_v41 = vshrl.u32 %v4106_v27, 16 }
 0x523   : > { %v3810_v15 = vpop.f32.mrf.mxu0  ;;  %v4210_v51 = vshll.u32 %v4106_v27, 16 }
 0x524   : > { %v3853_v11 = vmax.f32 %v3810_v15, 0.0  ;;  %v4225_v34 = vrot.slane %v4223_v26, 7  ;;  %v4322_v20 = vrot.slane %v4226_v56, 1  ;;  %v4209_v30 = vrot.slane %v4207_v41, 7 }
 0x525   : > { %v10669_v57 = vpop.f32.mrf.mxu0 }
 0x526   : > { %v4091_v50 = vmul.f32 %v14071_v29, %v3853_v11  ;;  %v4228_v33 = vor.u32 %v4226_v56, %v4225_v34  ;;  %v4324_v53 = vor.u32 %v4322_v20, %v4223_v26  ;;  %v4212_v61 = vor.u32 %v4210_v51, %v4209_v30 }
 0x527   : > { %v3815_v16 = vpop.f32.mrf.mxu0 }
 0x528   : > { %v4109_v59 = vpack.c.bf16 %v4091_v50, %v4090_v62  ;;  %v3854_v2 = vmax.f32 %v3815_v16, 0.0  ;;  %v4229_v11 = vsel %vm2922_vm1, %v4217_v0, %v4228_v33  ;;  %v4201_v50 = vrot.slane %v4199_v5, 7  ;;  %v11497_v0 = vld [vmem:[#allocation7 + $0x94] ss:$12 sps:$4 sm:$0xff]   ;;  %v11500_v33 = vld [vmem:[#allocation7 + $0xac] ss:$12 sps:$4 sm:$0xff]  }
 0x529   : > { %v10672_v37 = vpop.f32.mrf.mxu0  ;;  %v4278_v16 = vmax.bf16 %v4229_v11, %v4108_v63 }
 0x52a   : > { %v4231_v14 = vshrl.u32 %v4109_v59, 16  ;;  %v4234_v31 = vshll.u32 %v4109_v59, 16  ;;  %v4092_v18 = vmul.f32 %v14085_v25, %v3854_v2  ;;  %v4319_v25 = vrot.slane %v4218_v43, 1  ;;  %v11495_v43 = vld [vmem:[#allocation7 + $0x90] ss:$12 sps:$4 sm:$0xff]  }
 0x52b   : > { %v3818_v21 = vpop.f32.mrf.mxu0  ;;  %v4316_v37 = vrot.slane %v4210_v51, 1  ;;  %v4221_v2 = vsel %vm2922_vm1, %v4209_v30, %v4220_v8  ;;  %v11507_v30 = vld [vmem:[#allocation7 + $0x50] ss:$12 sps:$4 sm:$0xff]   ;;  %v11508_v51 = vld [vmem:[#allocation7 + $0x68] ss:$12 sps:$4 sm:$0xff]  }
 0x52c   : > { %v14213_v35 = vrot.slane %v4231_v14, 7  ;;  %v3855_v29 = vmax.f32 %v3818_v21, 0.0  ;;  %v4325_v12 = vrot.slane %v4234_v31, 1  ;;  %v4321_v56 = vor.u32 %v4319_v25, %v4215_v32  ;;  %v11509_v8 = vld [vmem:[#allocation7 + $0x80] ss:$12 sps:$4 sm:$0xff]  }
 0x52d   : > { %v10673_v7 = vpop.f32.mrf.mxu0  ;;  %v4277_v26 = vmax.bf16 %v4221_v2, %v4107_v24 }
 0x52e   : > { %v4236_v10 = vor.u32 %v4234_v31, %v14213_v35  ;;  %v4093_v22 = vmul.f32 %v14091_v49, %v3855_v29  ;;  %v4327_v15 = vor.u32 %v4325_v12, %v4231_v14  ;;  %v4326_v62 = vsel %vm3199_vm0, %v4324_v53, %v4325_v12  ;;  %v11503_v12 = vld [vmem:[#allocation7 + $0xc4] ss:$12 sps:$4 sm:$0xff]  }
 0x52f   : > { %v4363_v21 = vmax.bf16 %v4326_v62, %v4278_v16  ;;  %v4323_v14 = vsel %vm3199_vm0, %v4321_v56, %v4322_v20  ;;  %v4318_v31 = vor.u32 %v4316_v37, %v4207_v41  ;;  %v4315_v7 = vor.u32 %v14199_v36, %v4199_v5  ;;  %v11477_v36 = vld [vmem:[#allocation7] ss:$12 sps:$4 sm:$0xff]   ;;  %v11492_v41 = vld [vmem:[#allocation7 + $0x78] ss:$12 sps:$4 sm:$0xff]   ;;  %v11498_v20 = vld [vmem:[#allocation7 + $0xa8] ss:$12 sps:$4 sm:$0xff]  }
 0x530   : > { %v14218_v40 = vpack.c.bf16 %v4093_v22, %v4092_v18  ;;  %v4237_v42 = vsel %vm2922_vm1, %v4225_v34, %v4236_v10  ;;  %v4213_v34 = vsel %vm2922_vm1, %v4201_v50, %v4212_v61  ;;  %v4362_v63 = vmax.bf16 %v4323_v14, %v4277_v26  ;;  %v11494_v22 = vld [vmem:[#allocation7 + $0x7c] ss:$12 sps:$4 sm:$0xff]   ;;  %v11515_v26 = vld [vmem:[#allocation9 + $0x74] ss:$8 sps:$4 sm:$0xff]  }
 0x531   : > { %v4279_v48 = vmax.bf16 %v4237_v42, %v4109_v59  ;;  %v4204_v59 = vor.u32 %v4202_v46, %v4201_v50  ;;  %v4320_v29 = vsel %vm3199_vm0, %v4318_v31, %v4319_v25  ;;  %v4276_v32 = vmax.bf16 %v4213_v34, %v4106_v27  ;;  %v11504_v5 = vld [vmem:[#allocation7 + $0x8] ss:$12 sps:$4 sm:$0xff]   ;;  %v11506_v42 = vld [vmem:[#allocation7 + $0x38] ss:$12 sps:$4 sm:$0xff]   ;;  %5120 = vmatprep.subr.bf16.mxu0 %v11515_v26 }
 0x532   : > { %v4242_v23 = vshll.u32 %v14218_v40, 16  ;;  %v4317_v46 = vsel %vm3199_vm0, %v4315_v7, %v4316_v37  ;;  %v4239_v18 = vshrl.u32 %v14218_v40, 16  ;;  %v11510_v25 = vld [vmem:[#allocation7 + $0x98] ss:$12 sps:$4 sm:$0xff]   ;;  %v11513_v14 = vld [vmem:[#allocation9 + $0x70] ss:$8 sps:$4 sm:$0xff]  }
 0x533   : > { %v4361_v10 = vmax.bf16 %v4320_v29, %v4276_v32  ;;  %v11518_v34 = vld [vmem:[#allocation9 + $0x64] ss:$8 sps:$4 sm:$0xff]   ;;  %5121 = vmatpush1.bf16.msra.mxu0 %v11513_v14  ;;  %v11521_v32 = vld [vmem:[#allocation9 + $0x54] ss:$8 sps:$4 sm:$0xff]   ;;  %v11519_v7 = vld [vmem:[#allocation9 + $0x50] ss:$8 sps:$4 sm:$0xff]  }
 0x534   : > { %v4328_v49 = vrot.slane %v4242_v23, 1  ;;  %v4241_v27 = vrot.slane %v4239_v18, 7  ;;  %5122 = vmatprep.subr.bf16.mxu0 %v11518_v34 }
 0x536   : > { %v4329_v57 = vsel %vm3199_vm0, %v4327_v15, %v4328_v49  ;;  %v11511_v15 = vld [vmem:[#allocation7 + $0xb0] ss:$12 sps:$4 sm:$0xff]  }
 0x537   : > { %v4364_v52 = vmax.bf16 %v4329_v57, %v4279_v48 }
 0x539   : > { %10241 = vmatprep.subr.bf16.mxu1 %v4364_v52 }
 0x53a   : > { %10242 = vmatpush3.bf16.msra.mxu1 %v14176_v60  ;;  %v4205_v60 = vsel %vm2922_vm1, %v14185_v44, %v4204_v59  ;;  %v4244_v44 = vor.u32 %v4242_v23, %v4241_v27  ;;  %v11505_v23 = vld [vmem:[#allocation7 + $0x20] ss:$12 sps:$4 sm:$0xff]  }
 0x53b   : > { %10243 = vmatprep.subr.bf16.mxu1 %v4363_v21  ;;  %v4275_v24 = vmax.bf16 %v4205_v60, %v14193_v58  ;;  %v4330_v58 = vor.u32 %v4328_v49, %v4239_v18  ;;  %v11512_v49 = vld [vmem:[#allocation7 + $0xc8] ss:$12 sps:$4 sm:$0xff]  }
 0x53e   : > { %10244 = vmatpush3.bf16.msra.mxu1 %v14170_v39  ;;  %v4360_v39 = vmax.bf16 %v4317_v46, %v4275_v24  ;;  %v11524_v24 = vld [vmem:[#allocation9 + $0x44] ss:$8 sps:$4 sm:$0xff]  }
 0x53f   : > { %10245 = vmatprep.subr.bf16.mxu1 %v4362_v63  ;;  %v11516_v63 = vld [vmem:[#allocation9 + $0x60] ss:$8 sps:$4 sm:$0xff]  }
 0x540   : > { %5123 = vmatpush1.bf16.msra.mxu0 %v11516_v63 }
 0x541   : > { %5124 = vmatprep.subr.bf16.mxu0 %v11521_v32 }
 0x542   : > { %10246 = vmatpush3.bf16.msra.mxu1 %v14164_v13  ;;  %v4245_v13 = vsel %vm2922_vm1, %v14213_v35, %v4244_v44  ;;  %v11488_v35 = vld [vmem:[#allocation7 + $0x4c] ss:$12 sps:$4 sm:$0xff]  }
 0x543   : > { %10247 = vmatprep.subr.bf16.mxu1 %v4361_v10  ;;  %v11527_v44 = vld [vmem:[#allocation9 + $0x34] ss:$8 sps:$4 sm:$0xff]  }
 0x544   : > { %5125 = vmatpush1.bf16.msra.mxu0 %v11519_v7 }
 0x545   : > { %5126 = vmatprep.subr.bf16.mxu0 %v11524_v24 }
 0x546   : > { %10248 = vmatpush3.bf16.msra.mxu1 %v14158_v54  ;;  %v4280_v54 = vmax.bf16 %v4245_v13, %v14218_v40  ;;  %v11501_v40 = vld [vmem:[#allocation7 + $0xc0] ss:$12 sps:$4 sm:$0xff]  }
 0x547   : > { %10249 = vmatprep.subr.bf16.mxu1 %v4360_v39  ;;  %v11522_v39 = vld [vmem:[#allocation9 + $0x40] ss:$8 sps:$4 sm:$0xff]  }
 0x548   : > { %5127 = vmatpush1.bf16.msra.mxu0 %v11522_v39 }
 0x549   : > { %5128 = vmatprep.subr.bf16.mxu0 %v11527_v44 }
 0x54a   : > { %10250 = vmatpush3.bf16.msra.mxu1 %v14152_v1  ;;  %v11482_v1 = vld [vmem:[#allocation7 + $0x1c] ss:$12 sps:$4 sm:$0xff]  }
 0x54b   : > { %10251 = vmatprep.subr.bf16.mxu1 %v14203_v55  ;;  %v11483_v55 = vld [vmem:[#allocation7 + $0x30] ss:$12 sps:$4 sm:$0xff]  }
 0x54e   : > { %10252 = vmatpush3.bf16.msra.mxu1 %v14146_v9  ;;  %v4348_v9 = vsel %vm13929_vm12, %v4330_v58, 0  ;;  %v11525_v58 = vld [vmem:[#allocation9 + $0x30] ss:$8 sps:$4 sm:$0xff]  }
 0x54f   : > { %10253 = vmatprep.subr.bf16.mxu1 %v14191_v38  ;;  %v4365_v38 = vmax.bf16 %v4348_v9, %v4280_v54  ;;  %5129 = vmatpush1.bf16.msra.mxu0 %v11525_v58 }
 0x552   : > { %10254 = vmatpush3.bf16.msra.mxu1 %v14140_v3  ;;  %v11480_v3 = vld [vmem:[#allocation7 + $0x18] ss:$12 sps:$4 sm:$0xff]  }
 0x553   : > { %10255 = vmatprep.subr.bf16.mxu1 %v14182_v19  ;;  %v11485_v19 = vld [vmem:[#allocation7 + $0x34] ss:$12 sps:$4 sm:$0xff]  }
 0x556   : > { %10256 = vmatpush3.bf16.msra.mxu1 %v4349_v47  ;;  %v11489_v47 = vld [vmem:[#allocation7 + $0x60] ss:$12 sps:$4 sm:$0xff]  }
 0x557   : > { %10674 = vmatprep.subr.bf16.mxu1 %v15078_v45 }
 0x559   : > { %4598 = vmatmul.mubr.bf16.vlgmr.msra.gmra.mxu1 %v11477_v36 }
 0x55a   : > { %10675 = vmatpush3.bf16.msra.mxu1 %v4365_v38  ;;  %4605 = vmatprep.mubr.bf16.mxu1 %v11482_v1  ;;  %v11530_v1 = vld [vmem:[#allocation9 + $0x24] ss:$8 sps:$4 sm:$0xff]   ;;  %v11528_v38 = vld [vmem:[#allocation9 + $0x20] ss:$8 sps:$4 sm:$0xff]  }
 0x55b   : > { %5130 = vmatprep.subr.bf16.mxu0 %v11530_v1 }
 0x55c   : > { %5131 = vmatpush1.bf16.msra.mxu0 %v11528_v38 }
 0x561   : > { %4606 = vmatmul.mubr.bf16.gmra.mxu1 %v11480_v3 }
 0x562   : > { %4613 = vmatprep.mubr.bf16.mxu1 %v11485_v19  ;;  %v11533_v19 = vld [vmem:[#allocation9 + $0x14] ss:$8 sps:$4 sm:$0xff]  }
 0x563   : > { %5132 = vmatprep.subr.bf16.mxu0 %v11533_v19 }
 0x569   : > { %4614 = vmatmul.mubr.bf16.gmra.mxu1 %v11483_v55 }
 0x56a   : > { %4621 = vmatprep.mubr.bf16.mxu1 %v11488_v35  ;;  %v11531_v35 = vld [vmem:[#allocation9 + $0x10] ss:$8 sps:$4 sm:$0xff]  }
 0x56b   : > { %5133 = vmatpush1.bf16.msra.mxu0 %v11531_v35 }
 0x571   : > { %4622 = vmatmul.mubr.bf16.gmra.mxu1 %v11486_v4 }
 0x572   : > { %4629 = vmatprep.mubr.bf16.mxu1 %v11491_v17 }
 0x579   : > { %4630 = vmatmul.mubr.bf16.gmra.mxu1 %v11489_v47  ;;  %v11536_v47 = vld [vmem:[#allocation9 + $0x4] ss:$8 sps:$4 sm:$0xff]  }
 0x57a   : > { %4637 = vmatprep.mubr.bf16.mxu1 %v11494_v22  ;;  %5134 = vmatprep.subr.bf16.mxu0 %v11536_v47 }
 0x581   : > { %4638 = vmatmul.mubr.bf16.gmra.mxu1 %v11492_v41  ;;  %v11534_v41 = vld [vmem:[#allocation9] ss:$8 sps:$4 sm:$0xff]  }
 0x582   : > { %4645 = vmatprep.mubr.bf16.mxu1 %v11497_v0  ;;  %5135 = vmatpush1.bf16.msra.mxu0 %v11534_v41 }
 0x589   : > { %4646 = vmatmul.mubr.bf16.gmra.mxu1 %v11495_v43  ;;  %v11539_v43 = vld [vmem:[#allocation9 + $0xb4] ss:$8 sps:$4 sm:$0xff]  }
 0x58a   : > { %4653 = vmatprep.mubr.bf16.mxu1 %v11500_v33  ;;  %5144 = vmatprep.subr.bf16.mxu0 %v11539_v43 }
 0x591   : > { %4654 = vmatmul.mubr.bf16.gmra.mxu1 %v11498_v20  ;;  %v11537_v20 = vld [vmem:[#allocation9 + $0xb0] ss:$8 sps:$4 sm:$0xff]  }
 0x592   : > { %4661 = vmatprep.mubr.bf16.mxu1 %v11503_v12  ;;  %5145 = vmatpush2.bf16.msra.mxu0 %v11537_v20 }
 0x599   : > { %4662 = vmatmul.mubr.bf16.gmra.mxu1 %v11501_v40 }
 0x59a   : > { %10676 = vmatprep.mubr.msk.bf16.mxu1 %vm12578_vm3, %v15078_v45 }
 0x5a1   : > { %10677 = vmatmul.mubr.msk.bf16.vlgmr.msra.gmra.mxu1 %vm4537_vm13, %v11504_v5  ;;  %v11542_v5 = vld [vmem:[#allocation9 + $0xa4] ss:$8 sps:$4 sm:$0xff]  }
 0x5a2   : > { %10680 = vmatprep.mubr.msk.bf16.mxu1 %vm12578_vm3, %v15078_v45  ;;  %5146 = vmatprep.subr.bf16.mxu0 %v11542_v5 }
 0x5a9   : > { %10681 = vmatmul.mubr.msk.bf16.gmra.mxu1 %vm4537_vm13, %v11505_v23 }
 0x5aa   : > { %10684 = vmatprep.mubr.msk.bf16.mxu1 %vm12578_vm3, %v15078_v45 }
 0x5b1   : > { %10685 = vmatmul.mubr.msk.bf16.gmra.mxu1 %vm4537_vm13, %v11506_v42  ;;  %v11540_v42 = vld [vmem:[#allocation9 + $0xa0] ss:$8 sps:$4 sm:$0xff]  }
 0x5b2   : > { %10688 = vmatprep.mubr.msk.bf16.mxu1 %vm12578_vm3, %v15078_v45  ;;  %5147 = vmatpush2.bf16.msra.mxu0 %v11540_v42 }
 0x5b9   : > { %10689 = vmatmul.mubr.msk.bf16.gmra.mxu1 %vm4537_vm13, %v11507_v30 }
 0x5ba   : > { %10692 = vmatprep.mubr.msk.bf16.mxu1 %vm12578_vm3, %v15078_v45 }
 0x5c1   : > { %10693 = vmatmul.mubr.msk.bf16.gmra.mxu1 %vm4537_vm13, %v11508_v51  ;;  %v11545_v51 = vld [vmem:[#allocation9 + $0x94] ss:$8 sps:$4 sm:$0xff]  }
 0x5c2   : > { %10696 = vmatprep.mubr.msk.bf16.mxu1 %vm12578_vm3, %v15078_v45  ;;  %5148 = vmatprep.subr.bf16.mxu0 %v11545_v51 }
 0x5c9   : > { %10697 = vmatmul.mubr.msk.bf16.gmra.mxu1 %vm4537_vm13, %v11509_v8 }
 0x5ca   : > { %10700 = vmatprep.mubr.msk.bf16.mxu1 %vm12578_vm3, %v15078_v45 }
 0x5d1   : > { %10701 = vmatmul.mubr.msk.bf16.gmra.mxu1 %vm4537_vm13, %v11510_v25  ;;  %v11543_v25 = vld [vmem:[#allocation9 + $0x90] ss:$8 sps:$4 sm:$0xff]  }
 0x5d2   : > { %10704 = vmatprep.mubr.msk.bf16.mxu1 %vm12578_vm3, %v15078_v45  ;;  %5149 = vmatpush2.bf16.msra.mxu0 %v11543_v25 }
 0x5d9   : > { %10705 = vmatmul.mubr.msk.bf16.gmra.mxu1 %vm4537_vm13, %v11511_v15 }
 0x5da   : > { %10708 = vmatprep.mubr.msk.bf16.mxu1 %vm12578_vm3, %v15078_v45 }
 0x5e1   : > { %10709 = vmatmul.mubr.msk.bf16.gmra.mxu1 %vm4537_vm13, %v11512_v49 }
 0x619   : > { %v10257_v11 = vpop.f32.mrf.mxu1 }
 0x61b   : > { %v10258_v53 = vpop.f32.mrf.mxu1 }
 0x61c   : > { %v14284_v48 = vadd.f32 %v10258_v53, %v10257_v11  ;;  %v11548_v11 = vld [vmem:[#allocation9 + $0x84] ss:$8 sps:$4 sm:$0xff]  }
 0x61d   : > { %v14286_v57 = vpop.f32.mrf.mxu1  ;;  %5150 = vmatprep.subr.bf16.mxu0 %v11548_v11 }
 0x61f   : > { %v14288_v62 = vpop.f32.mrf.mxu1 }
 0x621   : > { %v10263_v50 = vpop.f32.mrf.mxu1 }
 0x623   : > { %v10264_v52 = vpop.f32.mrf.mxu1 }
 0x624   : > { %v14290_v16 = vadd.f32 %v10264_v52, %v10263_v50  ;;  %v11546_v50 = vld [vmem:[#allocation9 + $0x80] ss:$8 sps:$4 sm:$0xff]  }
 0x625   : > { %v14292_v61 = vpop.f32.mrf.mxu1  ;;  %5151 = vmatpush2.bf16.msra.mxu0 %v11546_v50 }
 0x626   : > { %10712 = vmatprep.subr.bf16.mxu0 %v15078_v45 }
 0x627   : > { %v14294_v37 = vpop.f32.mrf.mxu1 }
 0x628   : > { %v10268_v58 = vadd.f32 %v14294_v37, %v14292_v61 }
 0x629   : > { %v10269_v2 = vpop.f32.mrf.mxu1 }
 0x62b   : > { %v10270_v56 = vpop.f32.mrf.mxu1 }
 0x62c   : > { %v14296_v21 = vadd.f32 %v10270_v56, %v10269_v2 }
 0x62d   : > { %v14298_v59 = vpop.f32.mrf.mxu1 }
 0x62f   : > { %v14300_v31 = vpop.f32.mrf.mxu1 }
 0x630   : > { %v10274_v61 = vadd.f32 %v14300_v31, %v14298_v59 }
 0x631   : > { %v10275_v29 = vpop.f32.mrf.mxu1 }
 0x633   : > { %v10276_v60 = vpop.f32.mrf.mxu1 }
 0x634   : > { %v14302_v10 = vadd.f32 %v10276_v60, %v10275_v29  ;;  %v10262_v29 = vadd.f32 %v14288_v62, %v14286_v57 }
 0x635   : > { %v14304_v46 = vpop.f32.mrf.mxu1 }
 0x637   : > { %v14306_v18 = vpop.f32.mrf.mxu1 }
 0x639   : > { %v10281_v27 = vpop.f32.mrf.mxu1 }
 0x63b   : > { %v10282_v13 = vpop.f32.mrf.mxu1 }
 0x63c   : > { %v14308_v54 = vadd.f32 %v10282_v13, %v10281_v27 }
 0x63d   : > { %v14310_v36 = vpop.f32.mrf.mxu1 }
 0x63f   : > { %v14312_v9 = vpop.f32.mrf.mxu1 }
 0x641   : > { %v10287_v3 = vpop.f32.mrf.mxu1 }
 0x643   : > { %v10288_v55 = vpop.f32.mrf.mxu1 }
 0x644   : > { %v14314_v4 = vadd.f32 %v10288_v55, %v10287_v3 }
 0x645   : > { %v14316_v17 = vpop.f32.mrf.mxu1 }
 0x647   : > { %v14318_v22 = vpop.f32.mrf.mxu1 }
 0x649   : > { %v10293_v0 = vpop.f32.mrf.mxu1 }
 0x64b   : > { %v10294_v33 = vpop.f32.mrf.mxu1 }
 0x64c   : > { %v14320_v12 = vadd.f32 %v10294_v33, %v10293_v0 }
 0x64d   : > { %v14322_v40 = vpop.f32.mrf.mxu1 }
 0x64f   : > { %v14324_v23 = vpop.f32.mrf.mxu1 }
 0x651   : > { %v10299_v30 = vpop.f32.mrf.mxu1 }
 0x653   : > { %v10300_v8 = vpop.f32.mrf.mxu1 }
 0x654   : > { %v14326_v15 = vadd.f32 %v10300_v8, %v10299_v30 }
 0x655   : > { %v14328_v49 = vpop.f32.mrf.mxu1 }
 0x657   : > { %v14330_v53 = vpop.f32.mrf.mxu1 }
 0x659   : > { %v10305_v52 = vpop.f32.mrf.mxu1 }
 0x65b   : > { %v10306_v2 = vpop.f32.mrf.mxu1 }
 0x65c   : > { %v14332_v56 = vadd.f32 %v10306_v2, %v10305_v52 }
 0x65d   : > { %v14335_v14 = vpop.f32.mrf.mxu1 }
 0x65f   : > { %v14337_v26 = vpop.f32.mrf.mxu1 }
 0x661   : > { %v4704_v34 = vpop.f32.mrf.mxu1 }
 0x662   : > { %v4705_v60 = vadd.f32 %v14284_v48, %v4704_v34 }
 0x663   : > { %v10678_v63 = vpop.f32.mrf.mxu1 }
 0x665   : > { %v4707_v32 = vpop.f32.mrf.mxu1 }
 0x666   : > { %v4708_v7 = vadd.f32 %v10262_v29, %v4707_v32 }
 0x667   : > { %v10679_v24 = vpop.f32.mrf.mxu1 }
 0x668   : > { %v4775_v39 = vpack.c.bf16 %v4708_v7, %v4705_v60 }
 0x669   : > { %v4712_v27 = vpop.f32.mrf.mxu1 }
 0x66a   : > { %v4785_v44 = vshrl.u32 %v4775_v39, 16  ;;  %4894 = vrot.lane.b32.xlu1 %v4775_v39, %s12582_s13  ;;  %v4788_v1 = vshll.u32 %v4775_v39, 16  ;;  %v4713_v57 = vadd.f32 %v14290_v16, %v4712_v27 }
 0x66b   : > { %v10682_v13 = vpop.f32.mrf.mxu1 }
 0x66c   : > { %v4787_v38 = vrot.slane %v4785_v44, 7  ;;  %v4857_v55 = vrot.slane %v4788_v1, 1 }
 0x66d   : > { %v4715_v3 = vpop.f32.mrf.mxu1 }
 0x66e   : > { %v4716_v62 = vadd.f32 %v10268_v58, %v4715_v3  ;;  %v14346_v19 = vor.u32 %v4788_v1, %v4787_v38  ;;  %v4858_v33 = vor.u32 %v4857_v55, %v4785_v44 }
 0x66f   : > { %v10683_v48 = vpop.f32.mrf.mxu1 }
 0x670   : > { %v4776_v35 = vpack.c.bf16 %v4716_v62, %v4713_v57 }
 0x671   : > { %v4720_v47 = vpop.f32.mrf.mxu1 }
 0x672   : > { %v4792_v41 = vshrl.u32 %v4776_v35, 16  ;;  %v4795_v0 = vshll.u32 %v4776_v35, 16  ;;  %4896 = vrot.lane.b32.xlu0 %v4776_v35, %s12582_s13  ;;  %v4721_v16 = vadd.f32 %v14296_v21, %v4720_v47  ;;  %v10280_v21 = vadd.f32 %v14306_v18, %v14304_v46 }
 0x673   : > { %v10686_v43 = vpop.f32.mrf.mxu1  ;;  %v10286_v18 = vadd.f32 %v14312_v9, %v14310_v36  ;;  %v10292_v9 = vadd.f32 %v14318_v22, %v14316_v17  ;;  %v10298_v22 = vadd.f32 %v14324_v23, %v14322_v40  ;;  %v10304_v23 = vadd.f32 %v14330_v53, %v14328_v49  ;;  %v5261_v53 = vld [vmem:[#allocation10] sm:$0xff] }
 0x674   : > { %v4794_v37 = vrot.slane %v4792_v41, 7  ;;  %v4859_v20 = vrot.slane %v4795_v0, 1 }
 0x675   : > { %v4723_v5 = vpop.f32.mrf.mxu1 }
 0x676   : > { %v4724_v42 = vadd.f32 %v10274_v61, %v4723_v5  ;;  %v4860_v30 = vsel %vm3199_vm0, %v4858_v33, %v4859_v20  ;;  %v4861_v51 = vor.u32 %v4859_v20, %v4792_v41  ;;  %v4797_v8 = vor.u32 %v4795_v0, %v4794_v37 }
 0x677   : > { %v10687_v25 = vpop.f32.mrf.mxu1  ;;  %9917 = vmatprep.mubr.msk.bf16.mxu0 %vm4912_vm14, %v4860_v30 }
 0x678   : > { %v4777_v11 = vpack.c.bf16 %v4724_v42, %v4721_v16  ;;  %v14355_v50 = vsel %vm2922_vm1, %v4787_v38, %v4797_v8 }
 0x679   : > { %v4728_v52 = vpop.f32.mrf.mxu1 }
 0x67a   : > { %v4800_v59 = vshrl.u32 %v4777_v11, 16  ;;  %v4803_v31 = vshll.u32 %v4777_v11, 16  ;;  %4898 = vrot.lane.b32.xlu1 %v4777_v11, %s12582_s13  ;;  %v4729_v32 = vadd.f32 %v14302_v10, %v4728_v52 }
 0x67b   : > { %v10690_v2 = vpop.f32.mrf.mxu1 }
 0x67c   : > { %v4802_v34 = vrot.slane %v4800_v59, 7  ;;  %v4862_v63 = vrot.slane %v4803_v31, 1 }
 0x67d   : > { %v4731_v29 = vpop.f32.mrf.mxu1 }
 0x67e   : > { %v4732_v60 = vadd.f32 %v10280_v21, %v4731_v29  ;;  %v14362_v7 = vsel %vm3199_vm0, %v4861_v51, %v4862_v63  ;;  %v4805_v24 = vor.u32 %v4803_v31, %v4802_v34  ;;  %v4864_v38 = vor.u32 %v4862_v63, %v4800_v59 }
 0x67f   : > { %v10691_v39 = vpop.f32.mrf.mxu1 }
 0x680   : > { %v4778_v27 = vpack.c.bf16 %v4732_v60, %v4729_v32  ;;  %v14365_v44 = vsel %vm2922_vm1, %v4794_v37, %v4805_v24 }
 0x681   : > { %v4736_v13 = vpop.f32.mrf.mxu1 }
 0x682   : > { %v4808_v58 = vshrl.u32 %v4778_v27, 16  ;;  %v4811_v1 = vshll.u32 %v4778_v27, 16  ;;  %4900 = vrot.lane.b32.xlu0 %v4778_v27, %s12582_s13  ;;  %v4737_v62 = vadd.f32 %v14308_v54, %v4736_v13 }
 0x683   : > { %v10694_v46 = vpop.f32.mrf.mxu1 }
 0x684   : > { %v4810_v10 = vrot.slane %v4808_v58, 7  ;;  %v4865_v3 = vrot.slane %v4811_v1, 1 }
 0x685   : > { %v4739_v57 = vpop.f32.mrf.mxu1 }
 0x686   : > { %v4740_v48 = vadd.f32 %v10286_v18, %v4739_v57  ;;  %v14372_v55 = vsel %vm3199_vm0, %v4864_v38, %v4865_v3  ;;  %v4813_v35 = vor.u32 %v4811_v1, %v4810_v10  ;;  %v4867_v33 = vor.u32 %v4865_v3, %v4808_v58 }
 0x687   : > { %v10695_v47 = vpop.f32.mrf.mxu1 }
 0x688   : > { %v4779_v41 = vpack.c.bf16 %v4740_v48, %v4737_v62  ;;  %v14375_v0 = vsel %vm2922_vm1, %v4802_v34, %v4813_v35 }
 0x689   : > { %v4744_v43 = vpop.f32.mrf.mxu1 }
 0x68a   : > { %v4816_v61 = vshrl.u32 %v4779_v41, 16  ;;  %v4819_v37 = vshll.u32 %v4779_v41, 16  ;;  %4902 = vrot.lane.b32.xlu1 %v4779_v41, %s12582_s13  ;;  %v4745_v5 = vadd.f32 %v14314_v4, %v4744_v43 }
 0x68b   : > { %v10698_v36 = vpop.f32.mrf.mxu1 }
 0x68c   : > { %v4818_v54 = vrot.slane %v4816_v61, 7  ;;  %v4868_v20 = vrot.slane %v4819_v37, 1 }
 0x68d   : > { %v4747_v16 = vpop.f32.mrf.mxu1 }
 0x68e   : > { %v4748_v42 = vadd.f32 %v10292_v9, %v4747_v16  ;;  %v14382_v30 = vsel %vm3199_vm0, %v4867_v33, %v4868_v20  ;;  %v4821_v51 = vor.u32 %v4819_v37, %v4818_v54  ;;  %v4870_v2 = vor.u32 %v4868_v20, %v4816_v61 }
 0x68f   : > { %v10699_v8 = vpop.f32.mrf.mxu1 }
 0x690   : > { %v4780_v25 = vpack.c.bf16 %v4748_v42, %v4745_v5  ;;  %v14385_v11 = vsel %vm2922_vm1, %v4810_v10, %v4821_v51  ;;  %v5263_v42 = vld [vmem:[#allocation10 + $0x10] sm:$0xff] }
 0x691   : > { %v4752_v52 = vpop.f32.mrf.mxu1 }
 0x692   : > { %v4824_v59 = vshrl.u32 %v4780_v25, 16  ;;  %v4827_v31 = vshll.u32 %v4780_v25, 16  ;;  %4904 = vrot.lane.b32.xlu0 %v4780_v25, %s12582_s13  ;;  %v4753_v63 = vadd.f32 %v14320_v12, %v4752_v52  ;;  %v5262_v52 = vld [vmem:[#allocation10 + $0x8] sm:$0xff] }
 0x693   : > { %v10702_v17 = vpop.f32.mrf.mxu1 }
 0x694   : > { %v4826_v4 = vrot.slane %v4824_v59, 7  ;;  %v4871_v21 = vrot.slane %v4827_v31, 1 }
 0x695   : > { %v4755_v34 = vpop.f32.mrf.mxu1 }
 0x696   : > { %v4756_v29 = vadd.f32 %v10298_v22, %v4755_v34  ;;  %v14392_v32 = vsel %vm3199_vm0, %v4870_v2, %v4871_v21  ;;  %v4829_v60 = vor.u32 %v4827_v31, %v4826_v4  ;;  %v4873_v46 = vor.u32 %v4871_v21, %v4824_v59  ;;  %v5267_v2 = vld [vmem:[#allocation10 + $0x30] sm:$0xff]  ;;  %v5264_v21 = vld [vmem:[#allocation10 + $0x18] sm:$0xff] }
 0x697   : > { %v10703_v24 = vpop.f32.mrf.mxu1 }
 0x698   : > { %v4781_v39 = vpack.c.bf16 %v4756_v29, %v4753_v63  ;;  %v14395_v27 = vsel %vm2922_vm1, %v4818_v54, %v4829_v60  ;;  %v5269_v63 = vld [vmem:[#allocation10 + $0x40] sm:$0xff]  ;;  %v5266_v29 = vld [vmem:[#allocation10 + $0x28] sm:$0xff]  ;;  %v5271_v60 = vld [vmem:[#allocation10 + $0x50] sm:$0xff] }
 0x699   : > { %v4760_v13 = vpop.f32.mrf.mxu1  ;;  %v5268_v24 = vld [vmem:[#allocation10 + $0x38] sm:$0xff] }
 0x69a   : > { %v4832_v58 = vshrl.u32 %v4781_v39, 16  ;;  %v4835_v1 = vshll.u32 %v4781_v39, 16  ;;  %4906 = vrot.lane.b32.xlu1 %v4781_v39, %s12582_s13  ;;  %v4761_v38 = vadd.f32 %v14326_v15, %v4760_v13  ;;  %v10310_v15 = vadd.f32 %v14337_v26, %v14335_v14  ;;  %v5273_v39 = vld [vmem:[#allocation10 + $0x60] sm:$0xff]  ;;  %v5270_v13 = vld [vmem:[#allocation10 + $0x48] sm:$0xff] }
 0x69b   : > { %v10706_v40 = vpop.f32.mrf.mxu1 }
 0x69c   : > { %v4834_v12 = vrot.slane %v4832_v58, 7  ;;  %v4874_v18 = vrot.slane %v4835_v1, 1  ;;  %v5277_v40 = vld [vmem:[#allocation10 + $0x80] sm:$0xff] }
 0x69d   : > { %v4763_v10 = vpop.f32.mrf.mxu1 }
 0x69e   : > { %v4764_v3 = vadd.f32 %v10304_v23, %v4763_v10  ;;  %v14402_v57 = vsel %vm3199_vm0, %v4873_v46, %v4874_v18  ;;  %v4837_v62 = vor.u32 %v4835_v1, %v4834_v12  ;;  %v4876_v36 = vor.u32 %v4874_v18, %v4832_v58  ;;  %v5275_v58 = vld [vmem:[#allocation10 + $0x70] sm:$0xff]  ;;  %v5272_v1 = vld [vmem:[#allocation10 + $0x58] sm:$0xff]  ;;  %v5274_v23 = vld [vmem:[#allocation10 + $0x68] sm:$0xff] }
 0x69f   : > { %v10707_v48 = vpop.f32.mrf.mxu1  ;;  %v5276_v46 = vld [vmem:[#allocation10 + $0x78] sm:$0xff]  ;;  %v6749_v18 = vld [vmem:[#allocation18 + $0x10] sm:$0xff]  ;;  %v5278_v10 = vld [vmem:[#allocation10 + $0x88] sm:$0xff] }
 0x6a0   : > { %v4782_v35 = vpack.c.bf16 %v4764_v3, %v4761_v38  ;;  %v14405_v47 = vsel %vm2922_vm1, %v4826_v4, %v4837_v62  ;;  %v6751_v38 = vld [vmem:[#allocation18 + $0x20] sm:$0xff]  ;;  %v6748_v3 = vld [vmem:[#allocation18 + $0x8] sm:$0xff]  ;;  %v6753_v62 = vld [vmem:[#allocation18 + $0x30] sm:$0xff] }
 0x6a1   : > { %v4768_v41 = vpop.f32.mrf.mxu1  ;;  %v6750_v48 = vld [vmem:[#allocation18 + $0x18] sm:$0xff] }
 0x6a2   : > { %v4840_v43 = vshrl.u32 %v4782_v35, 16  ;;  %v4843_v61 = vshll.u32 %v4782_v35, 16  ;;  %4908 = vrot.lane.b32.xlu0 %v4782_v35, %s12582_s13  ;;  %v4769_v33 = vadd.f32 %v14332_v56, %v4768_v41  ;;  %v5265_v56 = vld [vmem:[#allocation10 + $0x20] sm:$0xff]  ;;  %v6755_v35 = vld [vmem:[#allocation18 + $0x40] sm:$0xff]  ;;  %v6752_v41 = vld [vmem:[#allocation18 + $0x28] sm:$0xff] }
 0x6a3   : > { %v10710_v49 = vpop.f32.mrf.mxu1 }
 0x6a4   : > { %v4842_v37 = vrot.slane %v4840_v43, 7  ;;  %v4877_v9 = vrot.slane %v4843_v61, 1 }
 0x6a5   : > { %v4771_v54 = vpop.f32.mrf.mxu1 }
 0x6a6   : > { %v4772_v20 = vadd.f32 %v10310_v15, %v4771_v54  ;;  %5281 = vperm.xlu0 %11235, %v5261_v53   ;;  %v14412_v16 = vsel %vm3199_vm0, %v4876_v36, %v4877_v9  ;;  %v4845_v5 = vor.u32 %v4843_v61, %v4842_v37  ;;  %v4879_v31 = vor.u32 %v4877_v9, %v4840_v43  ;;  %v7868_v43 = vld [vmem:[#allocation25] sm:$0xff]  ;;  %v6754_v61 = vld [vmem:[#allocation18 + $0x38] sm:$0xff]  ;;  %v6756_v36 = vld [vmem:[#allocation18 + $0x48] sm:$0xff] }
 0x6a7   : > { %v10711_v51 = vpop.f32.mrf.mxu1  ;;  %v4856_v53 = vsel %vm13788_vm5, 0, %v14346_v19  ;;  %v7872_v9 = vld [vmem:[#allocation25 + $0x20] sm:$0xff]  ;;  %v7869_v54 = vld [vmem:[#allocation25 + $0x8] sm:$0xff]  ;;  %v8825_v19 = vld [vmem:[#allocation31] sm:$0xff] }
 0x6a8   : > { %v14414_v8 = vpack.c.bf16 %v4772_v20, %v4769_v33  ;;  %v14417_v25 = vsel %vm2922_vm1, %v4834_v12, %v4845_v5  ;;  %v6747_v12 = vld [vmem:[#allocation18] sm:$0xff]  ;;  %v7871_v5 = vld [vmem:[#allocation25 + $0x18] sm:$0xff] }
 0x6aa   : > { %v4848_v14 = vshrl.u32 %v14414_v8, 16  ;;  %v4851_v26 = vshll.u32 %v14414_v8, 16  ;;  %5291 = vperm.xlu0 %11235, %v5263_v42   ;;  %4910 = vrot.lane.b32.xlu1 %v14414_v8, %s12582_s13  ;;  %v8827_v42 = vld [vmem:[#allocation31 + $0x10] sm:$0xff]  ;;  %v11561_v8 = vld [vmem:[#allocation12 + $0x18] sm:$0xff]  }
 0x6ac   : > { %v4850_v59 = vrot.slane %v4848_v14, 7  ;;  %v14425_v17 = vrot.slane %v4851_v26, 1 }
 0x6ae   : > { %5301 = vperm.xlu0 %11235, %v5265_v56   ;;  %5286 = vperm.xlu1 %11236, %v5262_v52   ;;  %v14429_v22 = vsel %vm3199_vm0, %v4879_v31, %v14425_v17  ;;  %v4853_v4 = vor.u32 %v4851_v26, %v4850_v59  ;;  %v11549_v56 = vld [vmem:[#allocation12 + $0x78] sm:$0xff]   ;;  %v11551_v59 = vld [vmem:[#allocation12 + $0x70] sm:$0xff]   ;;  %v8828_v31 = vld [vmem:[#allocation31 + $0x18] sm:$0xff] }
 0x6af   : > { %v11550_v52 = vld [vmem:[#allocation12 + $0x38] sm:$0xff]   ;;  %10321 = vmatprep.subr.bf16.mxu1 %v11549_v56 }
 0x6b0   : > { %v14432_v34 = vsel %vm2922_vm1, %v4842_v37, %v4853_v4  ;;  %v7870_v37 = vld [vmem:[#allocation25 + $0x10] sm:$0xff]  ;;  %10322 = vmatpush3.bf16.msra.mxu1 %v11550_v52 }
 0x6b1   : > { %10323 = vmatprep.subr.bf16.mxu1 %v11551_v59 }
 0x6b2   : > { %5311 = vperm.xlu0 %11235, %v5267_v2   ;;  %5296 = vperm.xlu1 %11236, %v5264_v21   ;;  %v11552_v2 = vld [vmem:[#allocation12 + $0x30] sm:$0xff]   ;;  %v11554_v21 = vld [vmem:[#allocation12 + $0x68] sm:$0xff]  }
 0x6b4   : > { %10324 = vmatpush3.bf16.msra.mxu1 %v11552_v2 }
 0x6b5   : > { %10325 = vmatprep.subr.bf16.mxu1 %v11554_v21 }
 0x6b6   : > { %5321 = vperm.xlu0 %11235, %v5269_v63   ;;  %5306 = vperm.xlu1 %11236, %v5266_v29   ;;  %v11556_v63 = vld [vmem:[#allocation12 + $0xb0] sm:$0xff]   ;;  %v11557_v29 = vld [vmem:[#allocation12 + $0x60] sm:$0xff]  }
 0x6ba   : > { %5331 = vperm.xlu0 %11235, %v5271_v60   ;;  %5316 = vperm.xlu1 %11236, %v5268_v24  }
 0x6be   : > { %5341 = vperm.xlu0 %11235, %v5273_v39   ;;  %5326 = vperm.xlu1 %11236, %v5270_v13  }
 0x6c2   : > { %5351 = vperm.xlu0 %11235, %v5275_v58   ;;  %5336 = vperm.xlu1 %11236, %v5272_v1  }
 0x6c6   : > { %5361 = vperm.xlu0 %11235, %v5277_v40   ;;  %5346 = vperm.xlu1 %11236, %v5274_v23   ;;  %v11559_v40 = vld [vmem:[#allocation12 + $0xa8] sm:$0xff]  }
 0x6c7   : > { %v11566_v23 = vld [vmem:[#allocation12 + $0x48] sm:$0xff]  }
 0x6ca   : > { %6759 = vperm.xlu0 %11235, %v6747_v12   ;;  %5356 = vperm.xlu1 %11236, %v5276_v46   ;;  %v11567_v12 = vld [vmem:[#allocation12 + $0x8] sm:$0xff]   ;;  %v11568_v46 = vld [vmem:[#allocation12 + $0x90] sm:$0xff]  }
 0x6ce   : > { %6769 = vperm.xlu0 %11235, %v6749_v18   ;;  %5366 = vperm.xlu1 %11236, %v5278_v10   ;;  %v11569_v18 = vld [vmem:[#allocation12 + $0x40] sm:$0xff]  }
 0x6cf   : > { %v11570_v10 = vld [vmem:[#allocation12] sm:$0xff]  }
 0x6d2   : > { %6779 = vperm.xlu0 %11235, %v6751_v38   ;;  %6764 = vperm.xlu1 %11236, %v6748_v3   ;;  %v11571_v38 = vld [vmem:[#allocation12 + $0x88] sm:$0xff]   ;;  %v15200_v3 = vmov 0  }
 0x6d6   : > { %6789 = vperm.xlu0 %11235, %v6753_v62   ;;  %6774 = vperm.xlu1 %11236, %v6750_v48   ;;  %v11572_v62 = vld [vmem:[#allocation12 + $0x80] sm:$0xff]  }
 0x6da   : > { %6799 = vperm.xlu0 %11235, %v6755_v35   ;;  %6784 = vperm.xlu1 %11236, %v6752_v41  }
 0x6dc   : > { %v4895_v49 = vpop.permute.xlu1 %4894 }
 0x6dd   : > { %v4915_v15 = vsel %vm4912_vm14, %v4856_v53, %v4895_v49 }
 0x6de   : > { %7876 = vperm.xlu0 %11235, %v7868_v43   ;;  %6794 = vperm.xlu1 %11236, %v6754_v61  }
 0x6df   : > { %5153 = vmatmul.mubr.bf16.vlgmr.msra.gmra.mxu0 %v4915_v15 }
 0x6e0   : > { %9918 = vmatprep.mubr.msk.bf16.mxu0 %vm4912_vm14, %v14362_v7  ;;  %v7873_v7 = vld [vmem:[#allocation25 + $0x28] sm:$0xff] }
 0x6e2   : > { %7886 = vperm.xlu0 %11235, %v7870_v37   ;;  %6804 = vperm.xlu1 %11236, %v6756_v36  }
 0x6e4   : > { %v4897_v33 = vpop.permute.xlu0 %4896 }
 0x6e5   : > { %v4919_v20 = vsel %vm4912_vm14, %v14355_v50, %v4897_v33  ;;  %v8826_v50 = vld [vmem:[#allocation31 + $0x8] sm:$0xff] }
 0x6e6   : > { %7896 = vperm.xlu0 %11235, %v7872_v9   ;;  %7881 = vperm.xlu1 %11236, %v7869_v54  }
 0x6e7   : > { %5163 = vmatmul.mubr.bf16.gmra.mxu0 %v4919_v20 }
 0x6e8   : > { %9919 = vmatprep.mubr.msk.bf16.mxu0 %vm4912_vm14, %v14372_v55  ;;  %v11553_v55 = vld [vmem:[#allocation12 + $0xb8] sm:$0xff]  }
 0x6e9   : > { %10713 = vmatpush3.bf16.msra.mxu0 %v11553_v55 }
 0x6ea   : > { %8831 = vperm.xlu0 %11235, %v8825_v19   ;;  %7891 = vperm.xlu1 %11236, %v7871_v5  }
 0x6eb   : > { %10714 = vmatprep.subr.bf16.mxu0 %v15078_v45 }
 0x6ec   : > { %v4899_v51 = vpop.permute.xlu1 %4898 }
 0x6ed   : > { %v4923_v26 = vsel %vm4912_vm14, %v14365_v44, %v4899_v51  ;;  %10715 = vmatpush3.bf16.msra.mxu0 %v11556_v63 }
 0x6ee   : > { %8841 = vperm.xlu0 %11235, %v8827_v42   ;;  %7901 = vperm.xlu1 %11236, %v7873_v7  }
 0x6ef   : > { %5173 = vmatmul.mubr.bf16.gmra.mxu0 %v4923_v26  ;;  %10716 = vmatprep.subr.bf16.mxu0 %v15078_v45 }
 0x6f0   : > { %9920 = vmatprep.mubr.msk.bf16.mxu0 %vm4912_vm14, %v14382_v30  ;;  %v11555_v30 = vld [vmem:[#allocation12 + $0x28] sm:$0xff]  }
 0x6f1   : > { %10326 = vmatpush3.bf16.msra.mxu1 %v11555_v30  ;;  %10717 = vmatpush3.bf16.msra.mxu0 %v11559_v40 }
 0x6f2   : > { %8836 = vperm.xlu1 %11236, %v8826_v50   ;;  %10327 = vmatprep.subr.bf16.mxu1 %v11557_v29 }
 0x6f3   : > { %10718 = vmatprep.subr.bf16.mxu0 %v15078_v45 }
 0x6f4   : > { %v4901_v4 = vpop.permute.xlu0 %4900 }
 0x6f5   : > { %v4927_v44 = vsel %vm4912_vm14, %v14375_v0, %v4901_v4  ;;  %v11558_v0 = vld [vmem:[#allocation12 + $0x20] sm:$0xff]  }
 0x6f6   : > { %8846 = vperm.xlu1 %11236, %v8828_v31   ;;  %10328 = vmatpush3.bf16.msra.mxu1 %v11558_v0 }
 0x6f7   : > { %5183 = vmatmul.mubr.bf16.gmra.mxu0 %v4927_v44 }
 0x6f8   : > { %9921 = vmatprep.mubr.msk.bf16.mxu0 %vm4912_vm14, %v14392_v32 }
 0x6fc   : > { %v4903_v60 = vpop.permute.xlu1 %4902 }
 0x6fd   : > { %v4931_v24 = vsel %vm4912_vm14, %v14385_v11, %v4903_v60  ;;  %v4882_v11 = vor.u32 %v14425_v17, %v4848_v14  ;;  %v11563_v14 = vld [vmem:[#allocation12 + $0x50] sm:$0xff]  }
 0x6fe   : > { %v11564_v17 = vld [vmem:[#allocation12 + $0x10] sm:$0xff]  }
 0x6ff   : > { %5193 = vmatmul.mubr.bf16.gmra.mxu0 %v4931_v24 }
 0x700   : > { %9922 = vmatprep.mubr.msk.bf16.mxu0 %vm4912_vm14, %v14402_v57 }
 0x704   : > { %v4905_v32 = vpop.permute.xlu0 %4904 }
 0x705   : > { %v4935_v39 = vsel %vm4912_vm14, %v14395_v27, %v4905_v32 }
 0x707   : > { %5203 = vmatmul.mubr.bf16.gmra.mxu0 %v4935_v39 }
 0x708   : > { %9923 = vmatprep.mubr.msk.bf16.mxu0 %vm4912_vm14, %v14412_v16  ;;  %v4884_v16 = vsel %vm13929_vm12, %v4882_v11, 0 }
 0x70c   : > { %v4907_v13 = vpop.permute.xlu1 %4906 }
 0x70d   : > { %v4939_v58 = vsel %vm4912_vm14, %v14405_v47, %v4907_v13 }
 0x70f   : > { %5213 = vmatmul.mubr.bf16.gmra.mxu0 %v4939_v58 }
 0x710   : > { %9924 = vmatprep.mubr.msk.bf16.mxu0 %vm4912_vm14, %v14429_v22  ;;  %v11560_v22 = vld [vmem:[#allocation12 + $0x58] sm:$0xff]  }
 0x711   : > { %10329 = vmatprep.subr.bf16.mxu1 %v11560_v22 }
 0x712   : > { %10330 = vmatpush3.bf16.msra.mxu1 %v11561_v8 }
 0x713   : > { %10331 = vmatprep.subr.bf16.mxu1 %v11563_v14 }
 0x714   : > { %v4909_v57 = vpop.permute.xlu0 %4908 }
 0x715   : > { %v4943_v27 = vsel %vm4912_vm14, %v14417_v25, %v4909_v57  ;;  %v11562_v25 = vld [vmem:[#allocation12 + $0xa0] sm:$0xff]  }
 0x716   : > { %10719 = vmatpush3.bf16.msra.mxu0 %v11562_v25  ;;  %10332 = vmatpush3.bf16.msra.mxu1 %v11564_v17 }
 0x717   : > { %5223 = vmatmul.mubr.bf16.gmra.mxu0 %v4943_v27  ;;  %10720 = vmatprep.subr.bf16.mxu0 %v15078_v45 }
 0x718   : > { %9925 = vmatprep.mubr.msk.bf16.mxu0 %vm4912_vm14, %v4884_v16  ;;  %10333 = vmatprep.subr.bf16.mxu1 %v11566_v23 }
 0x71a   : > { %10334 = vmatpush3.bf16.msra.mxu1 %v11567_v12 }
 0x71b   : > { %10335 = vmatprep.subr.bf16.mxu1 %v11569_v18 }
 0x71c   : > { %v4911_v1 = vpop.permute.xlu1 %4910 }
 0x71d   : > { %v4947_v47 = vsel %vm4912_vm14, %v14432_v34, %v4911_v1  ;;  %v11565_v34 = vld [vmem:[#allocation12 + $0x98] sm:$0xff]  }
 0x71e   : > { %10721 = vmatpush3.bf16.msra.mxu0 %v11565_v34  ;;  %10336 = vmatpush3.bf16.msra.mxu1 %v11570_v10 }
 0x71f   : > { %5233 = vmatmul.mubr.bf16.gmra.mxu0 %v4947_v47  ;;  %10722 = vmatprep.subr.bf16.mxu0 %v15078_v45 }
 0x720   : > { %10728 = vmatprep.mubr.msk.bf16.mxu0 %vm12578_vm3, %v15078_v45  ;;  %6022 = vmatprep.subr.bf16.mxu1 %v15200_v3 }
 0x721   : > { %v5282_v61 = vpop.permute.xlu0 %5281 }
 0x722   : > { %10723 = vmatpush3.bf16.msra.mxu0 %v11568_v46 }
 0x723   : > { %10724 = vmatprep.subr.bf16.mxu0 %v15078_v45 }
 0x725   : > { %v5292_v42 = vpop.permute.xlu0 %5291 }
 0x726   : > { %10725 = vmatpush3.bf16.msra.mxu0 %v11571_v38 }
 0x727   : > { %10726 = vmatprep.subr.bf16.mxu0 %v15078_v45 }
 0x729   : > { %v5287_v53 = vpop.permute.xlu1 %5286  ;;  %v5302_v0 = vpop.permute.xlu0 %5301 }
 0x72a   : > { %10727 = vmatpush3.bf16.msra.mxu0 %v11572_v62 }
 0x72d   : > { %v5297_v50 = vpop.permute.xlu1 %5296  ;;  %v5312_v23 = vpop.permute.xlu0 %5311 }
 0x731   : > { %v5307_v58 = vpop.permute.xlu1 %5306 }
 0x735   : > { %v5317_v38 = vpop.permute.xlu1 %5316 }
 0x79f   : > { %v5154_v48 = vpop.f32.mrf.mxu0 }
 0x7a0   : > { %v5243_v41 = vmax.f32 %v5154_v48, 0.0 }
 0x7a1   : > { %v14484_v35 = vpop.f32.mrf.mxu0 }
 0x7a2   : > { %v5369_v37 = vmul.f32 %v5282_v61, %v5243_v41 }
 0x7a3   : > { %v5158_v43 = vpop.f32.mrf.mxu0 }
 0x7a4   : > { %v5244_v49 = vmax.f32 %v5158_v43, 0.0 }
 0x7a5   : > { %v14486_v15 = vpop.f32.mrf.mxu0 }
 0x7a6   : > { %v5370_v36 = vmul.f32 %v5287_v53, %v5244_v49 }
 0x7a7   : > { %v5164_v9 = vpop.f32.mrf.mxu0 }
 0x7a8   : > { %v5387_v54 = vpack.c.bf16 %v5370_v36, %v5369_v37  ;;  %v5245_v20 = vmax.f32 %v5164_v9, 0.0 }
 0x7a9   : > { %v14488_v33 = vpop.f32.mrf.mxu0 }
 0x7aa   : > { %v5397_v19 = vshrl.u32 %v5387_v54, 16  ;;  %5737 = vmatprep.mubr.bf16.mxu1 %v5387_v54  ;;  %v5400_v51 = vshll.u32 %v5387_v54, 16  ;;  %v5371_v52 = vmul.f32 %v5292_v42, %v5245_v20 }
 0x7ab   : > { %v5168_v5 = vpop.f32.mrf.mxu0 }
 0x7ac   : > { %v5399_v7 = vrot.slane %v5397_v19, 7  ;;  %v5246_v26 = vmax.f32 %v5168_v5, 0.0  ;;  %v5477_v4 = vrot.slane %v5400_v51, 1  ;;  %v5322_v5 = vpop.permute.xlu0 %5321 }
 0x7ad   : > { %v14490_v56 = vpop.f32.mrf.mxu0 }
 0x7ae   : > { %v5372_v59 = vmul.f32 %v5297_v50, %v5246_v26  ;;  %v5402_v55 = vor.u32 %v5400_v51, %v5399_v7  ;;  %v5478_v24 = vor.u32 %v5477_v4, %v5397_v19  ;;  %v5327_v50 = vpop.permute.xlu1 %5326 }
 0x7af   : > { %v5174_v31 = vpop.f32.mrf.mxu0 }
 0x7b0   : > { %v5476_v2 = vsel %vm13788_vm5, 0, %v5402_v55  ;;  %v5388_v44 = vpack.c.bf16 %v5372_v59, %v5371_v52  ;;  %v5247_v63 = vmax.f32 %v5174_v31, 0.0 }
 0x7b1   : > { %v14494_v21 = vpop.f32.mrf.mxu0  ;;  %5738 = vmatmul.mubr.bf16.vlgmr.msra.gmra.mxu1 %v5476_v2 }
 0x7b2   : > { %v5404_v30 = vshrl.u32 %v5388_v44, 16  ;;  %v5407_v29 = vshll.u32 %v5388_v44, 16  ;;  %5745 = vmatprep.mubr.bf16.mxu1 %v5388_v44  ;;  %v5373_v57 = vmul.f32 %v5302_v0, %v5247_v63 }
 0x7b3   : > { %v5178_v60 = vpop.f32.mrf.mxu0 }
 0x7b4   : > { %v5479_v32 = vrot.slane %v5407_v29, 1  ;;  %v5248_v39 = vmax.f32 %v5178_v60, 0.0  ;;  %v5406_v13 = vrot.slane %v5404_v30, 7 }
 0x7b5   : > { %v14496_v11 = vpop.f32.mrf.mxu0 }
 0x7b6   : > { %v5374_v27 = vmul.f32 %v5307_v58, %v5248_v39  ;;  %v5480_v16 = vsel %vm3199_vm0, %v5478_v24, %v5479_v32  ;;  %v5409_v1 = vor.u32 %v5407_v29, %v5406_v13  ;;  %v5481_v46 = vor.u32 %v5479_v32, %v5404_v30  ;;  %v5332_v32 = vpop.permute.xlu0 %5331 }
 0x7b7   : > { %v5184_v47 = vpop.f32.mrf.mxu0  ;;  %10729 = vmatmul.mubr.bf16.vlgmr.msra.gmra.mxu0 %v5480_v16 }
 0x7b8   : > { %v5410_v40 = vsel %vm2922_vm1, %v5399_v7, %v5409_v1  ;;  %v5389_v22 = vpack.c.bf16 %v5374_v27, %v5373_v57  ;;  %10732 = vmatprep.mubr.msk.bf16.mxu0 %vm12578_vm3, %v15078_v45  ;;  %v5249_v25 = vmax.f32 %v5184_v47, 0.0  ;;  %v5337_v27 = vpop.permute.xlu1 %5336 }
 0x7b9   : > { %v14502_v8 = vpop.f32.mrf.mxu0  ;;  %5746 = vmatmul.mubr.bf16.gmra.mxu1 %v5410_v40 }
 0x7ba   : > { %v5412_v14 = vshrl.u32 %v5389_v22, 16  ;;  %v5415_v17 = vshll.u32 %v5389_v22, 16  ;;  %5753 = vmatprep.mubr.bf16.mxu1 %v5389_v22  ;;  %v5375_v48 = vmul.f32 %v5312_v23, %v5249_v25 }
 0x7bb   : > { %v5188_v34 = vpop.f32.mrf.mxu0 }
 0x7bc   : > { %v5250_v12 = vmax.f32 %v5188_v34, 0.0  ;;  %v5482_v18 = vrot.slane %v5415_v17, 1  ;;  %v5414_v10 = vrot.slane %v5412_v14, 7 }
 0x7bd   : > { %v14504_v62 = vpop.f32.mrf.mxu0 }
 0x7be   : > { %v5376_v41 = vmul.f32 %v5317_v38, %v5250_v12  ;;  %v5483_v43 = vsel %vm3199_vm0, %v5481_v46, %v5482_v18  ;;  %v5417_v61 = vor.u32 %v5415_v17, %v5414_v10  ;;  %v5484_v7 = vor.u32 %v5482_v18, %v5412_v14 }
 0x7bf   : > { %v5194_v49 = vpop.f32.mrf.mxu0  ;;  %10733 = vmatmul.mubr.bf16.gmra.mxu0 %v5483_v43 }
 0x7c0   : > { %v5418_v53 = vsel %vm2922_vm1, %v5406_v13, %v5417_v61  ;;  %v5390_v37 = vpack.c.bf16 %v5376_v41, %v5375_v48  ;;  %10736 = vmatprep.mubr.msk.bf16.mxu0 %vm12578_vm3, %v15078_v45  ;;  %v5251_v9 = vmax.f32 %v5194_v49, 0.0  ;;  %v5347_v61 = vpop.permute.xlu1 %5346 }
 0x7c1   : > { %v14510_v36 = vpop.f32.mrf.mxu0  ;;  %5754 = vmatmul.mubr.bf16.gmra.mxu1 %v5418_v53 }
 0x7c2   : > { %v5420_v54 = vshrl.u32 %v5390_v37, 16  ;;  %v5423_v20 = vshll.u32 %v5390_v37, 16  ;;  %5761 = vmatprep.mubr.bf16.mxu1 %v5390_v37  ;;  %v5377_v59 = vmul.f32 %v5322_v5, %v5251_v9 }
 0x7c3   : > { %v5198_v19 = vpop.f32.mrf.mxu0 }
 0x7c4   : > { %v5252_v42 = vmax.f32 %v5198_v19, 0.0  ;;  %v5485_v51 = vrot.slane %v5423_v20, 1  ;;  %v5422_v26 = vrot.slane %v5420_v54, 7 }
 0x7c5   : > { %v14512_v52 = vpop.f32.mrf.mxu0 }
 0x7c6   : > { %v5378_v55 = vmul.f32 %v5327_v50, %v5252_v42  ;;  %v5486_v31 = vsel %vm3199_vm0, %v5484_v7, %v5485_v51  ;;  %v5425_v4 = vor.u32 %v5423_v20, %v5422_v26  ;;  %v5487_v13 = vor.u32 %v5485_v51, %v5420_v54 }
 0x7c7   : > { %v5204_v2 = vpop.f32.mrf.mxu0  ;;  %10737 = vmatmul.mubr.bf16.gmra.mxu0 %v5486_v31 }
 0x7c8   : > { %v5426_v44 = vsel %vm2922_vm1, %v5414_v10, %v5425_v4  ;;  %v5391_v63 = vpack.c.bf16 %v5378_v55, %v5377_v59  ;;  %10740 = vmatprep.mubr.msk.bf16.mxu0 %vm12578_vm3, %v15078_v45  ;;  %v5253_v29 = vmax.f32 %v5204_v2, 0.0  ;;  %v5342_v10 = vpop.permute.xlu0 %5341 }
 0x7c9   : > { %v14518_v30 = vpop.f32.mrf.mxu0  ;;  %5762 = vmatmul.mubr.bf16.gmra.mxu1 %v5426_v44  ;;  %v5357_v44 = vpop.permute.xlu1 %5356 }
 0x7ca   : > { %v5428_v60 = vshrl.u32 %v5391_v63, 16  ;;  %v5431_v0 = vshll.u32 %v5391_v63, 16  ;;  %5769 = vmatprep.mubr.bf16.mxu1 %v5391_v63  ;;  %v5379_v1 = vmul.f32 %v5332_v32, %v5253_v29 }
 0x7cb   : > { %v5208_v24 = vpop.f32.mrf.mxu0 }
 0x7cc   : > { %v5254_v39 = vmax.f32 %v5208_v24, 0.0  ;;  %v5488_v58 = vrot.slane %v5431_v0, 1  ;;  %v5430_v57 = vrot.slane %v5428_v60, 7  ;;  %v5352_v59 = vpop.permute.xlu0 %5351 }
 0x7cd   : > { %v14520_v16 = vpop.f32.mrf.mxu0 }
 0x7ce   : > { %v5380_v47 = vmul.f32 %v5337_v27, %v5254_v39  ;;  %v5489_v40 = vsel %vm3199_vm0, %v5487_v13, %v5488_v58  ;;  %v5433_v22 = vor.u32 %v5431_v0, %v5430_v57  ;;  %v5490_v48 = vor.u32 %v5488_v58, %v5428_v60 }
 0x7cf   : > { %v5214_v25 = vpop.f32.mrf.mxu0  ;;  %10741 = vmatmul.mubr.bf16.gmra.mxu0 %v5489_v40 }
 0x7d0   : > { %v5434_v14 = vsel %vm2922_vm1, %v5422_v26, %v5433_v22  ;;  %v5392_v17 = vpack.c.bf16 %v5380_v47, %v5379_v1  ;;  %10744 = vmatprep.mubr.msk.bf16.mxu0 %vm12578_vm3, %v15078_v45  ;;  %v5255_v23 = vmax.f32 %v5214_v25, 0.0 }
 0x7d1   : > { %v14526_v34 = vpop.f32.mrf.mxu0  ;;  %5770 = vmatmul.mubr.bf16.gmra.mxu1 %v5434_v14 }
 0x7d2   : > { %v5436_v12 = vshrl.u32 %v5392_v17, 16  ;;  %v5439_v46 = vshll.u32 %v5392_v17, 16  ;;  %5777 = vmatprep.mubr.bf16.mxu1 %v5392_v17  ;;  %v5381_v53 = vmul.f32 %v5342_v10, %v5255_v23  ;;  %v5362_v17 = vpop.permute.xlu0 %5361  ;;  %v5367_v23 = vpop.permute.xlu1 %5366 }
 0x7d3   : > { %v5218_v18 = vpop.f32.mrf.mxu0 }
 0x7d4   : > { %v5256_v38 = vmax.f32 %v5218_v18, 0.0  ;;  %v5491_v41 = vrot.slane %v5439_v46, 1  ;;  %v5438_v43 = vrot.slane %v5436_v12, 7 }
 0x7d5   : > { %v14528_v49 = vpop.f32.mrf.mxu0 }
 0x7d6   : > { %v5382_v37 = vmul.f32 %v5347_v61, %v5256_v38  ;;  %v5492_v9 = vsel %vm3199_vm0, %v5490_v48, %v5491_v41  ;;  %v5441_v54 = vor.u32 %v5439_v46, %v5438_v43  ;;  %v5493_v31 = vor.u32 %v5491_v41, %v5436_v12 }
 0x7d7   : > { %v5224_v20 = vpop.f32.mrf.mxu0  ;;  %10745 = vmatmul.mubr.bf16.gmra.mxu0 %v5492_v9 }
 0x7d8   : > { %v5442_v19 = vsel %vm2922_vm1, %v5430_v57, %v5441_v54  ;;  %v5393_v5 = vpack.c.bf16 %v5382_v37, %v5381_v53  ;;  %10748 = vmatprep.mubr.msk.bf16.mxu0 %vm12578_vm3, %v15078_v45  ;;  %v5257_v7 = vmax.f32 %v5224_v20, 0.0 }
 0x7d9   : > { %v14534_v42 = vpop.f32.mrf.mxu0  ;;  %5778 = vmatmul.mubr.bf16.gmra.mxu1 %v5442_v19 }
 0x7da   : > { %v5444_v51 = vshrl.u32 %v5393_v5, 16  ;;  %v5447_v26 = vshll.u32 %v5393_v5, 16  ;;  %5785 = vmatprep.mubr.bf16.mxu1 %v5393_v5  ;;  %v5383_v29 = vmul.f32 %v5352_v59, %v5257_v7  ;;  %v11575_v7 = vld [vmem:[#allocation13 + $0x4] ss:$8 sps:$4 sm:$0xff]  }
 0x7db   : > { %v5228_v50 = vpop.f32.mrf.mxu0 }
 0x7dc   : > { %v5258_v55 = vmax.f32 %v5228_v50, 0.0  ;;  %v5494_v4 = vrot.slane %v5447_v26, 1  ;;  %v5446_v2 = vrot.slane %v5444_v51, 7 }
 0x7dd   : > { %v14536_v63 = vpop.f32.mrf.mxu0 }
 0x7de   : > { %v5384_v60 = vmul.f32 %v5357_v44, %v5258_v55  ;;  %v5495_v0 = vsel %vm3199_vm0, %v5493_v31, %v5494_v4  ;;  %v5449_v24 = vor.u32 %v5447_v26, %v5446_v2  ;;  %v5496_v22 = vor.u32 %v5494_v4, %v5444_v51 }
 0x7df   : > { %v5234_v32 = vpop.f32.mrf.mxu0  ;;  %10749 = vmatmul.mubr.bf16.gmra.mxu0 %v5495_v0 }
 0x7e0   : > { %v5450_v39 = vsel %vm2922_vm1, %v5438_v43, %v5449_v24  ;;  %v5394_v13 = vpack.c.bf16 %v5384_v60, %v5383_v29  ;;  %10752 = vmatprep.mubr.msk.bf16.mxu0 %vm12578_vm3, %v15078_v45  ;;  %v5259_v57 = vmax.f32 %v5234_v32, 0.0 }
 0x7e1   : > { %v14542_v58 = vpop.f32.mrf.mxu0  ;;  %5786 = vmatmul.mubr.bf16.gmra.mxu1 %v5450_v39 }
 0x7e2   : > { %v5452_v27 = vshrl.u32 %v5394_v13, 16  ;;  %v5455_v1 = vshll.u32 %v5394_v13, 16  ;;  %5793 = vmatprep.mubr.bf16.mxu1 %v5394_v13  ;;  %v5385_v12 = vmul.f32 %v5362_v17, %v5259_v57 }
 0x7e3   : > { %v5238_v47 = vpop.f32.mrf.mxu0 }
 0x7e4   : > { %v5260_v40 = vmax.f32 %v5238_v47, 0.0  ;;  %v5497_v25 = vrot.slane %v5455_v1, 1  ;;  %v5454_v14 = vrot.slane %v5452_v27, 7 }
 0x7e5   : > { %v14555_v59 = vpop.f32.mrf.mxu0 }
 0x7e6   : > { %v5386_v46 = vmul.f32 %v5367_v23, %v5260_v40  ;;  %v5498_v18 = vsel %vm3199_vm0, %v5496_v22, %v5497_v25  ;;  %v5457_v10 = vor.u32 %v5455_v1, %v5454_v14  ;;  %v5499_v61 = vor.u32 %v5497_v25, %v5452_v27 }
 0x7e7   : > { %10753 = vmatmul.mubr.bf16.gmra.mxu0 %v5498_v18 }
 0x7e8   : > { %v5458_v38 = vsel %vm2922_vm1, %v5446_v2, %v5457_v10  ;;  %v5395_v48 = vpack.c.bf16 %v5386_v46, %v5385_v12  ;;  %10756 = vmatprep.mubr.msk.bf16.mxu0 %vm12578_vm3, %v15078_v45 }
 0x7e9   : > { %5794 = vmatmul.mubr.bf16.gmra.mxu1 %v5458_v38 }
 0x7ea   : > { %v5460_v41 = vshrl.u32 %v5395_v48, 16  ;;  %v5463_v43 = vshll.u32 %v5395_v48, 16  ;;  %5801 = vmatprep.mubr.bf16.mxu1 %v5395_v48 }
 0x7ec   : > { %v5500_v53 = vrot.slane %v5463_v43, 1  ;;  %v5462_v37 = vrot.slane %v5460_v41, 7 }
 0x7ee   : > { %v5501_v9 = vsel %vm3199_vm0, %v5499_v61, %v5500_v53  ;;  %v5465_v54 = vor.u32 %v5463_v43, %v5462_v37  ;;  %v5502_v19 = vor.u32 %v5500_v53, %v5460_v41 }
 0x7ef   : > { %10757 = vmatmul.mubr.bf16.gmra.mxu0 %v5501_v9 }
 0x7f0   : > { %v5466_v20 = vsel %vm2922_vm1, %v5454_v14, %v5465_v54  ;;  %10760 = vmatprep.mubr.msk.bf16.mxu0 %vm12578_vm3, %v15078_v45  ;;  %v5512_v5 = vsel %vm13929_vm12, %v5502_v19, 0 }
 0x7f1   : > { %5802 = vmatmul.mubr.bf16.gmra.mxu1 %v5466_v20 }
 0x7f2   : > { %9960 = vmatprep.mubr.msk.bf16.mxu1 %vm4537_vm13, %v11575_v7 }
 0x7f7   : > { %10761 = vmatmul.mubr.bf16.gmra.mxu0 %v5512_v5 }
 0x871   : > { %v10337_v51 = vpop.f32.mrf.mxu1 }
 0x873   : > { %v10338_v26 = vpop.f32.mrf.mxu1 }
 0x874   : > { %v10339_v50 = vadd.f32 %v10338_v26, %v10337_v51 }
 0x875   : > { %v10340_v55 = vpop.f32.mrf.mxu1 }
 0x876   : > { %v5740_v31 = vadd.f32 %v10339_v50, %v14484_v35 }
 0x877   : > { %v10341_v4 = vpop.f32.mrf.mxu1  ;;  %v5844_v2 = vpop.f32.mrf.mxu0 }
 0x878   : > { %v10342_v44 = vadd.f32 %v10341_v4, %v10340_v55  ;;  %v5845_v29 = vadd.f32 %v5844_v2, %v5740_v31 }
 0x879   : > { %v10343_v60 = vpop.f32.mrf.mxu1  ;;  %v10730_v0 = vpop.f32.mrf.mxu0 }
 0x87a   : > { %v5743_v24 = vadd.f32 %v10342_v44, %v14486_v15  ;;  %v5915_v47 = vmax.f32 %v5845_v29, 0.0 }
 0x87b   : > { %v10344_v32 = vpop.f32.mrf.mxu1  ;;  %v5847_v39 = vpop.f32.mrf.mxu0 }
 0x87c   : > { %v10345_v13 = vadd.f32 %v10344_v32, %v10343_v60  ;;  %v5848_v57 = vadd.f32 %v5847_v39, %v5743_v24 }
 0x87d   : > { %v10346_v27 = vpop.f32.mrf.mxu1  ;;  %v10731_v1 = vpop.f32.mrf.mxu0 }
 0x87e   : > { %v5916_v40 = vmax.f32 %v5848_v57, 0.0  ;;  %v5748_v22 = vadd.f32 %v10345_v13, %v14488_v33 }
 0x87f   : > { %v10347_v25 = vpop.f32.mrf.mxu1  ;;  %v5852_v35 = vpop.f32.mrf.mxu0 }
 0x880   : > { %v14560_v14 = vpack.c.bf16 %v5916_v40, %v5915_v47  ;;  %v10348_v17 = vadd.f32 %v10347_v25, %v10346_v27  ;;  %v5853_v23 = vadd.f32 %v5852_v35, %v5748_v22 }
 0x881   : > { %v10349_v12 = vpop.f32.mrf.mxu1  ;;  %v10734_v46 = vpop.f32.mrf.mxu0 }
 0x882   : > { %v5751_v15 = vadd.f32 %v10348_v17, %v14490_v56  ;;  %v5917_v61 = vmax.f32 %v5853_v23, 0.0  ;;  %v11605_v46 = vld [vmem:[#allocation16 + $0x74] ss:$8 sps:$4 sm:$0xff]  }
 0x883   : > { %v10350_v18 = vpop.f32.mrf.mxu1  ;;  %v5855_v10 = vpop.f32.mrf.mxu0  ;;  %6571 = vmatprep.subr.bf16.mxu0 %v11605_v46 }
 0x884   : > { %v10351_v38 = vadd.f32 %v10350_v18, %v10349_v12  ;;  %v5856_v48 = vadd.f32 %v5855_v10, %v5751_v15  ;;  %v11603_v12 = vld [vmem:[#allocation16 + $0x70] ss:$8 sps:$4 sm:$0xff]   ;;  %v11608_v15 = vld [vmem:[#allocation16 + $0x64] ss:$8 sps:$4 sm:$0xff]  }
 0x885   : > { %v14563_v41 = vpop.f32.mrf.mxu1  ;;  %v10735_v43 = vpop.f32.mrf.mxu0  ;;  %6572 = vmatpush1.bf16.msra.mxu0 %v11603_v12 }
 0x886   : > { %v5918_v53 = vmax.f32 %v5856_v48, 0.0  ;;  %v5756_v33 = vadd.f32 %v10351_v38, %v14494_v21  ;;  %v11606_v38 = vld [vmem:[#allocation16 + $0x60] ss:$8 sps:$4 sm:$0xff]   ;;  %6573 = vmatprep.subr.bf16.mxu0 %v11608_v15 }
 0x887   : > { %v14566_v37 = vpop.f32.mrf.mxu1  ;;  %v5860_v9 = vpop.f32.mrf.mxu0 }
 0x888   : > { %v14568_v54 = vpack.c.bf16 %v5918_v53, %v5917_v61  ;;  %v14570_v20 = vadd.f32 %v5860_v9, %v5756_v33  ;;  %v11611_v61 = vld [vmem:[#allocation16 + $0x54] ss:$8 sps:$4 sm:$0xff]  }
 0x889   : > { %v14572_v19 = vpop.f32.mrf.mxu1  ;;  %v10738_v56 = vpop.f32.mrf.mxu0  ;;  %6574 = vmatpush1.bf16.msra.mxu0 %v11606_v38 }
 0x88a   : > { %6575 = vmatprep.subr.bf16.mxu0 %v11611_v61 }
 0x88b   : > { %v14574_v5 = vpop.f32.mrf.mxu1  ;;  %v14576_v7 = vpop.f32.mrf.mxu0 }
 0x88d   : > { %v14578_v51 = vpop.f32.mrf.mxu1  ;;  %v10739_v26 = vpop.f32.mrf.mxu0 }
 0x88e   : > { %v11609_v26 = vld [vmem:[#allocation16 + $0x50] ss:$8 sps:$4 sm:$0xff]  }
 0x88f   : > { %v14580_v50 = vpop.f32.mrf.mxu1  ;;  %v14582_v21 = vpop.f32.mrf.mxu0  ;;  %6576 = vmatpush1.bf16.msra.mxu0 %v11609_v26 }
 0x891   : > { %v10361_v55 = vpop.f32.mrf.mxu1  ;;  %v10742_v31 = vpop.f32.mrf.mxu0 }
 0x893   : > { %v10362_v4 = vpop.f32.mrf.mxu1  ;;  %v14584_v2 = vpop.f32.mrf.mxu0 }
 0x894   : > { %v10363_v61 = vadd.f32 %v10362_v4, %v10361_v55  ;;  %v10357_v55 = vadd.f32 %v14574_v5, %v14572_v19 }
 0x895   : > { %v10364_v44 = vpop.f32.mrf.mxu1  ;;  %v10743_v29 = vpop.f32.mrf.mxu0 }
 0x897   : > { %v10365_v60 = vpop.f32.mrf.mxu1  ;;  %v14586_v0 = vpop.f32.mrf.mxu0 }
 0x899   : > { %v10367_v24 = vpop.f32.mrf.mxu1  ;;  %v10746_v32 = vpop.f32.mrf.mxu0 }
 0x89b   : > { %v10368_v39 = vpop.f32.mrf.mxu1  ;;  %v14588_v13 = vpop.f32.mrf.mxu0 }
 0x89c   : > { %v10369_v45 = vadd.f32 %v10368_v39, %v10367_v24  ;;  %v10360_v24 = vadd.f32 %v14580_v50, %v14578_v51  ;;  %v10354_v51 = vadd.f32 %v14566_v37, %v14563_v41 }
 0x89d   : > { %v10370_v57 = vpop.f32.mrf.mxu1  ;;  %v10747_v27 = vpop.f32.mrf.mxu0 }
 0x89e   : > { %v5759_v41 = vadd.f32 %v10354_v51, %v14496_v11  ;;  %v11623_v51 = vld [vmem:[#allocation16 + $0x14] ss:$8 sps:$4 sm:$0xff]  }
 0x89f   : > { %v10371_v1 = vpop.f32.mrf.mxu1  ;;  %v5884_v47 = vpop.f32.mrf.mxu0 }
 0x8a0   : > { %v10372_v12 = vadd.f32 %v10371_v1, %v10370_v57  ;;  %v5780_v57 = vadd.f32 %v10369_v45, %v14518_v30  ;;  %v5772_v45 = vadd.f32 %v10363_v61, %v14510_v36  ;;  %v5764_v36 = vadd.f32 %v10357_v55, %v14502_v8  ;;  %v11582_v61 = vld [vmem:[#allocation13 + $0x34] ss:$8 sps:$4 sm:$0xff]  }
 0x8a1   : > { %v10373_v40 = vpop.f32.mrf.mxu1  ;;  %v10750_v22 = vpop.f32.mrf.mxu0  ;;  %v5864_v8 = vadd.f32 %v14576_v7, %v5759_v41  ;;  %v11617_v55 = vld [vmem:[#allocation16 + $0x34] ss:$8 sps:$4 sm:$0xff]   ;;  %v11642_v41 = vld [vmem:[#allocation16 + $0x150] ss:$8 sps:$4 sm:$0xff]  }
 0x8a2   : > { %v5885_v30 = vadd.f32 %v5884_v47, %v5780_v57  ;;  %v5877_v5 = vadd.f32 %v14586_v0, %v5772_v45  ;;  %v11585_v57 = vld [vmem:[#allocation13 + $0x44] ss:$8 sps:$4 sm:$0xff]   ;;  %v11615_v45 = vld [vmem:[#allocation16 + $0x30] ss:$8 sps:$4 sm:$0xff]  }
 0x8a3   : > { %v10374_v25 = vpop.f32.mrf.mxu1  ;;  %v5887_v35 = vpop.f32.mrf.mxu0  ;;  %v5920_v11 = vmax.f32 %v5864_v8, 0.0  ;;  %v11656_v8 = vld [vmem:[#allocation16 + $0x134] ss:$8 sps:$4 sm:$0xff]  }
 0x8a4   : > { %v10375_v32 = vadd.f32 %v10374_v25, %v10373_v40  ;;  %v5783_v40 = vadd.f32 %v10372_v12, %v14520_v16  ;;  %v5925_v47 = vmax.f32 %v5885_v30, 0.0  ;;  %v11620_v30 = vld [vmem:[#allocation16 + $0x24] ss:$8 sps:$4 sm:$0xff]  }
 0x8a5   : > { %v10376_v17 = vpop.f32.mrf.mxu1  ;;  %v10751_v23 = vpop.f32.mrf.mxu0 }
 0x8a7   : > { %v10377_v18 = vpop.f32.mrf.mxu1  ;;  %v5892_v10 = vpop.f32.mrf.mxu0 }
 0x8a8   : > { %v10378_v9 = vadd.f32 %v10377_v18, %v10376_v17  ;;  %v5788_v17 = vadd.f32 %v10375_v32, %v14526_v34 }
 0x8a9   : > { %v10379_v48 = vpop.f32.mrf.mxu1  ;;  %v10754_v43 = vpop.f32.mrf.mxu0 }
 0x8aa   : > { %v5791_v46 = vadd.f32 %v10378_v9, %v14528_v49  ;;  %v5893_v49 = vadd.f32 %v5892_v10, %v5788_v17 }
 0x8ab   : > { %v10380_v53 = vpop.f32.mrf.mxu1  ;;  %v5895_v33 = vpop.f32.mrf.mxu0 }
 0x8ac   : > { %v10381_v56 = vadd.f32 %v10380_v53, %v10379_v48  ;;  %v10366_v53 = vadd.f32 %v10365_v60, %v10364_v44  ;;  %v5896_v25 = vadd.f32 %v5895_v33, %v5791_v46  ;;  %v5927_v4 = vmax.f32 %v5893_v49, 0.0  ;;  %v11587_v49 = vld [vmem:[#allocation13 + $0x40] ss:$8 sps:$4 sm:$0xff]  }
 0x8ad   : > { %v10382_v31 = vpop.f32.mrf.mxu1  ;;  %v10755_v29 = vpop.f32.mrf.mxu0 }
 0x8ae   : > { %v5796_v27 = vadd.f32 %v10381_v56, %v14534_v42  ;;  %v5775_v39 = vadd.f32 %v10366_v53, %v14512_v52  ;;  %v5928_v26 = vmax.f32 %v5896_v25, 0.0  ;;  %v5767_v52 = vadd.f32 %v10360_v24, %v14504_v62  ;;  %v11579_v25 = vld [vmem:[#allocation13 + $0x24] ss:$8 sps:$4 sm:$0xff]  }
 0x8af   : > { %v10383_v22 = vpop.f32.mrf.mxu1  ;;  %v5900_v23 = vpop.f32.mrf.mxu0  ;;  %v11591_v24 = vld [vmem:[#allocation15 + $0x14] ss:$8 sps:$4 sm:$0xff]  }
 0x8b0   : > { %v10384_v43 = vadd.f32 %v10383_v22, %v10382_v31  ;;  %v5901_v18 = vadd.f32 %v5900_v23, %v5796_v27  ;;  %v5939_v33 = vpack.c.bf16 %v5928_v26, %v5927_v4  ;;  %v5872_v37 = vadd.f32 %v14584_v2, %v5767_v52  ;;  %v11600_v26 = vld [vmem:[#allocation15 + $0x44] ss:$8 sps:$4 sm:$0xff]   ;;  %v11618_v4 = vld [vmem:[#allocation16 + $0x20] ss:$8 sps:$4 sm:$0xff]  }
 0x8b1   : > { %v10758_v15 = vpop.f32.mrf.mxu0  ;;  %v10385_v16 = vpop.f32.mrf.mxu1  ;;  %v5923_v27 = vmax.f32 %v5877_v5, 0.0  ;;  %v11632_v52 = vld [vmem:[#allocation16 + $0x174] ss:$8 sps:$4 sm:$0xff]   ;;  %v11627_v5 = vld [vmem:[#allocation16 + $0xf0] ss:$8 sps:$4 sm:$0xff]  }
 0x8b2   : > { %v5799_v38 = vadd.f32 %v10384_v43, %v14536_v63  ;;  %v5929_v1 = vmax.f32 %v5901_v18, 0.0  ;;  %v5888_v63 = vadd.f32 %v5887_v35, %v5783_v40  ;;  %v5880_v35 = vadd.f32 %v14588_v13, %v5775_v39  ;;  %v11573_v40 = vld [vmem:[#allocation13] ss:$8 sps:$4 sm:$0xff]   ;;  %v11596_v39 = vld [vmem:[#allocation15 + $0x20] ss:$8 sps:$4 sm:$0xff]  }
 0x8b3   : > { %v5903_v48 = vpop.f32.mrf.mxu0  ;;  %v10386_v31 = vpop.f32.mrf.mxu1  ;;  %v5869_v13 = vadd.f32 %v14582_v21, %v5764_v36  ;;  %v5922_v0 = vmax.f32 %v5872_v37, 0.0  ;;  %v5919_v43 = vmax.f32 %v14570_v20, 0.0  ;;  %v11629_v36 = vld [vmem:[#allocation16 + $0xf4] ss:$8 sps:$4 sm:$0xff]   ;;  %v11635_v37 = vld [vmem:[#allocation16 + $0xe4] ss:$8 sps:$4 sm:$0xff]  }
 0x8b4   : > { %v5904_v42 = vadd.f32 %v5903_v48, %v5799_v38  ;;  %v5926_v10 = vmax.f32 %v5888_v63, 0.0  ;;  %v5924_v29 = vmax.f32 %v5880_v35, 0.0  ;;  %v10387_v15 = vadd.f32 %v10386_v31, %v10385_v16  ;;  %v11597_v63 = vld [vmem:[#allocation15 + $0x34] ss:$8 sps:$4 sm:$0xff]   ;;  %v11612_v16 = vld [vmem:[#allocation16 + $0x40] ss:$8 sps:$4 sm:$0xff]  }
 0x8b5   : > { %v10759_v56 = vpop.f32.mrf.mxu0  ;;  %v10388_v32 = vpop.f32.mrf.mxu1  ;;  %v5921_v12 = vmax.f32 %v5869_v13, 0.0  ;;  %v5935_v21 = vpack.c.bf16 %v5920_v11, %v5919_v43  ;;  %v11630_v35 = vld [vmem:[#allocation16 + $0x170] ss:$8 sps:$4 sm:$0xff]   ;;  %v11638_v31 = vld [vmem:[#allocation16 + $0x164] ss:$8 sps:$4 sm:$0xff]  }
 0x8b6   : > { %v5930_v9 = vmax.f32 %v5904_v42, 0.0  ;;  %v5938_v62 = vpack.c.bf16 %v5926_v10, %v5925_v47  ;;  %v5937_v22 = vpack.c.bf16 %v5924_v29, %v5923_v27  ;;  %v5804_v7 = vadd.f32 %v10387_v15, %v14542_v58  ;;  %v11578_v58 = vld [vmem:[#allocation13 + $0x10] ss:$8 sps:$4 sm:$0xff]   ;;  %v11581_v42 = vld [vmem:[#allocation13 + $0x20] ss:$8 sps:$4 sm:$0xff]  }
 0x8b7   : > { %v5908_v34 = vpop.f32.mrf.mxu0  ;;  %v10389_v23 = vpop.f32.mrf.mxu1  ;;  %v5936_v2 = vpack.c.bf16 %v5922_v0, %v5921_v12  ;;  %v11584_v56 = vld [vmem:[#allocation13 + $0x30] ss:$8 sps:$4 sm:$0xff]   ;;  %v11626_v10 = vld [vmem:[#allocation16 + $0x4] ss:$8 sps:$4 sm:$0xff]   ;;  %v11644_v47 = vld [vmem:[#allocation16 + $0x154] ss:$8 sps:$4 sm:$0xff]  }
 0x8b8   : > { %v14599_v44 = vpack.c.bf16 %v5930_v9, %v5929_v1  ;;  %v10390_v46 = vadd.f32 %v10389_v23, %v10388_v32  ;;  %v5909_v38 = vadd.f32 %v5908_v34, %v5804_v7  ;;  %v11590_v1 = vld [vmem:[#allocation15 + $0x4] ss:$8 sps:$4 sm:$0xff]   ;;  %v11588_v9 = vld [vmem:[#allocation15] ss:$8 sps:$4 sm:$0xff]   ;;  %v11633_v29 = vld [vmem:[#allocation16 + $0xe0] ss:$8 sps:$4 sm:$0xff]  }
 0x8b9   : > { %v10762_v60 = vpop.f32.mrf.mxu0  ;;  %v11594_v34 = vld [vmem:[#allocation15 + $0x24] ss:$8 sps:$4 sm:$0xff]   ;;  %v11648_v32 = vld [vmem:[#allocation16 + $0x140] ss:$8 sps:$4 sm:$0xff]   ;;  %v11639_v27 = vld [vmem:[#allocation16 + $0xd0] ss:$8 sps:$4 sm:$0xff]  }
 0x8ba   : > { %6023 = vmatpush1.bf16.msra.mxu1 %v14599_v44  ;;  %v5807_v17 = vadd.f32 %v10390_v46, %v14555_v59  ;;  %v5931_v20 = vmax.f32 %v5909_v38, 0.0  ;;  %v11576_v59 = vld [vmem:[#allocation13 + $0x14] ss:$8 sps:$4 sm:$0xff]   ;;  %v11602_v60 = vld [vmem:[#allocation15 + $0x40] ss:$8 sps:$4 sm:$0xff]  }
 0x8bb   : > { %v5911_v50 = vpop.f32.mrf.mxu0  ;;  %6024 = vmatprep.subr.bf16.mxu1 %v15200_v3  ;;  %v11641_v13 = vld [vmem:[#allocation16 + $0xd4] ss:$8 sps:$4 sm:$0xff]   ;;  %v11654_v0 = vld [vmem:[#allocation16 + $0x130] ss:$8 sps:$4 sm:$0xff]   ;;  %v11645_v23 = vld [vmem:[#allocation16 + $0xc0] ss:$8 sps:$4 sm:$0xff]  }
 0x8bc   : > { %v5912_v18 = vadd.f32 %v5911_v50, %v5807_v17  ;;  %v11621_v50 = vld [vmem:[#allocation16 + $0x10] ss:$8 sps:$4 sm:$0xff]   ;;  %v11662_v12 = vld [vmem:[#allocation16 + $0x124] ss:$8 sps:$4 sm:$0xff]   ;;  %v11660_v11 = vld [vmem:[#allocation16 + $0x120] ss:$8 sps:$4 sm:$0xff]  }
 0x8bd   : > { %v10763_v19 = vpop.f32.mrf.mxu0  ;;  %v11651_v46 = vld [vmem:[#allocation16 + $0xb0] ss:$8 sps:$4 sm:$0xff]   ;;  %v11668_v43 = vld [vmem:[#allocation16 + $0x114] ss:$8 sps:$4 sm:$0xff]   ;;  %v11657_v17 = vld [vmem:[#allocation16 + $0xa0] ss:$8 sps:$4 sm:$0xff]  }
 0x8be   : > { %6025 = vmatpush1.bf16.msra.mxu1 %v5939_v33  ;;  %v5932_v48 = vmax.f32 %v5912_v18, 0.0  ;;  %v11636_v19 = vld [vmem:[#allocation16 + $0x160] ss:$8 sps:$4 sm:$0xff]   ;;  %v11666_v15 = vld [vmem:[#allocation16 + $0x110] ss:$8 sps:$4 sm:$0xff]  }
 0x8bf   : > { %6026 = vmatprep.subr.bf16.mxu1 %v15200_v3  ;;  %v11674_v7 = vld [vmem:[#allocation16 + $0x104] ss:$8 sps:$4 sm:$0xff]   ;;  %v11672_v18 = vld [vmem:[#allocation16 + $0x100] ss:$8 sps:$4 sm:$0xff]   ;;  %v11665_v38 = vld [vmem:[#allocation16 + $0x94] ss:$8 sps:$4 sm:$0xff]  }
 0x8c0   : > { %v5941_v53 = vpack.c.bf16 %v5932_v48, %v5931_v20  ;;  %v11663_v48 = vld [vmem:[#allocation16 + $0x90] ss:$8 sps:$4 sm:$0xff]   ;;  %v15201_v20 = vmov 0.0  }
 0x8c2   : > { %6027 = vmatpush1.bf16.msra.mxu1 %v5938_v62 }
 0x8c3   : > { %6028 = vmatprep.subr.bf16.mxu1 %v15200_v3 }
 0x8c6   : > { %6029 = vmatpush1.bf16.msra.mxu1 %v5937_v22 }
 0x8c7   : > { %6030 = vmatprep.subr.bf16.mxu1 %v15200_v3 }
 0x8ca   : > { %6031 = vmatpush1.bf16.msra.mxu1 %v5936_v2 }
 0x8cb   : > { %6032 = vmatprep.subr.bf16.mxu1 %v15200_v3 }
 0x8ce   : > { %6033 = vmatpush1.bf16.msra.mxu1 %v5935_v21 }
 0x8cf   : > { %6034 = vmatprep.subr.bf16.mxu1 %v15200_v3 }
 0x8d2   : > { %6035 = vmatpush1.bf16.msra.mxu1 %v14568_v54 }
 0x8d3   : > { %6036 = vmatprep.subr.bf16.mxu1 %v15200_v3 }
 0x8d6   : > { %6037 = vmatpush1.bf16.msra.mxu1 %v14560_v14 }
 0x8d7   : > { %6052 = vmatprep.subr.bf16.mxu1 %v15200_v3 }
 0x8da   : > { %6053 = vmatpush2.bf16.msra.mxu1 %v5941_v53 }
 0x8db   : > { %6160 = vmatprep.subr.bf16.mxu1 %v15200_v3 }
 0x8dd   : > { %6055 = vmatmul.mubr.bf16.vlgmr.msra.gmra.mxu1 %v11573_v40  ;;  %v11669_v40 = vld [vmem:[#allocation16 + $0x80] ss:$8 sps:$4 sm:$0xff]  }
 0x8de   : > { %6161 = vmatpush1.bf16.msra.mxu1 %v14599_v44  ;;  %9961 = vmatprep.mubr.msk.bf16.mxu1 %vm4537_vm13, %v11576_v59  ;;  %v11614_v44 = vld [vmem:[#allocation16 + $0x44] ss:$8 sps:$4 sm:$0xff]  }
 0x8df   : > { %6162 = vmatprep.subr.bf16.mxu1 %v15200_v3  ;;  %6577 = vmatprep.subr.bf16.mxu0 %v11614_v44  ;;  %v11675_v59 = vld [vmem:[#allocation19 + $0x78] sm:$0xff]  }
 0x8e0   : > { %6578 = vmatpush1.bf16.msra.mxu0 %v11612_v16 }
 0x8e1   : > { %6579 = vmatprep.subr.bf16.mxu0 %v11617_v55 }
 0x8e2   : > { %6163 = vmatpush1.bf16.msra.mxu1 %v5939_v33  ;;  %v11624_v33 = vld [vmem:[#allocation16] ss:$8 sps:$4 sm:$0xff]  }
 0x8e3   : > { %6164 = vmatprep.subr.bf16.mxu1 %v15200_v3 }
 0x8e4   : > { %6580 = vmatpush1.bf16.msra.mxu0 %v11615_v45 }
 0x8e5   : > { %6063 = vmatmul.mubr.bf16.gmra.mxu1 %v11578_v58  ;;  %6581 = vmatprep.subr.bf16.mxu0 %v11620_v30 }
 0x8e6   : > { %6165 = vmatpush1.bf16.msra.mxu1 %v5938_v62  ;;  %9962 = vmatprep.mubr.msk.bf16.mxu1 %vm4537_vm13, %v11579_v25  ;;  %v11650_v62 = vld [vmem:[#allocation16 + $0x144] ss:$8 sps:$4 sm:$0xff]  }
 0x8e7   : > { %6166 = vmatprep.subr.bf16.mxu1 %v15200_v3 }
 0x8e8   : > { %6582 = vmatpush1.bf16.msra.mxu0 %v11618_v4 }
 0x8e9   : > { %6583 = vmatprep.subr.bf16.mxu0 %v11623_v51 }
 0x8ea   : > { %6167 = vmatpush1.bf16.msra.mxu1 %v5937_v22  ;;  %v11647_v22 = vld [vmem:[#allocation16 + $0xc4] ss:$8 sps:$4 sm:$0xff]  }
 0x8eb   : > { %6168 = vmatprep.subr.bf16.mxu1 %v15200_v3 }
 0x8ec   : > { %6584 = vmatpush1.bf16.msra.mxu0 %v11621_v50  ;;  %v11679_v50 = vld [vmem:[#allocation19 + $0xb8] sm:$0xff]  }
 0x8ed   : > { %6071 = vmatmul.mubr.bf16.gmra.mxu1 %v11581_v42  ;;  %6585 = vmatprep.subr.bf16.mxu0 %v11626_v10 }
 0x8ee   : > { %6169 = vmatpush1.bf16.msra.mxu1 %v5936_v2  ;;  %9963 = vmatprep.mubr.msk.bf16.mxu1 %vm4537_vm13, %v11582_v61  ;;  %v11653_v2 = vld [vmem:[#allocation16 + $0xb4] ss:$8 sps:$4 sm:$0xff]  }
 0x8ef   : > { %6170 = vmatprep.subr.bf16.mxu1 %v15200_v3 }
 0x8f0   : > { %6586 = vmatpush1.bf16.msra.mxu0 %v11624_v33 }
 0x8f1   : > { %6587 = vmatprep.subr.bf16.mxu0 %v11629_v36 }
 0x8f2   : > { %6171 = vmatpush1.bf16.msra.mxu1 %v5935_v21  ;;  %v11659_v21 = vld [vmem:[#allocation16 + $0xa4] ss:$8 sps:$4 sm:$0xff]  }
 0x8f3   : > { %6172 = vmatprep.subr.bf16.mxu1 %v15200_v3 }
 0x8f4   : > { %6588 = vmatpush2.bf16.msra.mxu0 %v11627_v5 }
 0x8f5   : > { %6079 = vmatmul.mubr.bf16.gmra.mxu1 %v11584_v56  ;;  %6589 = vmatprep.subr.bf16.mxu0 %v11635_v37  ;;  %v11676_v37 = vld [vmem:[#allocation19 + $0x38] sm:$0xff]  }
 0x8f6   : > { %6173 = vmatpush1.bf16.msra.mxu1 %v14568_v54  ;;  %9964 = vmatprep.mubr.msk.bf16.mxu1 %vm4537_vm13, %v11585_v57  ;;  %v11593_v54 = vld [vmem:[#allocation15 + $0x10] ss:$8 sps:$4 sm:$0xff]  }
 0x8f7   : > { %6174 = vmatprep.subr.bf16.mxu1 %v15200_v3 }
 0x8f8   : > { %6590 = vmatpush2.bf16.msra.mxu0 %v11633_v29 }
 0x8f9   : > { %6591 = vmatprep.subr.bf16.mxu0 %v11641_v13  ;;  %v11677_v13 = vld [vmem:[#allocation19 + $0x70] sm:$0xff]  }
 0x8fa   : > { %6175 = vmatpush1.bf16.msra.mxu1 %v14560_v14  ;;  %v11599_v14 = vld [vmem:[#allocation15 + $0x30] ss:$8 sps:$4 sm:$0xff]  }
 0x8fb   : > { %6190 = vmatprep.subr.bf16.mxu1 %v15200_v3 }
 0x8fc   : > { %6592 = vmatpush2.bf16.msra.mxu0 %v11639_v27 }
 0x8fd   : > { %6087 = vmatmul.mubr.bf16.gmra.mxu1 %v11587_v49  ;;  %6593 = vmatprep.subr.bf16.mxu0 %v11647_v22  ;;  %v11678_v22 = vld [vmem:[#allocation19 + $0x30] sm:$0xff]  }
 0x8fe   : > { %6191 = vmatpush2.bf16.msra.mxu1 %v5941_v53  ;;  %9975 = vmatprep.mubr.msk.bf16.mxu1 %vm4537_vm13, %v11590_v1  ;;  %v11671_v53 = vld [vmem:[#allocation16 + $0x84] ss:$8 sps:$4 sm:$0xff]  }
 0x8ff   : > { %6654 = vmatprep.subr.bf16.mxu1 %v11632_v52 }
 0x900   : > { %6594 = vmatpush2.bf16.msra.mxu0 %v11645_v23 }
 0x901   : > { %6595 = vmatprep.subr.bf16.mxu0 %v11653_v2 }
 0x904   : > { %6596 = vmatpush2.bf16.msra.mxu0 %v11651_v46 }
 0x905   : > { %6193 = vmatmul.mubr.bf16.vlgmr.msra.gmra.mxu1 %v11588_v9  ;;  %6597 = vmatprep.subr.bf16.mxu0 %v11659_v21 }
 0x906   : > { %9976 = vmatprep.mubr.msk.bf16.mxu1 %vm4537_vm13, %v11591_v24  ;;  %6655 = vmatpush1.bf16.msra.mxu1 %v11630_v35 }
 0x907   : > { %6656 = vmatprep.subr.bf16.mxu1 %v11638_v31  ;;  %v11682_v31 = vld [vmem:[#allocation19 + $0xb0] sm:$0xff]  }
 0x908   : > { %6598 = vmatpush2.bf16.msra.mxu0 %v11657_v17 }
 0x909   : > { %6599 = vmatprep.subr.bf16.mxu0 %v11665_v38 }
 0x90a   : > { %6657 = vmatpush1.bf16.msra.mxu1 %v11636_v19 }
 0x90b   : > { %6658 = vmatprep.subr.bf16.mxu1 %v11644_v47 }
 0x90c   : > { %6600 = vmatpush2.bf16.msra.mxu0 %v11663_v48 }
 0x90d   : > { %6201 = vmatmul.mubr.bf16.gmra.mxu1 %v11593_v54  ;;  %6601 = vmatprep.subr.bf16.mxu0 %v11671_v53 }
 0x90e   : > { %9977 = vmatprep.mubr.msk.bf16.mxu1 %vm4537_vm13, %v11594_v34  ;;  %6659 = vmatpush1.bf16.msra.mxu1 %v11642_v41 }
 0x90f   : > { %6660 = vmatprep.subr.bf16.mxu1 %v11650_v62 }
 0x910   : > { %6602 = vmatpush2.bf16.msra.mxu0 %v11669_v40 }
 0x911   : > { %10408 = vmatprep.subr.bf16.mxu0 %v11675_v59 }
 0x912   : > { %6661 = vmatpush1.bf16.msra.mxu1 %v11648_v32 }
 0x913   : > { %6662 = vmatprep.subr.bf16.mxu1 %v11656_v8 }
 0x915   : > { %6209 = vmatmul.mubr.bf16.gmra.mxu1 %v11596_v39 }
 0x916   : > { %9978 = vmatprep.mubr.msk.bf16.mxu1 %vm4537_vm13, %v11597_v63  ;;  %6663 = vmatpush1.bf16.msra.mxu1 %v11654_v0 }
 0x917   : > { %6664 = vmatprep.subr.bf16.mxu1 %v11662_v12 }
 0x91a   : > { %6665 = vmatpush1.bf16.msra.mxu1 %v11660_v11  ;;  %v11680_v11 = vld [vmem:[#allocation19 + $0x68] sm:$0xff]  }
 0x91b   : > { %6666 = vmatprep.subr.bf16.mxu1 %v11668_v43 }
 0x91d   : > { %6217 = vmatmul.mubr.bf16.gmra.mxu1 %v11599_v14 }
 0x91e   : > { %9979 = vmatprep.mubr.msk.bf16.mxu1 %vm4537_vm13, %v11600_v26  ;;  %6667 = vmatpush1.bf16.msra.mxu1 %v11666_v15  ;;  %v11681_v15 = vld [vmem:[#allocation19 + $0x28] sm:$0xff]  }
 0x91f   : > { %6668 = vmatprep.subr.bf16.mxu1 %v11674_v7 }
 0x922   : > { %6669 = vmatpush1.bf16.msra.mxu1 %v11672_v18 }
 0x923   : > { %10764 = vmatprep.subr.bf16.mxu1 %v15201_v20 }
 0x925   : > { %6225 = vmatmul.mubr.bf16.gmra.mxu1 %v11602_v60 }
 0x926   : > { %6686 = vmatprep.mubr.bf16.mxu1 %v15200_v3 }
 0x99d   : > { %v6056_v58 = vpop.f32.mrf.mxu1 }
 0x99f   : > { %v6058_v25 = vpop.f32.mrf.mxu1 }
 0x9a1   : > { %v6059_v42 = vpop.f32.mrf.mxu1 }
 0x9a2   : > { %v6095_v61 = vpack.c.bf16 %v6059_v42, %v6056_v58 }
 0x9a3   : > { %v6061_v56 = vpop.f32.mrf.mxu1 }
 0x9a4   : > { %6603 = vmatprep.mubr.bf16.mxu0 %v6095_v61 }
 0x9a5   : > { %v6064_v57 = vpop.f32.mrf.mxu1 }
 0x9a7   : > { %v6066_v49 = vpop.f32.mrf.mxu1 }
 0x9a9   : > { %v6067_v1 = vpop.f32.mrf.mxu1 }
 0x9aa   : > { %v6096_v29 = vpack.c.bf16 %v6067_v1, %v6064_v57 }
 0x9ab   : > { %v6069_v9 = vpop.f32.mrf.mxu1 }
 0x9ad   : > { %v6072_v24 = vpop.f32.mrf.mxu1 }
 0x9af   : > { %v6074_v54 = vpop.f32.mrf.mxu1 }
 0x9b1   : > { %v6075_v34 = vpop.f32.mrf.mxu1 }
 0x9b2   : > { %v6097_v21 = vpack.c.bf16 %v6075_v34, %v6072_v24 }
 0x9b3   : > { %v6077_v39 = vpop.f32.mrf.mxu1 }
 0x9b5   : > { %v14651_v63 = vpop.f32.mrf.mxu1 }
 0x9b7   : > { %v6082_v14 = vpop.f32.mrf.mxu1 }
 0x9b9   : > { %v14653_v26 = vpop.f32.mrf.mxu1 }
 0x9ba   : > { %v6098_v42 = vpack.c.bf16 %v14653_v26, %v14651_v63 }
 0x9bb   : > { %v6085_v44 = vpop.f32.mrf.mxu1 }
 0x9bd   : > { %v14655_v16 = vpop.f32.mrf.mxu1 }
 0x9bf   : > { %v6090_v60 = vpop.f32.mrf.mxu1 }
 0x9c1   : > { %v14657_v55 = vpop.f32.mrf.mxu1 }
 0x9c2   : > { %v6099_v14 = vpack.c.bf16 %v14657_v55, %v14655_v16  ;;  %v11685_v16 = vld [vmem:[#allocation19 + $0xa8] sm:$0xff]   ;;  %v11686_v55 = vld [vmem:[#allocation19 + $0x58] sm:$0xff]  }
 0x9c3   : > { %v6093_v45 = vpop.f32.mrf.mxu1 }
 0x9c5   : > { %v6194_v30 = vpop.f32.mrf.mxu1 }
 0x9c7   : > { %v6196_v4 = vpop.f32.mrf.mxu1 }
 0x9c9   : > { %v6197_v51 = vpop.f32.mrf.mxu1 }
 0x9ca   : > { %v6233_v52 = vpack.c.bf16 %v6197_v51, %v6194_v30 }
 0x9cb   : > { %v6199_v35 = vpop.f32.mrf.mxu1 }
 0x9cc   : > { %v6239_v10 = vshrl.u32 %v6233_v52, 16  ;;  %6687 = vmatmul.mubr.bf16.vlgmr.msra.gmra.mxu1 %v6233_v52  ;;  %v6242_v36 = vshll.u32 %v6233_v52, 16  ;;  %v11684_v52 = vld [vmem:[#allocation19 + $0x20] sm:$0xff]   ;;  %v11687_v35 = vld [vmem:[#allocation19 + $0x18] sm:$0xff]  }
 0x9cd   : > { %v6202_v33 = vpop.f32.mrf.mxu1  ;;  %6696 = vmatprep.mubr.bf16.mxu1 %v15200_v3  ;;  %10765 = vmatpush3.bf16.msra.mxu1 %v11679_v50  ;;  %v11683_v50 = vld [vmem:[#allocation19 + $0x60] sm:$0xff]  }
 0x9ce   : > { %v6241_v19 = vrot.slane %v6239_v10, 7  ;;  %10766 = vmatprep.subr.bf16.mxu1 %v15201_v20  ;;  %v11688_v10 = vld [vmem:[#allocation19 + $0xa0] sm:$0xff]  }
 0x9cf   : > { %v6204_v5 = vpop.f32.mrf.mxu1 }
 0x9d0   : > { %v6244_v47 = vor.u32 %v6242_v36, %v6241_v19  ;;  %v11692_v36 = vld [vmem:[#allocation19 + $0x48] sm:$0xff]  }
 0x9d1   : > { %v6205_v41 = vpop.f32.mrf.mxu1  ;;  %10767 = vmatpush3.bf16.msra.mxu1 %v11682_v31  ;;  %v11690_v31 = vld [vmem:[#allocation19 + $0x10] sm:$0xff]   ;;  %v11693_v5 = vld [vmem:[#allocation19 + $0x8] sm:$0xff]  }
 0x9d2   : > { %v6234_v62 = vpack.c.bf16 %v6205_v41, %v6202_v33  ;;  %v6282_v32 = vsel %vm13788_vm5, 0, %v6244_v47  ;;  %10768 = vmatprep.subr.bf16.mxu1 %v15201_v20  ;;  %v11689_v33 = vld [vmem:[#allocation19 + $0x50] sm:$0xff]   ;;  %v11695_v41 = vld [vmem:[#allocation19 + $0x40] sm:$0xff]  }
 0x9d3   : > { %v6207_v27 = vpop.f32.mrf.mxu1  ;;  %6604 = vmatmul.mubr.bf16.vlgmr.msra.gmra.mxu0 %v6282_v32  ;;  %v11694_v47 = vld [vmem:[#allocation19 + $0x90] sm:$0xff]  }
 0x9d4   : > { %v6246_v8 = vshrl.u32 %v6234_v62, 16  ;;  %6613 = vmatprep.mubr.bf16.mxu0 %v6096_v29  ;;  %6697 = vmatmul.mubr.bf16.gmra.mxu1 %v6234_v62  ;;  %v6249_v12 = vshll.u32 %v6234_v62, 16  ;;  %v11697_v29 = vld [vmem:[#allocation19 + $0x88] sm:$0xff]   ;;  %v11698_v62 = vld [vmem:[#allocation19 + $0x80] sm:$0xff]  }
 0x9d5   : > { %v6210_v0 = vpop.f32.mrf.mxu1  ;;  %6706 = vmatprep.mubr.bf16.mxu1 %v15200_v3  ;;  %10409 = vmatpush3.bf16.msra.mxu0 %v11676_v37  ;;  %v11696_v37 = vld [vmem:[#allocation19] sm:$0xff]  }
 0x9d6   : > { %v6248_v23 = vrot.slane %v6246_v8, 7  ;;  %10410 = vmatprep.subr.bf16.mxu0 %v11677_v13  ;;  %10769 = vmatpush3.bf16.msra.mxu1 %v11685_v16 }
 0x9d7   : > { %v6212_v2 = vpop.f32.mrf.mxu1  ;;  %10770 = vmatprep.subr.bf16.mxu1 %v15201_v20 }
 0x9d8   : > { %v6251_v46 = vor.u32 %v6249_v12, %v6248_v23 }
 0x9d9   : > { %v6213_v43 = vpop.f32.mrf.mxu1  ;;  %10411 = vmatpush3.bf16.msra.mxu0 %v11678_v22 }
 0x9da   : > { %v6235_v17 = vpack.c.bf16 %v6213_v43, %v6210_v0  ;;  %v6252_v7 = vsel %vm2922_vm1, %v6241_v19, %v6251_v46  ;;  %10412 = vmatprep.subr.bf16.mxu0 %v11680_v11  ;;  %10771 = vmatpush3.bf16.msra.mxu1 %v11688_v10  ;;  %v11691_v19 = vld [vmem:[#allocation19 + $0x98] sm:$0xff]  }
 0x9db   : > { %v6215_v18 = vpop.f32.mrf.mxu1  ;;  %6614 = vmatmul.mubr.bf16.gmra.mxu0 %v6252_v7  ;;  %10772 = vmatprep.subr.bf16.mxu1 %v15201_v20 }
 0x9dc   : > { %v6254_v38 = vshrl.u32 %v6235_v17, 16  ;;  %6623 = vmatprep.mubr.bf16.mxu0 %v6097_v21  ;;  %6707 = vmatmul.mubr.bf16.gmra.mxu1 %v6235_v17  ;;  %v6257_v40 = vshll.u32 %v6235_v17, 16  ;;  %v6760_v17 = vpop.permute.xlu0 %6759 }
 0x9dd   : > { %v6218_v48 = vpop.f32.mrf.mxu1  ;;  %6716 = vmatprep.mubr.bf16.mxu1 %v15200_v3  ;;  %10413 = vmatpush3.bf16.msra.mxu0 %v11681_v15 }
 0x9de   : > { %v6256_v53 = vrot.slane %v6254_v38, 7  ;;  %10414 = vmatprep.subr.bf16.mxu0 %v11683_v50  ;;  %10773 = vmatpush3.bf16.msra.mxu1 %v11691_v19 }
 0x9df   : > { %v6220_v59 = vpop.f32.mrf.mxu1  ;;  %10774 = vmatprep.subr.bf16.mxu1 %v15201_v20 }
 0x9e0   : > { %v6259_v58 = vor.u32 %v6257_v40, %v6256_v53 }
 0x9e1   : > { %v6221_v25 = vpop.f32.mrf.mxu1  ;;  %10415 = vmatpush3.bf16.msra.mxu0 %v11684_v52 }
 0x9e2   : > { %v6236_v61 = vpack.c.bf16 %v6221_v25, %v6218_v48  ;;  %v6260_v56 = vsel %vm2922_vm1, %v6248_v23, %v6259_v58  ;;  %10416 = vmatprep.subr.bf16.mxu0 %v11686_v55  ;;  %10775 = vmatpush3.bf16.msra.mxu1 %v11694_v47  ;;  %v6765_v48 = vpop.permute.xlu1 %6764 }
 0x9e3   : > { %v6223_v57 = vpop.f32.mrf.mxu1  ;;  %6624 = vmatmul.mubr.bf16.gmra.mxu0 %v6260_v56  ;;  %10776 = vmatprep.subr.bf16.mxu1 %v15201_v20 }
 0x9e4   : > { %v6262_v49 = vshrl.u32 %v6236_v61, 16  ;;  %6633 = vmatprep.mubr.bf16.mxu0 %v6098_v42  ;;  %6717 = vmatmul.mubr.bf16.gmra.mxu1 %v6236_v61  ;;  %v6265_v24 = vshll.u32 %v6236_v61, 16 }
 0x9e5   : > { %v6226_v1 = vpop.f32.mrf.mxu1  ;;  %6726 = vmatprep.mubr.bf16.mxu1 %v15200_v3  ;;  %10417 = vmatpush3.bf16.msra.mxu0 %v11687_v35 }
 0x9e6   : > { %v6264_v9 = vrot.slane %v6262_v49, 7  ;;  %10418 = vmatprep.subr.bf16.mxu0 %v11689_v33  ;;  %10777 = vmatpush3.bf16.msra.mxu1 %v11697_v29 }
 0x9e7   : > { %v6228_v54 = vpop.f32.mrf.mxu1  ;;  %10778 = vmatprep.subr.bf16.mxu1 %v15201_v20 }
 0x9e8   : > { %v6267_v34 = vor.u32 %v6265_v24, %v6264_v9 }
 0x9e9   : > { %v6229_v39 = vpop.f32.mrf.mxu1  ;;  %10419 = vmatpush3.bf16.msra.mxu0 %v11690_v31 }
 0x9ea   : > { %v6237_v63 = vpack.c.bf16 %v6229_v39, %v6226_v1  ;;  %v6268_v26 = vsel %vm2922_vm1, %v6256_v53, %v6267_v34  ;;  %10420 = vmatprep.subr.bf16.mxu0 %v11692_v36  ;;  %10779 = vmatpush3.bf16.msra.mxu1 %v11698_v62 }
 0x9eb   : > { %6634 = vmatmul.mubr.bf16.gmra.mxu0 %v6268_v26  ;;  %v6231_v44 = vpop.f32.mrf.mxu1  ;;  %10800 = vmatprep.subr.bf16.mxu1 %v15201_v20 }
 0x9ec   : > { %v6270_v60 = vshrl.u32 %v6237_v63, 16  ;;  %6643 = vmatprep.mubr.bf16.mxu0 %v6099_v14  ;;  %6727 = vmatmul.mubr.bf16.gmra.mxu1 %v6237_v63  ;;  %v6273_v30 = vshll.u32 %v6237_v63, 16  ;;  %v6770_v14 = vpop.permute.xlu0 %6769 }
 0x9ed   : > { %10780 = vmatprep.mubr.msk.bf16.mxu1 %vm12578_vm3, %v15201_v20  ;;  %10421 = vmatpush3.bf16.msra.mxu0 %v11693_v5 }
 0x9ee   : > { %v6272_v45 = vrot.slane %v6270_v60, 7  ;;  %10422 = vmatprep.subr.bf16.mxu0 %v11695_v41 }
 0x9f0   : > { %v6275_v4 = vor.u32 %v6273_v30, %v6272_v45  ;;  %v6775_v45 = vpop.permute.xlu1 %6774 }
 0x9f1   : > { %10423 = vmatpush3.bf16.msra.mxu0 %v11696_v37 }
 0x9f2   : > { %v6276_v51 = vsel %vm2922_vm1, %v6264_v9, %v6275_v4 }
 0x9f3   : > { %6644 = vmatmul.mubr.bf16.gmra.mxu0 %v6276_v51 }
 0xa8c   : > { %v6688_v32 = vpop.f32.mrf.mxu1 }
 0xa8e   : > { %v14683_v13 = vpop.f32.mrf.mxu1 }
 0xa90   : > { %v6692_v27 = vpop.f32.mrf.mxu1 }
 0xa92   : > { %v6694_v8 = vpop.f32.mrf.mxu1 }
 0xa93   : > { %v6605_v0 = vpop.f32.mrf.mxu0 }
 0xa94   : > { %v6689_v22 = vadd.f32 %v6688_v32, %v6605_v0  ;;  %v6698_v23 = vpop.f32.mrf.mxu1 }
 0xa95   : > { %v14685_v12 = vpop.f32.mrf.mxu0 }
 0xa96   : > { %v6700_v11 = vpop.f32.mrf.mxu1  ;;  %v6737_v46 = vmax.f32 %v6689_v22, 0.0 }
 0xa97   : > { %v6609_v2 = vpop.f32.mrf.mxu0 }
 0xa98   : > { %v6693_v43 = vadd.f32 %v6692_v27, %v6609_v2  ;;  %v6702_v15 = vpop.f32.mrf.mxu1  ;;  %v6807_v40 = vmul.f32 %v6760_v17, %v6737_v46  ;;  %v6780_v27 = vpop.permute.xlu0 %6779 }
 0xa99   : > { %v6611_v21 = vpop.f32.mrf.mxu0 }
 0xa9a   : > { %v6738_v7 = vmax.f32 %v6693_v43, 0.0  ;;  %v14687_v18 = vadd.f32 %v6694_v8, %v6611_v21  ;;  %v6704_v38 = vpop.f32.mrf.mxu1  ;;  %v6785_v8 = vpop.permute.xlu1 %6784 }
 0xa9b   : > { %v6615_v53 = vpop.f32.mrf.mxu0 }
 0xa9c   : > { %v6808_v59 = vmul.f32 %v6765_v48, %v6738_v7  ;;  %v6699_v58 = vadd.f32 %v6698_v23, %v6615_v53  ;;  %v6708_v25 = vpop.f32.mrf.mxu1 }
 0xa9d   : > { %v6617_v42 = vpop.f32.mrf.mxu0 }
 0xa9e   : > { %v14689_v61 = vadd.f32 %v6700_v11, %v6617_v42  ;;  %v6817_v56 = vpack.c.bf16 %v6808_v59, %v6807_v40  ;;  %v6710_v57 = vpop.f32.mrf.mxu1  ;;  %v6739_v1 = vmax.f32 %v6699_v58, 0.0 }
 0xa9f   : > { %v6619_v49 = vpop.f32.mrf.mxu0 }
 0xaa0   : > { %v6703_v9 = vadd.f32 %v6702_v15, %v6619_v49  ;;  %v6823_v24 = vshrl.u32 %v6817_v56, 16  ;;  %7111 = vmatprep.mubr.bf16.mxu0 %v6817_v56  ;;  %v6712_v54 = vpop.f32.mrf.mxu1  ;;  %v6826_v34 = vshll.u32 %v6817_v56, 16  ;;  %v6809_v4 = vmul.f32 %v6770_v14, %v6739_v1 }
 0xaa1   : > { %v6621_v39 = vpop.f32.mrf.mxu0 }
 0xaa2   : > { %v6740_v63 = vmax.f32 %v6703_v9, 0.0  ;;  %v6825_v26 = vrot.slane %v6823_v24, 7  ;;  %v14691_v44 = vadd.f32 %v6704_v38, %v6621_v39  ;;  %v6714_v60 = vpop.f32.mrf.mxu1  ;;  %v6867_v55 = vrot.slane %v6826_v34, 1  ;;  %v6790_v9 = vpop.permute.xlu0 %6789 }
 0xaa3   : > { %v6625_v30 = vpop.f32.mrf.mxu0 }
 0xaa4   : > { %v6810_v51 = vmul.f32 %v6775_v45, %v6740_v63  ;;  %v6709_v50 = vadd.f32 %v6708_v25, %v6625_v30  ;;  %v6828_v52 = vor.u32 %v6826_v34, %v6825_v26  ;;  %v6718_v16 = vpop.f32.mrf.mxu1  ;;  %v6868_v62 = vor.u32 %v6867_v55, %v6823_v24  ;;  %v6795_v24 = vpop.permute.xlu1 %6794 }
 0xaa5   : > { %v6627_v35 = vpop.f32.mrf.mxu0 }
 0xaa6   : > { %v14693_v10 = vadd.f32 %v6710_v57, %v6627_v35  ;;  %v6866_v33 = vsel %vm13788_vm5, 0, %v6828_v52  ;;  %v6818_v31 = vpack.c.bf16 %v6810_v51, %v6809_v4  ;;  %v6720_v19 = vpop.f32.mrf.mxu1  ;;  %v6741_v36 = vmax.f32 %v6709_v50, 0.0 }
 0xaa7   : > { %v6629_v5 = vpop.f32.mrf.mxu0  ;;  %7112 = vmatmul.mubr.bf16.vlgmr.msra.gmra.mxu0 %v6866_v33 }
 0xaa8   : > { %v6713_v47 = vadd.f32 %v6712_v54, %v6629_v5  ;;  %v6830_v41 = vshrl.u32 %v6818_v31, 16  ;;  %v6833_v37 = vshll.u32 %v6818_v31, 16  ;;  %7119 = vmatprep.mubr.bf16.mxu0 %v6818_v31  ;;  %v6722_v29 = vpop.f32.mrf.mxu1  ;;  %v6811_v2 = vmul.f32 %v6780_v27, %v6741_v36 }
 0xaa9   : > { %v6631_v32 = vpop.f32.mrf.mxu0 }
 0xaaa   : > { %v6742_v0 = vmax.f32 %v6713_v47, 0.0  ;;  %v6869_v22 = vrot.slane %v6833_v37, 1  ;;  %v14697_v23 = vadd.f32 %v6714_v60, %v6631_v32  ;;  %v6832_v11 = vrot.slane %v6830_v41, 7  ;;  %v6724_v43 = vpop.f32.mrf.mxu1  ;;  %v6805_v32 = vpop.permute.xlu1 %6804 }
 0xaab   : > { %v6635_v46 = vpop.f32.mrf.mxu0 }
 0xaac   : > { %v6812_v15 = vmul.f32 %v6785_v8, %v6742_v0  ;;  %v6719_v21 = vadd.f32 %v6718_v16, %v6635_v46  ;;  %v6870_v17 = vsel %vm3199_vm0, %v6868_v62, %v6869_v22  ;;  %v6835_v7 = vor.u32 %v6833_v37, %v6832_v11  ;;  %v6728_v25 = vpop.f32.mrf.mxu1  ;;  %v6800_v62 = vpop.permute.xlu0 %6799 }
 0xaad   : > { %v6637_v38 = vpop.f32.mrf.mxu0  ;;  %10781 = vmatmul.mubr.bf16.vlgmr.msra.gmra.mxu1 %v6870_v17  ;;  %v6871_v1 = vor.u32 %v6869_v22, %v6830_v41 }
 0xaae   : > { %v14700_v48 = vadd.f32 %v6720_v19, %v6637_v38  ;;  %v6836_v53 = vsel %vm2922_vm1, %v6825_v26, %v6835_v7  ;;  %v6819_v40 = vpack.c.bf16 %v6812_v15, %v6811_v2  ;;  %10784 = vmatprep.mubr.msk.bf16.mxu1 %vm12578_vm3, %v15201_v20  ;;  %v6743_v59 = vmax.f32 %v6719_v21, 0.0  ;;  %v6730_v60 = vpop.f32.mrf.mxu1 }
 0xaaf   : > { %v6639_v58 = vpop.f32.mrf.mxu0  ;;  %7120 = vmatmul.mubr.bf16.gmra.mxu0 %v6836_v53 }
 0xab0   : > { %v6723_v42 = vadd.f32 %v6722_v29, %v6639_v58  ;;  %v6838_v56 = vshrl.u32 %v6819_v40, 16  ;;  %v6841_v57 = vshll.u32 %v6819_v40, 16  ;;  %7127 = vmatprep.mubr.bf16.mxu0 %v6819_v40  ;;  %v6813_v63 = vmul.f32 %v6790_v9, %v6743_v59  ;;  %v6732_v33 = vpop.f32.mrf.mxu1  ;;  %v11705_v58 = vld [vmem:[#allocation24 + $0x70] ss:$8 sps:$4 sm:$0xff]   ;;  %v11714_v9 = vld [vmem:[#allocation24 + $0x40] ss:$8 sps:$4 sm:$0xff]  }
 0xab1   : > { %v6641_v49 = vpop.f32.mrf.mxu0 }
 0xab2   : > { %v6744_v54 = vmax.f32 %v6723_v42, 0.0  ;;  %v14705_v34 = vadd.f32 %v6724_v43, %v6641_v49  ;;  %v6872_v39 = vrot.slane %v6841_v57, 1  ;;  %v6840_v14 = vrot.slane %v6838_v56, 7  ;;  %v11710_v42 = vld [vmem:[#allocation24 + $0x64] ss:$8 sps:$4 sm:$0xff]  }
 0xab3   : > { %v6645_v26 = vpop.f32.mrf.mxu0  ;;  %v11711_v49 = vld [vmem:[#allocation24 + $0x50] ss:$8 sps:$4 sm:$0xff]  }
 0xab4   : > { %v6814_v45 = vmul.f32 %v6795_v24, %v6744_v54  ;;  %v6729_v30 = vadd.f32 %v6728_v25, %v6645_v26  ;;  %v6873_v4 = vsel %vm3199_vm0, %v6871_v1, %v6872_v39  ;;  %v6843_v51 = vor.u32 %v6841_v57, %v6840_v14  ;;  %v11707_v25 = vld [vmem:[#allocation24 + $0x74] ss:$8 sps:$4 sm:$0xff]   ;;  %v11716_v1 = vld [vmem:[#allocation24 + $0x44] ss:$8 sps:$4 sm:$0xff]   ;;  %v11717_v54 = vld [vmem:[#allocation24 + $0x30] ss:$8 sps:$4 sm:$0xff]  }
 0xab5   : > { %v6647_v50 = vpop.f32.mrf.mxu0  ;;  %10785 = vmatmul.mubr.bf16.gmra.mxu1 %v6873_v4  ;;  %v6874_v41 = vor.u32 %v6872_v39, %v6838_v56  ;;  %7736 = vmatprep.subr.bf16.mxu0 %v11707_v25  ;;  %v11708_v56 = vld [vmem:[#allocation24 + $0x60] ss:$8 sps:$4 sm:$0xff]   ;;  %v11713_v57 = vld [vmem:[#allocation24 + $0x54] ss:$8 sps:$4 sm:$0xff]   ;;  %v11722_v39 = vld [vmem:[#allocation24 + $0x24] ss:$8 sps:$4 sm:$0xff]  }
 0xab6   : > { %v14708_v52 = vadd.f32 %v6730_v60, %v6647_v50  ;;  %v6844_v16 = vsel %vm2922_vm1, %v6832_v11, %v6843_v51  ;;  %v6820_v55 = vpack.c.bf16 %v6814_v45, %v6813_v63  ;;  %10788 = vmatprep.mubr.msk.bf16.mxu1 %vm12578_vm3, %v15201_v20  ;;  %v6745_v31 = vmax.f32 %v6729_v30, 0.0  ;;  %7737 = vmatpush1.bf16.msra.mxu0 %v11705_v58  ;;  %v11719_v24 = vld [vmem:[#allocation24 + $0x34] ss:$8 sps:$4 sm:$0xff]   ;;  %v11720_v63 = vld [vmem:[#allocation24 + $0x20] ss:$8 sps:$4 sm:$0xff]   ;;  %v14729_v50 = vpop.f32.mrf.mxu1 }
 0xab7   : > { %v6649_v35 = vpop.f32.mrf.mxu0  ;;  %7128 = vmatmul.mubr.bf16.gmra.mxu0 %v6844_v16  ;;  %7738 = vmatprep.subr.bf16.mxu0 %v11710_v42  ;;  %v11725_v60 = vld [vmem:[#allocation24 + $0x14] ss:$8 sps:$4 sm:$0xff]   ;;  %v6691_v30 = vadd.f32 %v14683_v13, %v14685_v12  ;;  %v11723_v51 = vld [vmem:[#allocation24 + $0x10] ss:$8 sps:$4 sm:$0xff]  }
 0xab8   : > { %v6733_v19 = vadd.f32 %v6732_v33, %v6649_v35  ;;  %v6846_v36 = vshrl.u32 %v6820_v55, 16  ;;  %v6849_v5 = vshll.u32 %v6820_v55, 16  ;;  %7135 = vmatprep.mubr.bf16.mxu0 %v6820_v55  ;;  %v6815_v27 = vmul.f32 %v6800_v62, %v6745_v31 }
 0xaba   : > { %v6746_v47 = vmax.f32 %v6733_v19, 0.0  ;;  %v6875_v37 = vrot.slane %v6849_v5, 1  ;;  %v6848_v29 = vrot.slane %v6846_v36, 7  ;;  %7739 = vmatpush1.bf16.msra.mxu0 %v11708_v56 }
 0xabb   : > { %7740 = vmatprep.subr.bf16.mxu0 %v11713_v57 }
 0xabc   : > { %v6816_v8 = vmul.f32 %v6805_v32, %v6746_v47  ;;  %v6876_v0 = vsel %vm3199_vm0, %v6874_v41, %v6875_v37  ;;  %v6851_v22 = vor.u32 %v6849_v5, %v6848_v29  ;;  %v6877_v15 = vor.u32 %v6875_v37, %v6846_v36 }
 0xabd   : > { %10789 = vmatmul.mubr.bf16.gmra.mxu1 %v6876_v0 }
 0xabe   : > { %v6852_v11 = vsel %vm2922_vm1, %v6840_v14, %v6851_v22  ;;  %v6821_v2 = vpack.c.bf16 %v6816_v8, %v6815_v27  ;;  %10792 = vmatprep.mubr.msk.bf16.mxu1 %vm12578_vm3, %v15201_v20  ;;  %7741 = vmatpush1.bf16.msra.mxu0 %v11711_v49  ;;  %v14725_v14 = vpop.f32.mrf.mxu0 }
 0xabf   : > { %7136 = vmatmul.mubr.bf16.gmra.mxu0 %v6852_v11  ;;  %7742 = vmatprep.subr.bf16.mxu0 %v11716_v1 }
 0xac0   : > { %v6854_v46 = vshrl.u32 %v6821_v2, 16  ;;  %v6857_v43 = vshll.u32 %v6821_v2, 16  ;;  %7143 = vmatprep.mubr.bf16.mxu0 %v6821_v2 }
 0xac2   : > { %v6878_v21 = vrot.slane %v6857_v43, 1  ;;  %v6856_v17 = vrot.slane %v6854_v46, 7  ;;  %7743 = vmatpush1.bf16.msra.mxu0 %v11714_v9 }
 0xac3   : > { %7744 = vmatprep.subr.bf16.mxu0 %v11719_v24 }
 0xac4   : > { %v6879_v7 = vsel %vm3199_vm0, %v6877_v15, %v6878_v21  ;;  %v6859_v38 = vor.u32 %v6857_v43, %v6856_v17  ;;  %v6880_v40 = vor.u32 %v6878_v21, %v6854_v46 }
 0xac5   : > { %10793 = vmatmul.mubr.bf16.gmra.mxu1 %v6879_v7 }
 0xac6   : > { %v6860_v53 = vsel %vm2922_vm1, %v6848_v29, %v6859_v38  ;;  %10796 = vmatprep.mubr.msk.bf16.mxu1 %vm12578_vm3, %v15201_v20  ;;  %v6886_v59 = vsel %vm13929_vm12, %v6880_v40, 0  ;;  %7745 = vmatpush1.bf16.msra.mxu0 %v11717_v54 }
 0xac7   : > { %7144 = vmatmul.mubr.bf16.gmra.mxu0 %v6860_v53  ;;  %7746 = vmatprep.subr.bf16.mxu0 %v11722_v39 }
 0xaca   : > { %7747 = vmatpush1.bf16.msra.mxu0 %v11720_v63 }
 0xacb   : > { %7748 = vmatprep.subr.bf16.mxu0 %v11725_v60 }
 0xacd   : > { %10797 = vmatmul.mubr.bf16.gmra.mxu1 %v6886_v59 }
 0xace   : > { %10810 = vmatprep.mubr.msk.bf16.mxu1 %vm12578_vm3, %v15201_v20  ;;  %7749 = vmatpush1.bf16.msra.mxu0 %v11723_v51 }
 0xb67   : > { %v10424_v26 = vpop.f32.mrf.mxu0 }
 0xb69   : > { %v10425_v45 = vpop.f32.mrf.mxu0 }
 0xb6a   : > { %v10426_v4 = vadd.f32 %v10425_v45, %v10424_v26 }
 0xb6b   : > { %v10427_v16 = vpop.f32.mrf.mxu0 }
 0xb6c   : > { %v7114_v55 = vadd.f32 %v10426_v4, %v6691_v30 }
 0xb6d   : > { %v10428_v35 = vpop.f32.mrf.mxu0  ;;  %v7186_v33 = vpop.f32.mrf.mxu1 }
 0xb6e   : > { %v10429_v31 = vadd.f32 %v10428_v35, %v10427_v16  ;;  %v7187_v5 = vadd.f32 %v7186_v33, %v7114_v55 }
 0xb6f   : > { %v10430_v19 = vpop.f32.mrf.mxu0  ;;  %v10782_v36 = vpop.f32.mrf.mxu1 }
 0xb70   : > { %v7117_v47 = vadd.f32 %v10429_v31, %v14687_v18  ;;  %v7225_v32 = vmax.f32 %v7187_v5, 0.0 }
 0xb71   : > { %v10431_v41 = vpop.f32.mrf.mxu0  ;;  %v7189_v37 = vpop.f32.mrf.mxu1 }
 0xb72   : > { %v10432_v13 = vadd.f32 %v10431_v41, %v10430_v19  ;;  %v7190_v12 = vadd.f32 %v7189_v37, %v7117_v47 }
 0xb73   : > { %v10433_v29 = vpop.f32.mrf.mxu0  ;;  %v10783_v62 = vpop.f32.mrf.mxu1 }
 0xb74   : > { %v7226_v27 = vmax.f32 %v7190_v12, 0.0  ;;  %v7122_v8 = vadd.f32 %v10432_v13, %v14689_v61 }
 0xb75   : > { %v10434_v0 = vpop.f32.mrf.mxu0  ;;  %v7194_v22 = vpop.f32.mrf.mxu1 }
 0xb76   : > { %v14733_v11 = vpack.c.bf16 %v7226_v27, %v7225_v32  ;;  %v10435_v2 = vadd.f32 %v10434_v0, %v10433_v29  ;;  %v7195_v15 = vadd.f32 %v7194_v22, %v7122_v8  ;;  %v6735_v32 = vadd.f32 %v14729_v50, %v14725_v14  ;;  %v11700_v14 = vld [vmem:[#allocation21 + $0x8] sm:$0xff]   ;;  %v11701_v50 = vld [vmem:[#allocation21 + $0x10] sm:$0xff]  }
 0xb77   : > { %v10436_v46 = vpop.f32.mrf.mxu0  ;;  %v10786_v43 = vpop.f32.mrf.mxu1 }
 0xb78   : > { %v7125_v18 = vadd.f32 %v10435_v2, %v14691_v44  ;;  %v7227_v59 = vmax.f32 %v7195_v15, 0.0 }
 0xb79   : > { %v10437_v21 = vpop.f32.mrf.mxu0  ;;  %v7197_v17 = vpop.f32.mrf.mxu1 }
 0xb7a   : > { %v10438_v7 = vadd.f32 %v10437_v21, %v10436_v46  ;;  %v7198_v38 = vadd.f32 %v7197_v17, %v7125_v18  ;;  %v11702_v17 = vld [vmem:[#allocation22] sm:$0xff]  }
 0xb7b   : > { %v10439_v53 = vpop.f32.mrf.mxu0  ;;  %v10787_v40 = vpop.f32.mrf.mxu1 }
 0xb7c   : > { %v7228_v58 = vmax.f32 %v7198_v38, 0.0  ;;  %v7130_v61 = vadd.f32 %v10438_v7, %v14693_v10  ;;  %v11703_v7 = vld [vmem:[#allocation22 + $0x8] sm:$0xff]   ;;  %v11704_v38 = vld [vmem:[#allocation22 + $0x10] sm:$0xff]   ;;  %v11728_v40 = vld [vmem:[#allocation24 + $0x4] ss:$8 sps:$4 sm:$0xff]  }
 0xb7d   : > { %v10440_v25 = vpop.f32.mrf.mxu0  ;;  %v7202_v42 = vpop.f32.mrf.mxu1  ;;  %7750 = vmatprep.subr.bf16.mxu0 %v11728_v40 }
 0xb7e   : > { %v14737_v56 = vpack.c.bf16 %v7228_v58, %v7227_v59  ;;  %v10441_v57 = vadd.f32 %v10440_v25, %v10439_v53  ;;  %v7203_v9 = vadd.f32 %v7202_v42, %v7130_v61  ;;  %v11732_v53 = vld [vmem:[#allocation24 + $0x170] ss:$8 sps:$4 sm:$0xff]   ;;  %v11726_v59 = vld [vmem:[#allocation24] ss:$8 sps:$4 sm:$0xff]   ;;  %v11740_v58 = vld [vmem:[#allocation24 + $0x164] ss:$8 sps:$4 sm:$0xff]  }
 0xb7f   : > { %v10442_v49 = vpop.f32.mrf.mxu0  ;;  %v10790_v1 = vpop.f32.mrf.mxu1  ;;  %v11738_v61 = vld [vmem:[#allocation24 + $0x160] ss:$8 sps:$4 sm:$0xff]   ;;  %7751 = vmatpush1.bf16.msra.mxu0 %v11726_v59  ;;  %v11731_v25 = vld [vmem:[#allocation24 + $0xf4] ss:$8 sps:$4 sm:$0xff]   ;;  %v11729_v42 = vld [vmem:[#allocation24 + $0xf0] ss:$8 sps:$4 sm:$0xff]  }
 0xb80   : > { %v7133_v44 = vadd.f32 %v10441_v57, %v14697_v23  ;;  %v7229_v45 = vmax.f32 %v7203_v9, 0.0  ;;  %7752 = vmatprep.subr.bf16.mxu0 %v11731_v25  ;;  %v11744_v57 = vld [vmem:[#allocation24 + $0x150] ss:$8 sps:$4 sm:$0xff]   ;;  %v11735_v1 = vld [vmem:[#allocation24 + $0xe0] ss:$8 sps:$4 sm:$0xff]  }
 0xb81   : > { %v10443_v24 = vpop.f32.mrf.mxu0  ;;  %v7205_v54 = vpop.f32.mrf.mxu1  ;;  %v11752_v9 = vld [vmem:[#allocation24 + $0x144] ss:$8 sps:$4 sm:$0xff]  }
 0xb82   : > { %v10444_v39 = vadd.f32 %v10443_v24, %v10442_v49  ;;  %v7206_v63 = vadd.f32 %v7205_v54, %v7133_v44  ;;  %v11737_v49 = vld [vmem:[#allocation24 + $0xe4] ss:$8 sps:$4 sm:$0xff]   ;;  %v11750_v44 = vld [vmem:[#allocation24 + $0x140] ss:$8 sps:$4 sm:$0xff]   ;;  %v11743_v24 = vld [vmem:[#allocation24 + $0xd4] ss:$8 sps:$4 sm:$0xff]  }
 0xb83   : > { %v10445_v26 = vpop.f32.mrf.mxu0  ;;  %v10791_v60 = vpop.f32.mrf.mxu1  ;;  %7753 = vmatpush2.bf16.msra.mxu0 %v11729_v42  ;;  %v11741_v54 = vld [vmem:[#allocation24 + $0xd0] ss:$8 sps:$4 sm:$0xff]  }
 0xb84   : > { %v7230_v30 = vmax.f32 %v7206_v63, 0.0  ;;  %v7138_v10 = vadd.f32 %v10444_v39, %v14700_v48  ;;  %7754 = vmatprep.subr.bf16.mxu0 %v11737_v49  ;;  %v11758_v39 = vld [vmem:[#allocation24 + $0x134] ss:$8 sps:$4 sm:$0xff]   ;;  %v11756_v63 = vld [vmem:[#allocation24 + $0x130] ss:$8 sps:$4 sm:$0xff]  }
 0xb85   : > { %v10446_v4 = vpop.f32.mrf.mxu0  ;;  %v7210_v51 = vpop.f32.mrf.mxu1  ;;  %v11747_v60 = vld [vmem:[#allocation24 + $0xc0] ss:$8 sps:$4 sm:$0xff]  }
 0xb86   : > { %v7237_v16 = vpack.c.bf16 %v7230_v30, %v7229_v45  ;;  %v10447_v55 = vadd.f32 %v10446_v4, %v10445_v26  ;;  %v7211_v31 = vadd.f32 %v7210_v51, %v7138_v10  ;;  %v11749_v26 = vld [vmem:[#allocation24 + $0xc4] ss:$8 sps:$4 sm:$0xff]   ;;  %v11762_v30 = vld [vmem:[#allocation24 + $0x120] ss:$8 sps:$4 sm:$0xff]   ;;  %v11755_v10 = vld [vmem:[#allocation24 + $0xb4] ss:$8 sps:$4 sm:$0xff]  }
 0xb87   : > { %v10448_v35 = vpop.f32.mrf.mxu0  ;;  %v10794_v33 = vpop.f32.mrf.mxu1  ;;  %7755 = vmatpush2.bf16.msra.mxu0 %v11735_v1  ;;  %v11764_v45 = vld [vmem:[#allocation24 + $0x124] ss:$8 sps:$4 sm:$0xff]   ;;  %v11753_v4 = vld [vmem:[#allocation24 + $0xb0] ss:$8 sps:$4 sm:$0xff]   ;;  %v11770_v51 = vld [vmem:[#allocation24 + $0x114] ss:$8 sps:$4 sm:$0xff]  }
 0xb88   : > { %v7141_v19 = vadd.f32 %v10447_v55, %v14705_v34  ;;  %v7231_v13 = vmax.f32 %v7211_v31, 0.0  ;;  %7756 = vmatprep.subr.bf16.mxu0 %v11743_v24  ;;  %v11761_v55 = vld [vmem:[#allocation24 + $0xa4] ss:$8 sps:$4 sm:$0xff]   ;;  %v11774_v31 = vld [vmem:[#allocation24 + $0x100] ss:$8 sps:$4 sm:$0xff]  }
 0xb89   : > { %v10449_v23 = vpop.f32.mrf.mxu0  ;;  %v7213_v36 = vpop.f32.mrf.mxu1  ;;  %v11776_v33 = vld [vmem:[#allocation24 + $0x104] ss:$8 sps:$4 sm:$0xff]  }
 0xb8a   : > { %v10450_v5 = vadd.f32 %v10449_v23, %v10448_v35  ;;  %v7214_v47 = vadd.f32 %v7213_v36, %v7141_v19  ;;  %v11759_v35 = vld [vmem:[#allocation24 + $0xa0] ss:$8 sps:$4 sm:$0xff]   ;;  %v11767_v19 = vld [vmem:[#allocation24 + $0x94] ss:$8 sps:$4 sm:$0xff]   ;;  %v11765_v23 = vld [vmem:[#allocation24 + $0x90] ss:$8 sps:$4 sm:$0xff]  }
 0xb8b   : > { %v10451_v41 = vpop.f32.mrf.mxu0  ;;  %v10795_v37 = vpop.f32.mrf.mxu1  ;;  %7757 = vmatpush2.bf16.msra.mxu0 %v11741_v54  ;;  %v11773_v36 = vld [vmem:[#allocation24 + $0x84] ss:$8 sps:$4 sm:$0xff]  }
 0xb8c   : > { %v7232_v12 = vmax.f32 %v7214_v47, 0.0  ;;  %v7146_v29 = vadd.f32 %v10450_v5, %v14708_v52  ;;  %v11699_v52 = vld [vmem:[#allocation21] sm:$0xff]   ;;  %7758 = vmatprep.subr.bf16.mxu0 %v11749_v26  ;;  %v11771_v5 = vld [vmem:[#allocation24 + $0x80] ss:$8 sps:$4 sm:$0xff]  }
 0xb8d   : > { %v10452_v48 = vpop.f32.mrf.mxu0  ;;  %v7218_v62 = vpop.f32.mrf.mxu1  ;;  %v11777_v47 = vld [vmem:[#allocation27 + $0x78] sm:$0xff]  }
 0xb8e   : > { %v7238_v27 = vpack.c.bf16 %v7232_v12, %v7231_v13  ;;  %v10453_v8 = vadd.f32 %v10452_v48, %v10451_v41  ;;  %v7219_v22 = vadd.f32 %v7218_v62, %v7146_v29 }
 0xb8f   : > { %v10798_v0 = vpop.f32.mrf.mxu1  ;;  %7759 = vmatpush2.bf16.msra.mxu0 %v11747_v60 }
 0xb90   : > { %v7149_v34 = vadd.f32 %v10453_v8, %v6735_v32  ;;  %v7233_v15 = vmax.f32 %v7219_v22, 0.0  ;;  %7760 = vmatprep.subr.bf16.mxu0 %v11755_v10 }
 0xb91   : > { %v7221_v2 = vpop.f32.mrf.mxu1 }
 0xb92   : > { %v7222_v46 = vadd.f32 %v7221_v2, %v7149_v34 }
 0xb93   : > { %v10799_v43 = vpop.f32.mrf.mxu1  ;;  %7761 = vmatpush2.bf16.msra.mxu0 %v11753_v4 }
 0xb94   : > { %v7234_v18 = vmax.f32 %v7222_v46, 0.0  ;;  %7762 = vmatprep.subr.bf16.mxu0 %v11761_v55 }
 0xb96   : > { %v7239_v21 = vpack.c.bf16 %v7234_v18, %v7233_v15  ;;  %v11778_v15 = vld [vmem:[#allocation27 + $0x38] sm:$0xff]  }
 0xb97   : > { %7763 = vmatpush2.bf16.msra.mxu0 %v11759_v35  ;;  %v11785_v35 = vld [vmem:[#allocation27 + $0x60] sm:$0xff]  }
 0xb98   : > { %10801 = vmatpush3.bf16.msra.mxu1 %v7239_v21  ;;  %7764 = vmatprep.subr.bf16.mxu0 %v11767_v19  ;;  %v11788_v19 = vld [vmem:[#allocation27 + $0x58] sm:$0xff]  }
 0xb99   : > { %10802 = vmatprep.subr.bf16.mxu1 %v15201_v20 }
 0xb9b   : > { %7765 = vmatpush2.bf16.msra.mxu0 %v11765_v23  ;;  %v11789_v23 = vld [vmem:[#allocation27 + $0x18] sm:$0xff]  }
 0xb9c   : > { %10803 = vmatpush3.bf16.msra.mxu1 %v7238_v27  ;;  %7766 = vmatprep.subr.bf16.mxu0 %v11773_v36  ;;  %v11790_v36 = vld [vmem:[#allocation27 + $0xa0] sm:$0xff]  }
 0xb9d   : > { %10804 = vmatprep.subr.bf16.mxu1 %v15201_v20 }
 0xb9f   : > { %7767 = vmatpush2.bf16.msra.mxu0 %v11771_v5  ;;  %v11791_v5 = vld [vmem:[#allocation27 + $0x50] sm:$0xff]  }
 0xba0   : > { %10805 = vmatpush3.bf16.msra.mxu1 %v7237_v16  ;;  %10844 = vmatprep.subr.bf16.mxu0 %v15201_v20 }
 0xba1   : > { %10806 = vmatprep.subr.bf16.mxu1 %v15201_v20 }
 0xba4   : > { %10807 = vmatpush3.bf16.msra.mxu1 %v14737_v56 }
 0xba5   : > { %10808 = vmatprep.subr.bf16.mxu1 %v15201_v20 }
 0xba8   : > { %10809 = vmatpush3.bf16.msra.mxu1 %v14733_v11 }
 0xba9   : > { %10822 = vmatprep.subr.bf16.mxu1 %v15201_v20 }
 0xbab   : > { %10811 = vmatmul.mubr.msk.bf16.vlgmr.msra.gmra.mxu1 %vm7267_vm15, %v11699_v52 }
 0xbac   : > { %10823 = vmatpush3.bf16.msra.mxu1 %v7239_v21  ;;  %10814 = vmatprep.mubr.msk.bf16.mxu1 %vm12578_vm3, %v15201_v20  ;;  %v11779_v21 = vld [vmem:[#allocation27 + $0x70] sm:$0xff]  }
 0xbad   : > { %10824 = vmatprep.subr.bf16.mxu1 %v15201_v20 }
 0xbb0   : > { %10825 = vmatpush3.bf16.msra.mxu1 %v7238_v27 }
 0xbb1   : > { %10826 = vmatprep.subr.bf16.mxu1 %v15201_v20 }
 0xbb3   : > { %10815 = vmatmul.mubr.msk.bf16.gmra.mxu1 %vm7267_vm15, %v11700_v14 }
 0xbb4   : > { %10827 = vmatpush3.bf16.msra.mxu1 %v7237_v16  ;;  %10818 = vmatprep.mubr.msk.bf16.mxu1 %vm12578_vm3, %v15201_v20  ;;  %v11768_v16 = vld [vmem:[#allocation24 + $0x110] ss:$8 sps:$4 sm:$0xff]  }
 0xbb5   : > { %10828 = vmatprep.subr.bf16.mxu1 %v15201_v20 }
 0xbb8   : > { %10829 = vmatpush3.bf16.msra.mxu1 %v14737_v56  ;;  %v11746_v56 = vld [vmem:[#allocation24 + $0x154] ss:$8 sps:$4 sm:$0xff]  }
 0xbb9   : > { %10830 = vmatprep.subr.bf16.mxu1 %v15201_v20 }
 0xbbb   : > { %10819 = vmatmul.mubr.msk.bf16.gmra.mxu1 %vm7267_vm15, %v11701_v50 }
 0xbbc   : > { %10831 = vmatpush3.bf16.msra.mxu1 %v14733_v11  ;;  %10832 = vmatprep.mubr.msk.bf16.mxu1 %vm12578_vm3, %v15201_v20  ;;  %v11734_v11 = vld [vmem:[#allocation24 + $0x174] ss:$8 sps:$4 sm:$0xff]  }
 0xbbd   : > { %7799 = vmatprep.subr.bf16.mxu1 %v11734_v11  ;;  %v11782_v11 = vld [vmem:[#allocation27 + $0x68] sm:$0xff]  }
 0xbc3   : > { %10833 = vmatmul.mubr.msk.bf16.vlgmr.msra.gmra.mxu1 %vm7267_vm15, %v11702_v17  ;;  %v11780_v17 = vld [vmem:[#allocation27 + $0x30] sm:$0xff]  }
 0xbc4   : > { %10836 = vmatprep.mubr.msk.bf16.mxu1 %vm12578_vm3, %v15201_v20  ;;  %7800 = vmatpush1.bf16.msra.mxu1 %v11732_v53 }
 0xbc5   : > { %7801 = vmatprep.subr.bf16.mxu1 %v11740_v58  ;;  %v11781_v58 = vld [vmem:[#allocation27 + $0xb8] sm:$0xff]  }
 0xbc8   : > { %7802 = vmatpush1.bf16.msra.mxu1 %v11738_v61 }
 0xbc9   : > { %7803 = vmatprep.subr.bf16.mxu1 %v11746_v56  ;;  %v11783_v56 = vld [vmem:[#allocation27 + $0x28] sm:$0xff]  }
 0xbcb   : > { %10837 = vmatmul.mubr.msk.bf16.gmra.mxu1 %vm7267_vm15, %v11703_v7 }
 0xbcc   : > { %10840 = vmatprep.mubr.msk.bf16.mxu1 %vm12578_vm3, %v15201_v20  ;;  %7804 = vmatpush1.bf16.msra.mxu1 %v11744_v57 }
 0xbcd   : > { %7805 = vmatprep.subr.bf16.mxu1 %v11752_v9  ;;  %v11784_v9 = vld [vmem:[#allocation27 + $0xb0] sm:$0xff]  }
 0xbd0   : > { %7806 = vmatpush1.bf16.msra.mxu1 %v11750_v44 }
 0xbd1   : > { %7807 = vmatprep.subr.bf16.mxu1 %v11758_v39 }
 0xbd3   : > { %10841 = vmatmul.mubr.msk.bf16.gmra.mxu1 %vm7267_vm15, %v11704_v38 }
 0xbd4   : > { %7831 = vmatprep.mubr.bf16.mxu1 %v15200_v3  ;;  %7808 = vmatpush1.bf16.msra.mxu1 %v11756_v63 }
 0xbd5   : > { %7809 = vmatprep.subr.bf16.mxu1 %v11764_v45 }
 0xbd8   : > { %7810 = vmatpush1.bf16.msra.mxu1 %v11762_v30 }
 0xbd9   : > { %7811 = vmatprep.subr.bf16.mxu1 %v11770_v51 }
 0xbdc   : > { %7812 = vmatpush1.bf16.msra.mxu1 %v11768_v16 }
 0xbdd   : > { %7813 = vmatprep.subr.bf16.mxu1 %v11776_v33  ;;  %v11786_v33 = vld [vmem:[#allocation27 + $0x20] sm:$0xff]  }
 0xbe0   : > { %7814 = vmatpush1.bf16.msra.mxu1 %v11774_v31  ;;  %v11787_v31 = vld [vmem:[#allocation27 + $0xa8] sm:$0xff]  }
 0xbe1   : > { %10483 = vmatprep.subr.bf16.mxu1 %v11777_v47  ;;  %v11792_v47 = vld [vmem:[#allocation27 + $0x10] sm:$0xff]  }
 0xc6b   : > { %v7311_v41 = vpop.f32.mrf.mxu1 }
 0xc6d   : > { %v10812_v37 = vpop.f32.mrf.mxu1 }
 0xc6e   : > { %v11794_v37 = vld [vmem:[#allocation27 + $0x48] sm:$0xff]  }
 0xc6f   : > { %v7314_v13 = vpop.f32.mrf.mxu1 }
 0xc70   : > { %v7334_v12 = vpack.c.bf16 %v7314_v13, %v7311_v41  ;;  %v11793_v41 = vld [vmem:[#allocation27 + $0x98] sm:$0xff]   ;;  %v11795_v13 = vld [vmem:[#allocation27 + $0x8] sm:$0xff]  }
 0xc71   : > { %v10813_v29 = vpop.f32.mrf.mxu1 }
 0xc72   : > { %7768 = vmatprep.mubr.bf16.mxu0 %v7334_v12  ;;  %v11796_v12 = vld [vmem:[#allocation27 + $0x90] sm:$0xff]   ;;  %v11797_v29 = vld [vmem:[#allocation27 + $0x40] sm:$0xff]  }
 0xc73   : > { %v7319_v48 = vpop.f32.mrf.mxu1 }
 0xc75   : > { %v10816_v62 = vpop.f32.mrf.mxu1 }
 0xc76   : > { %v11799_v62 = vld [vmem:[#allocation27 + $0x88] sm:$0xff]  }
 0xc77   : > { %v7322_v32 = vpop.f32.mrf.mxu1 }
 0xc78   : > { %v7335_v61 = vpack.c.bf16 %v7322_v32, %v7319_v48  ;;  %v11798_v48 = vld [vmem:[#allocation27] sm:$0xff]  }
 0xc79   : > { %v10817_v27 = vpop.f32.mrf.mxu1  ;;  %v11800_v32 = vld [vmem:[#allocation27 + $0x80] sm:$0xff]  }
 0xc7b   : > { %v7327_v8 = vpop.f32.mrf.mxu1 }
 0xc7d   : > { %v10820_v0 = vpop.f32.mrf.mxu1 }
 0xc7f   : > { %v7330_v22 = vpop.f32.mrf.mxu1 }
 0xc80   : > { %v7336_v26 = vpack.c.bf16 %v7330_v22, %v7327_v8 }
 0xc81   : > { %v10821_v34 = vpop.f32.mrf.mxu1 }
 0xc83   : > { %v7395_v2 = vpop.f32.mrf.mxu1 }
 0xc85   : > { %v10834_v46 = vpop.f32.mrf.mxu1 }
 0xc87   : > { %v7398_v43 = vpop.f32.mrf.mxu1 }
 0xc88   : > { %v7418_v18 = vpack.c.bf16 %v7398_v43, %v7395_v2 }
 0xc89   : > { %v10835_v52 = vpop.f32.mrf.mxu1 }
 0xc8a   : > { %v7422_v14 = vshrl.u32 %v7418_v18, 16  ;;  %7832 = vmatmul.mubr.bf16.vlgmr.msra.gmra.mxu1 %v7418_v18  ;;  %v7425_v38 = vshll.u32 %v7418_v18, 16 }
 0xc8b   : > { %v7403_v50 = vpop.f32.mrf.mxu1  ;;  %7841 = vmatprep.mubr.bf16.mxu1 %v15200_v3  ;;  %10484 = vmatpush3.bf16.msra.mxu1 %v11778_v15 }
 0xc8c   : > { %v7424_v7 = vrot.slane %v7422_v14, 7  ;;  %10485 = vmatprep.subr.bf16.mxu1 %v11779_v21 }
 0xc8d   : > { %v10838_v53 = vpop.f32.mrf.mxu1 }
 0xc8e   : > { %v7427_v40 = vor.u32 %v7425_v38, %v7424_v7  ;;  %v7882_v38 = vpop.permute.xlu1 %7881 }
 0xc8f   : > { %v7406_v59 = vpop.f32.mrf.mxu1  ;;  %10486 = vmatpush3.bf16.msra.mxu1 %v11780_v17 }
 0xc90   : > { %v7419_v25 = vpack.c.bf16 %v7406_v59, %v7403_v50  ;;  %v7447_v42 = vsel %vm13788_vm5, 0, %v7427_v40  ;;  %10487 = vmatprep.subr.bf16.mxu1 %v11782_v11 }
 0xc91   : > { %v10839_v57 = vpop.f32.mrf.mxu1  ;;  %7769 = vmatmul.mubr.bf16.vlgmr.msra.gmra.mxu0 %v7447_v42 }
 0xc92   : > { %v7429_v49 = vshrl.u32 %v7419_v25, 16  ;;  %7778 = vmatprep.mubr.bf16.mxu0 %v7335_v61  ;;  %7842 = vmatmul.mubr.bf16.gmra.mxu1 %v7419_v25  ;;  %v7432_v24 = vshll.u32 %v7419_v25, 16 }
 0xc93   : > { %v7411_v1 = vpop.f32.mrf.mxu1  ;;  %7851 = vmatprep.mubr.bf16.mxu1 %v15200_v3  ;;  %10845 = vmatpush3.bf16.msra.mxu0 %v11781_v58 }
 0xc94   : > { %v7431_v44 = vrot.slane %v7429_v49, 7  ;;  %10488 = vmatpush3.bf16.msra.mxu1 %v11783_v56  ;;  %10846 = vmatprep.subr.bf16.mxu0 %v15201_v20 }
 0xc95   : > { %v10842_v54 = vpop.f32.mrf.mxu1  ;;  %10489 = vmatprep.subr.bf16.mxu1 %v11785_v35 }
 0xc96   : > { %v7434_v39 = vor.u32 %v7432_v24, %v7431_v44 }
 0xc97   : > { %v7414_v63 = vpop.f32.mrf.mxu1  ;;  %10847 = vmatpush3.bf16.msra.mxu0 %v11784_v9 }
 0xc98   : > { %v7420_v60 = vpack.c.bf16 %v7414_v63, %v7411_v1  ;;  %v7435_v45 = vsel %vm2922_vm1, %v7424_v7, %v7434_v39  ;;  %10848 = vmatprep.subr.bf16.mxu0 %v15201_v20  ;;  %10490 = vmatpush3.bf16.msra.mxu1 %v11786_v33  ;;  %v7877_v7 = vpop.permute.xlu0 %7876  ;;  %v7892_v63 = vpop.permute.xlu1 %7891 }
 0xc99   : > { %7779 = vmatmul.mubr.bf16.gmra.mxu0 %v7435_v45  ;;  %v10843_v30 = vpop.f32.mrf.mxu1  ;;  %10491 = vmatprep.subr.bf16.mxu1 %v11788_v19 }
 0xc9a   : > { %v7437_v10 = vshrl.u32 %v7420_v60, 16  ;;  %7788 = vmatprep.mubr.bf16.mxu0 %v7336_v26  ;;  %7852 = vmatmul.mubr.bf16.gmra.mxu1 %v7420_v60  ;;  %v7440_v51 = vshll.u32 %v7420_v60, 16 }
 0xc9b   : > { %10849 = vmatpush3.bf16.msra.mxu0 %v11787_v31 }
 0xc9c   : > { %v7439_v4 = vrot.slane %v7437_v10, 7  ;;  %10850 = vmatprep.subr.bf16.mxu0 %v15201_v20  ;;  %10492 = vmatpush3.bf16.msra.mxu1 %v11789_v23  ;;  %v7887_v39 = vpop.permute.xlu0 %7886 }
 0xc9d   : > { %10493 = vmatprep.subr.bf16.mxu1 %v11791_v5 }
 0xc9e   : > { %v7442_v16 = vor.u32 %v7440_v51, %v7439_v4 }
 0xc9f   : > { %10851 = vmatpush3.bf16.msra.mxu0 %v11790_v36 }
 0xca0   : > { %v7443_v55 = vsel %vm2922_vm1, %v7431_v44, %v7442_v16  ;;  %10852 = vmatprep.subr.bf16.mxu0 %v15201_v20  ;;  %10494 = vmatpush3.bf16.msra.mxu1 %v11792_v47 }
 0xca1   : > { %7789 = vmatmul.mubr.bf16.gmra.mxu0 %v7443_v55  ;;  %10495 = vmatprep.subr.bf16.mxu1 %v11794_v37 }
 0xca2   : > { %10860 = vmatprep.mubr.msk.bf16.mxu0 %vm12578_vm3, %v15201_v20 }
 0xca3   : > { %10853 = vmatpush3.bf16.msra.mxu0 %v11793_v41 }
 0xca4   : > { %10854 = vmatprep.subr.bf16.mxu0 %v15201_v20  ;;  %10496 = vmatpush3.bf16.msra.mxu1 %v11795_v13 }
 0xca5   : > { %10497 = vmatprep.subr.bf16.mxu1 %v11797_v29 }
 0xca7   : > { %10855 = vmatpush3.bf16.msra.mxu0 %v11796_v12 }
 0xca8   : > { %10856 = vmatprep.subr.bf16.mxu0 %v15201_v20  ;;  %10498 = vmatpush3.bf16.msra.mxu1 %v11798_v48 }
 0xcab   : > { %10857 = vmatpush3.bf16.msra.mxu0 %v11799_v62 }
 0xcac   : > { %10858 = vmatprep.subr.bf16.mxu0 %v15201_v20 }
 0xcaf   : > { %10859 = vmatpush3.bf16.msra.mxu0 %v11800_v32 }
 0xd4a   : > { %v7833_v27 = vpop.f32.mrf.mxu1 }
 0xd4c   : > { %v7835_v8 = vpop.f32.mrf.mxu1 }
 0xd4e   : > { %v7837_v0 = vpop.f32.mrf.mxu1 }
 0xd50   : > { %v7839_v22 = vpop.f32.mrf.mxu1 }
 0xd51   : > { %v7770_v34 = vpop.f32.mrf.mxu0 }
 0xd52   : > { %v7834_v2 = vadd.f32 %v7833_v27, %v7770_v34  ;;  %v7843_v46 = vpop.f32.mrf.mxu1  ;;  %v7897_v27 = vpop.permute.xlu0 %7896 }
 0xd53   : > { %v7772_v43 = vpop.f32.mrf.mxu0 }
 0xd54   : > { %v14791_v15 = vadd.f32 %v7835_v8, %v7772_v43  ;;  %v7845_v18 = vpop.f32.mrf.mxu1  ;;  %v7862_v52 = vmax.f32 %v7834_v2, 0.0  ;;  %v7902_v8 = vpop.permute.xlu1 %7901 }
 0xd55   : > { %v7774_v21 = vpop.f32.mrf.mxu0 }
 0xd56   : > { %v7838_v14 = vadd.f32 %v7837_v0, %v7774_v21  ;;  %v7847_v50 = vpop.f32.mrf.mxu1  ;;  %v7904_v58 = vmul.f32 %v7877_v7, %v7862_v52 }
 0xd57   : > { %v7776_v17 = vpop.f32.mrf.mxu0 }
 0xd58   : > { %v7863_v11 = vmax.f32 %v7838_v14, 0.0  ;;  %v14793_v53 = vadd.f32 %v7839_v22, %v7776_v17  ;;  %v7849_v59 = vpop.f32.mrf.mxu1 }
 0xd59   : > { %v7780_v40 = vpop.f32.mrf.mxu0 }
 0xd5a   : > { %v7905_v61 = vmul.f32 %v7882_v38, %v7863_v11  ;;  %v7844_v25 = vadd.f32 %v7843_v46, %v7780_v40  ;;  %v7853_v1 = vpop.f32.mrf.mxu1 }
 0xd5b   : > { %v7782_v42 = vpop.f32.mrf.mxu0 }
 0xd5c   : > { %v14795_v56 = vadd.f32 %v7845_v18, %v7782_v42  ;;  %v7910_v57 = vpack.c.bf16 %v7905_v61, %v7904_v58  ;;  %v7864_v9 = vmax.f32 %v7844_v25, 0.0  ;;  %v7855_v4 = vpop.f32.mrf.mxu1  ;;  %v11805_v58 = vld [vmem:[%s15045_s21 + $0x70] ss:$8 sps:$4 sm:$0xff]   ;;  %v11807_v61 = vld [vmem:[%s15045_s21 + $0x74] ss:$8 sps:$4 sm:$0xff]  }
 0xd5d   : > { %v7784_v49 = vpop.f32.mrf.mxu0  ;;  %v11810_v25 = vld [vmem:[%s15045_s21 + $0x64] ss:$8 sps:$4 sm:$0xff]   ;;  %8715 = vmatprep.subr.bf16.mxu0 %v11807_v61  ;;  %v11808_v42 = vld [vmem:[%s15045_s21 + $0x60] ss:$8 sps:$4 sm:$0xff]  }
 0xd5e   : > { %v7848_v44 = vadd.f32 %v7847_v50, %v7784_v49  ;;  %v7914_v24 = vshrl.u32 %v7910_v57, 16  ;;  %8176 = vmatprep.mubr.bf16.mxu1 %v7910_v57  ;;  %v7917_v45 = vshll.u32 %v7910_v57, 16  ;;  %v7906_v51 = vmul.f32 %v7887_v39, %v7864_v9  ;;  %v7857_v47 = vpop.f32.mrf.mxu1  ;;  %v11813_v57 = vld [vmem:[%s15045_s21 + $0x54] ss:$8 sps:$4 sm:$0xff]   ;;  %v11811_v49 = vld [vmem:[%s15045_s21 + $0x50] ss:$8 sps:$4 sm:$0xff]  }
 0xd5f   : > { %v7786_v54 = vpop.f32.mrf.mxu0  ;;  %v11814_v9 = vld [vmem:[%s15045_s21 + $0x40] ss:$8 sps:$4 sm:$0xff]  }
 0xd60   : > { %v7865_v26 = vmax.f32 %v7848_v44, 0.0  ;;  %v7916_v60 = vrot.slane %v7914_v24, 7  ;;  %v14797_v30 = vadd.f32 %v7849_v59, %v7786_v54  ;;  %v7940_v31 = vrot.slane %v7917_v45, 1  ;;  %v11801_v59 = vld [vmem:[#allocation28] sm:$0xff]   ;;  %v11819_v44 = vld [vmem:[%s15045_s21 + $0x34] ss:$8 sps:$4 sm:$0xff]  }
 0xd61   : > { %v7790_v10 = vpop.f32.mrf.mxu0  ;;  %v11822_v54 = vld [vmem:[%s15045_s21 + $0x24] ss:$8 sps:$4 sm:$0xff]   ;;  %v11820_v39 = vld [vmem:[%s15045_s21 + $0x20] ss:$8 sps:$4 sm:$0xff]  }
 0xd62   : > { %v7907_v16 = vmul.f32 %v7892_v63, %v7865_v26  ;;  %v7854_v55 = vadd.f32 %v7853_v1, %v7790_v10  ;;  %v7919_v35 = vor.u32 %v7917_v45, %v7916_v60  ;;  %v7941_v29 = vor.u32 %v7940_v31, %v7914_v24  ;;  %v11816_v1 = vld [vmem:[%s15045_s21 + $0x44] ss:$8 sps:$4 sm:$0xff]   ;;  %v11817_v24 = vld [vmem:[%s15045_s21 + $0x30] ss:$8 sps:$4 sm:$0xff]   ;;  %v11825_v63 = vld [vmem:[%s15045_s21 + $0x14] ss:$8 sps:$4 sm:$0xff]  }
 0xd63   : > { %v7792_v33 = vpop.f32.mrf.mxu0  ;;  %v11823_v26 = vld [vmem:[%s15045_s21 + $0x10] ss:$8 sps:$4 sm:$0xff]   ;;  %v11826_v45 = vld [vmem:[%s15045_s21] ss:$8 sps:$4 sm:$0xff]   ;;  %v11831_v10 = vld [vmem:[%s15045_s21 + $0xf4] ss:$8 sps:$4 sm:$0xff]  }
 0xd64   : > { %v14799_v19 = vadd.f32 %v7855_v4, %v7792_v33  ;;  %v7939_v23 = vsel %vm13788_vm5, 0, %v7919_v35  ;;  %v7911_v36 = vpack.c.bf16 %v7907_v16, %v7906_v51  ;;  %v7866_v41 = vmax.f32 %v7854_v55, 0.0  ;;  %v11829_v4 = vld [vmem:[%s15045_s21 + $0xf0] ss:$8 sps:$4 sm:$0xff]   ;;  %v11837_v51 = vld [vmem:[%s15045_s21 + $0xe4] ss:$8 sps:$4 sm:$0xff]   ;;  %v7859_v55 = vpop.f32.mrf.mxu1 }
 0xd65   : > { %v7794_v5 = vpop.f32.mrf.mxu0  ;;  %8177 = vmatmul.mubr.bf16.vlgmr.msra.gmra.mxu1 %v7939_v23  ;;  %v11835_v16 = vld [vmem:[%s15045_s21 + $0xe0] ss:$8 sps:$4 sm:$0xff]  }
 0xd66   : > { %v7858_v37 = vadd.f32 %v7857_v47, %v7794_v5  ;;  %v7921_v13 = vshrl.u32 %v7911_v36, 16  ;;  %v7924_v12 = vshll.u32 %v7911_v36, 16  ;;  %8184 = vmatprep.mubr.bf16.mxu1 %v7911_v36  ;;  %v7908_v0 = vmul.f32 %v7897_v27, %v7866_v41 }
 0xd67   : > { %v7796_v23 = vpop.f32.mrf.mxu0 }
 0xd68   : > { %v7867_v48 = vmax.f32 %v7858_v37, 0.0  ;;  %v7942_v62 = vrot.slane %v7924_v12, 1  ;;  %v7923_v32 = vrot.slane %v7921_v13, 7 }
 0xd6a   : > { %v7909_v22 = vmul.f32 %v7902_v8, %v7867_v48  ;;  %v7943_v34 = vsel %vm3199_vm0, %v7941_v29, %v7942_v62  ;;  %v7926_v2 = vor.u32 %v7924_v12, %v7923_v32  ;;  %v7944_v52 = vor.u32 %v7942_v62, %v7921_v13 }
 0xd6b   : > { %10861 = vmatmul.mubr.bf16.vlgmr.msra.gmra.mxu0 %v7943_v34 }
 0xd6c   : > { %v7927_v46 = vsel %vm2922_vm1, %v7916_v60, %v7926_v2  ;;  %v7912_v43 = vpack.c.bf16 %v7909_v22, %v7908_v0  ;;  %10864 = vmatprep.mubr.msk.bf16.mxu0 %vm12578_vm3, %v15201_v20  ;;  %8716 = vmatpush1.bf16.msra.mxu0 %v11805_v58  ;;  %v11828_v60 = vld [vmem:[%s15045_s21 + $0x4] ss:$8 sps:$4 sm:$0xff]  }
 0xd6d   : > { %8185 = vmatmul.mubr.bf16.gmra.mxu1 %v7927_v46  ;;  %8717 = vmatprep.subr.bf16.mxu0 %v11810_v25 }
 0xd6e   : > { %v7929_v18 = vshrl.u32 %v7912_v43, 16  ;;  %v7932_v21 = vshll.u32 %v7912_v43, 16  ;;  %8192 = vmatprep.mubr.bf16.mxu1 %v7912_v43 }
 0xd70   : > { %v7945_v14 = vrot.slane %v7932_v21, 1  ;;  %v7931_v50 = vrot.slane %v7929_v18, 7  ;;  %8718 = vmatpush1.bf16.msra.mxu0 %v11808_v42 }
 0xd71   : > { %8719 = vmatprep.subr.bf16.mxu0 %v11813_v57  ;;  %v7860_v57 = vadd.f32 %v7859_v55, %v7796_v23  ;;  %v11838_v55 = vld [vmem:[%s15045_s21 + $0x160] ss:$8 sps:$4 sm:$0xff]   ;;  %v11843_v23 = vld [vmem:[%s15045_s21 + $0xd4] ss:$8 sps:$4 sm:$0xff]  }
 0xd72   : > { %v7946_v17 = vsel %vm3199_vm0, %v7944_v52, %v7945_v14  ;;  %v7934_v7 = vor.u32 %v7932_v21, %v7931_v50  ;;  %v7947_v11 = vor.u32 %v7945_v14, %v7929_v18 }
 0xd73   : > { %10865 = vmatmul.mubr.bf16.gmra.mxu0 %v7946_v17 }
 0xd74   : > { %v7935_v38 = vsel %vm2922_vm1, %v7923_v32, %v7934_v7  ;;  %10868 = vmatprep.mubr.msk.bf16.mxu0 %vm12578_vm3, %v15201_v20  ;;  %v7951_v40 = vsel %vm13929_vm12, %v7947_v11, 0  ;;  %8720 = vmatpush1.bf16.msra.mxu0 %v11811_v49 }
 0xd75   : > { %8193 = vmatmul.mubr.bf16.gmra.mxu1 %v7935_v38  ;;  %8721 = vmatprep.subr.bf16.mxu0 %v11816_v1 }
 0xd76   : > { %10878 = vmatprep.mubr.msk.bf16.mxu1 %vm3548_vm9, %v11801_v59 }
 0xd78   : > { %8722 = vmatpush1.bf16.msra.mxu0 %v11814_v9 }
 0xd79   : > { %8723 = vmatprep.subr.bf16.mxu0 %v11819_v44 }
 0xd7b   : > { %10869 = vmatmul.mubr.bf16.gmra.mxu0 %v7951_v40 }
 0xd7c   : > { %8724 = vmatpush1.bf16.msra.mxu0 %v11817_v24 }
 0xd7d   : > { %8725 = vmatprep.subr.bf16.mxu0 %v11822_v54 }
 0xd80   : > { %8726 = vmatpush1.bf16.msra.mxu0 %v11820_v39 }
 0xd81   : > { %8727 = vmatprep.subr.bf16.mxu0 %v11825_v63 }
 0xd84   : > { %8728 = vmatpush1.bf16.msra.mxu0 %v11823_v26 }
 0xd85   : > { %8729 = vmatprep.subr.bf16.mxu0 %v11828_v60 }
 0xd88   : > { %8730 = vmatpush1.bf16.msra.mxu0 %v11826_v45  ;;  %v11803_v45 = vld [vmem:[#allocation30] sm:$0xff]  }
 0xd89   : > { %8731 = vmatprep.subr.bf16.mxu0 %v11831_v10  ;;  %v11834_v10 = vld [vmem:[%s15045_s21 + $0x174] ss:$8 sps:$4 sm:$0xff]  }
 0xd8c   : > { %8732 = vmatpush2.bf16.msra.mxu0 %v11829_v4  ;;  %v11804_v4 = vld [vmem:[#allocation30 + $0x8] sm:$0xff]  }
 0xd8d   : > { %8733 = vmatprep.subr.bf16.mxu0 %v11837_v51  ;;  %v11832_v51 = vld [vmem:[%s15045_s21 + $0x170] ss:$8 sps:$4 sm:$0xff]  }
 0xd90   : > { %8734 = vmatpush2.bf16.msra.mxu0 %v11835_v16  ;;  %v11840_v16 = vld [vmem:[%s15045_s21 + $0x164] ss:$8 sps:$4 sm:$0xff]  }
 0xd91   : > { %8735 = vmatprep.subr.bf16.mxu0 %v11843_v23  ;;  %v11895_v23 = vld [vmem:[#allocation33 + $0x8] sm:$0xff]  }
 0xe25   : > { %v10499_v35 = vpop.f32.mrf.mxu1 }
 0xe27   : > { %v10500_v33 = vpop.f32.mrf.mxu1 }
 0xe28   : > { %v10501_v31 = vadd.f32 %v10500_v33, %v10499_v35  ;;  %v11846_v35 = vld [vmem:[%s15045_s21 + $0x154] ss:$8 sps:$4 sm:$0xff]   ;;  %v11844_v33 = vld [vmem:[%s15045_s21 + $0x150] ss:$8 sps:$4 sm:$0xff]  }
 0xe29   : > { %v10502_v36 = vpop.f32.mrf.mxu1 }
 0xe2a   : > { %v8179_v5 = vadd.f32 %v10501_v31, %v14791_v15  ;;  %v11841_v31 = vld [vmem:[%s15045_s21 + $0xd0] ss:$8 sps:$4 sm:$0xff]  }
 0xe2b   : > { %v10503_v47 = vpop.f32.mrf.mxu1  ;;  %v8235_v41 = vpop.f32.mrf.mxu0  ;;  %8736 = vmatpush2.bf16.msra.mxu0 %v11841_v31  ;;  %v11894_v31 = vld [vmem:[#allocation33 + $0x98] sm:$0xff]  }
 0xe2c   : > { %v10504_v37 = vadd.f32 %v10503_v47, %v10502_v36  ;;  %v8236_v29 = vadd.f32 %v8235_v41, %v8179_v5  ;;  %v11852_v36 = vld [vmem:[%s15045_s21 + $0x144] ss:$8 sps:$4 sm:$0xff]   ;;  %v11850_v5 = vld [vmem:[%s15045_s21 + $0x140] ss:$8 sps:$4 sm:$0xff]   ;;  %v11858_v47 = vld [vmem:[%s15045_s21 + $0x134] ss:$8 sps:$4 sm:$0xff]  }
 0xe2d   : > { %v10505_v13 = vpop.f32.mrf.mxu1  ;;  %v10862_v12 = vpop.f32.mrf.mxu0  ;;  %v11847_v41 = vld [vmem:[%s15045_s21 + $0xc0] ss:$8 sps:$4 sm:$0xff]  }
 0xe2e   : > { %v8182_v48 = vadd.f32 %v10504_v37, %v14793_v53  ;;  %v8258_v34 = vmax.f32 %v8236_v29, 0.0  ;;  %v11849_v37 = vld [vmem:[%s15045_s21 + $0xc4] ss:$8 sps:$4 sm:$0xff]   ;;  %v11862_v29 = vld [vmem:[%s15045_s21 + $0x120] ss:$8 sps:$4 sm:$0xff]  }
 0xe2f   : > { %v10506_v62 = vpop.f32.mrf.mxu1  ;;  %v8238_v32 = vpop.f32.mrf.mxu0  ;;  %8737 = vmatprep.subr.bf16.mxu0 %v11849_v37  ;;  %v11864_v12 = vld [vmem:[%s15045_s21 + $0x124] ss:$8 sps:$4 sm:$0xff]  }
 0xe30   : > { %v10507_v27 = vadd.f32 %v10506_v62, %v10505_v13  ;;  %v8239_v8 = vadd.f32 %v8238_v32, %v8182_v48  ;;  %v11856_v13 = vld [vmem:[%s15045_s21 + $0x130] ss:$8 sps:$4 sm:$0xff]   ;;  %8738 = vmatpush2.bf16.msra.mxu0 %v11847_v41  ;;  %v11855_v48 = vld [vmem:[%s15045_s21 + $0xb4] ss:$8 sps:$4 sm:$0xff]   ;;  %v11900_v37 = vld [vmem:[#allocation33 + $0x80] sm:$0xff]  }
 0xe31   : > { %v10508_v0 = vpop.f32.mrf.mxu1  ;;  %v10863_v22 = vpop.f32.mrf.mxu0  ;;  %v11853_v62 = vld [vmem:[%s15045_s21 + $0xb0] ss:$8 sps:$4 sm:$0xff]   ;;  %v11870_v32 = vld [vmem:[%s15045_s21 + $0x114] ss:$8 sps:$4 sm:$0xff]   ;;  %8739 = vmatprep.subr.bf16.mxu0 %v11855_v48 }
 0xe32   : > { %v8259_v2 = vmax.f32 %v8239_v8, 0.0  ;;  %v8187_v46 = vadd.f32 %v10507_v27, %v14795_v56  ;;  %v11868_v27 = vld [vmem:[%s15045_s21 + $0x110] ss:$8 sps:$4 sm:$0xff]   ;;  %v11861_v8 = vld [vmem:[%s15045_s21 + $0xa4] ss:$8 sps:$4 sm:$0xff]  }
 0xe33   : > { %v10509_v43 = vpop.f32.mrf.mxu1  ;;  %v8243_v15 = vpop.f32.mrf.mxu0  ;;  %v11876_v22 = vld [vmem:[%s15045_s21 + $0x104] ss:$8 sps:$4 sm:$0xff]   ;;  %v11899_v41 = vld [vmem:[#allocation33 + $0x88] sm:$0xff]  }
 0xe34   : > { %v8264_v18 = vpack.c.bf16 %v8259_v2, %v8258_v34  ;;  %v10510_v21 = vadd.f32 %v10509_v43, %v10508_v0  ;;  %v8244_v50 = vadd.f32 %v8243_v15, %v8187_v46  ;;  %8740 = vmatpush2.bf16.msra.mxu0 %v11853_v62  ;;  %v11859_v0 = vld [vmem:[%s15045_s21 + $0xa0] ss:$8 sps:$4 sm:$0xff]   ;;  %v11867_v2 = vld [vmem:[%s15045_s21 + $0x94] ss:$8 sps:$4 sm:$0xff]   ;;  %v11865_v46 = vld [vmem:[%s15045_s21 + $0x90] ss:$8 sps:$4 sm:$0xff]  }
 0xe35   : > { %v10511_v52 = vpop.f32.mrf.mxu1  ;;  %v10866_v14 = vpop.f32.mrf.mxu0  ;;  %8741 = vmatprep.subr.bf16.mxu0 %v11861_v8  ;;  %v11874_v34 = vld [vmem:[%s15045_s21 + $0x100] ss:$8 sps:$4 sm:$0xff]   ;;  %v11873_v43 = vld [vmem:[%s15045_s21 + $0x84] ss:$8 sps:$4 sm:$0xff]  }
 0xe36   : > { %v8190_v17 = vadd.f32 %v10510_v21, %v14797_v30  ;;  %v8260_v58 = vmax.f32 %v8244_v50, 0.0  ;;  %v11871_v15 = vld [vmem:[%s15045_s21 + $0x80] ss:$8 sps:$4 sm:$0xff]  }
 0xe37   : > { %v10512_v53 = vpop.f32.mrf.mxu1  ;;  %v8246_v7 = vpop.f32.mrf.mxu0  ;;  %v11882_v21 = vld [vmem:[#allocation33 + $0xb8] sm:$0xff]  }
 0xe38   : > { %v10513_v38 = vadd.f32 %v10512_v53, %v10511_v52  ;;  %v8247_v11 = vadd.f32 %v8246_v7, %v8190_v17  ;;  %8742 = vmatpush2.bf16.msra.mxu0 %v11859_v0 }
 0xe39   : > { %v10514_v40 = vpop.f32.mrf.mxu1  ;;  %v10867_v59 = vpop.f32.mrf.mxu0  ;;  %8743 = vmatprep.subr.bf16.mxu0 %v11867_v2 }
 0xe3a   : > { %v8261_v61 = vmax.f32 %v8247_v11, 0.0  ;;  %v8195_v25 = vadd.f32 %v10513_v38, %v14799_v19  ;;  %v11802_v19 = vld [vmem:[#allocation28 + $0x8] sm:$0xff]   ;;  %v11878_v59 = vld [vmem:[#allocation33 + $0x38] sm:$0xff]  }
 0xe3b   : > { %v10515_v56 = vpop.f32.mrf.mxu1  ;;  %v8251_v42 = vpop.f32.mrf.mxu0 }
 0xe3c   : > { %v8265_v49 = vpack.c.bf16 %v8261_v61, %v8260_v58  ;;  %v10516_v1 = vadd.f32 %v10515_v56, %v10514_v40  ;;  %v8252_v44 = vadd.f32 %v8251_v42, %v8195_v25  ;;  %8744 = vmatpush2.bf16.msra.mxu0 %v11865_v46  ;;  %v11879_v25 = vld [vmem:[#allocation33 + $0x70] sm:$0xff]  }
 0xe3d   : > { %v10870_v9 = vpop.f32.mrf.mxu0  ;;  %8745 = vmatprep.subr.bf16.mxu0 %v11873_v43  ;;  %v11880_v42 = vld [vmem:[#allocation33 + $0x30] sm:$0xff]   ;;  %v8832_v43 = vpop.permute.xlu0 %8831 }
 0xe3e   : > { %v8198_v24 = vadd.f32 %v10516_v1, %v7860_v57  ;;  %v8262_v63 = vmax.f32 %v8252_v44, 0.0  ;;  %v11881_v9 = vld [vmem:[#allocation33 + $0x68] sm:$0xff]  }
 0xe3f   : > { %v8254_v54 = vpop.f32.mrf.mxu0 }
 0xe40   : > { %v8255_v30 = vadd.f32 %v8254_v54, %v8198_v24  ;;  %8746 = vmatpush2.bf16.msra.mxu0 %v11871_v15  ;;  %v11883_v24 = vld [vmem:[#allocation33 + $0x28] sm:$0xff]   ;;  %v8837_v15 = vpop.permute.xlu1 %8836 }
 0xe41   : > { %v10871_v39 = vpop.f32.mrf.mxu0  ;;  %10892 = vmatprep.subr.bf16.mxu0 %v11882_v21 }
 0xe42   : > { %v8263_v26 = vmax.f32 %v8255_v30, 0.0 }
 0xe44   : > { %v8266_v60 = vpack.c.bf16 %v8263_v26, %v8262_v63 }
 0xe46   : > { %10872 = vmatprep.subr.bf16.mxu1 %v8266_v60 }
 0xe47   : > { %10873 = vmatpush3.bf16.msra.mxu1 %v8266_v60 }
 0xe48   : > { %10874 = vmatprep.subr.bf16.mxu1 %v8265_v49 }
 0xe4b   : > { %10875 = vmatpush3.bf16.msra.mxu1 %v8265_v49 }
 0xe4c   : > { %10876 = vmatprep.subr.bf16.mxu1 %v8264_v18 }
 0xe4f   : > { %10877 = vmatpush3.bf16.msra.mxu1 %v8264_v18 }
 0xe50   : > { %10882 = vmatprep.subr.bf16.mxu1 %v8266_v60 }
 0xe52   : > { %10879 = vmatmul.mubr.msk.bf16.vlgmr.msra.gmra.mxu1 %vm3548_vm9, %v11802_v19  ;;  %v11885_v19 = vld [vmem:[#allocation33 + $0xb0] sm:$0xff]  }
 0xe53   : > { %10883 = vmatpush3.bf16.msra.mxu1 %v8266_v60  ;;  %10888 = vmatprep.mubr.msk.bf16.mxu1 %vm3548_vm9, %v11803_v45  ;;  %v11884_v60 = vld [vmem:[#allocation33 + $0x60] sm:$0xff]  }
 0xe54   : > { %10884 = vmatprep.subr.bf16.mxu1 %v8265_v49  ;;  %v11886_v45 = vld [vmem:[#allocation33 + $0x20] sm:$0xff]  }
 0xe57   : > { %10885 = vmatpush3.bf16.msra.mxu1 %v8265_v49 }
 0xe58   : > { %10886 = vmatprep.subr.bf16.mxu1 %v8264_v18 }
 0xe5b   : > { %10887 = vmatpush3.bf16.msra.mxu1 %v8264_v18  ;;  %v11877_v18 = vld [vmem:[#allocation33 + $0x78] sm:$0xff]  }
 0xe5c   : > { %8768 = vmatprep.subr.bf16.mxu1 %v11834_v10  ;;  %v11887_v10 = vld [vmem:[#allocation33 + $0x58] sm:$0xff]  }
 0xe5e   : > { %10889 = vmatmul.mubr.msk.bf16.vlgmr.msra.gmra.mxu1 %vm3548_vm9, %v11804_v4  ;;  %v11888_v4 = vld [vmem:[#allocation33 + $0xa8] sm:$0xff]  }
 0xe5f   : > { %8769 = vmatpush1.bf16.msra.mxu1 %v11832_v51  ;;  %8800 = vmatprep.mubr.bf16.mxu1 %v15200_v3  ;;  %v11889_v51 = vld [vmem:[#allocation33 + $0x18] sm:$0xff]  }
 0xe60   : > { %8770 = vmatprep.subr.bf16.mxu1 %v11840_v16  ;;  %v11890_v16 = vld [vmem:[#allocation33 + $0x50] sm:$0xff]  }
 0xe63   : > { %8771 = vmatpush1.bf16.msra.mxu1 %v11838_v55  ;;  %v11891_v55 = vld [vmem:[#allocation33 + $0xa0] sm:$0xff]  }
 0xe64   : > { %8772 = vmatprep.subr.bf16.mxu1 %v11846_v35  ;;  %v11892_v35 = vld [vmem:[#allocation33 + $0x10] sm:$0xff]  }
 0xe67   : > { %8773 = vmatpush1.bf16.msra.mxu1 %v11844_v33  ;;  %v11893_v33 = vld [vmem:[#allocation33 + $0x48] sm:$0xff]  }
 0xe68   : > { %8774 = vmatprep.subr.bf16.mxu1 %v11852_v36  ;;  %v11896_v36 = vld [vmem:[#allocation33 + $0x40] sm:$0xff]  }
 0xe6b   : > { %8775 = vmatpush1.bf16.msra.mxu1 %v11850_v5  ;;  %v11897_v5 = vld [vmem:[#allocation33 + $0x90] sm:$0xff]  }
 0xe6c   : > { %8776 = vmatprep.subr.bf16.mxu1 %v11858_v47  ;;  %v11898_v47 = vld [vmem:[#allocation33] sm:$0xff]  }
 0xe6f   : > { %8777 = vmatpush1.bf16.msra.mxu1 %v11856_v13 }
 0xe70   : > { %8778 = vmatprep.subr.bf16.mxu1 %v11864_v12 }
 0xe73   : > { %8779 = vmatpush1.bf16.msra.mxu1 %v11862_v29 }
 0xe74   : > { %8780 = vmatprep.subr.bf16.mxu1 %v11870_v32 }
 0xe77   : > { %8781 = vmatpush1.bf16.msra.mxu1 %v11868_v27 }
 0xe78   : > { %8782 = vmatprep.subr.bf16.mxu1 %v11876_v22 }
 0xe7b   : > { %8783 = vmatpush1.bf16.msra.mxu1 %v11874_v34 }
 0xe7c   : > { %10538 = vmatprep.subr.bf16.mxu1 %v11877_v18 }
 0xf12   : > { %v10880_v52 = vpop.f32.mrf.mxu1 }
 0xf14   : > { %v8325_v14 = vpop.f32.mrf.mxu1 }
 0xf16   : > { %v10881_v50 = vpop.f32.mrf.mxu1 }
 0xf17   : > { %v8341_v54 = vpack.c.bf16 %v10881_v50, %v10880_v52 }
 0xf18   : > { %v8328_v17 = vpop.f32.mrf.mxu1 }
 0xf19   : > { %v8340_v53 = vpack.c.bf16 %v8328_v17, %v8325_v14 }
 0xf1b   : > { %8747 = vmatprep.mubr.bf16.mxu0 %v8340_v53 }
 0xf1e   : > { %v10890_v7 = vpop.f32.mrf.mxu1 }
 0xf20   : > { %v8392_v38 = vpop.f32.mrf.mxu1 }
 0xf22   : > { %v10891_v11 = vpop.f32.mrf.mxu1 }
 0xf23   : > { %v8408_v58 = vpack.c.bf16 %v10891_v11, %v10890_v7 }
 0xf24   : > { %v8395_v40 = vpop.f32.mrf.mxu1 }
 0xf25   : > { %v8407_v61 = vpack.c.bf16 %v8395_v40, %v8392_v38  ;;  %v8417_v57 = vshrl.u32 %v8408_v58, 16  ;;  %v8420_v63 = vshll.u32 %v8408_v58, 16 }
 0xf27   : > { %v8410_v56 = vshrl.u32 %v8407_v61, 16  ;;  %8801 = vmatmul.mubr.bf16.vlgmr.msra.gmra.mxu1 %v8407_v61  ;;  %v8413_v1 = vshll.u32 %v8407_v61, 16  ;;  %v8419_v30 = vrot.slane %v8417_v57, 7 }
 0xf28   : > { %8810 = vmatprep.mubr.bf16.mxu1 %v15200_v3  ;;  %10539 = vmatpush3.bf16.msra.mxu1 %v11878_v59 }
 0xf29   : > { %v8412_v49 = vrot.slane %v8410_v56, 7  ;;  %10540 = vmatprep.subr.bf16.mxu1 %v11879_v25  ;;  %v8422_v3 = vor.u32 %v8420_v63, %v8419_v30 }
 0xf2b   : > { %v8415_v44 = vor.u32 %v8413_v1, %v8412_v49  ;;  %v8423_v26 = vsel %vm2922_vm1, %v8412_v49, %v8422_v3  ;;  %v8842_v49 = vpop.permute.xlu0 %8841  ;;  %v8847_v1 = vpop.permute.xlu1 %8846 }
 0xf2c   : > { %10541 = vmatpush3.bf16.msra.mxu1 %v11880_v42 }
 0xf2d   : > { %v8426_v39 = vsel %vm13788_vm5, 0, %v8415_v44  ;;  %10542 = vmatprep.subr.bf16.mxu1 %v11881_v9 }
 0xf2e   : > { %8748 = vmatmul.mubr.bf16.vlgmr.msra.gmra.mxu0 %v8426_v39 }
 0xf2f   : > { %8757 = vmatprep.mubr.bf16.mxu0 %v8341_v54  ;;  %8811 = vmatmul.mubr.bf16.gmra.mxu1 %v8408_v58 }
 0xf30   : > { %10543 = vmatpush3.bf16.msra.mxu1 %v11883_v24  ;;  %10893 = vmatpush3.bf16.msra.mxu0 %v11882_v21 }
 0xf31   : > { %10544 = vmatprep.subr.bf16.mxu1 %v11884_v60  ;;  %10894 = vmatprep.subr.bf16.mxu0 %v11885_v19 }
 0xf34   : > { %10545 = vmatpush3.bf16.msra.mxu1 %v11886_v45  ;;  %10895 = vmatpush3.bf16.msra.mxu0 %v11885_v19 }
 0xf35   : > { %10546 = vmatprep.subr.bf16.mxu1 %v11887_v10  ;;  %10896 = vmatprep.subr.bf16.mxu0 %v11888_v4 }
 0xf36   : > { %8758 = vmatmul.mubr.bf16.gmra.mxu0 %v8423_v26 }
 0xf38   : > { %10547 = vmatpush3.bf16.msra.mxu1 %v11889_v51  ;;  %10897 = vmatpush3.bf16.msra.mxu0 %v11888_v4 }
 0xf39   : > { %10548 = vmatprep.subr.bf16.mxu1 %v11890_v16  ;;  %10898 = vmatprep.subr.bf16.mxu0 %v11891_v55  ;;  %v9271_v16 = vld [vmem:[#allocation34 + $0x78] sm:$0xff] }
 0xf3c   : > { %10549 = vmatpush3.bf16.msra.mxu1 %v11892_v35  ;;  %10899 = vmatpush3.bf16.msra.mxu0 %v11891_v55  ;;  %v9270_v55 = vld [vmem:[#allocation34 + $0x70] sm:$0xff]  ;;  %v9269_v35 = vld [vmem:[#allocation34 + $0x68] sm:$0xff] }
 0xf3d   : > { %10550 = vmatprep.subr.bf16.mxu1 %v11893_v33  ;;  %10900 = vmatprep.subr.bf16.mxu0 %v11894_v31  ;;  %v9268_v33 = vld [vmem:[#allocation34 + $0x60] sm:$0xff] }
 0xf40   : > { %10551 = vmatpush3.bf16.msra.mxu1 %v11895_v23  ;;  %10901 = vmatpush3.bf16.msra.mxu0 %v11894_v31  ;;  %v9266_v31 = vld [vmem:[#allocation34 + $0x50] sm:$0xff]  ;;  %v9265_v23 = vld [vmem:[#allocation34 + $0x48] sm:$0xff] }
 0xf41   : > { %10552 = vmatprep.subr.bf16.mxu1 %v11896_v36  ;;  %10902 = vmatprep.subr.bf16.mxu0 %v11897_v5  ;;  %v9264_v36 = vld [vmem:[#allocation34 + $0x40] sm:$0xff] }
 0xf44   : > { %10553 = vmatpush3.bf16.msra.mxu1 %v11898_v47  ;;  %10903 = vmatpush3.bf16.msra.mxu0 %v11897_v5  ;;  %v9263_v5 = vld [vmem:[#allocation34 + $0x38] sm:$0xff]  ;;  %v9262_v47 = vld [vmem:[#allocation34 + $0x30] sm:$0xff] }
 0xf45   : > { %10912 = vmatprep.subr.mxu1 %v15201_v20  ;;  %10904 = vmatprep.subr.bf16.mxu0 %v11899_v41 }
 0xf48   : > { %10905 = vmatpush3.bf16.msra.mxu0 %v11899_v41  ;;  %v9261_v41 = vld [vmem:[#allocation34 + $0x28] sm:$0xff] }
 0xf49   : > { %10906 = vmatprep.subr.bf16.mxu0 %v11900_v37 }
 0xf4c   : > { %10907 = vmatpush3.bf16.msra.mxu0 %v11900_v37  ;;  %v9260_v37 = vld [vmem:[#allocation34 + $0x20] sm:$0xff] }
 0xf4d   : > { %10923 = vmatprep.subr.mxu0 %v15201_v20 }
 0xfe7   : > { %v8802_v13 = vpop.f32.mrf.mxu1 }
 0xfe9   : > { %v8804_v12 = vpop.f32.mrf.mxu1 }
 0xfeb   : > { %v8806_v29 = vpop.f32.mrf.mxu1 }
 0xfed   : > { %v8808_v62 = vpop.f32.mrf.mxu1 }
 0xfee   : > { %v8749_v48 = vpop.f32.mrf.mxu0 }
 0xfef   : > { %v8803_v32 = vadd.f32 %v8802_v13, %v8749_v48  ;;  %v8812_v22 = vpop.f32.mrf.mxu1  ;;  %v9259_v13 = vld [vmem:[#allocation34 + $0x18] sm:$0xff] }
 0xff0   : > { %v8751_v27 = vpop.f32.mrf.mxu0 }
 0xff1   : > { %v14973_v8 = vadd.f32 %v8804_v12, %v8751_v27  ;;  %v8821_v34 = vmax.f32 %v8803_v32, 0.0  ;;  %v8814_v14 = vpop.f32.mrf.mxu1  ;;  %v9258_v12 = vld [vmem:[#allocation34 + $0x10] sm:$0xff] }
 0xff2   : > { %v8753_v0 = vpop.f32.mrf.mxu0 }
 0xff3   : > { %v8807_v2 = vadd.f32 %v8806_v29, %v8753_v0  ;;  %v8849_v50 = vmul.f32 %v8832_v43, %v8821_v34  ;;  %v8816_v59 = vpop.f32.mrf.mxu1  ;;  %v9257_v29 = vld [vmem:[#allocation34 + $0x8] sm:$0xff] }
 0xff4   : > { %v8755_v46 = vpop.f32.mrf.mxu0 }
 0xff5   : > { %v8822_v18 = vmax.f32 %v8807_v2, 0.0  ;;  %v14975_v21 = vadd.f32 %v8808_v62, %v8755_v46  ;;  %v8818_v48 = vpop.f32.mrf.mxu1 }
 0xff6   : > { %v8759_v52 = vpop.f32.mrf.mxu0 }
 0xff7   : > { %v8850_v17 = vmul.f32 %v8837_v15, %v8822_v18  ;;  %v8813_v53 = vadd.f32 %v8812_v22, %v8759_v52 }
 0xff8   : > { %v8761_v7 = vpop.f32.mrf.mxu0 }
 0xff9   : > { %v14977_v38 = vadd.f32 %v8814_v14, %v8761_v7  ;;  %v8853_v11 = vpack.c.bf16 %v8850_v17, %v8849_v50  ;;  %v8823_v58 = vmax.f32 %v8813_v53, 0.0 }
 0xffa   : > { %v8763_v40 = vpop.f32.mrf.mxu0 }
 0xffb   : > { %v8817_v61 = vadd.f32 %v8816_v59, %v8763_v40  ;;  %v8856_v25 = vshrl.u32 %v8853_v11, 16  ;;  %9105 = vmatprep.mubr.bf16.mxu1 %v8853_v11  ;;  %v8859_v57 = vshll.u32 %v8853_v11, 16  ;;  %v8851_v9 = vmul.f32 %v8842_v49, %v8823_v58 }
 0xffc   : > { %v8765_v0 = vpop.f32.mrf.mxu0 }
 0xffd   : > { %v8824_v56 = vmax.f32 %v8817_v61, 0.0  ;;  %v8858_v42 = vrot.slane %v8856_v25, 7  ;;  %v8873_v39 = vrot.slane %v8859_v57, 1  ;;  %v8819_v58 = vadd.f32 %v8818_v48, %v8765_v0 }
 0xfff   : > { %v8852_v44 = vmul.f32 %v8847_v1, %v8824_v56  ;;  %v8861_v24 = vor.u32 %v8859_v57, %v8858_v42  ;;  %v8874_v26 = vor.u32 %v8873_v39, %v8856_v25  ;;  %v9177_v39 = vld [vmem:[%s15048_s24] sm:$0xff] }
0x1001   : > { %v8872_v54 = vsel %vm13788_vm5, 0, %v8861_v24  ;;  %v8854_v30 = vpack.c.bf16 %v8852_v44, %v8851_v9 }
0x1002   : > { %9106 = vmatmul.mubr.bf16.vlgmr.msra.gmra.mxu1 %v8872_v54 }
0x1003   : > { %v8863_v63 = vshrl.u32 %v8854_v30, 16  ;;  %9113 = vmatprep.mubr.bf16.mxu1 %v8854_v30  ;;  %v8866_v3 = vshll.u32 %v8854_v30, 16 }
0x1005   : > { %v8875_v60 = vrot.slane %v8866_v3, 1  ;;  %v8865_v19 = vrot.slane %v8863_v63, 7 }
0x1007   : > { %v8876_v45 = vsel %vm3199_vm0, %v8874_v26, %v8875_v60  ;;  %v8877_v10 = vor.u32 %v8875_v60, %v8863_v63  ;;  %v8868_v4 = vor.u32 %v8866_v3, %v8865_v19  ;;  %vm9182_vm0 = vcmask 261120   ;;  %v9256_v63 = vld [vmem:[#allocation34] sm:$0xff]  ;;  %v10217_v60 = vld [vmem:[%s15050_s26] ss:$0 sm:$0xff] }
0x1008   : > { %10908 = vmatprep.mubr.bf16.mxu0 %v8876_v45 }
0x1009   : > { %v8869_v51 = vsel %vm2922_vm1, %v8858_v42, %v8868_v4  ;;  %v8880_v28 = vsel %vm13929_vm12, %v8877_v10, 0  ;;  %vm9349_vm1 = vcmask 64512  }
0x100a   : > { %9114 = vmatmul.mubr.bf16.gmra.mxu1 %v8869_v51  ;;  %10909 = vmatmul.mubr.bf16.vlgmr.msra.gmra.mxu0 %v8880_v28 }
0x100b   : > { %10920 = vmatprep.mubr.msk.f32.mxu1 %vm12578_vm3, %v15201_v20  ;;  %10955 = vmatprep.mubr.msk.f32.mxu0 %vm12578_vm3, %v15201_v20 }
0x100c   : > { %10924 = vmatpush3.msra.mxu0 %v9271_v16 }
0x100d   : > { %10925 = vmatprep.subr.mxu0 %v15201_v20 }
0x100e   : > { %10926 = vmatpush3.msra.mxu0 %v9270_v55 }
0x100f   : > { %10927 = vmatprep.subr.mxu0 %v15201_v20 }
0x1010   : > { %10928 = vmatpush3.msra.mxu0 %v9269_v35 }
0x1011   : > { %10929 = vmatprep.subr.mxu0 %v15201_v20 }
0x1012   : > { %10930 = vmatpush3.msra.mxu0 %v9268_v33 }
0x1013   : > { %10931 = vmatprep.subr.mxu0 %v15201_v20 }
0x1014   : > { %10932 = vmatpush3.msra.mxu0 %v9267_v6 }
0x1015   : > { %10933 = vmatprep.subr.mxu0 %v15201_v20 }
0x1016   : > { %10934 = vmatpush3.msra.mxu0 %v9266_v31 }
0x1017   : > { %10935 = vmatprep.subr.mxu0 %v15201_v20 }
0x1018   : > { %10936 = vmatpush3.msra.mxu0 %v9265_v23 }
0x1019   : > { %10937 = vmatprep.subr.mxu0 %v15201_v20 }
0x101a   : > { %10938 = vmatpush3.msra.mxu0 %v9264_v36 }
0x101b   : > { %10939 = vmatprep.subr.mxu0 %v15201_v20 }
0x101c   : > { %10940 = vmatpush3.msra.mxu0 %v9263_v5 }
0x101d   : > { %10941 = vmatprep.subr.mxu0 %v15201_v20 }
0x101e   : > { %10942 = vmatpush3.msra.mxu0 %v9262_v47 }
0x101f   : > { %10943 = vmatprep.subr.mxu0 %v15201_v20 }
0x1020   : > { %10944 = vmatpush3.msra.mxu0 %v9261_v41 }
0x1021   : > { %10945 = vmatprep.subr.mxu0 %v15201_v20 }
0x1022   : > { %10946 = vmatpush3.msra.mxu0 %v9260_v37 }
0x1023   : > { %10947 = vmatprep.subr.mxu0 %v15201_v20 }
0x1024   : > { %10948 = vmatpush3.msra.mxu0 %v9259_v13 }
0x1025   : > { %10949 = vmatprep.subr.mxu0 %v15201_v20 }
0x1026   : > { %10950 = vmatpush3.msra.mxu0 %v9258_v12 }
0x1027   : > { %10951 = vmatprep.subr.mxu0 %v15201_v20 }
0x1028   : > { %10952 = vmatpush3.msra.mxu0 %v9257_v29 }
0x1029   : > { %10953 = vmatprep.subr.mxu0 %v15201_v20 }
0x102a   : > { %10954 = vmatpush3.msra.mxu0 %v9256_v63 }
0x10c2   : > { %v10554_v62 = vpop.f32.mrf.mxu1 }
0x10c4   : > { %v10555_v32 = vpop.f32.mrf.mxu1 }
0x10c5   : > { %v10556_v34 = vadd.f32 %v10555_v32, %v10554_v62 }
0x10c6   : > { %v10557_v27 = vpop.f32.mrf.mxu1 }
0x10c7   : > { %v9108_v14 = vadd.f32 %v10556_v34, %v14973_v8 }
0x10c8   : > { %v10558_v22 = vpop.f32.mrf.mxu1 }
0x10c9   : > { %v10559_v43 = vadd.f32 %v10558_v22, %v10557_v27 }
0x10ca   : > { %v10560_v2 = vpop.f32.mrf.mxu1  ;;  %v10910_v46 = vpop.f32.mrf.mxu0 }
0x10cb   : > { %v9111_v11 = vadd.f32 %v10559_v43, %v14975_v21 }
0x10cc   : > { %v10561_v15 = vpop.f32.mrf.mxu1  ;;  %v9156_v18 = vpop.f32.mrf.mxu0 }
0x10cd   : > { %v10562_v52 = vadd.f32 %v10561_v15, %v10560_v2  ;;  %v9157_v7 = vadd.f32 %v9156_v18, %v9108_v14 }
0x10ce   : > { %v10563_v50 = vpop.f32.mrf.mxu1  ;;  %v10911_v17 = vpop.f32.mrf.mxu0 }
0x10cf   : > { %v9116_v53 = vadd.f32 %v10562_v52, %v14977_v38  ;;  %v9171_v42 = vmax.f32 %v9157_v7, 0.0 }
0x10d0   : > { %v10564_v40 = vpop.f32.mrf.mxu1  ;;  %v9159_v59 = vpop.f32.mrf.mxu0 }
0x10d1   : > { %v10565_v61 = vadd.f32 %v10564_v40, %v10563_v50  ;;  %v9160_v25 = vadd.f32 %v9159_v59, %v9111_v11  ;;  %v9165_v56 = vadd.f32 %v10910_v46, %v9116_v53 }
0x10d3   : > { %v9119_v57 = vadd.f32 %v10565_v61, %v8819_v58  ;;  %v9172_v49 = vmax.f32 %v9160_v25, 0.0  ;;  %v9173_v44 = vmax.f32 %v9165_v56, 0.0 }
0x10d5   : > { %v9168_v1 = vadd.f32 %v10911_v17, %v9119_v57  ;;  %v9175_v9 = vpack.c.bf16 %v9172_v49, %v9171_v42 }
0x10d7   : > { %v9174_v8 = vmax.f32 %v9168_v1, 0.0  ;;  %v9179_v21 = vunpack.c.h.bf16 %v9175_v9  ;;  %v9178_v30 = vunpack.c.l.bf16 %v9175_v9 }
0x10d9   : > { %v9176_v24 = vpack.c.bf16 %v9174_v8, %v9173_v44 }
0x10db   : > { %v9181_v54 = vunpack.c.h.bf16 %v9176_v24  ;;  %v9180_v38 = vunpack.c.l.bf16 %v9176_v24 }
0x10dd   : > { %10913 = vmatpush3.msra.mxu1 %v9181_v54 }
0x10de   : > { %10914 = vmatprep.subr.mxu1 %v15201_v20 }
0x10df   : > { %10915 = vmatpush3.msra.mxu1 %v9180_v38 }
0x10e0   : > { %10916 = vmatprep.subr.mxu1 %v15201_v20 }
0x10e1   : > { %10917 = vmatpush3.msra.mxu1 %v9179_v21 }
0x10e2   : > { %10918 = vmatprep.subr.mxu1 %v15201_v20 }
0x10e3   : > { %10919 = vmatpush3.msra.mxu1 %v9178_v30 }
0x10e4   : > { %10921 = vmatmul.mubr.msk.f32.vlgmr.msra.gmra.mxu1 %vm9182_vm0, %v9177_v39 }
0x11a4   : > { %v9252_v3 = vpop.f32.mrf.mxu1 }
0x11a5   : > { %10956 = vmatmul.mubr.f32.vlgmr.msra.gmra.mxu0 %v9252_v3 }
0x11a6   : > { %v10922_v26 = vpop.f32.mrf.mxu1 }
0x1265   : > { %v9345_v19 = vpop.f32.mrf.mxu0 }
0x1266   : > { %v9346_v20 = vadd.f32 %v10217_v60, %v9345_v19 }
0x1267   : > { %v10957_v45 = vpop.f32.mrf.mxu0 }
0x1268   : > { %9350 = vst.msk [vmem:[%s1138_s9] sm:$0xff] %vm9349_vm1, %v9346_v20 }
0x1269 PF: > { %s15203_s0 = sld [smem:[#allocation48_spill]] }
0x126f   : > { %s49_s7 = sadd.s32 1, %s15203_s0  }
0x1270   : > { %p46_p5 = scmp.ge.s32.totalorder %s49_s7, 4  }
0x1272   :  { %48 = sbr.rel (!%p46_p5) target bundleno = 29 (0x1d), region = 247 }
0x1277   :  { %9370 = vsyncpa [#allocation3], 1 }
0x1278   :  { %9372 = vsyncpa [#allocation3 + $0x1], 1 }
0x1279   :  { %9373 = vsyncpa [#allocation5], 1 }
0x127a   :  { %9374 = vsyncpa [#allocation8], 1 }
0x127b   :  { %9375 = vsyncpa [#allocation11], 1 }
0x127c   :  { %9376 = vsyncpa [#allocation14], 1 }
0x127d   :  { %9377 = vsyncpa [#allocation17], 1 }
0x127e   :  { %9378 = vsyncpa [#allocation20], 1 }
0x127f   :  { %9379 = vsyncpa [#allocation23], 1 }
0x1280   :  { %9380 = vsyncpa [#allocation26], 1 }
0x1281   :  { %9381 = vsyncpa [#allocation29], 1 }
0x1282   :  { %9382 = vsyncpa [#allocation32], 1 }
0x1283   :  { %9383 = vsyncpa [#allocation35], 1 }

</bundles_post_ra>
